<compile_context>
chip_gen: v7x
topology: tpu7x:2x2x1
jax: 0.10.0
libtpu: 0.0.40
codegen_flags: <defaults>
</compile_context>

<pallas_src>
import numpy as np
import jax
import jax.numpy as jnp
from jax.experimental import pallas as pl
from jax.experimental.pallas import tpu as pltpu


# ---------------------------------------------------------------------------
# Model configuration (mirrors PyTorchModelTreeConnect)
# ---------------------------------------------------------------------------
_CONV_CFG = [  # (name, Cin, Cout, k, stride, pad)
    ("conv1", 3, 64, 3, 1, 1),
    ("conv2", 64, 64, 3, 1, 1),
    ("conv3", 64, 128, 4, 2, 1),
    ("conv4", 128, 128, 3, 1, 1),
    ("conv5", 128, 128, 3, 1, 1),
    ("conv6", 128, 256, 4, 2, 1),
]
_FC_CFG = [("dense1", 2048, 256), ("dense2", 256, 128), ("dense3", 128, 10)]


def init_params(key):
    """Synthetic parameters in PyTorch layouts (Cout,Cin,kh,kw) / (out,in)."""
    params = {}
    for name, cin, cout, k, _, _ in _CONV_CFG:
        key, k1, k2 = jax.random.split(key, 3)
        fan_in = cin * k * k
        params[name + "_w"] = (jax.random.normal(k1, (cout, cin, k, k), jnp.float32)
                               * np.sqrt(2.0 / fan_in))
        params[name + "_b"] = jax.random.normal(k2, (cout,), jnp.float32) * 0.01
    for name, fin, fout in _FC_CFG:
        key, k1, k2 = jax.random.split(key, 3)
        params[name + "_w"] = (jax.random.normal(k1, (fout, fin), jnp.float32)
                               * np.sqrt(2.0 / fin))
        params[name + "_b"] = jax.random.normal(k2, (fout,), jnp.float32) * 0.01
    return params


# ---------------------------------------------------------------------------
# Precomputed 0/1 scatter matrices: dense conv output -> next padded image
# Dense layout: row p = r*Wp + c  (window start (r,c) in padded coords).
# Real output pixel (oh,ow) of a stride-s conv lives at p = s*oh*Wp + s*ow.
# ---------------------------------------------------------------------------
def _selection(rows, cols, entries):
    s = np.zeros((rows, cols), np.float32)
    for q, p_ in entries:
        s[q, p_] = 1.0
    return jnp.asarray(s)


def build_selection_matrices():
    m = {}
    # conv1 out (8x16, Wp=18) -> conv2 padded image (10x18), R=184
    m["S1"] = _selection(184, 144, [((oh + 1) * 18 + ow + 1, oh * 18 + ow)
                                    for oh in range(8) for ow in range(16)])
    # conv2 out (8x16) -> conv3 padded image (10x18), R=192
    m["S2"] = _selection(192, 144, [((oh + 1) * 18 + ow + 1, oh * 18 + ow)
                                    for oh in range(8) for ow in range(16)])
    # conv3 out (4x8, stride 2 over Wp=18) -> conv4 padded image (6x10), R=64
    m["S3"] = _selection(64, 128, [((oh + 1) * 10 + ow + 1, 2 * oh * 18 + 2 * ow)
                                   for oh in range(4) for ow in range(8)])
    # conv4 out (4x8, Wp=10) -> conv5 padded image (6x10), R=64
    m["S4"] = _selection(64, 40, [((oh + 1) * 10 + ow + 1, oh * 10 + ow)
                                  for oh in range(4) for ow in range(8)])
    # conv5 out (4x8) -> conv6 padded image (6x10), R=72
    m["S5"] = _selection(72, 40, [((oh + 1) * 10 + ow + 1, oh * 10 + ow)
                                  for oh in range(4) for ow in range(8)])
    # conv6 out (2x4, stride 2 over Wp=10) -> 8 flattened spatial positions
    m["S6"] = _selection(8, 32, [(oh * 4 + ow, 2 * oh * 10 + 2 * ow)
                                 for oh in range(2) for ow in range(4)])
    return m


def prepare_params(params):
    """One-time (outside jit) conversion to matmul-ready bf16 layout."""
    p = {}
    for name, cin, cout, k, _, _ in _CONV_CFG:
        w = params[name + "_w"]                                   # (Cout,Cin,k,k)
        wm = jnp.transpose(w, (2, 3, 1, 0)).reshape(k * k * cin, cout)
        if name == "conv1":                                       # K 27 -> 32
            wm = jnp.pad(wm, ((0, 32 - 27), (0, 0)))
        p[name + "_w"] = wm.astype(jnp.bfloat16)
        p[name + "_b"] = params[name + "_b"].reshape(1, cout).astype(jnp.float32)
    # dense1: reorder rows so feature index is (spatial_pos * 256 + channel)
    w1 = params["dense1_w"]                                       # (256, 2048)
    w1r = jnp.transpose(w1.reshape(256, 256, 8), (2, 1, 0)).reshape(2048, 256)
    p["dense1_w"] = w1r.astype(jnp.bfloat16)
    p["dense1_b"] = params["dense1_b"].reshape(1, 256).astype(jnp.float32)
    p["dense2_w"] = params["dense2_w"].T.astype(jnp.bfloat16)     # (256, 128)
    p["dense2_b"] = params["dense2_b"].reshape(1, 128).astype(jnp.float32)
    w3 = jnp.pad(params["dense3_w"].T, ((0, 0), (0, 118)))        # (128, 128)
    p["dense3_w"] = w3.astype(jnp.bfloat16)
    p["dense3_b"] = jnp.pad(params["dense3_b"], (0, 118),
                            constant_values=-1e30).reshape(1, 128).astype(jnp.float32)
    p.update(build_selection_matrices())
    return p


# ---------------------------------------------------------------------------
# Fused kernel: whole network for one sample per grid step
# ---------------------------------------------------------------------------
def _fused_kernel(x1_ref,
                  w1_ref, b1_ref, s1_ref,
                  w2_ref, b2_ref, s2_ref,
                  w3_ref, b3_ref, s3_ref,
                  w4_ref, b4_ref, s4_ref,
                  w5_ref, b5_ref, s5_ref,
                  w6_ref, b6_ref, s6_ref,
                  wd1_ref, bd1_ref, wd2_ref, bd2_ref, wd3_ref, bd3_ref,
                  o_ref,
                  p2_scr, p3_scr, p4_scr, p5_scr, p6_scr):
    f32 = jnp.float32
    bf16 = jnp.bfloat16

    def conv(act, s_ref, w_ref, b_ref, p_scr, k, wp, n, cin, cout):
        # scatter previous outputs into the zero-padded flat image (VMEM scratch)
        p_scr[...] = jnp.dot(s_ref[...], act, preferred_element_type=f32)
        acc = jnp.zeros((n, cout), f32)
        for ki in range(k):
            for kj in range(k):
                off = ki * wp + kj
                lhs = p_scr[off:off + n, :].astype(bf16)
                j = ki * k + kj
                rhs = w_ref[j * cin:(j + 1) * cin, :]
                acc = acc + jnp.dot(lhs, rhs, preferred_element_type=f32)
        return jnp.maximum(acc + b_ref[...], 0.0)

    # conv1: input is already im2col'd on the host -> one matmul
    d1 = jnp.dot(x1_ref[0], w1_ref[...], preferred_element_type=f32)   # (144, 64)
    a = jnp.maximum(d1 + b1_ref[...], 0.0)

    a = conv(a, s1_ref, w2_ref, b2_ref, p2_scr, 3, 18, 144, 64, 64)    # (144, 64)
    a = conv(a, s2_ref, w3_ref, b3_ref, p3_scr, 4, 18, 128, 64, 128)   # (128,128)
    a = conv(a, s3_ref, w4_ref, b4_ref, p4_scr, 3, 10, 40, 128, 128)   # (40, 128)
    a = conv(a, s4_ref, w5_ref, b5_ref, p5_scr, 3, 10, 40, 128, 128)   # (40, 128)
    a = conv(a, s5_ref, w6_ref, b6_ref, p6_scr, 4, 10, 32, 128, 256)   # (32, 256)

    # select the 8 real conv6 outputs (row-major spatial order)
    feat = jnp.dot(s6_ref[...], a, preferred_element_type=f32)         # (8, 256)

    # dense1 as 8 accumulated (1,256)@(256,256) matmuls (avoids lane-reshape)
    h = jnp.zeros((1, 256), f32)
    for pos in range(8):
        lhs = feat[pos:pos + 1, :].astype(bf16)
        rhs = wd1_ref[pos * 256:(pos + 1) * 256, :]
        h = h + jnp.dot(lhs, rhs, preferred_element_type=f32)
    h = jnp.maximum(h + bd1_ref[...], 0.0)
    h = jnp.dot(h.astype(bf16), wd2_ref[...], preferred_element_type=f32)
    h = jnp.maximum(h + bd2_ref[...], 0.0)
    logits = jnp.dot(h.astype(bf16), wd3_ref[...],
                     preferred_element_type=f32) + bd3_ref[...]
    # padded logit lanes carry a -1e30 bias -> exp underflows to 0, harmless.
    m = jnp.max(logits, axis=-1, keepdims=True)
    z = logits - m
    lse = jnp.log(jnp.sum(jnp.exp(z), axis=-1, keepdims=True))
    o_ref[0] = (z - lse).astype(o_ref.dtype)


def _const_spec(arr):
    nd = arr.ndim
    return pl.BlockSpec(arr.shape, lambda b, _nd=nd: (0,) * _nd)


def forward(p, x_nchw):
    B = x_nchw.shape[0]
    # conv1 im2col on the raw input only (tiny; no intermediate HBM traffic).
    xh = jnp.transpose(x_nchw, (0, 2, 3, 1))                     # (B, 8, 16, 3)
    xp = jnp.pad(xh, ((0, 0), (1, 1), (1, 3), (0, 0)))           # (B, 10, 20, 3)
    cols = [xp[:, ki:ki + 8, kj:kj + 18, :]
            for ki in range(3) for kj in range(3)]
    x1 = jnp.concatenate(cols, axis=-1).reshape(B, 144, 27)
    x1 = jnp.pad(x1, ((0, 0), (0, 0), (0, 5))).astype(jnp.bfloat16)  # (B,144,32)

    ins = [x1,
           p["conv1_w"], p["conv1_b"], p["S1"],
           p["conv2_w"], p["conv2_b"], p["S2"],
           p["conv3_w"], p["conv3_b"], p["S3"],
           p["conv4_w"], p["conv4_b"], p["S4"],
           p["conv5_w"], p["conv5_b"], p["S5"],
           p["conv6_w"], p["conv6_b"], p["S6"],
           p["dense1_w"], p["dense1_b"],
           p["dense2_w"], p["dense2_b"],
           p["dense3_w"], p["dense3_b"]]
    in_specs = ([pl.BlockSpec((1, 144, 32), lambda b: (b, 0, 0))]
                + [_const_spec(a) for a in ins[1:]])

    out = pl.pallas_call(
        _fused_kernel,
        out_shape=jax.ShapeDtypeStruct((B, 1, 128), jnp.float32),
        grid=(B,),
        in_specs=in_specs,
        out_specs=pl.BlockSpec((1, 1, 128), lambda b: (b, 0, 0)),
        scratch_shapes=[pltpu.VMEM((184, 64), jnp.float32),
                        pltpu.VMEM((192, 64), jnp.float32),
                        pltpu.VMEM((64, 128), jnp.float32),
                        pltpu.VMEM((64, 128), jnp.float32),
                        pltpu.VMEM((72, 128), jnp.float32)],
        compiler_params=pltpu.CompilerParams(
            dimension_semantics=("parallel",),
            vmem_limit_bytes=32 * 1024 * 1024),
    )(*ins)
    return out[:, 0, :10]


# ---------------------------------------------------------------------------
# Pure-JAX f32 reference (independent of the kernel's layout tricks)
# ---------------------------------------------------------------------------
def reference_forward(raw, x):
    a = x
    for name, cin, cout, k, s, pad in _CONV_CFG:
        w = raw[name + "_w"]
        b = raw[name + "_b"]
        a = jax.lax.conv_general_dilated(
            a, w, window_strides=(s, s), padding=[(pad, pad), (pad, pad)],
            dimension_numbers=("NCHW", "OIHW", "NCHW"))
        a = jax.nn.relu(a + b[None, :, None, None])
    a = a.reshape(a.shape[0], -1)
    for name, fin, fout in _FC_CFG:
        a = a @ raw[name + "_w"].T + raw[name + "_b"]
        if name != "dense3":
            a = jax.nn.relu(a)
    return jax.nn.log_softmax(a, axis=-1)


if __name__ == "__main__":
    key = jax.random.PRNGKey(0)
    pkey, xkey = jax.random.split(key)
    raw = init_params(pkey)
    prepped = prepare_params(raw)
    # Spatial (8, 16): conv6 output is (256, 2, 4) -> flatten = 2048, exactly
    # matching dense1's in_features as the module requires.
    x = jax.random.normal(xkey, (2, 3, 8, 16), jnp.float32)

    out = jax.jit(forward)(prepped, x)
    out = jax.block_until_ready(out)
    assert out.shape == (2, 10), out.shape

    # log_softmax rows must sum to 1 in prob space.
    assert bool(jnp.all(jnp.abs(jnp.sum(jnp.exp(out), axis=1) - 1.0) < 1e-3))
    # compare against an independent f32 reference (loose tol: bf16 weights).
    ref = reference_forward(raw, x)
    max_diff = float(jnp.max(jnp.abs(out - ref)))
    assert max_diff < 0.35, f"mismatch vs reference: {max_diff}"
    print("KERNEL_OK")
</pallas_src>

<mosaic_0001>
module attributes {stable_mosaic.version = 11 : i64} {
  func.func @_fused_kernel(%arg0: i32, %arg1: memref<1x144x32xbf16, #tpu.memory_space<vmem>>, %arg2: memref<32x64xbf16, #tpu.memory_space<vmem>>, %arg3: memref<1x64xf32, #tpu.memory_space<vmem>>, %arg4: memref<184x144xf32, #tpu.memory_space<vmem>>, %arg5: memref<576x64xbf16, #tpu.memory_space<vmem>>, %arg6: memref<1x64xf32, #tpu.memory_space<vmem>>, %arg7: memref<192x144xf32, #tpu.memory_space<vmem>>, %arg8: memref<1024x128xbf16, #tpu.memory_space<vmem>>, %arg9: memref<1x128xf32, #tpu.memory_space<vmem>>, %arg10: memref<64x128xf32, #tpu.memory_space<vmem>>, %arg11: memref<1152x128xbf16, #tpu.memory_space<vmem>>, %arg12: memref<1x128xf32, #tpu.memory_space<vmem>>, %arg13: memref<64x40xf32, #tpu.memory_space<vmem>>, %arg14: memref<1152x128xbf16, #tpu.memory_space<vmem>>, %arg15: memref<1x128xf32, #tpu.memory_space<vmem>>, %arg16: memref<72x40xf32, #tpu.memory_space<vmem>>, %arg17: memref<2048x256xbf16, #tpu.memory_space<vmem>>, %arg18: memref<1x256xf32, #tpu.memory_space<vmem>>, %arg19: memref<8x32xf32, #tpu.memory_space<vmem>>, %arg20: memref<2048x256xbf16, #tpu.memory_space<vmem>>, %arg21: memref<1x256xf32, #tpu.memory_space<vmem>>, %arg22: memref<256x128xbf16, #tpu.memory_space<vmem>>, %arg23: memref<1x128xf32, #tpu.memory_space<vmem>>, %arg24: memref<128x128xbf16, #tpu.memory_space<vmem>>, %arg25: memref<1x128xf32, #tpu.memory_space<vmem>>, %arg26: memref<1x1x128xf32, #tpu.memory_space<vmem>>, %arg27: memref<184x64xf32, #tpu.memory_space<vmem>>, %arg28: memref<192x64xf32, #tpu.memory_space<vmem>>, %arg29: memref<64x128xf32, #tpu.memory_space<vmem>>, %arg30: memref<64x128xf32, #tpu.memory_space<vmem>>, %arg31: memref<72x128xf32, #tpu.memory_space<vmem>>) attributes {dimension_semantics = [#tpu.dimension_semantics<parallel>], iteration_bounds = array<i64: 2>, scalar_prefetch = 0 : i64, scratch_operands = 5 : i64, tpu.core_type = #tpu.core_type<tc>, window_params = [{transform_indices = @transform_0, window_bounds = array<i64: 1, 144, 32>}, {pipeline_mode = #tpu.pipeline_mode<synchronous>, transform_indices = @transform_1, window_bounds = array<i64: 32, 64>}, {pipeline_mode = #tpu.pipeline_mode<synchronous>, transform_indices = @transform_2, window_bounds = array<i64: 1, 64>}, {pipeline_mode = #tpu.pipeline_mode<synchronous>, transform_indices = @transform_3, window_bounds = array<i64: 184, 144>}, {pipeline_mode = #tpu.pipeline_mode<synchronous>, transform_indices = @transform_4, window_bounds = array<i64: 576, 64>}, {pipeline_mode = #tpu.pipeline_mode<synchronous>, transform_indices = @transform_5, window_bounds = array<i64: 1, 64>}, {pipeline_mode = #tpu.pipeline_mode<synchronous>, transform_indices = @transform_6, window_bounds = array<i64: 192, 144>}, {pipeline_mode = #tpu.pipeline_mode<synchronous>, transform_indices = @transform_7, window_bounds = array<i64: 1024, 128>}, {pipeline_mode = #tpu.pipeline_mode<synchronous>, transform_indices = @transform_8, window_bounds = array<i64: 1, 128>}, {pipeline_mode = #tpu.pipeline_mode<synchronous>, transform_indices = @transform_9, window_bounds = array<i64: 64, 128>}, {pipeline_mode = #tpu.pipeline_mode<synchronous>, transform_indices = @transform_10, window_bounds = array<i64: 1152, 128>}, {pipeline_mode = #tpu.pipeline_mode<synchronous>, transform_indices = @transform_11, window_bounds = array<i64: 1, 128>}, {pipeline_mode = #tpu.pipeline_mode<synchronous>, transform_indices = @transform_12, window_bounds = array<i64: 64, 40>}, {pipeline_mode = #tpu.pipeline_mode<synchronous>, transform_indices = @transform_13, window_bounds = array<i64: 1152, 128>}, {pipeline_mode = #tpu.pipeline_mode<synchronous>, transform_indices = @transform_14, window_bounds = array<i64: 1, 128>}, {pipeline_mode = #tpu.pipeline_mode<synchronous>, transform_indices = @transform_15, window_bounds = array<i64: 72, 40>}, {pipeline_mode = #tpu.pipeline_mode<synchronous>, transform_indices = @transform_16, window_bounds = array<i64: 2048, 256>}, {pipeline_mode = #tpu.pipeline_mode<synchronous>, transform_indices = @transform_17, window_bounds = array<i64: 1, 256>}, {pipeline_mode = #tpu.pipeline_mode<synchronous>, transform_indices = @transform_18, window_bounds = array<i64: 8, 32>}, {pipeline_mode = #tpu.pipeline_mode<synchronous>, transform_indices = @transform_19, window_bounds = array<i64: 2048, 256>}, {pipeline_mode = #tpu.pipeline_mode<synchronous>, transform_indices = @transform_20, window_bounds = array<i64: 1, 256>}, {pipeline_mode = #tpu.pipeline_mode<synchronous>, transform_indices = @transform_21, window_bounds = array<i64: 256, 128>}, {pipeline_mode = #tpu.pipeline_mode<synchronous>, transform_indices = @transform_22, window_bounds = array<i64: 1, 128>}, {pipeline_mode = #tpu.pipeline_mode<synchronous>, transform_indices = @transform_23, window_bounds = array<i64: 128, 128>}, {pipeline_mode = #tpu.pipeline_mode<synchronous>, transform_indices = @transform_24, window_bounds = array<i64: 1, 128>}, {transform_indices = @transform_25, window_bounds = array<i64: 1, 1, 128>}]} {
    %c0 = arith.constant 0 : index
    %c0_0 = arith.constant 0 : index
    %c0_1 = arith.constant 0 : index
    %0 = vector.load %arg1[%c0, %c0_0, %c0_1] : memref<1x144x32xbf16, #tpu.memory_space<vmem>>, vector<1x144x32xbf16>
    %1 = vector.shape_cast %0 : vector<1x144x32xbf16> to vector<144x32xbf16>
    %c0_2 = arith.constant 0 : index
    %c0_3 = arith.constant 0 : index
    %2 = vector.load %arg2[%c0_2, %c0_3] : memref<32x64xbf16, #tpu.memory_space<vmem>>, vector<32x64xbf16>
    %cst = arith.constant dense<0.000000e+00> : vector<144x64xf32>
    %3 = tpu.matmul %1, %2, %cst {dimension_numbers = #tpu.dot_dimension_numbers<[1], [0], [0], [1], [0, 0, 1, 1], [], []>} : vector<144x32xbf16>, vector<32x64xbf16>, vector<144x64xf32> -> vector<144x64xf32>
    %c0_4 = arith.constant 0 : index
    %c0_5 = arith.constant 0 : index
    %4 = vector.load %arg3[%c0_4, %c0_5] : memref<1x64xf32, #tpu.memory_space<vmem>>, vector<1x64xf32>
    %5 = vector.broadcast %4 : vector<1x64xf32> to vector<144x64xf32>
    %6 = arith.addf %3, %5 : vector<144x64xf32>
    %cst_6 = arith.constant 0.000000e+00 : f32
    %7 = vector.broadcast %cst_6 : f32 to vector<144x64xf32>
    %8 = arith.maximumf %6, %7 : vector<144x64xf32>
    %c0_7 = arith.constant 0 : index
    %c0_8 = arith.constant 0 : index
    %9 = vector.load %arg4[%c0_7, %c0_8] : memref<184x144xf32, #tpu.memory_space<vmem>>, vector<184x144xf32>
    %cst_9 = arith.constant dense<0.000000e+00> : vector<184x64xf32>
    %10 = tpu.matmul %9, %8, %cst_9 {dimension_numbers = #tpu.dot_dimension_numbers<[1], [0], [0], [1], [0, 0, 1, 1], [], []>} : vector<184x144xf32>, vector<144x64xf32>, vector<184x64xf32> -> vector<184x64xf32>
    %c0_10 = arith.constant 0 : index
    %c0_11 = arith.constant 0 : index
    %11 = vector.load %arg27[%c0_10, %c0_11] : memref<184x64xf32, #tpu.memory_space<vmem>>, vector<184x64xf32>
    tpu.vector_store %arg27[%c0_10, %c0_11], %10 {strides = array<i32>} : memref<184x64xf32, #tpu.memory_space<vmem>>, vector<184x64xf32>,
    %cst_12 = arith.constant 0.000000e+00 : f32
    %12 = vector.broadcast %cst_12 : f32 to vector<144x64xf32>
    %c0_13 = arith.constant 0 : index
    %c0_14 = arith.constant 0 : index
    %13 = vector.load %arg27[%c0_13, %c0_14] : memref<184x64xf32, #tpu.memory_space<vmem>>, vector<144x64xf32>
    %14 = arith.truncf %13 : vector<144x64xf32> to vector<144x64xbf16>
    %c0_15 = arith.constant 0 : index
    %c0_16 = arith.constant 0 : index
    %15 = vector.load %arg5[%c0_15, %c0_16] : memref<576x64xbf16, #tpu.memory_space<vmem>>, vector<64x64xbf16>
    %cst_17 = arith.constant dense<0.000000e+00> : vector<144x64xf32>
    %16 = tpu.matmul %14, %15, %cst_17 {dimension_numbers = #tpu.dot_dimension_numbers<[1], [0], [0], [1], [0, 0, 1, 1], [], []>} : vector<144x64xbf16>, vector<64x64xbf16>, vector<144x64xf32> -> vector<144x64xf32>
    %17 = arith.addf %12, %16 : vector<144x64xf32>
    %c1 = arith.constant 1 : index
    %c0_18 = arith.constant 0 : index
    %18 = vector.load %arg27[%c1, %c0_18] : memref<184x64xf32, #tpu.memory_space<vmem>>, vector<144x64xf32>
    %19 = arith.truncf %18 : vector<144x64xf32> to vector<144x64xbf16>
    %c64 = arith.constant 64 : index
    %c0_19 = arith.constant 0 : index
    %20 = vector.load %arg5[%c64, %c0_19] : memref<576x64xbf16, #tpu.memory_space<vmem>>, vector<64x64xbf16>
    %cst_20 = arith.constant dense<0.000000e+00> : vector<144x64xf32>
    %21 = tpu.matmul %19, %20, %cst_20 {dimension_numbers = #tpu.dot_dimension_numbers<[1], [0], [0], [1], [0, 0, 1, 1], [], []>} : vector<144x64xbf16>, vector<64x64xbf16>, vector<144x64xf32> -> vector<144x64xf32>
    %22 = arith.addf %17, %21 : vector<144x64xf32>
    %c2 = arith.constant 2 : index
    %c0_21 = arith.constant 0 : index
    %23 = vector.load %arg27[%c2, %c0_21] : memref<184x64xf32, #tpu.memory_space<vmem>>, vector<144x64xf32>
    %24 = arith.truncf %23 : vector<144x64xf32> to vector<144x64xbf16>
    %c128 = arith.constant 128 : index
    %c0_22 = arith.constant 0 : index
    %25 = vector.load %arg5[%c128, %c0_22] : memref<576x64xbf16, #tpu.memory_space<vmem>>, vector<64x64xbf16>
    %cst_23 = arith.constant dense<0.000000e+00> : vector<144x64xf32>
    %26 = tpu.matmul %24, %25, %cst_23 {dimension_numbers = #tpu.dot_dimension_numbers<[1], [0], [0], [1], [0, 0, 1, 1], [], []>} : vector<144x64xbf16>, vector<64x64xbf16>, vector<144x64xf32> -> vector<144x64xf32>
    %27 = arith.addf %22, %26 : vector<144x64xf32>
    %c18 = arith.constant 18 : index
    %c0_24 = arith.constant 0 : index
    %28 = vector.load %arg27[%c18, %c0_24] : memref<184x64xf32, #tpu.memory_space<vmem>>, vector<144x64xf32>
    %29 = arith.truncf %28 : vector<144x64xf32> to vector<144x64xbf16>
    %c192 = arith.constant 192 : index
    %c0_25 = arith.constant 0 : index
    %30 = vector.load %arg5[%c192, %c0_25] : memref<576x64xbf16, #tpu.memory_space<vmem>>, vector<64x64xbf16>
    %cst_26 = arith.constant dense<0.000000e+00> : vector<144x64xf32>
    %31 = tpu.matmul %29, %30, %cst_26 {dimension_numbers = #tpu.dot_dimension_numbers<[1], [0], [0], [1], [0, 0, 1, 1], [], []>} : vector<144x64xbf16>, vector<64x64xbf16>, vector<144x64xf32> -> vector<144x64xf32>
    %32 = arith.addf %27, %31 : vector<144x64xf32>
    %c19 = arith.constant 19 : index
    %c0_27 = arith.constant 0 : index
    %33 = vector.load %arg27[%c19, %c0_27] : memref<184x64xf32, #tpu.memory_space<vmem>>, vector<144x64xf32>
    %34 = arith.truncf %33 : vector<144x64xf32> to vector<144x64xbf16>
    %c256 = arith.constant 256 : index
    %c0_28 = arith.constant 0 : index
    %35 = vector.load %arg5[%c256, %c0_28] : memref<576x64xbf16, #tpu.memory_space<vmem>>, vector<64x64xbf16>
    %cst_29 = arith.constant dense<0.000000e+00> : vector<144x64xf32>
    %36 = tpu.matmul %34, %35, %cst_29 {dimension_numbers = #tpu.dot_dimension_numbers<[1], [0], [0], [1], [0, 0, 1, 1], [], []>} : vector<144x64xbf16>, vector<64x64xbf16>, vector<144x64xf32> -> vector<144x64xf32>
    %37 = arith.addf %32, %36 : vector<144x64xf32>
    %c20 = arith.constant 20 : index
    %c0_30 = arith.constant 0 : index
    %38 = vector.load %arg27[%c20, %c0_30] : memref<184x64xf32, #tpu.memory_space<vmem>>, vector<144x64xf32>
    %39 = arith.truncf %38 : vector<144x64xf32> to vector<144x64xbf16>
    %c320 = arith.constant 320 : index
    %c0_31 = arith.constant 0 : index
    %40 = vector.load %arg5[%c320, %c0_31] : memref<576x64xbf16, #tpu.memory_space<vmem>>, vector<64x64xbf16>
    %cst_32 = arith.constant dense<0.000000e+00> : vector<144x64xf32>
    %41 = tpu.matmul %39, %40, %cst_32 {dimension_numbers = #tpu.dot_dimension_numbers<[1], [0], [0], [1], [0, 0, 1, 1], [], []>} : vector<144x64xbf16>, vector<64x64xbf16>, vector<144x64xf32> -> vector<144x64xf32>
    %42 = arith.addf %37, %41 : vector<144x64xf32>
    %c36 = arith.constant 36 : index
    %c0_33 = arith.constant 0 : index
    %43 = vector.load %arg27[%c36, %c0_33] : memref<184x64xf32, #tpu.memory_space<vmem>>, vector<144x64xf32>
    %44 = arith.truncf %43 : vector<144x64xf32> to vector<144x64xbf16>
    %c384 = arith.constant 384 : index
    %c0_34 = arith.constant 0 : index
    %45 = vector.load %arg5[%c384, %c0_34] : memref<576x64xbf16, #tpu.memory_space<vmem>>, vector<64x64xbf16>
    %cst_35 = arith.constant dense<0.000000e+00> : vector<144x64xf32>
    %46 = tpu.matmul %44, %45, %cst_35 {dimension_numbers = #tpu.dot_dimension_numbers<[1], [0], [0], [1], [0, 0, 1, 1], [], []>} : vector<144x64xbf16>, vector<64x64xbf16>, vector<144x64xf32> -> vector<144x64xf32>
    %47 = arith.addf %42, %46 : vector<144x64xf32>
    %c37 = arith.constant 37 : index
    %c0_36 = arith.constant 0 : index
    %48 = vector.load %arg27[%c37, %c0_36] : memref<184x64xf32, #tpu.memory_space<vmem>>, vector<144x64xf32>
    %49 = arith.truncf %48 : vector<144x64xf32> to vector<144x64xbf16>
    %c448 = arith.constant 448 : index
    %c0_37 = arith.constant 0 : index
    %50 = vector.load %arg5[%c448, %c0_37] : memref<576x64xbf16, #tpu.memory_space<vmem>>, vector<64x64xbf16>
    %cst_38 = arith.constant dense<0.000000e+00> : vector<144x64xf32>
    %51 = tpu.matmul %49, %50, %cst_38 {dimension_numbers = #tpu.dot_dimension_numbers<[1], [0], [0], [1], [0, 0, 1, 1], [], []>} : vector<144x64xbf16>, vector<64x64xbf16>, vector<144x64xf32> -> vector<144x64xf32>
    %52 = arith.addf %47, %51 : vector<144x64xf32>
    %c38 = arith.constant 38 : index
    %c0_39 = arith.constant 0 : index
    %53 = vector.load %arg27[%c38, %c0_39] : memref<184x64xf32, #tpu.memory_space<vmem>>, vector<144x64xf32>
    %54 = arith.truncf %53 : vector<144x64xf32> to vector<144x64xbf16>
    %c512 = arith.constant 512 : index
    %c0_40 = arith.constant 0 : index
    %55 = vector.load %arg5[%c512, %c0_40] : memref<576x64xbf16, #tpu.memory_space<vmem>>, vector<64x64xbf16>
    %cst_41 = arith.constant dense<0.000000e+00> : vector<144x64xf32>
    %56 = tpu.matmul %54, %55, %cst_41 {dimension_numbers = #tpu.dot_dimension_numbers<[1], [0], [0], [1], [0, 0, 1, 1], [], []>} : vector<144x64xbf16>, vector<64x64xbf16>, vector<144x64xf32> -> vector<144x64xf32>
    %57 = arith.addf %52, %56 : vector<144x64xf32>
    %c0_42 = arith.constant 0 : index
    %c0_43 = arith.constant 0 : index
    %58 = vector.load %arg6[%c0_42, %c0_43] : memref<1x64xf32, #tpu.memory_space<vmem>>, vector<1x64xf32>
    %59 = vector.broadcast %58 : vector<1x64xf32> to vector<144x64xf32>
    %60 = arith.addf %57, %59 : vector<144x64xf32>
    %cst_44 = arith.constant 0.000000e+00 : f32
    %61 = vector.broadcast %cst_44 : f32 to vector<144x64xf32>
    %62 = arith.maximumf %60, %61 : vector<144x64xf32>
    %c0_45 = arith.constant 0 : index
    %c0_46 = arith.constant 0 : index
    %63 = vector.load %arg7[%c0_45, %c0_46] : memref<192x144xf32, #tpu.memory_space<vmem>>, vector<192x144xf32>
    %cst_47 = arith.constant dense<0.000000e+00> : vector<192x64xf32>
    %64 = tpu.matmul %63, %62, %cst_47 {dimension_numbers = #tpu.dot_dimension_numbers<[1], [0], [0], [1], [0, 0, 1, 1], [], []>} : vector<192x144xf32>, vector<144x64xf32>, vector<192x64xf32> -> vector<192x64xf32>
    %c0_48 = arith.constant 0 : index
    %c0_49 = arith.constant 0 : index
    %65 = vector.load %arg28[%c0_48, %c0_49] : memref<192x64xf32, #tpu.memory_space<vmem>>, vector<192x64xf32>
    tpu.vector_store %arg28[%c0_48, %c0_49], %64 {strides = array<i32>} : memref<192x64xf32, #tpu.memory_space<vmem>>, vector<192x64xf32>,
    %cst_50 = arith.constant 0.000000e+00 : f32
    %66 = vector.broadcast %cst_50 : f32 to vector<128x128xf32>
    %c0_51 = arith.constant 0 : index
    %c0_52 = arith.constant 0 : index
    %67 = vector.load %arg28[%c0_51, %c0_52] : memref<192x64xf32, #tpu.memory_space<vmem>>, vector<128x64xf32>
    %68 = arith.truncf %67 : vector<128x64xf32> to vector<128x64xbf16>
    %c0_53 = arith.constant 0 : index
    %c0_54 = arith.constant 0 : index
    %69 = vector.load %arg8[%c0_53, %c0_54] : memref<1024x128xbf16, #tpu.memory_space<vmem>>, vector<64x128xbf16>
    %cst_55 = arith.constant dense<0.000000e+00> : vector<128x128xf32>
    %70 = tpu.matmul %68, %69, %cst_55 {dimension_numbers = #tpu.dot_dimension_numbers<[1], [0], [0], [1], [0, 0, 1, 1], [], []>} : vector<128x64xbf16>, vector<64x128xbf16>, vector<128x128xf32> -> vector<128x128xf32>
    %71 = arith.addf %66, %70 : vector<128x128xf32>
    %c1_56 = arith.constant 1 : index
    %c0_57 = arith.constant 0 : index
    %72 = vector.load %arg28[%c1_56, %c0_57] : memref<192x64xf32, #tpu.memory_space<vmem>>, vector<128x64xf32>
    %73 = arith.truncf %72 : vector<128x64xf32> to vector<128x64xbf16>
    %c64_58 = arith.constant 64 : index
    %c0_59 = arith.constant 0 : index
    %74 = vector.load %arg8[%c64_58, %c0_59] : memref<1024x128xbf16, #tpu.memory_space<vmem>>, vector<64x128xbf16>
    %cst_60 = arith.constant dense<0.000000e+00> : vector<128x128xf32>
    %75 = tpu.matmul %73, %74, %cst_60 {dimension_numbers = #tpu.dot_dimension_numbers<[1], [0], [0], [1], [0, 0, 1, 1], [], []>} : vector<128x64xbf16>, vector<64x128xbf16>, vector<128x128xf32> -> vector<128x128xf32>
    %76 = arith.addf %71, %75 : vector<128x128xf32>
    %c2_61 = arith.constant 2 : index
    %c0_62 = arith.constant 0 : index
    %77 = vector.load %arg28[%c2_61, %c0_62] : memref<192x64xf32, #tpu.memory_space<vmem>>, vector<128x64xf32>
    %78 = arith.truncf %77 : vector<128x64xf32> to vector<128x64xbf16>
    %c128_63 = arith.constant 128 : index
    %c0_64 = arith.constant 0 : index
    %79 = vector.load %arg8[%c128_63, %c0_64] : memref<1024x128xbf16, #tpu.memory_space<vmem>>, vector<64x128xbf16>
    %cst_65 = arith.constant dense<0.000000e+00> : vector<128x128xf32>
    %80 = tpu.matmul %78, %79, %cst_65 {dimension_numbers = #tpu.dot_dimension_numbers<[1], [0], [0], [1], [0, 0, 1, 1], [], []>} : vector<128x64xbf16>, vector<64x128xbf16>, vector<128x128xf32> -> vector<128x128xf32>
    %81 = arith.addf %76, %80 : vector<128x128xf32>
    %c3 = arith.constant 3 : index
    %c0_66 = arith.constant 0 : index
    %82 = vector.load %arg28[%c3, %c0_66] : memref<192x64xf32, #tpu.memory_space<vmem>>, vector<128x64xf32>
    %83 = arith.truncf %82 : vector<128x64xf32> to vector<128x64xbf16>
    %c192_67 = arith.constant 192 : index
    %c0_68 = arith.constant 0 : index
    %84 = vector.load %arg8[%c192_67, %c0_68] : memref<1024x128xbf16, #tpu.memory_space<vmem>>, vector<64x128xbf16>
    %cst_69 = arith.constant dense<0.000000e+00> : vector<128x128xf32>
    %85 = tpu.matmul %83, %84, %cst_69 {dimension_numbers = #tpu.dot_dimension_numbers<[1], [0], [0], [1], [0, 0, 1, 1], [], []>} : vector<128x64xbf16>, vector<64x128xbf16>, vector<128x128xf32> -> vector<128x128xf32>
    %86 = arith.addf %81, %85 : vector<128x128xf32>
    %c18_70 = arith.constant 18 : index
    %c0_71 = arith.constant 0 : index
    %87 = vector.load %arg28[%c18_70, %c0_71] : memref<192x64xf32, #tpu.memory_space<vmem>>, vector<128x64xf32>
    %88 = arith.truncf %87 : vector<128x64xf32> to vector<128x64xbf16>
    %c256_72 = arith.constant 256 : index
    %c0_73 = arith.constant 0 : index
    %89 = vector.load %arg8[%c256_72, %c0_73] : memref<1024x128xbf16, #tpu.memory_space<vmem>>, vector<64x128xbf16>
    %cst_74 = arith.constant dense<0.000000e+00> : vector<128x128xf32>
    %90 = tpu.matmul %88, %89, %cst_74 {dimension_numbers = #tpu.dot_dimension_numbers<[1], [0], [0], [1], [0, 0, 1, 1], [], []>} : vector<128x64xbf16>, vector<64x128xbf16>, vector<128x128xf32> -> vector<128x128xf32>
    %91 = arith.addf %86, %90 : vector<128x128xf32>
    %c19_75 = arith.constant 19 : index
    %c0_76 = arith.constant 0 : index
    %92 = vector.load %arg28[%c19_75, %c0_76] : memref<192x64xf32, #tpu.memory_space<vmem>>, vector<128x64xf32>
    %93 = arith.truncf %92 : vector<128x64xf32> to vector<128x64xbf16>
    %c320_77 = arith.constant 320 : index
    %c0_78 = arith.constant 0 : index
    %94 = vector.load %arg8[%c320_77, %c0_78] : memref<1024x128xbf16, #tpu.memory_space<vmem>>, vector<64x128xbf16>
    %cst_79 = arith.constant dense<0.000000e+00> : vector<128x128xf32>
    %95 = tpu.matmul %93, %94, %cst_79 {dimension_numbers = #tpu.dot_dimension_numbers<[1], [0], [0], [1], [0, 0, 1, 1], [], []>} : vector<128x64xbf16>, vector<64x128xbf16>, vector<128x128xf32> -> vector<128x128xf32>
    %96 = arith.addf %91, %95 : vector<128x128xf32>
    %c20_80 = arith.constant 20 : index
    %c0_81 = arith.constant 0 : index
    %97 = vector.load %arg28[%c20_80, %c0_81] : memref<192x64xf32, #tpu.memory_space<vmem>>, vector<128x64xf32>
    %98 = arith.truncf %97 : vector<128x64xf32> to vector<128x64xbf16>
    %c384_82 = arith.constant 384 : index
    %c0_83 = arith.constant 0 : index
    %99 = vector.load %arg8[%c384_82, %c0_83] : memref<1024x128xbf16, #tpu.memory_space<vmem>>, vector<64x128xbf16>
    %cst_84 = arith.constant dense<0.000000e+00> : vector<128x128xf32>
    %100 = tpu.matmul %98, %99, %cst_84 {dimension_numbers = #tpu.dot_dimension_numbers<[1], [0], [0], [1], [0, 0, 1, 1], [], []>} : vector<128x64xbf16>, vector<64x128xbf16>, vector<128x128xf32> -> vector<128x128xf32>
    %101 = arith.addf %96, %100 : vector<128x128xf32>
    %c21 = arith.constant 21 : index
    %c0_85 = arith.constant 0 : index
    %102 = vector.load %arg28[%c21, %c0_85] : memref<192x64xf32, #tpu.memory_space<vmem>>, vector<128x64xf32>
    %103 = arith.truncf %102 : vector<128x64xf32> to vector<128x64xbf16>
    %c448_86 = arith.constant 448 : index
    %c0_87 = arith.constant 0 : index
    %104 = vector.load %arg8[%c448_86, %c0_87] : memref<1024x128xbf16, #tpu.memory_space<vmem>>, vector<64x128xbf16>
    %cst_88 = arith.constant dense<0.000000e+00> : vector<128x128xf32>
    %105 = tpu.matmul %103, %104, %cst_88 {dimension_numbers = #tpu.dot_dimension_numbers<[1], [0], [0], [1], [0, 0, 1, 1], [], []>} : vector<128x64xbf16>, vector<64x128xbf16>, vector<128x128xf32> -> vector<128x128xf32>
    %106 = arith.addf %101, %105 : vector<128x128xf32>
    %c36_89 = arith.constant 36 : index
    %c0_90 = arith.constant 0 : index
    %107 = vector.load %arg28[%c36_89, %c0_90] : memref<192x64xf32, #tpu.memory_space<vmem>>, vector<128x64xf32>
    %108 = arith.truncf %107 : vector<128x64xf32> to vector<128x64xbf16>
    %c512_91 = arith.constant 512 : index
    %c0_92 = arith.constant 0 : index
    %109 = vector.load %arg8[%c512_91, %c0_92] : memref<1024x128xbf16, #tpu.memory_space<vmem>>, vector<64x128xbf16>
    %cst_93 = arith.constant dense<0.000000e+00> : vector<128x128xf32>
    %110 = tpu.matmul %108, %109, %cst_93 {dimension_numbers = #tpu.dot_dimension_numbers<[1], [0], [0], [1], [0, 0, 1, 1], [], []>} : vector<128x64xbf16>, vector<64x128xbf16>, vector<128x128xf32> -> vector<128x128xf32>
    %111 = arith.addf %106, %110 : vector<128x128xf32>
    %c37_94 = arith.constant 37 : index
    %c0_95 = arith.constant 0 : index
    %112 = vector.load %arg28[%c37_94, %c0_95] : memref<192x64xf32, #tpu.memory_space<vmem>>, vector<128x64xf32>
    %113 = arith.truncf %112 : vector<128x64xf32> to vector<128x64xbf16>
    %c576 = arith.constant 576 : index
    %c0_96 = arith.constant 0 : index
    %114 = vector.load %arg8[%c576, %c0_96] : memref<1024x128xbf16, #tpu.memory_space<vmem>>, vector<64x128xbf16>
    %cst_97 = arith.constant dense<0.000000e+00> : vector<128x128xf32>
    %115 = tpu.matmul %113, %114, %cst_97 {dimension_numbers = #tpu.dot_dimension_numbers<[1], [0], [0], [1], [0, 0, 1, 1], [], []>} : vector<128x64xbf16>, vector<64x128xbf16>, vector<128x128xf32> -> vector<128x128xf32>
    %116 = arith.addf %111, %115 : vector<128x128xf32>
    %c38_98 = arith.constant 38 : index
    %c0_99 = arith.constant 0 : index
    %117 = vector.load %arg28[%c38_98, %c0_99] : memref<192x64xf32, #tpu.memory_space<vmem>>, vector<128x64xf32>
    %118 = arith.truncf %117 : vector<128x64xf32> to vector<128x64xbf16>
    %c640 = arith.constant 640 : index
    %c0_100 = arith.constant 0 : index
    %119 = vector.load %arg8[%c640, %c0_100] : memref<1024x128xbf16, #tpu.memory_space<vmem>>, vector<64x128xbf16>
    %cst_101 = arith.constant dense<0.000000e+00> : vector<128x128xf32>
    %120 = tpu.matmul %118, %119, %cst_101 {dimension_numbers = #tpu.dot_dimension_numbers<[1], [0], [0], [1], [0, 0, 1, 1], [], []>} : vector<128x64xbf16>, vector<64x128xbf16>, vector<128x128xf32> -> vector<128x128xf32>
    %121 = arith.addf %116, %120 : vector<128x128xf32>
    %c39 = arith.constant 39 : index
    %c0_102 = arith.constant 0 : index
    %122 = vector.load %arg28[%c39, %c0_102] : memref<192x64xf32, #tpu.memory_space<vmem>>, vector<128x64xf32>
    %123 = arith.truncf %122 : vector<128x64xf32> to vector<128x64xbf16>
    %c704 = arith.constant 704 : index
    %c0_103 = arith.constant 0 : index
    %124 = vector.load %arg8[%c704, %c0_103] : memref<1024x128xbf16, #tpu.memory_space<vmem>>, vector<64x128xbf16>
    %cst_104 = arith.constant dense<0.000000e+00> : vector<128x128xf32>
    %125 = tpu.matmul %123, %124, %cst_104 {dimension_numbers = #tpu.dot_dimension_numbers<[1], [0], [0], [1], [0, 0, 1, 1], [], []>} : vector<128x64xbf16>, vector<64x128xbf16>, vector<128x128xf32> -> vector<128x128xf32>
    %126 = arith.addf %121, %125 : vector<128x128xf32>
    %c54 = arith.constant 54 : index
    %c0_105 = arith.constant 0 : index
    %127 = vector.load %arg28[%c54, %c0_105] : memref<192x64xf32, #tpu.memory_space<vmem>>, vector<128x64xf32>
    %128 = arith.truncf %127 : vector<128x64xf32> to vector<128x64xbf16>
    %c768 = arith.constant 768 : index
    %c0_106 = arith.constant 0 : index
    %129 = vector.load %arg8[%c768, %c0_106] : memref<1024x128xbf16, #tpu.memory_space<vmem>>, vector<64x128xbf16>
    %cst_107 = arith.constant dense<0.000000e+00> : vector<128x128xf32>
    %130 = tpu.matmul %128, %129, %cst_107 {dimension_numbers = #tpu.dot_dimension_numbers<[1], [0], [0], [1], [0, 0, 1, 1], [], []>} : vector<128x64xbf16>, vector<64x128xbf16>, vector<128x128xf32> -> vector<128x128xf32>
    %131 = arith.addf %126, %130 : vector<128x128xf32>
    %c55 = arith.constant 55 : index
    %c0_108 = arith.constant 0 : index
    %132 = vector.load %arg28[%c55, %c0_108] : memref<192x64xf32, #tpu.memory_space<vmem>>, vector<128x64xf32>
    %133 = arith.truncf %132 : vector<128x64xf32> to vector<128x64xbf16>
    %c832 = arith.constant 832 : index
    %c0_109 = arith.constant 0 : index
    %134 = vector.load %arg8[%c832, %c0_109] : memref<1024x128xbf16, #tpu.memory_space<vmem>>, vector<64x128xbf16>
    %cst_110 = arith.constant dense<0.000000e+00> : vector<128x128xf32>
    %135 = tpu.matmul %133, %134, %cst_110 {dimension_numbers = #tpu.dot_dimension_numbers<[1], [0], [0], [1], [0, 0, 1, 1], [], []>} : vector<128x64xbf16>, vector<64x128xbf16>, vector<128x128xf32> -> vector<128x128xf32>
    %136 = arith.addf %131, %135 : vector<128x128xf32>
    %c56 = arith.constant 56 : index
    %c0_111 = arith.constant 0 : index
    %137 = vector.load %arg28[%c56, %c0_111] : memref<192x64xf32, #tpu.memory_space<vmem>>, vector<128x64xf32>
    %138 = arith.truncf %137 : vector<128x64xf32> to vector<128x64xbf16>
    %c896 = arith.constant 896 : index
    %c0_112 = arith.constant 0 : index
    %139 = vector.load %arg8[%c896, %c0_112] : memref<1024x128xbf16, #tpu.memory_space<vmem>>, vector<64x128xbf16>
    %cst_113 = arith.constant dense<0.000000e+00> : vector<128x128xf32>
    %140 = tpu.matmul %138, %139, %cst_113 {dimension_numbers = #tpu.dot_dimension_numbers<[1], [0], [0], [1], [0, 0, 1, 1], [], []>} : vector<128x64xbf16>, vector<64x128xbf16>, vector<128x128xf32> -> vector<128x128xf32>
    %141 = arith.addf %136, %140 : vector<128x128xf32>
    %c57 = arith.constant 57 : index
    %c0_114 = arith.constant 0 : index
    %142 = vector.load %arg28[%c57, %c0_114] : memref<192x64xf32, #tpu.memory_space<vmem>>, vector<128x64xf32>
    %143 = arith.truncf %142 : vector<128x64xf32> to vector<128x64xbf16>
    %c960 = arith.constant 960 : index
    %c0_115 = arith.constant 0 : index
    %144 = vector.load %arg8[%c960, %c0_115] : memref<1024x128xbf16, #tpu.memory_space<vmem>>, vector<64x128xbf16>
    %cst_116 = arith.constant dense<0.000000e+00> : vector<128x128xf32>
    %145 = tpu.matmul %143, %144, %cst_116 {dimension_numbers = #tpu.dot_dimension_numbers<[1], [0], [0], [1], [0, 0, 1, 1], [], []>} : vector<128x64xbf16>, vector<64x128xbf16>, vector<128x128xf32> -> vector<128x128xf32>
    %146 = arith.addf %141, %145 : vector<128x128xf32>
    %c0_117 = arith.constant 0 : index
    %c0_118 = arith.constant 0 : index
    %147 = vector.load %arg9[%c0_117, %c0_118] : memref<1x128xf32, #tpu.memory_space<vmem>>, vector<1x128xf32>
    %148 = vector.broadcast %147 : vector<1x128xf32> to vector<128x128xf32>
    %149 = arith.addf %146, %148 : vector<128x128xf32>
    %cst_119 = arith.constant 0.000000e+00 : f32
    %150 = vector.broadcast %cst_119 : f32 to vector<128x128xf32>
    %151 = arith.maximumf %149, %150 : vector<128x128xf32>
    %c0_120 = arith.constant 0 : index
    %c0_121 = arith.constant 0 : index
    %152 = vector.load %arg10[%c0_120, %c0_121] : memref<64x128xf32, #tpu.memory_space<vmem>>, vector<64x128xf32>
    %cst_122 = arith.constant dense<0.000000e+00> : vector<64x128xf32>
    %153 = tpu.matmul %152, %151, %cst_122 {dimension_numbers = #tpu.dot_dimension_numbers<[1], [0], [0], [1], [0, 0, 1, 1], [], []>} : vector<64x128xf32>, vector<128x128xf32>, vector<64x128xf32> -> vector<64x128xf32>
    %c0_123 = arith.constant 0 : index
    %c0_124 = arith.constant 0 : index
    %154 = vector.load %arg29[%c0_123, %c0_124] : memref<64x128xf32, #tpu.memory_space<vmem>>, vector<64x128xf32>
    tpu.vector_store %arg29[%c0_123, %c0_124], %153 {strides = array<i32>} : memref<64x128xf32, #tpu.memory_space<vmem>>, vector<64x128xf32>,
    %cst_125 = arith.constant 0.000000e+00 : f32
    %155 = vector.broadcast %cst_125 : f32 to vector<40x128xf32>
    %c0_126 = arith.constant 0 : index
    %c0_127 = arith.constant 0 : index
    %156 = vector.load %arg29[%c0_126, %c0_127] : memref<64x128xf32, #tpu.memory_space<vmem>>, vector<40x128xf32>
    %157 = arith.truncf %156 : vector<40x128xf32> to vector<40x128xbf16>
    %c0_128 = arith.constant 0 : index
    %c0_129 = arith.constant 0 : index
    %158 = vector.load %arg11[%c0_128, %c0_129] : memref<1152x128xbf16, #tpu.memory_space<vmem>>, vector<128x128xbf16>
    %cst_130 = arith.constant dense<0.000000e+00> : vector<40x128xf32>
    %159 = tpu.matmul %157, %158, %cst_130 {dimension_numbers = #tpu.dot_dimension_numbers<[1], [0], [0], [1], [0, 0, 1, 1], [], []>} : vector<40x128xbf16>, vector<128x128xbf16>, vector<40x128xf32> -> vector<40x128xf32>
    %160 = arith.addf %155, %159 : vector<40x128xf32>
    %c1_131 = arith.constant 1 : index
    %c0_132 = arith.constant 0 : index
    %161 = vector.load %arg29[%c1_131, %c0_132] : memref<64x128xf32, #tpu.memory_space<vmem>>, vector<40x128xf32>
    %162 = arith.truncf %161 : vector<40x128xf32> to vector<40x128xbf16>
    %c128_133 = arith.constant 128 : index
    %c0_134 = arith.constant 0 : index
    %163 = vector.load %arg11[%c128_133, %c0_134] : memref<1152x128xbf16, #tpu.memory_space<vmem>>, vector<128x128xbf16>
    %cst_135 = arith.constant dense<0.000000e+00> : vector<40x128xf32>
    %164 = tpu.matmul %162, %163, %cst_135 {dimension_numbers = #tpu.dot_dimension_numbers<[1], [0], [0], [1], [0, 0, 1, 1], [], []>} : vector<40x128xbf16>, vector<128x128xbf16>, vector<40x128xf32> -> vector<40x128xf32>
    %165 = arith.addf %160, %164 : vector<40x128xf32>
    %c2_136 = arith.constant 2 : index
    %c0_137 = arith.constant 0 : index
    %166 = vector.load %arg29[%c2_136, %c0_137] : memref<64x128xf32, #tpu.memory_space<vmem>>, vector<40x128xf32>
    %167 = arith.truncf %166 : vector<40x128xf32> to vector<40x128xbf16>
    %c256_138 = arith.constant 256 : index
    %c0_139 = arith.constant 0 : index
    %168 = vector.load %arg11[%c256_138, %c0_139] : memref<1152x128xbf16, #tpu.memory_space<vmem>>, vector<128x128xbf16>
    %cst_140 = arith.constant dense<0.000000e+00> : vector<40x128xf32>
    %169 = tpu.matmul %167, %168, %cst_140 {dimension_numbers = #tpu.dot_dimension_numbers<[1], [0], [0], [1], [0, 0, 1, 1], [], []>} : vector<40x128xbf16>, vector<128x128xbf16>, vector<40x128xf32> -> vector<40x128xf32>
    %170 = arith.addf %165, %169 : vector<40x128xf32>
    %c10 = arith.constant 10 : index
    %c0_141 = arith.constant 0 : index
    %171 = vector.load %arg29[%c10, %c0_141] : memref<64x128xf32, #tpu.memory_space<vmem>>, vector<40x128xf32>
    %172 = arith.truncf %171 : vector<40x128xf32> to vector<40x128xbf16>
    %c384_142 = arith.constant 384 : index
    %c0_143 = arith.constant 0 : index
    %173 = vector.load %arg11[%c384_142, %c0_143] : memref<1152x128xbf16, #tpu.memory_space<vmem>>, vector<128x128xbf16>
    %cst_144 = arith.constant dense<0.000000e+00> : vector<40x128xf32>
    %174 = tpu.matmul %172, %173, %cst_144 {dimension_numbers = #tpu.dot_dimension_numbers<[1], [0], [0], [1], [0, 0, 1, 1], [], []>} : vector<40x128xbf16>, vector<128x128xbf16>, vector<40x128xf32> -> vector<40x128xf32>
    %175 = arith.addf %170, %174 : vector<40x128xf32>
    %c11 = arith.constant 11 : index
    %c0_145 = arith.constant 0 : index
    %176 = vector.load %arg29[%c11, %c0_145] : memref<64x128xf32, #tpu.memory_space<vmem>>, vector<40x128xf32>
    %177 = arith.truncf %176 : vector<40x128xf32> to vector<40x128xbf16>
    %c512_146 = arith.constant 512 : index
    %c0_147 = arith.constant 0 : index
    %178 = vector.load %arg11[%c512_146, %c0_147] : memref<1152x128xbf16, #tpu.memory_space<vmem>>, vector<128x128xbf16>
    %cst_148 = arith.constant dense<0.000000e+00> : vector<40x128xf32>
    %179 = tpu.matmul %177, %178, %cst_148 {dimension_numbers = #tpu.dot_dimension_numbers<[1], [0], [0], [1], [0, 0, 1, 1], [], []>} : vector<40x128xbf16>, vector<128x128xbf16>, vector<40x128xf32> -> vector<40x128xf32>
    %180 = arith.addf %175, %179 : vector<40x128xf32>
    %c12 = arith.constant 12 : index
    %c0_149 = arith.constant 0 : index
    %181 = vector.load %arg29[%c12, %c0_149] : memref<64x128xf32, #tpu.memory_space<vmem>>, vector<40x128xf32>
    %182 = arith.truncf %181 : vector<40x128xf32> to vector<40x128xbf16>
    %c640_150 = arith.constant 640 : index
    %c0_151 = arith.constant 0 : index
    %183 = vector.load %arg11[%c640_150, %c0_151] : memref<1152x128xbf16, #tpu.memory_space<vmem>>, vector<128x128xbf16>
    %cst_152 = arith.constant dense<0.000000e+00> : vector<40x128xf32>
    %184 = tpu.matmul %182, %183, %cst_152 {dimension_numbers = #tpu.dot_dimension_numbers<[1], [0], [0], [1], [0, 0, 1, 1], [], []>} : vector<40x128xbf16>, vector<128x128xbf16>, vector<40x128xf32> -> vector<40x128xf32>
    %185 = arith.addf %180, %184 : vector<40x128xf32>
    %c20_153 = arith.constant 20 : index
    %c0_154 = arith.constant 0 : index
    %186 = vector.load %arg29[%c20_153, %c0_154] : memref<64x128xf32, #tpu.memory_space<vmem>>, vector<40x128xf32>
    %187 = arith.truncf %186 : vector<40x128xf32> to vector<40x128xbf16>
    %c768_155 = arith.constant 768 : index
    %c0_156 = arith.constant 0 : index
    %188 = vector.load %arg11[%c768_155, %c0_156] : memref<1152x128xbf16, #tpu.memory_space<vmem>>, vector<128x128xbf16>
    %cst_157 = arith.constant dense<0.000000e+00> : vector<40x128xf32>
    %189 = tpu.matmul %187, %188, %cst_157 {dimension_numbers = #tpu.dot_dimension_numbers<[1], [0], [0], [1], [0, 0, 1, 1], [], []>} : vector<40x128xbf16>, vector<128x128xbf16>, vector<40x128xf32> -> vector<40x128xf32>
    %190 = arith.addf %185, %189 : vector<40x128xf32>
    %c21_158 = arith.constant 21 : index
    %c0_159 = arith.constant 0 : index
    %191 = vector.load %arg29[%c21_158, %c0_159] : memref<64x128xf32, #tpu.memory_space<vmem>>, vector<40x128xf32>
    %192 = arith.truncf %191 : vector<40x128xf32> to vector<40x128xbf16>
    %c896_160 = arith.constant 896 : index
    %c0_161 = arith.constant 0 : index
    %193 = vector.load %arg11[%c896_160, %c0_161] : memref<1152x128xbf16, #tpu.memory_space<vmem>>, vector<128x128xbf16>
    %cst_162 = arith.constant dense<0.000000e+00> : vector<40x128xf32>
    %194 = tpu.matmul %192, %193, %cst_162 {dimension_numbers = #tpu.dot_dimension_numbers<[1], [0], [0], [1], [0, 0, 1, 1], [], []>} : vector<40x128xbf16>, vector<128x128xbf16>, vector<40x128xf32> -> vector<40x128xf32>
    %195 = arith.addf %190, %194 : vector<40x128xf32>
    %c22 = arith.constant 22 : index
    %c0_163 = arith.constant 0 : index
    %196 = vector.load %arg29[%c22, %c0_163] : memref<64x128xf32, #tpu.memory_space<vmem>>, vector<40x128xf32>
    %197 = arith.truncf %196 : vector<40x128xf32> to vector<40x128xbf16>
    %c1024 = arith.constant 1024 : index
    %c0_164 = arith.constant 0 : index
    %198 = vector.load %arg11[%c1024, %c0_164] : memref<1152x128xbf16, #tpu.memory_space<vmem>>, vector<128x128xbf16>
    %cst_165 = arith.constant dense<0.000000e+00> : vector<40x128xf32>
    %199 = tpu.matmul %197, %198, %cst_165 {dimension_numbers = #tpu.dot_dimension_numbers<[1], [0], [0], [1], [0, 0, 1, 1], [], []>} : vector<40x128xbf16>, vector<128x128xbf16>, vector<40x128xf32> -> vector<40x128xf32>
    %200 = arith.addf %195, %199 : vector<40x128xf32>
    %c0_166 = arith.constant 0 : index
    %c0_167 = arith.constant 0 : index
    %201 = vector.load %arg12[%c0_166, %c0_167] : memref<1x128xf32, #tpu.memory_space<vmem>>, vector<1x128xf32>
    %202 = vector.broadcast %201 : vector<1x128xf32> to vector<40x128xf32>
    %203 = arith.addf %200, %202 : vector<40x128xf32>
    %cst_168 = arith.constant 0.000000e+00 : f32
    %204 = vector.broadcast %cst_168 : f32 to vector<40x128xf32>
    %205 = arith.maximumf %203, %204 : vector<40x128xf32>
    %c0_169 = arith.constant 0 : index
    %c0_170 = arith.constant 0 : index
    %206 = vector.load %arg13[%c0_169, %c0_170] : memref<64x40xf32, #tpu.memory_space<vmem>>, vector<64x40xf32>
    %cst_171 = arith.constant dense<0.000000e+00> : vector<64x128xf32>
    %207 = tpu.matmul %206, %205, %cst_171 {dimension_numbers = #tpu.dot_dimension_numbers<[1], [0], [0], [1], [0, 0, 1, 1], [], []>} : vector<64x40xf32>, vector<40x128xf32>, vector<64x128xf32> -> vector<64x128xf32>
    %c0_172 = arith.constant 0 : index
    %c0_173 = arith.constant 0 : index
    %208 = vector.load %arg30[%c0_172, %c0_173] : memref<64x128xf32, #tpu.memory_space<vmem>>, vector<64x128xf32>
    tpu.vector_store %arg30[%c0_172, %c0_173], %207 {strides = array<i32>} : memref<64x128xf32, #tpu.memory_space<vmem>>, vector<64x128xf32>,
    %cst_174 = arith.constant 0.000000e+00 : f32
    %209 = vector.broadcast %cst_174 : f32 to vector<40x128xf32>
    %c0_175 = arith.constant 0 : index
    %c0_176 = arith.constant 0 : index
    %210 = vector.load %arg30[%c0_175, %c0_176] : memref<64x128xf32, #tpu.memory_space<vmem>>, vector<40x128xf32>
    %211 = arith.truncf %210 : vector<40x128xf32> to vector<40x128xbf16>
    %c0_177 = arith.constant 0 : index
    %c0_178 = arith.constant 0 : index
    %212 = vector.load %arg14[%c0_177, %c0_178] : memref<1152x128xbf16, #tpu.memory_space<vmem>>, vector<128x128xbf16>
    %cst_179 = arith.constant dense<0.000000e+00> : vector<40x128xf32>
    %213 = tpu.matmul %211, %212, %cst_179 {dimension_numbers = #tpu.dot_dimension_numbers<[1], [0], [0], [1], [0, 0, 1, 1], [], []>} : vector<40x128xbf16>, vector<128x128xbf16>, vector<40x128xf32> -> vector<40x128xf32>
    %214 = arith.addf %209, %213 : vector<40x128xf32>
    %c1_180 = arith.constant 1 : index
    %c0_181 = arith.constant 0 : index
    %215 = vector.load %arg30[%c1_180, %c0_181] : memref<64x128xf32, #tpu.memory_space<vmem>>, vector<40x128xf32>
    %216 = arith.truncf %215 : vector<40x128xf32> to vector<40x128xbf16>
    %c128_182 = arith.constant 128 : index
    %c0_183 = arith.constant 0 : index
    %217 = vector.load %arg14[%c128_182, %c0_183] : memref<1152x128xbf16, #tpu.memory_space<vmem>>, vector<128x128xbf16>
    %cst_184 = arith.constant dense<0.000000e+00> : vector<40x128xf32>
    %218 = tpu.matmul %216, %217, %cst_184 {dimension_numbers = #tpu.dot_dimension_numbers<[1], [0], [0], [1], [0, 0, 1, 1], [], []>} : vector<40x128xbf16>, vector<128x128xbf16>, vector<40x128xf32> -> vector<40x128xf32>
    %219 = arith.addf %214, %218 : vector<40x128xf32>
    %c2_185 = arith.constant 2 : index
    %c0_186 = arith.constant 0 : index
    %220 = vector.load %arg30[%c2_185, %c0_186] : memref<64x128xf32, #tpu.memory_space<vmem>>, vector<40x128xf32>
    %221 = arith.truncf %220 : vector<40x128xf32> to vector<40x128xbf16>
    %c256_187 = arith.constant 256 : index
    %c0_188 = arith.constant 0 : index
    %222 = vector.load %arg14[%c256_187, %c0_188] : memref<1152x128xbf16, #tpu.memory_space<vmem>>, vector<128x128xbf16>
    %cst_189 = arith.constant dense<0.000000e+00> : vector<40x128xf32>
    %223 = tpu.matmul %221, %222, %cst_189 {dimension_numbers = #tpu.dot_dimension_numbers<[1], [0], [0], [1], [0, 0, 1, 1], [], []>} : vector<40x128xbf16>, vector<128x128xbf16>, vector<40x128xf32> -> vector<40x128xf32>
    %224 = arith.addf %219, %223 : vector<40x128xf32>
    %c10_190 = arith.constant 10 : index
    %c0_191 = arith.constant 0 : index
    %225 = vector.load %arg30[%c10_190, %c0_191] : memref<64x128xf32, #tpu.memory_space<vmem>>, vector<40x128xf32>
    %226 = arith.truncf %225 : vector<40x128xf32> to vector<40x128xbf16>
    %c384_192 = arith.constant 384 : index
    %c0_193 = arith.constant 0 : index
    %227 = vector.load %arg14[%c384_192, %c0_193] : memref<1152x128xbf16, #tpu.memory_space<vmem>>, vector<128x128xbf16>
    %cst_194 = arith.constant dense<0.000000e+00> : vector<40x128xf32>
    %228 = tpu.matmul %226, %227, %cst_194 {dimension_numbers = #tpu.dot_dimension_numbers<[1], [0], [0], [1], [0, 0, 1, 1], [], []>} : vector<40x128xbf16>, vector<128x128xbf16>, vector<40x128xf32> -> vector<40x128xf32>
    %229 = arith.addf %224, %228 : vector<40x128xf32>
    %c11_195 = arith.constant 11 : index
    %c0_196 = arith.constant 0 : index
    %230 = vector.load %arg30[%c11_195, %c0_196] : memref<64x128xf32, #tpu.memory_space<vmem>>, vector<40x128xf32>
    %231 = arith.truncf %230 : vector<40x128xf32> to vector<40x128xbf16>
    %c512_197 = arith.constant 512 : index
    %c0_198 = arith.constant 0 : index
    %232 = vector.load %arg14[%c512_197, %c0_198] : memref<1152x128xbf16, #tpu.memory_space<vmem>>, vector<128x128xbf16>
    %cst_199 = arith.constant dense<0.000000e+00> : vector<40x128xf32>
    %233 = tpu.matmul %231, %232, %cst_199 {dimension_numbers = #tpu.dot_dimension_numbers<[1], [0], [0], [1], [0, 0, 1, 1], [], []>} : vector<40x128xbf16>, vector<128x128xbf16>, vector<40x128xf32> -> vector<40x128xf32>
    %234 = arith.addf %229, %233 : vector<40x128xf32>
    %c12_200 = arith.constant 12 : index
    %c0_201 = arith.constant 0 : index
    %235 = vector.load %arg30[%c12_200, %c0_201] : memref<64x128xf32, #tpu.memory_space<vmem>>, vector<40x128xf32>
    %236 = arith.truncf %235 : vector<40x128xf32> to vector<40x128xbf16>
    %c640_202 = arith.constant 640 : index
    %c0_203 = arith.constant 0 : index
    %237 = vector.load %arg14[%c640_202, %c0_203] : memref<1152x128xbf16, #tpu.memory_space<vmem>>, vector<128x128xbf16>
    %cst_204 = arith.constant dense<0.000000e+00> : vector<40x128xf32>
    %238 = tpu.matmul %236, %237, %cst_204 {dimension_numbers = #tpu.dot_dimension_numbers<[1], [0], [0], [1], [0, 0, 1, 1], [], []>} : vector<40x128xbf16>, vector<128x128xbf16>, vector<40x128xf32> -> vector<40x128xf32>
    %239 = arith.addf %234, %238 : vector<40x128xf32>
    %c20_205 = arith.constant 20 : index
    %c0_206 = arith.constant 0 : index
    %240 = vector.load %arg30[%c20_205, %c0_206] : memref<64x128xf32, #tpu.memory_space<vmem>>, vector<40x128xf32>
    %241 = arith.truncf %240 : vector<40x128xf32> to vector<40x128xbf16>
    %c768_207 = arith.constant 768 : index
    %c0_208 = arith.constant 0 : index
    %242 = vector.load %arg14[%c768_207, %c0_208] : memref<1152x128xbf16, #tpu.memory_space<vmem>>, vector<128x128xbf16>
    %cst_209 = arith.constant dense<0.000000e+00> : vector<40x128xf32>
    %243 = tpu.matmul %241, %242, %cst_209 {dimension_numbers = #tpu.dot_dimension_numbers<[1], [0], [0], [1], [0, 0, 1, 1], [], []>} : vector<40x128xbf16>, vector<128x128xbf16>, vector<40x128xf32> -> vector<40x128xf32>
    %244 = arith.addf %239, %243 : vector<40x128xf32>
    %c21_210 = arith.constant 21 : index
    %c0_211 = arith.constant 0 : index
    %245 = vector.load %arg30[%c21_210, %c0_211] : memref<64x128xf32, #tpu.memory_space<vmem>>, vector<40x128xf32>
    %246 = arith.truncf %245 : vector<40x128xf32> to vector<40x128xbf16>
    %c896_212 = arith.constant 896 : index
    %c0_213 = arith.constant 0 : index
    %247 = vector.load %arg14[%c896_212, %c0_213] : memref<1152x128xbf16, #tpu.memory_space<vmem>>, vector<128x128xbf16>
    %cst_214 = arith.constant dense<0.000000e+00> : vector<40x128xf32>
    %248 = tpu.matmul %246, %247, %cst_214 {dimension_numbers = #tpu.dot_dimension_numbers<[1], [0], [0], [1], [0, 0, 1, 1], [], []>} : vector<40x128xbf16>, vector<128x128xbf16>, vector<40x128xf32> -> vector<40x128xf32>
    %249 = arith.addf %244, %248 : vector<40x128xf32>
    %c22_215 = arith.constant 22 : index
    %c0_216 = arith.constant 0 : index
    %250 = vector.load %arg30[%c22_215, %c0_216] : memref<64x128xf32, #tpu.memory_space<vmem>>, vector<40x128xf32>
    %251 = arith.truncf %250 : vector<40x128xf32> to vector<40x128xbf16>
    %c1024_217 = arith.constant 1024 : index
    %c0_218 = arith.constant 0 : index
    %252 = vector.load %arg14[%c1024_217, %c0_218] : memref<1152x128xbf16, #tpu.memory_space<vmem>>, vector<128x128xbf16>
    %cst_219 = arith.constant dense<0.000000e+00> : vector<40x128xf32>
    %253 = tpu.matmul %251, %252, %cst_219 {dimension_numbers = #tpu.dot_dimension_numbers<[1], [0], [0], [1], [0, 0, 1, 1], [], []>} : vector<40x128xbf16>, vector<128x128xbf16>, vector<40x128xf32> -> vector<40x128xf32>
    %254 = arith.addf %249, %253 : vector<40x128xf32>
    %c0_220 = arith.constant 0 : index
    %c0_221 = arith.constant 0 : index
    %255 = vector.load %arg15[%c0_220, %c0_221] : memref<1x128xf32, #tpu.memory_space<vmem>>, vector<1x128xf32>
    %256 = vector.broadcast %255 : vector<1x128xf32> to vector<40x128xf32>
    %257 = arith.addf %254, %256 : vector<40x128xf32>
    %cst_222 = arith.constant 0.000000e+00 : f32
    %258 = vector.broadcast %cst_222 : f32 to vector<40x128xf32>
    %259 = arith.maximumf %257, %258 : vector<40x128xf32>
    %c0_223 = arith.constant 0 : index
    %c0_224 = arith.constant 0 : index
    %260 = vector.load %arg16[%c0_223, %c0_224] : memref<72x40xf32, #tpu.memory_space<vmem>>, vector<72x40xf32>
    %cst_225 = arith.constant dense<0.000000e+00> : vector<72x128xf32>
    %261 = tpu.matmul %260, %259, %cst_225 {dimension_numbers = #tpu.dot_dimension_numbers<[1], [0], [0], [1], [0, 0, 1, 1], [], []>} : vector<72x40xf32>, vector<40x128xf32>, vector<72x128xf32> -> vector<72x128xf32>
    %c0_226 = arith.constant 0 : index
    %c0_227 = arith.constant 0 : index
    %262 = vector.load %arg31[%c0_226, %c0_227] : memref<72x128xf32, #tpu.memory_space<vmem>>, vector<72x128xf32>
    tpu.vector_store %arg31[%c0_226, %c0_227], %261 {strides = array<i32>} : memref<72x128xf32, #tpu.memory_space<vmem>>, vector<72x128xf32>,
    %cst_228 = arith.constant 0.000000e+00 : f32
    %263 = vector.broadcast %cst_228 : f32 to vector<32x256xf32>
    %c0_229 = arith.constant 0 : index
    %c0_230 = arith.constant 0 : index
    %264 = vector.load %arg31[%c0_229, %c0_230] : memref<72x128xf32, #tpu.memory_space<vmem>>, vector<32x128xf32>
    %265 = arith.truncf %264 : vector<32x128xf32> to vector<32x128xbf16>
    %c0_231 = arith.constant 0 : index
    %c0_232 = arith.constant 0 : index
    %266 = vector.load %arg17[%c0_231, %c0_232] : memref<2048x256xbf16, #tpu.memory_space<vmem>>, vector<128x256xbf16>
    %cst_233 = arith.constant dense<0.000000e+00> : vector<32x256xf32>
    %267 = tpu.matmul %265, %266, %cst_233 {dimension_numbers = #tpu.dot_dimension_numbers<[1], [0], [0], [1], [0, 0, 1, 1], [], []>} : vector<32x128xbf16>, vector<128x256xbf16>, vector<32x256xf32> -> vector<32x256xf32>
    %268 = arith.addf %263, %267 : vector<32x256xf32>
    %c1_234 = arith.constant 1 : index
    %c0_235 = arith.constant 0 : index
    %269 = vector.load %arg31[%c1_234, %c0_235] : memref<72x128xf32, #tpu.memory_space<vmem>>, vector<32x128xf32>
    %270 = arith.truncf %269 : vector<32x128xf32> to vector<32x128xbf16>
    %c128_236 = arith.constant 128 : index
    %c0_237 = arith.constant 0 : index
    %271 = vector.load %arg17[%c128_236, %c0_237] : memref<2048x256xbf16, #tpu.memory_space<vmem>>, vector<128x256xbf16>
    %cst_238 = arith.constant dense<0.000000e+00> : vector<32x256xf32>
    %272 = tpu.matmul %270, %271, %cst_238 {dimension_numbers = #tpu.dot_dimension_numbers<[1], [0], [0], [1], [0, 0, 1, 1], [], []>} : vector<32x128xbf16>, vector<128x256xbf16>, vector<32x256xf32> -> vector<32x256xf32>
    %273 = arith.addf %268, %272 : vector<32x256xf32>
    %c2_239 = arith.constant 2 : index
    %c0_240 = arith.constant 0 : index
    %274 = vector.load %arg31[%c2_239, %c0_240] : memref<72x128xf32, #tpu.memory_space<vmem>>, vector<32x128xf32>
    %275 = arith.truncf %274 : vector<32x128xf32> to vector<32x128xbf16>
    %c256_241 = arith.constant 256 : index
    %c0_242 = arith.constant 0 : index
    %276 = vector.load %arg17[%c256_241, %c0_242] : memref<2048x256xbf16, #tpu.memory_space<vmem>>, vector<128x256xbf16>
    %cst_243 = arith.constant dense<0.000000e+00> : vector<32x256xf32>
    %277 = tpu.matmul %275, %276, %cst_243 {dimension_numbers = #tpu.dot_dimension_numbers<[1], [0], [0], [1], [0, 0, 1, 1], [], []>} : vector<32x128xbf16>, vector<128x256xbf16>, vector<32x256xf32> -> vector<32x256xf32>
    %278 = arith.addf %273, %277 : vector<32x256xf32>
    %c3_244 = arith.constant 3 : index
    %c0_245 = arith.constant 0 : index
    %279 = vector.load %arg31[%c3_244, %c0_245] : memref<72x128xf32, #tpu.memory_space<vmem>>, vector<32x128xf32>
    %280 = arith.truncf %279 : vector<32x128xf32> to vector<32x128xbf16>
    %c384_246 = arith.constant 384 : index
    %c0_247 = arith.constant 0 : index
    %281 = vector.load %arg17[%c384_246, %c0_247] : memref<2048x256xbf16, #tpu.memory_space<vmem>>, vector<128x256xbf16>
    %cst_248 = arith.constant dense<0.000000e+00> : vector<32x256xf32>
    %282 = tpu.matmul %280, %281, %cst_248 {dimension_numbers = #tpu.dot_dimension_numbers<[1], [0], [0], [1], [0, 0, 1, 1], [], []>} : vector<32x128xbf16>, vector<128x256xbf16>, vector<32x256xf32> -> vector<32x256xf32>
    %283 = arith.addf %278, %282 : vector<32x256xf32>
    %c10_249 = arith.constant 10 : index
    %c0_250 = arith.constant 0 : index
    %284 = vector.load %arg31[%c10_249, %c0_250] : memref<72x128xf32, #tpu.memory_space<vmem>>, vector<32x128xf32>
    %285 = arith.truncf %284 : vector<32x128xf32> to vector<32x128xbf16>
    %c512_251 = arith.constant 512 : index
    %c0_252 = arith.constant 0 : index
    %286 = vector.load %arg17[%c512_251, %c0_252] : memref<2048x256xbf16, #tpu.memory_space<vmem>>, vector<128x256xbf16>
    %cst_253 = arith.constant dense<0.000000e+00> : vector<32x256xf32>
    %287 = tpu.matmul %285, %286, %cst_253 {dimension_numbers = #tpu.dot_dimension_numbers<[1], [0], [0], [1], [0, 0, 1, 1], [], []>} : vector<32x128xbf16>, vector<128x256xbf16>, vector<32x256xf32> -> vector<32x256xf32>
    %288 = arith.addf %283, %287 : vector<32x256xf32>
    %c11_254 = arith.constant 11 : index
    %c0_255 = arith.constant 0 : index
    %289 = vector.load %arg31[%c11_254, %c0_255] : memref<72x128xf32, #tpu.memory_space<vmem>>, vector<32x128xf32>
    %290 = arith.truncf %289 : vector<32x128xf32> to vector<32x128xbf16>
    %c640_256 = arith.constant 640 : index
    %c0_257 = arith.constant 0 : index
    %291 = vector.load %arg17[%c640_256, %c0_257] : memref<2048x256xbf16, #tpu.memory_space<vmem>>, vector<128x256xbf16>
    %cst_258 = arith.constant dense<0.000000e+00> : vector<32x256xf32>
    %292 = tpu.matmul %290, %291, %cst_258 {dimension_numbers = #tpu.dot_dimension_numbers<[1], [0], [0], [1], [0, 0, 1, 1], [], []>} : vector<32x128xbf16>, vector<128x256xbf16>, vector<32x256xf32> -> vector<32x256xf32>
    %293 = arith.addf %288, %292 : vector<32x256xf32>
    %c12_259 = arith.constant 12 : index
    %c0_260 = arith.constant 0 : index
    %294 = vector.load %arg31[%c12_259, %c0_260] : memref<72x128xf32, #tpu.memory_space<vmem>>, vector<32x128xf32>
    %295 = arith.truncf %294 : vector<32x128xf32> to vector<32x128xbf16>
    %c768_261 = arith.constant 768 : index
    %c0_262 = arith.constant 0 : index
    %296 = vector.load %arg17[%c768_261, %c0_262] : memref<2048x256xbf16, #tpu.memory_space<vmem>>, vector<128x256xbf16>
    %cst_263 = arith.constant dense<0.000000e+00> : vector<32x256xf32>
    %297 = tpu.matmul %295, %296, %cst_263 {dimension_numbers = #tpu.dot_dimension_numbers<[1], [0], [0], [1], [0, 0, 1, 1], [], []>} : vector<32x128xbf16>, vector<128x256xbf16>, vector<32x256xf32> -> vector<32x256xf32>
    %298 = arith.addf %293, %297 : vector<32x256xf32>
    %c13 = arith.constant 13 : index
    %c0_264 = arith.constant 0 : index
    %299 = vector.load %arg31[%c13, %c0_264] : memref<72x128xf32, #tpu.memory_space<vmem>>, vector<32x128xf32>
    %300 = arith.truncf %299 : vector<32x128xf32> to vector<32x128xbf16>
    %c896_265 = arith.constant 896 : index
    %c0_266 = arith.constant 0 : index
    %301 = vector.load %arg17[%c896_265, %c0_266] : memref<2048x256xbf16, #tpu.memory_space<vmem>>, vector<128x256xbf16>
    %cst_267 = arith.constant dense<0.000000e+00> : vector<32x256xf32>
    %302 = tpu.matmul %300, %301, %cst_267 {dimension_numbers = #tpu.dot_dimension_numbers<[1], [0], [0], [1], [0, 0, 1, 1], [], []>} : vector<32x128xbf16>, vector<128x256xbf16>, vector<32x256xf32> -> vector<32x256xf32>
    %303 = arith.addf %298, %302 : vector<32x256xf32>
    %c20_268 = arith.constant 20 : index
    %c0_269 = arith.constant 0 : index
    %304 = vector.load %arg31[%c20_268, %c0_269] : memref<72x128xf32, #tpu.memory_space<vmem>>, vector<32x128xf32>
    %305 = arith.truncf %304 : vector<32x128xf32> to vector<32x128xbf16>
    %c1024_270 = arith.constant 1024 : index
    %c0_271 = arith.constant 0 : index
    %306 = vector.load %arg17[%c1024_270, %c0_271] : memref<2048x256xbf16, #tpu.memory_space<vmem>>, vector<128x256xbf16>
    %cst_272 = arith.constant dense<0.000000e+00> : vector<32x256xf32>
    %307 = tpu.matmul %305, %306, %cst_272 {dimension_numbers = #tpu.dot_dimension_numbers<[1], [0], [0], [1], [0, 0, 1, 1], [], []>} : vector<32x128xbf16>, vector<128x256xbf16>, vector<32x256xf32> -> vector<32x256xf32>
    %308 = arith.addf %303, %307 : vector<32x256xf32>
    %c21_273 = arith.constant 21 : index
    %c0_274 = arith.constant 0 : index
    %309 = vector.load %arg31[%c21_273, %c0_274] : memref<72x128xf32, #tpu.memory_space<vmem>>, vector<32x128xf32>
    %310 = arith.truncf %309 : vector<32x128xf32> to vector<32x128xbf16>
    %c1152 = arith.constant 1152 : index
    %c0_275 = arith.constant 0 : index
    %311 = vector.load %arg17[%c1152, %c0_275] : memref<2048x256xbf16, #tpu.memory_space<vmem>>, vector<128x256xbf16>
    %cst_276 = arith.constant dense<0.000000e+00> : vector<32x256xf32>
    %312 = tpu.matmul %310, %311, %cst_276 {dimension_numbers = #tpu.dot_dimension_numbers<[1], [0], [0], [1], [0, 0, 1, 1], [], []>} : vector<32x128xbf16>, vector<128x256xbf16>, vector<32x256xf32> -> vector<32x256xf32>
    %313 = arith.addf %308, %312 : vector<32x256xf32>
    %c22_277 = arith.constant 22 : index
    %c0_278 = arith.constant 0 : index
    %314 = vector.load %arg31[%c22_277, %c0_278] : memref<72x128xf32, #tpu.memory_space<vmem>>, vector<32x128xf32>
    %315 = arith.truncf %314 : vector<32x128xf32> to vector<32x128xbf16>
    %c1280 = arith.constant 1280 : index
    %c0_279 = arith.constant 0 : index
    %316 = vector.load %arg17[%c1280, %c0_279] : memref<2048x256xbf16, #tpu.memory_space<vmem>>, vector<128x256xbf16>
    %cst_280 = arith.constant dense<0.000000e+00> : vector<32x256xf32>
    %317 = tpu.matmul %315, %316, %cst_280 {dimension_numbers = #tpu.dot_dimension_numbers<[1], [0], [0], [1], [0, 0, 1, 1], [], []>} : vector<32x128xbf16>, vector<128x256xbf16>, vector<32x256xf32> -> vector<32x256xf32>
    %318 = arith.addf %313, %317 : vector<32x256xf32>
    %c23 = arith.constant 23 : index
    %c0_281 = arith.constant 0 : index
    %319 = vector.load %arg31[%c23, %c0_281] : memref<72x128xf32, #tpu.memory_space<vmem>>, vector<32x128xf32>
    %320 = arith.truncf %319 : vector<32x128xf32> to vector<32x128xbf16>
    %c1408 = arith.constant 1408 : index
    %c0_282 = arith.constant 0 : index
    %321 = vector.load %arg17[%c1408, %c0_282] : memref<2048x256xbf16, #tpu.memory_space<vmem>>, vector<128x256xbf16>
    %cst_283 = arith.constant dense<0.000000e+00> : vector<32x256xf32>
    %322 = tpu.matmul %320, %321, %cst_283 {dimension_numbers = #tpu.dot_dimension_numbers<[1], [0], [0], [1], [0, 0, 1, 1], [], []>} : vector<32x128xbf16>, vector<128x256xbf16>, vector<32x256xf32> -> vector<32x256xf32>
    %323 = arith.addf %318, %322 : vector<32x256xf32>
    %c30 = arith.constant 30 : index
    %c0_284 = arith.constant 0 : index
    %324 = vector.load %arg31[%c30, %c0_284] : memref<72x128xf32, #tpu.memory_space<vmem>>, vector<32x128xf32>
    %325 = arith.truncf %324 : vector<32x128xf32> to vector<32x128xbf16>
    %c1536 = arith.constant 1536 : index
    %c0_285 = arith.constant 0 : index
    %326 = vector.load %arg17[%c1536, %c0_285] : memref<2048x256xbf16, #tpu.memory_space<vmem>>, vector<128x256xbf16>
    %cst_286 = arith.constant dense<0.000000e+00> : vector<32x256xf32>
    %327 = tpu.matmul %325, %326, %cst_286 {dimension_numbers = #tpu.dot_dimension_numbers<[1], [0], [0], [1], [0, 0, 1, 1], [], []>} : vector<32x128xbf16>, vector<128x256xbf16>, vector<32x256xf32> -> vector<32x256xf32>
    %328 = arith.addf %323, %327 : vector<32x256xf32>
    %c31 = arith.constant 31 : index
    %c0_287 = arith.constant 0 : index
    %329 = vector.load %arg31[%c31, %c0_287] : memref<72x128xf32, #tpu.memory_space<vmem>>, vector<32x128xf32>
    %330 = arith.truncf %329 : vector<32x128xf32> to vector<32x128xbf16>
    %c1664 = arith.constant 1664 : index
    %c0_288 = arith.constant 0 : index
    %331 = vector.load %arg17[%c1664, %c0_288] : memref<2048x256xbf16, #tpu.memory_space<vmem>>, vector<128x256xbf16>
    %cst_289 = arith.constant dense<0.000000e+00> : vector<32x256xf32>
    %332 = tpu.matmul %330, %331, %cst_289 {dimension_numbers = #tpu.dot_dimension_numbers<[1], [0], [0], [1], [0, 0, 1, 1], [], []>} : vector<32x128xbf16>, vector<128x256xbf16>, vector<32x256xf32> -> vector<32x256xf32>
    %333 = arith.addf %328, %332 : vector<32x256xf32>
    %c32 = arith.constant 32 : index
    %c0_290 = arith.constant 0 : index
    %334 = vector.load %arg31[%c32, %c0_290] : memref<72x128xf32, #tpu.memory_space<vmem>>, vector<32x128xf32>
    %335 = arith.truncf %334 : vector<32x128xf32> to vector<32x128xbf16>
    %c1792 = arith.constant 1792 : index
    %c0_291 = arith.constant 0 : index
    %336 = vector.load %arg17[%c1792, %c0_291] : memref<2048x256xbf16, #tpu.memory_space<vmem>>, vector<128x256xbf16>
    %cst_292 = arith.constant dense<0.000000e+00> : vector<32x256xf32>
    %337 = tpu.matmul %335, %336, %cst_292 {dimension_numbers = #tpu.dot_dimension_numbers<[1], [0], [0], [1], [0, 0, 1, 1], [], []>} : vector<32x128xbf16>, vector<128x256xbf16>, vector<32x256xf32> -> vector<32x256xf32>
    %338 = arith.addf %333, %337 : vector<32x256xf32>
    %c33 = arith.constant 33 : index
    %c0_293 = arith.constant 0 : index
    %339 = vector.load %arg31[%c33, %c0_293] : memref<72x128xf32, #tpu.memory_space<vmem>>, vector<32x128xf32>
    %340 = arith.truncf %339 : vector<32x128xf32> to vector<32x128xbf16>
    %c1920 = arith.constant 1920 : index
    %c0_294 = arith.constant 0 : index
    %341 = vector.load %arg17[%c1920, %c0_294] : memref<2048x256xbf16, #tpu.memory_space<vmem>>, vector<128x256xbf16>
    %cst_295 = arith.constant dense<0.000000e+00> : vector<32x256xf32>
    %342 = tpu.matmul %340, %341, %cst_295 {dimension_numbers = #tpu.dot_dimension_numbers<[1], [0], [0], [1], [0, 0, 1, 1], [], []>} : vector<32x128xbf16>, vector<128x256xbf16>, vector<32x256xf32> -> vector<32x256xf32>
    %343 = arith.addf %338, %342 : vector<32x256xf32>
    %c0_296 = arith.constant 0 : index
    %c0_297 = arith.constant 0 : index
    %344 = vector.load %arg18[%c0_296, %c0_297] : memref<1x256xf32, #tpu.memory_space<vmem>>, vector<1x256xf32>
    %345 = vector.broadcast %344 : vector<1x256xf32> to vector<32x256xf32>
    %346 = arith.addf %343, %345 : vector<32x256xf32>
    %cst_298 = arith.constant 0.000000e+00 : f32
    %347 = vector.broadcast %cst_298 : f32 to vector<32x256xf32>
    %348 = arith.maximumf %346, %347 : vector<32x256xf32>
    %c0_299 = arith.constant 0 : index
    %c0_300 = arith.constant 0 : index
    %349 = vector.load %arg19[%c0_299, %c0_300] : memref<8x32xf32, #tpu.memory_space<vmem>>, vector<8x32xf32>
    %cst_301 = arith.constant dense<0.000000e+00> : vector<8x256xf32>
    %350 = tpu.matmul %349, %348, %cst_301 {dimension_numbers = #tpu.dot_dimension_numbers<[1], [0], [0], [1], [0, 0, 1, 1], [], []>} : vector<8x32xf32>, vector<32x256xf32>, vector<8x256xf32> -> vector<8x256xf32>
    %cst_302 = arith.constant 0.000000e+00 : f32
    %351 = vector.broadcast %cst_302 : f32 to vector<1x256xf32>
    %352 = vector.extract_strided_slice %350 {offsets = [0, 0], sizes = [1, 256], strides = [1, 1]} : vector<8x256xf32> to vector<1x256xf32>
    %353 = arith.truncf %352 : vector<1x256xf32> to vector<1x256xbf16>
    %c0_303 = arith.constant 0 : index
    %c0_304 = arith.constant 0 : index
    %354 = vector.load %arg20[%c0_303, %c0_304] : memref<2048x256xbf16, #tpu.memory_space<vmem>>, vector<256x256xbf16>
    %cst_305 = arith.constant dense<0.000000e+00> : vector<1x256xf32>
    %355 = tpu.matmul %353, %354, %cst_305 {dimension_numbers = #tpu.dot_dimension_numbers<[1], [0], [0], [1], [0, 0, 1, 1], [], []>} : vector<1x256xbf16>, vector<256x256xbf16>, vector<1x256xf32> -> vector<1x256xf32>
    %356 = arith.addf %351, %355 : vector<1x256xf32>
    %357 = vector.extract_strided_slice %350 {offsets = [1, 0], sizes = [1, 256], strides = [1, 1]} : vector<8x256xf32> to vector<1x256xf32>
    %358 = arith.truncf %357 : vector<1x256xf32> to vector<1x256xbf16>
    %c256_306 = arith.constant 256 : index
    %c0_307 = arith.constant 0 : index
    %359 = vector.load %arg20[%c256_306, %c0_307] : memref<2048x256xbf16, #tpu.memory_space<vmem>>, vector<256x256xbf16>
    %cst_308 = arith.constant dense<0.000000e+00> : vector<1x256xf32>
    %360 = tpu.matmul %358, %359, %cst_308 {dimension_numbers = #tpu.dot_dimension_numbers<[1], [0], [0], [1], [0, 0, 1, 1], [], []>} : vector<1x256xbf16>, vector<256x256xbf16>, vector<1x256xf32> -> vector<1x256xf32>
    %361 = arith.addf %356, %360 : vector<1x256xf32>
    %362 = vector.extract_strided_slice %350 {offsets = [2, 0], sizes = [1, 256], strides = [1, 1]} : vector<8x256xf32> to vector<1x256xf32>
    %363 = arith.truncf %362 : vector<1x256xf32> to vector<1x256xbf16>
    %c512_309 = arith.constant 512 : index
    %c0_310 = arith.constant 0 : index
    %364 = vector.load %arg20[%c512_309, %c0_310] : memref<2048x256xbf16, #tpu.memory_space<vmem>>, vector<256x256xbf16>
    %cst_311 = arith.constant dense<0.000000e+00> : vector<1x256xf32>
    %365 = tpu.matmul %363, %364, %cst_311 {dimension_numbers = #tpu.dot_dimension_numbers<[1], [0], [0], [1], [0, 0, 1, 1], [], []>} : vector<1x256xbf16>, vector<256x256xbf16>, vector<1x256xf32> -> vector<1x256xf32>
    %366 = arith.addf %361, %365 : vector<1x256xf32>
    %367 = vector.extract_strided_slice %350 {offsets = [3, 0], sizes = [1, 256], strides = [1, 1]} : vector<8x256xf32> to vector<1x256xf32>
    %368 = arith.truncf %367 : vector<1x256xf32> to vector<1x256xbf16>
    %c768_312 = arith.constant 768 : index
    %c0_313 = arith.constant 0 : index
    %369 = vector.load %arg20[%c768_312, %c0_313] : memref<2048x256xbf16, #tpu.memory_space<vmem>>, vector<256x256xbf16>
    %cst_314 = arith.constant dense<0.000000e+00> : vector<1x256xf32>
    %370 = tpu.matmul %368, %369, %cst_314 {dimension_numbers = #tpu.dot_dimension_numbers<[1], [0], [0], [1], [0, 0, 1, 1], [], []>} : vector<1x256xbf16>, vector<256x256xbf16>, vector<1x256xf32> -> vector<1x256xf32>
    %371 = arith.addf %366, %370 : vector<1x256xf32>
    %372 = vector.extract_strided_slice %350 {offsets = [4, 0], sizes = [1, 256], strides = [1, 1]} : vector<8x256xf32> to vector<1x256xf32>
    %373 = arith.truncf %372 : vector<1x256xf32> to vector<1x256xbf16>
    %c1024_315 = arith.constant 1024 : index
    %c0_316 = arith.constant 0 : index
    %374 = vector.load %arg20[%c1024_315, %c0_316] : memref<2048x256xbf16, #tpu.memory_space<vmem>>, vector<256x256xbf16>
    %cst_317 = arith.constant dense<0.000000e+00> : vector<1x256xf32>
    %375 = tpu.matmul %373, %374, %cst_317 {dimension_numbers = #tpu.dot_dimension_numbers<[1], [0], [0], [1], [0, 0, 1, 1], [], []>} : vector<1x256xbf16>, vector<256x256xbf16>, vector<1x256xf32> -> vector<1x256xf32>
    %376 = arith.addf %371, %375 : vector<1x256xf32>
    %377 = vector.extract_strided_slice %350 {offsets = [5, 0], sizes = [1, 256], strides = [1, 1]} : vector<8x256xf32> to vector<1x256xf32>
    %378 = arith.truncf %377 : vector<1x256xf32> to vector<1x256xbf16>
    %c1280_318 = arith.constant 1280 : index
    %c0_319 = arith.constant 0 : index
    %379 = vector.load %arg20[%c1280_318, %c0_319] : memref<2048x256xbf16, #tpu.memory_space<vmem>>, vector<256x256xbf16>
    %cst_320 = arith.constant dense<0.000000e+00> : vector<1x256xf32>
    %380 = tpu.matmul %378, %379, %cst_320 {dimension_numbers = #tpu.dot_dimension_numbers<[1], [0], [0], [1], [0, 0, 1, 1], [], []>} : vector<1x256xbf16>, vector<256x256xbf16>, vector<1x256xf32> -> vector<1x256xf32>
    %381 = arith.addf %376, %380 : vector<1x256xf32>
    %382 = vector.extract_strided_slice %350 {offsets = [6, 0], sizes = [1, 256], strides = [1, 1]} : vector<8x256xf32> to vector<1x256xf32>
    %383 = arith.truncf %382 : vector<1x256xf32> to vector<1x256xbf16>
    %c1536_321 = arith.constant 1536 : index
    %c0_322 = arith.constant 0 : index
    %384 = vector.load %arg20[%c1536_321, %c0_322] : memref<2048x256xbf16, #tpu.memory_space<vmem>>, vector<256x256xbf16>
    %cst_323 = arith.constant dense<0.000000e+00> : vector<1x256xf32>
    %385 = tpu.matmul %383, %384, %cst_323 {dimension_numbers = #tpu.dot_dimension_numbers<[1], [0], [0], [1], [0, 0, 1, 1], [], []>} : vector<1x256xbf16>, vector<256x256xbf16>, vector<1x256xf32> -> vector<1x256xf32>
    %386 = arith.addf %381, %385 : vector<1x256xf32>
    %387 = vector.extract_strided_slice %350 {offsets = [7, 0], sizes = [1, 256], strides = [1, 1]} : vector<8x256xf32> to vector<1x256xf32>
    %388 = arith.truncf %387 : vector<1x256xf32> to vector<1x256xbf16>
    %c1792_324 = arith.constant 1792 : index
    %c0_325 = arith.constant 0 : index
    %389 = vector.load %arg20[%c1792_324, %c0_325] : memref<2048x256xbf16, #tpu.memory_space<vmem>>, vector<256x256xbf16>
    %cst_326 = arith.constant dense<0.000000e+00> : vector<1x256xf32>
    %390 = tpu.matmul %388, %389, %cst_326 {dimension_numbers = #tpu.dot_dimension_numbers<[1], [0], [0], [1], [0, 0, 1, 1], [], []>} : vector<1x256xbf16>, vector<256x256xbf16>, vector<1x256xf32> -> vector<1x256xf32>
    %391 = arith.addf %386, %390 : vector<1x256xf32>
    %c0_327 = arith.constant 0 : index
    %c0_328 = arith.constant 0 : index
    %392 = vector.load %arg21[%c0_327, %c0_328] : memref<1x256xf32, #tpu.memory_space<vmem>>, vector<1x256xf32>
    %393 = arith.addf %391, %392 : vector<1x256xf32>
    %cst_329 = arith.constant 0.000000e+00 : f32
    %394 = vector.broadcast %cst_329 : f32 to vector<1x256xf32>
    %395 = arith.maximumf %393, %394 : vector<1x256xf32>
    %396 = arith.truncf %395 : vector<1x256xf32> to vector<1x256xbf16>
    %c0_330 = arith.constant 0 : index
    %c0_331 = arith.constant 0 : index
    %397 = vector.load %arg22[%c0_330, %c0_331] : memref<256x128xbf16, #tpu.memory_space<vmem>>, vector<256x128xbf16>
    %cst_332 = arith.constant dense<0.000000e+00> : vector<1x128xf32>
    %398 = tpu.matmul %396, %397, %cst_332 {dimension_numbers = #tpu.dot_dimension_numbers<[1], [0], [0], [1], [0, 0, 1, 1], [], []>} : vector<1x256xbf16>, vector<256x128xbf16>, vector<1x128xf32> -> vector<1x128xf32>
    %c0_333 = arith.constant 0 : index
    %c0_334 = arith.constant 0 : index
    %399 = vector.load %arg23[%c0_333, %c0_334] : memref<1x128xf32, #tpu.memory_space<vmem>>, vector<1x128xf32>
    %400 = arith.addf %398, %399 : vector<1x128xf32>
    %cst_335 = arith.constant 0.000000e+00 : f32
    %401 = vector.broadcast %cst_335 : f32 to vector<1x128xf32>
    %402 = arith.maximumf %400, %401 : vector<1x128xf32>
    %403 = arith.truncf %402 : vector<1x128xf32> to vector<1x128xbf16>
    %c0_336 = arith.constant 0 : index
    %c0_337 = arith.constant 0 : index
    %404 = vector.load %arg24[%c0_336, %c0_337] : memref<128x128xbf16, #tpu.memory_space<vmem>>, vector<128x128xbf16>
    %cst_338 = arith.constant dense<0.000000e+00> : vector<1x128xf32>
    %405 = tpu.matmul %403, %404, %cst_338 {dimension_numbers = #tpu.dot_dimension_numbers<[1], [0], [0], [1], [0, 0, 1, 1], [], []>} : vector<1x128xbf16>, vector<128x128xbf16>, vector<1x128xf32> -> vector<1x128xf32>
    %c0_339 = arith.constant 0 : index
    %c0_340 = arith.constant 0 : index
    %406 = vector.load %arg25[%c0_339, %c0_340] : memref<1x128xf32, #tpu.memory_space<vmem>>, vector<1x128xf32>
    %407 = arith.addf %405, %406 : vector<1x128xf32>
    %cst_341 = arith.constant dense<0xFF800000> : vector<1xf32>
    %408 = vector.multi_reduction <maximumf>, %407, %cst_341 [1] : vector<1x128xf32> to vector<1xf32>
    %409 = vector.shape_cast %408 : vector<1xf32> to vector<1x1xf32>
    %410 = vector.broadcast %409 : vector<1x1xf32> to vector<1x128xf32>
    %411 = arith.subf %407, %410 : vector<1x128xf32>
    %412 = math.exp %411 : vector<1x128xf32>
    %cst_342 = arith.constant dense<0.000000e+00> : vector<1xf32>
    %413 = vector.multi_reduction <add>, %412, %cst_342 [1] : vector<1x128xf32> to vector<1xf32>
    %414 = vector.shape_cast %413 : vector<1xf32> to vector<1x1xf32>
    %415 = math.log %414 : vector<1x1xf32>
    %416 = vector.broadcast %415 : vector<1x1xf32> to vector<1x128xf32>
    %417 = arith.subf %411, %416 : vector<1x128xf32>
    %c0_343 = arith.constant 0 : index
    %c0_344 = arith.constant 0 : index
    %c0_345 = arith.constant 0 : index
    %418 = vector.load %arg26[%c0_343, %c0_344, %c0_345] : memref<1x1x128xf32, #tpu.memory_space<vmem>>, vector<1x1x128xf32>
    %419 = vector.shape_cast %418 : vector<1x1x128xf32> to vector<1x128xf32>
    %420 = vector.shape_cast %417 : vector<1x128xf32> to vector<1x1x128xf32>
    tpu.vector_store %arg26[%c0_343, %c0_344, %c0_345], %420 {strides = array<i32>} : memref<1x1x128xf32, #tpu.memory_space<vmem>>, vector<1x1x128xf32>,
    return
  }
  func.func @transform_0(%arg0: i32) -> (i32, i32, i32) {
    %c0_i32 = arith.constant 0 : i32
    %c0_i32_0 = arith.constant 0 : i32
    %c0_i32_1 = arith.constant 0 : i32
    return %arg0, %c0_i32, %c0_i32_0 : i32, i32, i32
  }
  func.func @transform_1(%arg0: i32) -> (i32, i32) {
    %c0_i32 = arith.constant 0 : i32
    %c0_i32_0 = arith.constant 0 : i32
    %c0_i32_1 = arith.constant 0 : i32
    return %c0_i32, %c0_i32_0 : i32, i32
  }
  func.func @transform_2(%arg0: i32) -> (i32, i32) {
    %c0_i32 = arith.constant 0 : i32
    %c0_i32_0 = arith.constant 0 : i32
    %c0_i32_1 = arith.constant 0 : i32
    return %c0_i32, %c0_i32_0 : i32, i32
  }
  func.func @transform_3(%arg0: i32) -> (i32, i32) {
    %c0_i32 = arith.constant 0 : i32
    %c0_i32_0 = arith.constant 0 : i32
    %c0_i32_1 = arith.constant 0 : i32
    return %c0_i32, %c0_i32_0 : i32, i32
  }
  func.func @transform_4(%arg0: i32) -> (i32, i32) {
    %c0_i32 = arith.constant 0 : i32
    %c0_i32_0 = arith.constant 0 : i32
    %c0_i32_1 = arith.constant 0 : i32
    return %c0_i32, %c0_i32_0 : i32, i32
  }
  func.func @transform_5(%arg0: i32) -> (i32, i32) {
    %c0_i32 = arith.constant 0 : i32
    %c0_i32_0 = arith.constant 0 : i32
    %c0_i32_1 = arith.constant 0 : i32
    return %c0_i32, %c0_i32_0 : i32, i32
  }
  func.func @transform_6(%arg0: i32) -> (i32, i32) {
    %c0_i32 = arith.constant 0 : i32
    %c0_i32_0 = arith.constant 0 : i32
    %c0_i32_1 = arith.constant 0 : i32
    return %c0_i32, %c0_i32_0 : i32, i32
  }
  func.func @transform_7(%arg0: i32) -> (i32, i32) {
    %c0_i32 = arith.constant 0 : i32
    %c0_i32_0 = arith.constant 0 : i32
    %c0_i32_1 = arith.constant 0 : i32
    return %c0_i32, %c0_i32_0 : i32, i32
  }
  func.func @transform_8(%arg0: i32) -> (i32, i32) {
    %c0_i32 = arith.constant 0 : i32
    %c0_i32_0 = arith.constant 0 : i32
    %c0_i32_1 = arith.constant 0 : i32
    return %c0_i32, %c0_i32_0 : i32, i32
  }
  func.func @transform_9(%arg0: i32) -> (i32, i32) {
    %c0_i32 = arith.constant 0 : i32
    %c0_i32_0 = arith.constant 0 : i32
    %c0_i32_1 = arith.constant 0 : i32
    return %c0_i32, %c0_i32_0 : i32, i32
  }
  func.func @transform_10(%arg0: i32) -> (i32, i32) {
    %c0_i32 = arith.constant 0 : i32
    %c0_i32_0 = arith.constant 0 : i32
    %c0_i32_1 = arith.constant 0 : i32
    return %c0_i32, %c0_i32_0 : i32, i32
  }
  func.func @transform_11(%arg0: i32) -> (i32, i32) {
    %c0_i32 = arith.constant 0 : i32
    %c0_i32_0 = arith.constant 0 : i32
    %c0_i32_1 = arith.constant 0 : i32
    return %c0_i32, %c0_i32_0 : i32, i32
  }
  func.func @transform_12(%arg0: i32) -> (i32, i32) {
    %c0_i32 = arith.constant 0 : i32
    %c0_i32_0 = arith.constant 0 : i32
    %c0_i32_1 = arith.constant 0 : i32
    return %c0_i32, %c0_i32_0 : i32, i32
  }
  func.func @transform_13(%arg0: i32) -> (i32, i32) {
    %c0_i32 = arith.constant 0 : i32
    %c0_i32_0 = arith.constant 0 : i32
    %c0_i32_1 = arith.constant 0 : i32
    return %c0_i32, %c0_i32_0 : i32, i32
  }
  func.func @transform_14(%arg0: i32) -> (i32, i32) {
    %c0_i32 = arith.constant 0 : i32
    %c0_i32_0 = arith.constant 0 : i32
    %c0_i32_1 = arith.constant 0 : i32
    return %c0_i32, %c0_i32_0 : i32, i32
  }
  func.func @transform_15(%arg0: i32) -> (i32, i32) {
    %c0_i32 = arith.constant 0 : i32
    %c0_i32_0 = arith.constant 0 : i32
    %c0_i32_1 = arith.constant 0 : i32
    return %c0_i32, %c0_i32_0 : i32, i32
  }
  func.func @transform_16(%arg0: i32) -> (i32, i32) {
    %c0_i32 = arith.constant 0 : i32
    %c0_i32_0 = arith.constant 0 : i32
    %c0_i32_1 = arith.constant 0 : i32
    return %c0_i32, %c0_i32_0 : i32, i32
  }
  func.func @transform_17(%arg0: i32) -> (i32, i32) {
    %c0_i32 = arith.constant 0 : i32
    %c0_i32_0 = arith.constant 0 : i32
    %c0_i32_1 = arith.constant 0 : i32
    return %c0_i32, %c0_i32_0 : i32, i32
  }
  func.func @transform_18(%arg0: i32) -> (i32, i32) {
    %c0_i32 = arith.constant 0 : i32
    %c0_i32_0 = arith.constant 0 : i32
    %c0_i32_1 = arith.constant 0 : i32
    return %c0_i32, %c0_i32_0 : i32, i32
  }
  func.func @transform_19(%arg0: i32) -> (i32, i32) {
    %c0_i32 = arith.constant 0 : i32
    %c0_i32_0 = arith.constant 0 : i32
    %c0_i32_1 = arith.constant 0 : i32
    return %c0_i32, %c0_i32_0 : i32, i32
  }
  func.func @transform_20(%arg0: i32) -> (i32, i32) {
    %c0_i32 = arith.constant 0 : i32
    %c0_i32_0 = arith.constant 0 : i32
    %c0_i32_1 = arith.constant 0 : i32
    return %c0_i32, %c0_i32_0 : i32, i32
  }
  func.func @transform_21(%arg0: i32) -> (i32, i32) {
    %c0_i32 = arith.constant 0 : i32
    %c0_i32_0 = arith.constant 0 : i32
    %c0_i32_1 = arith.constant 0 : i32
    return %c0_i32, %c0_i32_0 : i32, i32
  }
  func.func @transform_22(%arg0: i32) -> (i32, i32) {
    %c0_i32 = arith.constant 0 : i32
    %c0_i32_0 = arith.constant 0 : i32
    %c0_i32_1 = arith.constant 0 : i32
    return %c0_i32, %c0_i32_0 : i32, i32
  }
  func.func @transform_23(%arg0: i32) -> (i32, i32) {
    %c0_i32 = arith.constant 0 : i32
    %c0_i32_0 = arith.constant 0 : i32
    %c0_i32_1 = arith.constant 0 : i32
    return %c0_i32, %c0_i32_0 : i32, i32
  }
  func.func @transform_24(%arg0: i32) -> (i32, i32) {
    %c0_i32 = arith.constant 0 : i32
    %c0_i32_0 = arith.constant 0 : i32
    %c0_i32_1 = arith.constant 0 : i32
    return %c0_i32, %c0_i32_0 : i32, i32
  }
  func.func @transform_25(%arg0: i32) -> (i32, i32, i32) {
    %c0_i32 = arith.constant 0 : i32
    %c0_i32_0 = arith.constant 0 : i32
    %c0_i32_1 = arith.constant 0 : i32
    return %arg0, %c0_i32, %c0_i32_0 : i32, i32, i32
  }
}

</mosaic_0001>

<bundles_post_ra>
// kernel: forward.1
= control target key start
LH: loop header
LB: loop body
LE: loop exit
PB: predicated region body
PF: predicated region fallthrough
CT: control target
= control target key end

     0   :  { %s23547_s0 = inlined_call_operand.vmem [shape: bf16[2,144,32], index: 0, kind: input, shape index: {}]   ;;  %s23548_s1 = inlined_call_operand.hbm [shape: bf16[32,64], index: 1, kind: input, shape index: {}]   ;;  %s23549_s2 = inlined_call_operand.vmem [shape: f32[1,64], index: 2, kind: input, shape index: {}]   ;;  %s23550_s3 = inlined_call_operand.vmem [shape: f32[184,144], index: 3, kind: input, shape index: {}]   ;;  %s23551_s4 = inlined_call_operand.vmem [shape: bf16[576,64], index: 4, kind: input, shape index: {}]   ;;  %s23552_s5 = inlined_call_operand.vmem [shape: f32[1,64], index: 5, kind: input, shape index: {}]   ;;  %s23553_s6 = inlined_call_operand.vmem [shape: f32[192,144], index: 6, kind: input, shape index: {}]   ;;  %s23554_s7 = inlined_call_operand.hbm [shape: bf16[1024,128], index: 7, kind: input, shape index: {}]   ;;  %s23555_s8 = inlined_call_operand.vmem [shape: f32[1,128], index: 8, kind: input, shape index: {}]   ;;  %s23556_s9 = inlined_call_operand.hbm [shape: f32[64,128], index: 9, kind: input, shape index: {}]   ;;  %s23557_s10 = inlined_call_operand.vmem [shape: bf16[1152,128], index: 10, kind: input, shape index: {}]   ;;  %s23558_s11 = inlined_call_operand.hbm [shape: f32[1,128], index: 11, kind: input, shape index: {}]   ;;  %s23559_s12 = inlined_call_operand.vmem [shape: f32[64,40], index: 12, kind: input, shape index: {}]   ;;  %s23560_s13 = inlined_call_operand.vmem [shape: bf16[1152,128], index: 13, kind: input, shape index: {}]   ;;  %s23561_s14 = inlined_call_operand.hbm [shape: f32[1,128], index: 14, kind: input, shape index: {}]   ;;  %s23562_s15 = inlined_call_operand.vmem [shape: f32[72,40], index: 15, kind: input, shape index: {}]   ;;  %s23563_s16 = inlined_call_operand.vmem [shape: bf16[2048,256], index: 16, kind: input, shape index: {}]   ;;  %s23564_s17 = inlined_call_operand.vmem [shape: f32[1,256], index: 17, kind: input, shape index: {}]   ;;  %s23565_s18 = inlined_call_operand.vmem [shape: f32[8,32], index: 18, kind: input, shape index: {}]   ;;  %s23566_s19 = inlined_call_operand.hbm [shape: bf16[2048,256], index: 19, kind: input, shape index: {}]   ;;  %s23567_s20 = inlined_call_operand.vmem [shape: f32[1,256], index: 20, kind: input, shape index: {}]   ;;  %s23568_s21 = inlined_call_operand.vmem [shape: bf16[256,128], index: 21, kind: input, shape index: {}]   ;;  %s23569_s22 = inlined_call_operand.hbm [shape: f32[1,128], index: 22, kind: input, shape index: {}]   ;;  %s23570_s23 = inlined_call_operand.hbm [shape: bf16[128,128], index: 23, kind: input, shape index: {}]   ;;  %s23571_s24 = inlined_call_operand.hbm [shape: f32[1,128], index: 24, kind: input, shape index: {}]   ;;  %s23572_s25 = inlined_call_operand.hbm [shape: f32[2,1,128], index: 25, kind: output, shape index: {}]  }
   0x1   :  { %23600 = sst [smem:[#allocation37_spill]] %s23547_s0 }
   0x2   :  { %23601 = sst [smem:[#allocation38_spill]] %s23548_s1 }
   0x3   :  { %23602 = sst [smem:[#allocation39_spill]] %s23549_s2 }
   0x4   :  { %23603 = sst [smem:[#allocation40_spill]] %s23550_s3 }
   0x5   :  { %23604 = sst [smem:[#allocation41_spill]] %s23551_s4 }
   0x6   :  { %23605 = sst [smem:[#allocation42_spill]] %s23552_s5 }
   0x7   :  { %23606 = sst [smem:[#allocation43_spill]] %s23553_s6 }
   0x8   :  { %23607 = sst [smem:[#allocation44_spill]] %s23554_s7 }
   0x9   :  { %23608 = sst [smem:[#allocation45_spill]] %s23555_s8 }
   0xa   :  { %23609 = sst [smem:[#allocation46_spill]] %s23556_s9 }
   0xb   :  { %23610 = sst [smem:[#allocation47_spill]] %s23558_s11 }
   0xc   :  { %23611 = sst [smem:[#allocation48_spill]] %s23566_s19 }
   0xd   :  { %23612 = sst [smem:[#allocation49_spill]] %s23567_s20 }
   0xe   :  { %23613 = sst [smem:[#allocation50_spill]] %s23568_s21 }
   0xf   :  { %23614 = sst [smem:[#allocation51_spill]] %s23572_s25 }
  0x10   :  { %30 = vsyncpa [#allocation8], 0 }
  0x11   :  { %31 = vsyncpa [#allocation11], 0 }
  0x12   :  { %32 = vsyncpa [#allocation14], 0 }
  0x13   :  { %33 = vsyncpa [#allocation17], 0 }
  0x14   :  { %34 = vsyncpa [#allocation20], 0 }
  0x15   :  { %35 = vsyncpa [#allocation9], 0 }
  0x16   :  { %37 = vsyncpa [#allocation9 + $0x1], 0  ;;  %s19951_s29 = smov 0   ;;  %s19953_s2 = smov 0  }
  0x17   :  { %s19955_s6 = smov 0   ;;  %s19957_s30 = smov 0  }
  0x18 LB: > { %23615 = sst [smem:[#allocation29_spill]] %s19789_s29  ;;  %s19972_s7 = sadd.s32 4294967295, %s19801_s30   ;;  %s19801_s30 = sphi %s19957_s30, %s23669_s30   ;;  %s19797_s6 = sphi %s19955_s6, %s23672_s6   ;;  %s19793_s2 = sphi %s19953_s2, %s23671_s2   ;;  %s19789_s29 = sphi %s19951_s29, %s23670_s29  }
  0x19   : > { %23616 = sst [smem:[#allocation30_spill]] %s19793_s2  ;;  %s14656_s3 = sadd.s32 4294967294, %s19801_s30  }
  0x1a   : > { %23617 = sst [smem:[#allocation31_spill]] %s19797_s6  ;;  %s19976_s26 = sadd.s32 1, %s19801_s30  }
  0x1b   : > { %23618 = sst [smem:[#allocation32_spill]] %s19801_s30  ;;  %s580_s1 = sadd.s32 1, %s19797_s6 }
  0x1c   : > { %23619 = sst [smem:[#allocation33_spill]] %s19976_s26  ;;  %s577_s8 = ssub.s32 %s19801_s30, %s19976_s26 }
  0x1d   : > { %p590_p0 = scmp.ne.s32.totalorder %s19797_s6, %s19793_s2  ;;  %p578_p1 = scmp.eq.s32.totalorder %s577_s8, 0 }
  0x1e   : > { %p591_p2 = scmp.eq.s32.totalorder %s19972_s7, 1  ;;  %p596_p3 = scmp.ne.s32.totalorder %s19793_s2, %s19789_s29 }
  0x1f   : > { %p597_p4 = scmp.eq.s32.totalorder %s14656_s3, 1  ;;  %p14657_p7 = scmp.ge.s32.totalorder %s19801_s30, 1 }
  0x20   : > { %s19987_s27 = scalar_select %p578_p1, %s19797_s6, %s580_s1  }
  0x21   : > { %p19989_p5 = por %p591_p2, %p590_p0  ;;  %p19993_p6 = por %p597_p4, %p596_p3 }
  0x22   : > { %23620 = sst [smem:[#allocation34_spill]] %s19987_s27  ;;  %p604_p8 = scmp.lt.s32.totalorder %s19801_s30, 3 }
  0x23   : > { %s23621_s4 = scalar_select %p19989_p5, 1, 0 }
  0x24   : > { %s23623_s28 = scalar_select %p19993_p6, 1, 0 }
  0x25   : > { %23622 = sst [smem:[#allocation35_spill]] %s23621_s4  ;;  %p23586_p9 = scmp.eq.s32.totalorder %s19972_s7, 0 }
  0x26   : > { %23624 = sst [smem:[#allocation36_spill]] %s23623_s28  ;;  %p20000_p10 = pnand %p14657_p7, %p604_p8 }
  0x27   : > { %s19803_s5 = smov [#allocation10]   ;;  %s19804_s1 = smov [#allocation13]  }
  0x28   : > { %s23625_s9 = scalar_select %p20000_p10, 1, 0 }
  0x29   : > { %p18315_p11 = pneg %p20000_p10  ;;  %s644_s0 = sshll.u32 %s19803_s5, 4  ;;  %s645_s0 = int_to_ptr.vmem [resolvable:$true] %s644_s0 }
  0x2a   : > { %s677_s8 = sshll.u32 %s19804_s1, 4  ;;  %s23627_s26 = sld [smem:[#allocation44_spill]]  ;;  %s20012_s8 = int_to_ptr.vmem [resolvable:$true] %s677_s8 }
  0x2b   : > { %p20008_p12 = pnand %p23586_p9, %p18315_p11 }
  0x2d   : > { %p20022_p0 = pneg %p20008_p12 }
  0x30   : > { %s19467_s28 = scalar_lea.hbm %s23627_s26, 8192 }
  0x31   : > { %p19468_p13 = scmp.ne.s32.totalorder %s23627_s26, %s19467_s28  ;;  %p19474_p3 = scmp.lt.u32.totalorder %s19467_s28, %s23627_s26 }
  0x33   : > { %p19470_p1 = pnand %p20022_p0, %p19468_p13 }
  0x35   : > { %p19471_p2 = pneg %p19470_p1 }
  0x37   : > { %p19476_p4 = pnand %p19474_p3, %p19471_p2 }
  0x39   : > { %19479 = shalt.err (!%p19476_p4)
}
  0x3a   : > { %s19480_s6 = scalar_lea.vmem %s645_s0, 8192  ;;  %p19488_p9 = scmp.lt.s32.totalorder %s645_s0, %s645_s0 }
  0x3b   : > { %p19481_p7 = scmp.ne.s32.totalorder %s645_s0, %s19480_s6  ;;  %p19489_p6 = scmp.lt.s32.totalorder %s19480_s6, %s19480_s6 }
  0x3d   : > { %p19483_p8 = pnand %p19481_p7, %p20022_p0  ;;  %p19490_p5 = por %p19489_p6, %p19488_p9 }
  0x3f   : > { %p19484_p11 = pneg %p19483_p8 }
  0x41   : > { %p19491_p10 = pnand %p19490_p5, %p19484_p11 }
  0x43   : > { %19494 = shalt.err (!%p19491_p10)
}
  0x44   : > { %s23593_s29 = smov 64   ;;  %s23595_s30 = smov 4  }
  0x45   : > { %18321 = dma.hbm_to_vmem [thread:$0]  (!%p20008_p12), %s23627_s26, 8192, %s645_s0, [#allocation11], %s23593_s29, %s23593_s29, %s23595_s30  }
  0x46   : > { %s23629_s11 = sld [smem:[#allocation47_spill]] }
  0x4c   : > { %s19495_s4 = scalar_lea.hbm %s23629_s11, 16 }
  0x4d   : > { %p19496_p5 = scmp.ne.s32.totalorder %s23629_s11, %s19495_s4  ;;  %p19502_p10 = scmp.lt.u32.totalorder %s19495_s4, %s23629_s11 }
  0x4f   : > { %p19498_p6 = pnand %p19496_p5, %p20022_p0 }
  0x51   : > { %p19499_p9 = pneg %p19498_p6 }
  0x53   : > { %p19504_p13 = pnand %p19502_p10, %p19499_p9 }
  0x55   : > { %19507 = shalt.err (!%p19504_p13)
}
  0x56   : > { %s19508_s0 = scalar_lea.vmem %s20012_s8, 16  ;;  %s19515_s2 = scalar_lea.vmem %s20012_s8, 32 }
  0x57   : > { %p19509_p1 = scmp.ne.s32.totalorder %s20012_s8, %s19508_s0  ;;  %p19516_p4 = scmp.lt.s32.totalorder %s20012_s8, %s20012_s8 }
  0x58   : > { %p19517_p7 = scmp.lt.s32.totalorder %s19515_s2, %s19508_s0 }
  0x59   : > { %p19511_p2 = pnand %p19509_p1, %p20022_p0 }
  0x5a   : > { %p19518_p8 = por %p19517_p7, %p19516_p4 }
  0x5b   : > { %p19512_p3 = pneg %p19511_p2 }
  0x5d   : > { %p19519_p11 = pnand %p19518_p8, %p19512_p3 }
  0x5f   : > { %19522 = shalt.err (!%p19519_p11)
}
  0x60   : > { %18327 = dma.hbm_to_vmem [thread:$0]  (!%p20008_p12), %s23629_s11, 16, %s20012_s8, [#allocation14]  }
  0x61   : > { %s19807_s4 = smov [#allocation16]   ;;  %s19808_s27 = smov [#allocation19]  }
  0x62   : > { %s716_s25 = sshll.u32 %s19807_s4, 4  ;;  %s746_s28 = sshll.u32 %s19808_s27, 4  ;;  %s717_s25 = int_to_ptr.vmem [resolvable:$true] %s716_s25  ;;  %s20065_s28 = int_to_ptr.vmem [resolvable:$true] %s746_s28 }
  0x63   : > { %s23630_s19 = sld [smem:[#allocation48_spill]] }
  0x69   : > { %s19523_s0 = scalar_lea.hbm %s23630_s19, 32768 }
  0x6a   : > { %p19524_p5 = scmp.ne.s32.totalorder %s23630_s19, %s19523_s0  ;;  %p19530_p10 = scmp.lt.u32.totalorder %s19523_s0, %s23630_s19 }
  0x6c   : > { %p19526_p6 = pnand %p19524_p5, %p20022_p0 }
  0x6e   : > { %p19527_p9 = pneg %p19526_p6 }
  0x70   : > { %p19532_p13 = pnand %p19530_p10, %p19527_p9 }
  0x72   : > { %19535 = shalt.err (!%p19532_p13)
}
  0x73   : > { %s19536_s21 = scalar_lea.vmem %s717_s25, 32768  ;;  %p19544_p4 = scmp.lt.s32.totalorder %s717_s25, %s717_s25 }
  0x74   : > { %p19537_p1 = scmp.ne.s32.totalorder %s717_s25, %s19536_s21  ;;  %p19545_p7 = scmp.lt.s32.totalorder %s19536_s21, %s19536_s21 }
  0x76   : > { %p19539_p2 = pnand %p19537_p1, %p20022_p0  ;;  %p19546_p8 = por %p19545_p7, %p19544_p4 }
  0x78   : > { %p19540_p3 = pneg %p19539_p2 }
  0x7a   : > { %p19547_p11 = pnand %p19546_p8, %p19540_p3 }
  0x7c   : > { %19550 = shalt.err (!%p19547_p11)
}
  0x7d   : > { %s23597_s29 = smov 128   ;;  %s23598_s4 = smov 8  }
  0x7e   : > { %18333 = dma.hbm_to_vmem [thread:$0]  (!%p20008_p12), %s23630_s19, 32768, %s717_s25, [#allocation17], %s23597_s29, %s23597_s29, %s23598_s4  }
  0x7f   : > { %s19551_s2 = scalar_lea.hbm %s23570_s23, 1024 }
  0x80   : > { %p19552_p5 = scmp.ne.s32.totalorder %s23570_s23, %s19551_s2  ;;  %p19558_p10 = scmp.lt.u32.totalorder %s19551_s2, %s23570_s23 }
  0x82   : > { %p19554_p6 = pnand %p19552_p5, %p20022_p0 }
  0x84   : > { %p19555_p9 = pneg %p19554_p6 }
  0x86   : > { %p19560_p13 = pnand %p19558_p10, %p19555_p9 }
  0x88   : > { %19563 = shalt.err (!%p19560_p13)
}
  0x89   : > { %s19564_s25 = scalar_lea.vmem %s20065_s28, 1024  ;;  %p19572_p4 = scmp.lt.s32.totalorder %s20065_s28, %s20065_s28 }
  0x8a   : > { %p19565_p1 = scmp.ne.s32.totalorder %s20065_s28, %s19564_s25  ;;  %p19573_p7 = scmp.lt.s32.totalorder %s19564_s25, %s19564_s25 }
  0x8c   : > { %p19567_p2 = pnand %p19565_p1, %p20022_p0  ;;  %p19574_p8 = por %p19573_p7, %p19572_p4 }
  0x8e   : > { %p19568_p3 = pneg %p19567_p2 }
  0x90   : > { %p19575_p11 = pnand %p19574_p8, %p19568_p3 }
  0x92   : > { %19578 = shalt.err (!%p19575_p11)
}
  0x93   : > { %s23631_s30 = smov 4   ;;  %s23632_s27 = smov 64  }
  0x94   : > { %18339 = dma.hbm_to_vmem [thread:$0]  (!%p20008_p12), %s23570_s23, 1024, %s20065_s28, [#allocation20], %s23632_s27, %s23632_s27, %s23631_s30  }
  0x95   : > { %s19811_s0 = smov [#allocation7]   ;;  %s19812_s20 = smov [#allocation12]  }
  0x96   : > { %s616_s2 = sshll.u32 %s19811_s0, 4  ;;  %s660_s8 = sshll.u32 %s19812_s20, 4  ;;  %s617_s2 = int_to_ptr.vmem [resolvable:$true] %s616_s2  ;;  %s20114_s8 = int_to_ptr.vmem [resolvable:$true] %s660_s8 }
  0x97   : > { %s23633_s29 = sld [smem:[#allocation38_spill]] }
  0x9d   : > { %s23634_s4 = smov %s23633_s29  ;;  %s19579_s11 = scalar_lea.hbm %s23633_s29, 256 }
  0x9e   : > { %p19580_p5 = scmp.ne.s32.totalorder %s23634_s4, %s19579_s11  ;;  %p19586_p10 = scmp.lt.u32.totalorder %s19579_s11, %s23634_s4 }
  0xa0   : > { %p19582_p6 = pnand %p19580_p5, %p20022_p0 }
  0xa2   : > { %p19583_p9 = pneg %p19582_p6 }
  0xa4   : > { %p19588_p13 = pnand %p19586_p10, %p19583_p9 }
  0xa6   : > { %19591 = shalt.err (!%p19588_p13)
}
  0xa7   : > { %s19592_s6 = scalar_lea.vmem %s617_s2, 256  ;;  %p19600_p4 = scmp.lt.s32.totalorder %s617_s2, %s617_s2 }
  0xa8   : > { %p19593_p1 = scmp.ne.s32.totalorder %s617_s2, %s19592_s6  ;;  %p19601_p7 = scmp.lt.s32.totalorder %s19592_s6, %s19592_s6 }
  0xaa   : > { %p19595_p2 = pnand %p19593_p1, %p20022_p0  ;;  %p19602_p8 = por %p19601_p7, %p19600_p4 }
  0xac   : > { %p19596_p3 = pneg %p19595_p2 }
  0xae   : > { %p19603_p11 = pnand %p19602_p8, %p19596_p3 }
  0xb0   : > { %19606 = shalt.err (!%p19603_p11)
}
  0xb1   : > { %18318 = dma.hbm_to_vmem [thread:$0]  (!%p20008_p12), %s23634_s4, 256, %s617_s2, [#allocation8], %s23632_s27, %s23632_s27, %s23631_s30  }
  0xb2   : > { %s23635_s0 = sld [smem:[#allocation46_spill]] }
  0xb8   : > { %s19607_s20 = scalar_lea.hbm %s23635_s0, 1024 }
  0xb9   : > { %p19608_p5 = scmp.ne.s32.totalorder %s23635_s0, %s19607_s20  ;;  %p19614_p10 = scmp.lt.u32.totalorder %s19607_s20, %s23635_s0 }
  0xbb   : > { %p19610_p6 = pnand %p19608_p5, %p20022_p0 }
  0xbd   : > { %p19611_p9 = pneg %p19610_p6 }
  0xbf   : > { %p19616_p13 = pnand %p19614_p10, %p19611_p9 }
  0xc1   : > { %19619 = shalt.err (!%p19616_p13)
}
  0xc2   : > { %s19620_s30 = scalar_lea.vmem %s20114_s8, 1024  ;;  %p19628_p4 = scmp.lt.s32.totalorder %s20114_s8, %s20114_s8 }
  0xc3   : > { %p19621_p1 = scmp.ne.s32.totalorder %s20114_s8, %s19620_s30  ;;  %p19629_p7 = scmp.lt.s32.totalorder %s19620_s30, %s19620_s30 }
  0xc5   : > { %p19623_p2 = pnand %p19621_p1, %p20022_p0  ;;  %p19630_p8 = por %p19629_p7, %p19628_p4 }
  0xc7   : > { %p19624_p3 = pneg %p19623_p2 }
  0xc9   : > { %p19631_p11 = pnand %p19630_p8, %p19624_p3 }
  0xcb   : > { %19634 = shalt.err (!%p19631_p11)
}
  0xcc   : > { %s23636_s27 = smov 8   ;;  %s23637_s2 = smov 128  }
  0xcd   : > { %18324 = dma.hbm_to_vmem [thread:$0]  (!%p20008_p12), %s23635_s0, 1024, %s20114_s8, [#allocation11], %s23637_s2, %s23637_s2, %s23636_s27  }
  0xce   : > { %s19813_s11 = smov [#allocation15]   ;;  %s19814_s29 = smov [#allocation18]  }
  0xcf   : > { %s694_s26 = sshll.u32 %s19813_s11, 4  ;;  %s736_s20 = sshll.u32 %s19814_s29, 4  ;;  %s695_s26 = int_to_ptr.vmem [resolvable:$true] %s694_s26  ;;  %s20163_s20 = int_to_ptr.vmem [resolvable:$true] %s736_s20 }
  0xd0   : > { %s19635_s1 = scalar_lea.hbm %s23561_s14, 16 }
  0xd1   : > { %p19636_p5 = scmp.ne.s32.totalorder %s23561_s14, %s19635_s1  ;;  %p19642_p10 = scmp.lt.u32.totalorder %s19635_s1, %s23561_s14 }
  0xd3   : > { %p19638_p6 = pnand %p19636_p5, %p20022_p0 }
  0xd5   : > { %p19639_p9 = pneg %p19638_p6 }
  0xd7   : > { %p19644_p13 = pnand %p19642_p10, %p19639_p9 }
  0xd9   : > { %19647 = shalt.err (!%p19644_p13)
}
  0xda   : > { %s19648_s27 = scalar_lea.vmem %s695_s26, 16  ;;  %s19655_s2 = scalar_lea.vmem %s695_s26, 32 }
  0xdb   : > { %p19649_p1 = scmp.ne.s32.totalorder %s695_s26, %s19648_s27  ;;  %p19656_p4 = scmp.lt.s32.totalorder %s695_s26, %s695_s26 }
  0xdc   : > { %p19657_p7 = scmp.lt.s32.totalorder %s19655_s2, %s19648_s27 }
  0xdd   : > { %p19651_p2 = pnand %p19649_p1, %p20022_p0 }
  0xde   : > { %p19658_p8 = por %p19657_p7, %p19656_p4 }
  0xdf   : > { %p19652_p3 = pneg %p19651_p2 }
  0xe1   : > { %p19659_p11 = pnand %p19658_p8, %p19652_p3 }
  0xe3   : > { %19662 = shalt.err (!%p19659_p11)
}
  0xe4   : > { %18330 = dma.hbm_to_vmem [thread:$0]  (!%p20008_p12), %s23561_s14, 16, %s695_s26, [#allocation14]  }
  0xe5   : > { %s19663_s25 = scalar_lea.hbm %s23569_s22, 16 }
  0xe6   : > { %p19664_p5 = scmp.ne.s32.totalorder %s23569_s22, %s19663_s25  ;;  %p19670_p10 = scmp.lt.u32.totalorder %s19663_s25, %s23569_s22 }
  0xe8   : > { %p19666_p6 = pnand %p19664_p5, %p20022_p0 }
  0xea   : > { %p19667_p9 = pneg %p19666_p6 }
  0xec   : > { %p19672_p13 = pnand %p19670_p10, %p19667_p9 }
  0xee   : > { %19675 = shalt.err (!%p19672_p13)
}
  0xef   : > { %s19676_s26 = scalar_lea.vmem %s20163_s20, 16  ;;  %s19683_s8 = scalar_lea.vmem %s20163_s20, 32 }
  0xf0   : > { %p19677_p1 = scmp.ne.s32.totalorder %s20163_s20, %s19676_s26  ;;  %p19684_p4 = scmp.lt.s32.totalorder %s20163_s20, %s20163_s20 }
  0xf1   : > { %p19685_p7 = scmp.lt.s32.totalorder %s19683_s8, %s19676_s26 }
  0xf2   : > { %p19679_p2 = pnand %p19677_p1, %p20022_p0 }
  0xf3   : > { %p19686_p8 = por %p19685_p7, %p19684_p4 }
  0xf4   : > { %p19680_p3 = pneg %p19679_p2 }
  0xf6   : > { %p19687_p11 = pnand %p19686_p8, %p19680_p3 }
  0xf8   : > { %19690 = shalt.err (!%p19687_p11)
}
  0xf9   : > { %18336 = dma.hbm_to_vmem [thread:$0]  (!%p20008_p12), %s23569_s22, 16, %s20163_s20, [#allocation17]  }
  0xfa   : > { %s19815_s19 = smov [#allocation21]   ;;  %s19691_s25 = scalar_lea.hbm %s23571_s24, 16 }
  0xfb   : > { %s760_s11 = sshll.u32 %s19815_s19, 4  ;;  %p19692_p5 = scmp.ne.s32.totalorder %s23571_s24, %s19691_s25  ;;  %s761_s11 = int_to_ptr.vmem [resolvable:$true] %s760_s11 }
  0xfc   : > { %p19698_p10 = scmp.lt.u32.totalorder %s19691_s25, %s23571_s24 }
  0xfd   : > { %p19694_p6 = pnand %p19692_p5, %p20022_p0 }
  0xff   : > { %p19695_p9 = pneg %p19694_p6 }
 0x101   : > { %p19700_p13 = pnand %p19698_p10, %p19695_p9 }
 0x103   : > { %19703 = shalt.err (!%p19700_p13)
}
 0x104   : > { %s19704_s20 = scalar_lea.vmem %s761_s11, 16  ;;  %s19711_s26 = scalar_lea.vmem %s761_s11, 32 }
 0x105   : > { %p19705_p1 = scmp.ne.s32.totalorder %s761_s11, %s19704_s20  ;;  %p19712_p4 = scmp.lt.s32.totalorder %s761_s11, %s761_s11 }
 0x106   : > { %p19713_p7 = scmp.lt.s32.totalorder %s19711_s26, %s19704_s20 }
 0x107   : > { %p19707_p2 = pnand %p19705_p1, %p20022_p0 }
 0x108   : > { %p19714_p8 = por %p19713_p7, %p19712_p4 }
 0x109   : > { %p19708_p3 = pneg %p19707_p2 }
 0x10b   : > { %p19715_p11 = pnand %p19714_p8, %p19708_p3 }
 0x10d   : > { %19718 = shalt.err (!%p19715_p11)
}
 0x10e   : > { %18342 = dma.hbm_to_vmem [thread:$0]  (!%p20008_p12), %s23571_s24, 16, %s761_s11, [#allocation20]  }
 0x10f   : > { %p23638_p5 = scmp.ne.s32.totalorder %s23625_s9, 0 }
 0x110   : > { %p23639_p6 = scmp.eq.s32.totalorder (!%p23638_p5), %s19972_s7, 0 }
 0x111   : > { %781 = sbr.rel (%p23638_p5) target bundleno = 6329 (0x18b9), region = 120 }
 0x118   : > { %19764 = dma.done.wait (%p23639_p6), [#allocation8], 256   ;;  %p23640_p0 = pmov %p23639_p6 }
 0x11a   : > { %19766 = vsyncadd (%p23640_p0), [#allocation8], 4294967040  ;;  %p23641_p9 = pmov %p23640_p0 }
 0x11b   : > { %p23642_p10 = pmov %p23640_p0 }
 0x11c   : > { %19768 = dma.done.wait (%p23641_p9), [#allocation11], 9216  }
 0x11d   : > { %19770 = vsyncadd (%p23642_p10), [#allocation11], 4294958080  ;;  %p23643_p13 = pmov %p23640_p0 }
 0x11e   : > { %p23644_p12 = pmov %p23640_p0 }
 0x11f   : > { %19772 = dma.done.wait (%p23643_p13), [#allocation14], 32  }
 0x120   : > { %19774 = vsyncadd (%p23644_p12), [#allocation14], 4294967264  ;;  %p23645_p1 = pmov %p23640_p0 }
 0x121   : > { %p23646_p2 = pmov %p23640_p0 }
 0x122   : > { %19776 = dma.done.wait (%p23645_p1), [#allocation17], 32784  }
 0x123   : > { %19778 = vsyncadd (%p23646_p2), [#allocation17], 4294934512  ;;  %p23647_p3 = pmov %p23640_p0 }
 0x124   : > { %p23648_p4 = pmov %p23640_p0 }
 0x125   : > { %19780 = dma.done.wait (%p23647_p3), [#allocation20], 1040  }
 0x126   : > { %19782 = vsyncadd (%p23648_p4), [#allocation20], 4294966256  ;;  %p880_p7 = scmp.lt.s32.totalorder %s19972_s7, 1  ;;  %v19816_v0 = vmov 0.0   ;;  %vm19817_vm0 = vmmov 0   ;;  %v18415_v1 = vld [vmem:[#allocation7] sm:$0xff]  }
 0x127   : > { %16361 = vmatprep.subr.bf16.mxu0 %v19816_v0  ;;  %16365 = vmatprep.mubr.msk.bf16.mxu0 %vm19817_vm0, %v19816_v0  ;;  %s23649_s19 = sld [smem:[#allocation37_spill]]  ;;  %v18416_v2 = vld [vmem:[#allocation7 + $0x8] sm:$0xff]   ;;  %vm972_vm1 = vcmask 261120   ;;  %v19818_v12 = vmov 0.0|0.0   ;;  %s23650_s25 = sld [smem:[#allocation40_spill]]  ;;  %vm1169_vm2 = vcmask 130048  }
 0x128   : > { %s881_s9 = scalar_select %p880_p7, %s19972_s7, 1  ;;  %16362 = vmatpush3.bf16.msra.mxu0 %v18415_v1  ;;  %17808 = vmatprep.subr.bf16.mxu1 %v19818_v12  ;;  %vm1419_vm3 = vcmask 523264   ;;  %vm8088_vm4 = vcmask 326656   ;;  %vm14486_vm5 = vcmask 1040384  }
 0x129   : > { %16363 = vmatprep.subr.bf16.mxu0 %v19816_v0  ;;  %s23651_s30 = sld [smem:[#allocation39_spill]]  ;;  %s23652_s2 = sld [smem:[#allocation41_spill]] }
 0x12a   : > { %s18276_s3 = smul.u32 72, %s881_s9  ;;  %s23654_s29 = sld [smem:[#allocation43_spill]] }
 0x12b   : > { %s23657_s28 = sld [smem:[#allocation45_spill]]  ;;  %s23660_s5 = sld [smem:[#allocation49_spill]] }
 0x12c   : > { %16364 = vmatpush3.bf16.msra.mxu0 %v18416_v2  ;;  %s15758_s1 = sshll.u32 %s19972_s7, 4  ;;  %s23663_s8 = sld [smem:[#allocation51_spill]] }
 0x12d   : > { %s20255_s11 = scalar_lea.vmem %s23649_s19, %s18276_s3  ;;  %16401 = vmatprep.subr.bf16.mxu0 %v19816_v0  ;;  %v1124_v13 = vld [vmem:[%s23650_s25 + $0x8] sm:$0xff]  ;;  %s19820_s7 = smov [#allocation22]  }
 0x12e   : > { %v18417_v3 = vld [vmem:[%s20255_s11] sm:$0xff]   ;;  %v18418_v4 = vld [vmem:[%s20255_s11 + $0x8] sm:$0xff]   ;;  %v18419_v5 = vld [vmem:[%s20255_s11 + $0x10] sm:$0xff]   ;;  %14700 = vmatprep.mubr.msk.f32.mxu1 %vm1169_vm2, %v1124_v13 }
 0x12f   : > { %16366 = vmatmul.mubr.msk.bf16.vlgmr.msra.gmra.mrb[0].mxu0 %vm972_vm1, %v18417_v3  ;;  %v18420_v6 = vld [vmem:[%s20255_s11 + $0x18] sm:$0xff]   ;;  %v18421_v7 = vld [vmem:[%s20255_s11 + $0x20] sm:$0xff]   ;;  %v18422_v8 = vld [vmem:[%s20255_s11 + $0x28] sm:$0xff]   ;;  %s23653_s19 = smov %s23652_s2 }
 0x130   : > { %16369 = vmatprep.mubr.msk.bf16.mxu0 %vm19817_vm0, %v19816_v0  ;;  %v18423_v9 = vld [vmem:[%s20255_s11 + $0x30] sm:$0xff]   ;;  %v18424_v10 = vld [vmem:[%s20255_s11 + $0x38] sm:$0xff]   ;;  %v18425_v11 = vld [vmem:[%s20255_s11 + $0x40] sm:$0xff]   ;;  %s23655_s21 = smov %s23654_s29  ;;  %s23662_s11 = sld [smem:[#allocation35_spill]] }
 0x131   : > { %v20303_v14 = vld [vmem:[%s23651_s30] ss:$0 sm:$0xff]  ;;  %s23656_s30 = sld [smem:[#allocation42_spill]] }
 0x132   : > { %s23505_s27 = scalar_lea.hbm %s23663_s8, %s15758_s1 }
 0x136   : > { %p23664_p11 = scmp.ne.s32.totalorder %s23662_s11, 0 }
 0x137   : > { %16370 = vmatmul.mubr.msk.bf16.gmra.mrb[4].mxu0 %vm972_vm1, %v18418_v4 }
 0x138   : > { %16373 = vmatprep.mubr.msk.bf16.mxu0 %vm19817_vm0, %v19816_v0 }
 0x13f   : > { %16374 = vmatmul.mubr.msk.bf16.gmra.mrb[8].mxu0 %vm972_vm1, %v18419_v5 }
 0x140   : > { %16377 = vmatprep.mubr.msk.bf16.mxu0 %vm19817_vm0, %v19816_v0 }
 0x147   : > { %16378 = vmatmul.mubr.msk.bf16.gmra.mrb[12].mxu0 %vm972_vm1, %v18420_v6 }
 0x148   : > { %16381 = vmatprep.mubr.msk.bf16.mxu0 %vm19817_vm0, %v19816_v0 }
 0x14f   : > { %16382 = vmatmul.mubr.msk.bf16.gmra.mrb[16].mxu0 %vm972_vm1, %v18421_v7 }
 0x150   : > { %16385 = vmatprep.mubr.msk.bf16.mxu0 %vm19817_vm0, %v19816_v0 }
 0x157   : > { %16386 = vmatmul.mubr.msk.bf16.gmra.mrb[20].mxu0 %vm972_vm1, %v18422_v8 }
 0x158   : > { %16389 = vmatprep.mubr.msk.bf16.mxu0 %vm19817_vm0, %v19816_v0 }
 0x15f   : > { %16390 = vmatmul.mubr.msk.bf16.gmra.mrb[24].mxu0 %vm972_vm1, %v18423_v9 }
 0x160   : > { %16393 = vmatprep.mubr.msk.bf16.mxu0 %vm19817_vm0, %v19816_v0 }
 0x167   : > { %16394 = vmatmul.mubr.msk.bf16.gmra.mrb[28].mxu0 %vm972_vm1, %v18424_v10 }
 0x168   : > { %16397 = vmatprep.mubr.msk.bf16.mxu0 %vm19817_vm0, %v19816_v0 }
 0x16f   : > { %16398 = vmatmul.mubr.msk.bf16.gmra.mrb[32].mxu0 %vm972_vm1, %v18425_v11 }
 0x170   : > { %16409 = vmatprep.mubr.msk.bf16.mxu0 %vm19817_vm0, %v19816_v0 }
 0x202   : > { %v1034_v15 = vpop.f32.mrb[0].mxu0 }
 0x203   : > { %v1035_v16 = vadd.f32 %v20303_v14, %v1034_v15  ;;  %v16367_v17 = vpop.f32.mrb[1].mxu0 }
 0x204   : > { %v1037_v18 = vpop.f32.mrb[2].mxu0 }
 0x205   : > { %v1038_v19 = vadd.f32 %v20303_v14, %v1037_v18  ;;  %v16368_v20 = vpop.f32.mrb[3].mxu0  ;;  %v1105_v21 = vmax.f32 %v1035_v16, 0.0 }
 0x207   : > { %v1106_v22 = vmax.f32 %v1038_v19, 0.0 }
 0x209   : > { %v17809_v23 = vpack.c.bf16 %v1106_v22, %v1105_v21 }
 0x20a   : > { %v1042_v24 = vpop.f32.mrb[4].mxu0 }
 0x20b   : > { %v1043_v25 = vadd.f32 %v20303_v14, %v1042_v24  ;;  %v16371_v26 = vpop.f32.mrb[5].mxu0  ;;  %17810 = vmatpush1.bf16.msra.mxu1 %v17809_v23 }
 0x20c   : > { %v1045_v27 = vpop.f32.mrb[6].mxu0  ;;  %17811 = vmatprep.subr.bf16.mxu1 %v19818_v12 }
 0x20d   : > { %v1046_v28 = vadd.f32 %v20303_v14, %v1045_v27  ;;  %v16372_v29 = vpop.f32.mrb[7].mxu0  ;;  %v1107_v30 = vmax.f32 %v1043_v25, 0.0 }
 0x20f   : > { %v1108_v31 = vmax.f32 %v1046_v28, 0.0 }
 0x211   : > { %v17812_v32 = vpack.c.bf16 %v1108_v31, %v1107_v30 }
 0x212   : > { %v1050_v33 = vpop.f32.mrb[8].mxu0 }
 0x213   : > { %v1051_v34 = vadd.f32 %v20303_v14, %v1050_v33  ;;  %v16375_v35 = vpop.f32.mrb[9].mxu0  ;;  %17813 = vmatpush1.bf16.msra.mxu1 %v17812_v32 }
 0x214   : > { %v1053_v36 = vpop.f32.mrb[10].mxu0  ;;  %17814 = vmatprep.subr.bf16.mxu1 %v19818_v12  ;;  %v1123_v35 = vld [vmem:[%s23650_s25] sm:$0xff] }
 0x215   : > { %v1054_v37 = vadd.f32 %v20303_v14, %v1053_v36  ;;  %v16376_v38 = vpop.f32.mrb[11].mxu0  ;;  %v1109_v39 = vmax.f32 %v1051_v34, 0.0  ;;  %v1126_v36 = vld [vmem:[%s23650_s25 + $0x18] sm:$0xff] }
 0x216   : > { %v1127_v38 = vld [vmem:[%s23650_s25 + $0x20] sm:$0xff] }
 0x217   : > { %v1110_v40 = vmax.f32 %v1054_v37, 0.0  ;;  %v1125_v37 = vld [vmem:[%s23650_s25 + $0x10] sm:$0xff] }
 0x219   : > { %v17815_v41 = vpack.c.bf16 %v1110_v40, %v1109_v39  ;;  %v1130_v39 = vld [vmem:[%s23650_s25 + $0x38] sm:$0xff]  ;;  %v1129_v40 = vld [vmem:[%s23650_s25 + $0x30] sm:$0xff] }
 0x21a   : > { %v1058_v42 = vpop.f32.mrb[12].mxu0 }
 0x21b   : > { %v1059_v43 = vadd.f32 %v20303_v14, %v1058_v42  ;;  %v16379_v44 = vpop.f32.mrb[13].mxu0  ;;  %17816 = vmatpush1.bf16.msra.mxu1 %v17815_v41  ;;  %v1132_v41 = vld [vmem:[%s23650_s25 + $0x48] sm:$0xff]  ;;  %v1131_v42 = vld [vmem:[%s23650_s25 + $0x40] sm:$0xff] }
 0x21c   : > { %v1061_v45 = vpop.f32.mrb[14].mxu0  ;;  %17817 = vmatprep.subr.bf16.mxu1 %v19818_v12  ;;  %v1133_v44 = vld [vmem:[%s23650_s25 + $0x50] sm:$0xff] }
 0x21d   : > { %v1062_v46 = vadd.f32 %v20303_v14, %v1061_v45  ;;  %v16380_v47 = vpop.f32.mrb[15].mxu0  ;;  %v1111_v48 = vmax.f32 %v1059_v43, 0.0  ;;  %v1134_v43 = vld [vmem:[%s23650_s25 + $0x58] sm:$0xff]  ;;  %v1136_v45 = vld [vmem:[%s23650_s25 + $0x68] sm:$0xff] }
 0x21e   : > { %v1138_v47 = vld [vmem:[%s23650_s25 + $0x78] sm:$0xff] }
 0x21f   : > { %v1112_v49 = vmax.f32 %v1062_v46, 0.0  ;;  %v1135_v46 = vld [vmem:[%s23650_s25 + $0x60] sm:$0xff] }
 0x221   : > { %v17818_v50 = vpack.c.bf16 %v1112_v49, %v1111_v48  ;;  %v1137_v48 = vld [vmem:[%s23650_s25 + $0x70] sm:$0xff]  ;;  %v1140_v49 = vld [vmem:[%s23650_s25 + $0x88] sm:$0xff] }
 0x222   : > { %v1066_v51 = vpop.f32.mrb[16].mxu0 }
 0x223   : > { %v1067_v52 = vadd.f32 %v20303_v14, %v1066_v51  ;;  %v16383_v53 = vpop.f32.mrb[17].mxu0  ;;  %17819 = vmatpush1.bf16.msra.mxu1 %v17818_v50  ;;  %v1139_v50 = vld [vmem:[%s23650_s25 + $0x80] sm:$0xff]  ;;  %v1142_v51 = vld [vmem:[%s23650_s25 + $0x98] sm:$0xff] }
 0x224   : > { %v1069_v54 = vpop.f32.mrb[18].mxu0  ;;  %17820 = vmatprep.subr.bf16.mxu1 %v19818_v12  ;;  %v1144_v53 = vld [vmem:[%s23650_s25 + $0xa8] sm:$0xff] }
 0x225   : > { %v1070_v55 = vadd.f32 %v20303_v14, %v1069_v54  ;;  %v16384_v56 = vpop.f32.mrb[19].mxu0  ;;  %v1113_v57 = vmax.f32 %v1067_v52, 0.0  ;;  %v1141_v52 = vld [vmem:[%s23650_s25 + $0x90] sm:$0xff]  ;;  %v1143_v54 = vld [vmem:[%s23650_s25 + $0xa0] sm:$0xff] }
 0x226   : > { %v1145_v56 = vld [vmem:[%s23650_s25 + $0xb0] sm:$0xff] }
 0x227   : > { %v1114_v58 = vmax.f32 %v1070_v55, 0.0  ;;  %v1146_v55 = vld [vmem:[%s23650_s25 + $0xb8] sm:$0xff] }
 0x229   : > { %v17821_v59 = vpack.c.bf16 %v1114_v58, %v1113_v57  ;;  %v1148_v57 = vld [vmem:[%s23650_s25 + $0xc8] sm:$0xff]  ;;  %v1147_v58 = vld [vmem:[%s23650_s25 + $0xc0] sm:$0xff] }
 0x22a   : > { %v1074_v60 = vpop.f32.mrb[20].mxu0 }
 0x22b   : > { %v1075_v61 = vadd.f32 %v20303_v14, %v1074_v60  ;;  %v16387_v62 = vpop.f32.mrb[21].mxu0  ;;  %17822 = vmatpush1.bf16.msra.mxu1 %v17821_v59  ;;  %v1150_v59 = vld [vmem:[%s23650_s25 + $0xd8] sm:$0xff]  ;;  %v1149_v60 = vld [vmem:[%s23650_s25 + $0xd0] sm:$0xff] }
 0x22c   : > { %v1077_v63 = vpop.f32.mrb[22].mxu0  ;;  %17823 = vmatprep.subr.bf16.mxu1 %v19818_v12  ;;  %v1151_v62 = vld [vmem:[%s23650_s25 + $0xe0] sm:$0xff] }
 0x22d   : > { %v1078_v1 = vadd.f32 %v20303_v14, %v1077_v63  ;;  %v16388_v2 = vpop.f32.mrb[23].mxu0  ;;  %v1115_v3 = vmax.f32 %v1075_v61, 0.0  ;;  %v1152_v61 = vld [vmem:[%s23650_s25 + $0xe8] sm:$0xff]  ;;  %v1154_v63 = vld [vmem:[%s23650_s25 + $0xf8] sm:$0xff] }
 0x22e   : > { %v1156_v2 = vld [vmem:[%s23650_s25 + $0x108] sm:$0xff] }
 0x22f   : > { %v1116_v4 = vmax.f32 %v1078_v1, 0.0  ;;  %v1153_v1 = vld [vmem:[%s23650_s25 + $0xf0] sm:$0xff] }
 0x231   : > { %v17824_v5 = vpack.c.bf16 %v1116_v4, %v1115_v3  ;;  %v1155_v3 = vld [vmem:[%s23650_s25 + $0x100] sm:$0xff]  ;;  %v1158_v4 = vld [vmem:[%s23650_s25 + $0x118] sm:$0xff] }
 0x232   : > { %v1082_v6 = vpop.f32.mrb[24].mxu0 }
 0x233   : > { %v1083_v7 = vadd.f32 %v20303_v14, %v1082_v6  ;;  %v16391_v8 = vpop.f32.mrb[25].mxu0  ;;  %17825 = vmatpush1.bf16.msra.mxu1 %v17824_v5  ;;  %v1157_v5 = vld [vmem:[%s23650_s25 + $0x110] sm:$0xff]  ;;  %v1160_v6 = vld [vmem:[%s23650_s25 + $0x128] sm:$0xff] }
 0x234   : > { %v1085_v9 = vpop.f32.mrb[26].mxu0  ;;  %17826 = vmatprep.subr.bf16.mxu1 %v19818_v12  ;;  %v1162_v8 = vld [vmem:[%s23650_s25 + $0x138] sm:$0xff] }
 0x235   : > { %v1086_v10 = vadd.f32 %v20303_v14, %v1085_v9  ;;  %v16392_v11 = vpop.f32.mrb[27].mxu0  ;;  %v1117_v13 = vmax.f32 %v1083_v7, 0.0  ;;  %v1159_v7 = vld [vmem:[%s23650_s25 + $0x120] sm:$0xff]  ;;  %v1161_v9 = vld [vmem:[%s23650_s25 + $0x130] sm:$0xff] }
 0x236   : > { %v1163_v11 = vld [vmem:[%s23650_s25 + $0x140] sm:$0xff] }
 0x237   : > { %v1118_v15 = vmax.f32 %v1086_v10, 0.0  ;;  %v1164_v10 = vld [vmem:[%s23650_s25 + $0x148] sm:$0xff] }
 0x239   : > { %v17827_v16 = vpack.c.bf16 %v1118_v15, %v1117_v13  ;;  %v1166_v13 = vld [vmem:[%s23650_s25 + $0x158] sm:$0xff]  ;;  %v1165_v15 = vld [vmem:[%s23650_s25 + $0x150] sm:$0xff] }
 0x23a   : > { %v1090_v17 = vpop.f32.mrb[28].mxu0 }
 0x23b   : > { %v1091_v18 = vadd.f32 %v20303_v14, %v1090_v17  ;;  %v16395_v19 = vpop.f32.mrb[29].mxu0  ;;  %17828 = vmatpush1.bf16.msra.mxu1 %v17827_v16  ;;  %v18426_v16 = vld [vmem:[%s23652_s2] sm:$0xff]   ;;  %v1168_v17 = vld [vmem:[%s23650_s25 + $0x168] sm:$0xff]  ;;  %s23661_s2 = sld [smem:[#allocation30_spill]] }
 0x23c   : > { %v1093_v20 = vpop.f32.mrb[30].mxu0  ;;  %17829 = vmatprep.subr.bf16.mxu1 %v19818_v12  ;;  %v18427_v19 = vld [vmem:[%s23653_s19 + $0x20] sm:$0xff]  }
 0x23d   : > { %v1094_v21 = vadd.f32 %v20303_v14, %v1093_v20  ;;  %v16396_v22 = vpop.f32.mrb[31].mxu0  ;;  %v1119_v23 = vmax.f32 %v1091_v18, 0.0  ;;  %v1167_v18 = vld [vmem:[%s23650_s25 + $0x160] sm:$0xff]  ;;  %v18428_v20 = vld [vmem:[%s23653_s19 + $0x8] sm:$0xff]   ;;  %16402 = vmatpush3.bf16.msra.mxu0 %v18427_v19 }
 0x23e   : > { %16403 = vmatprep.subr.bf16.mxu0 %v19816_v0  ;;  %v18430_v22 = vld [vmem:[%s23653_s19 + $0x10] sm:$0xff]  }
 0x23f   : > { %v1120_v24 = vmax.f32 %v1094_v21, 0.0  ;;  %v18429_v21 = vld [vmem:[%s23653_s19 + $0x28] sm:$0xff]  }
 0x241   : > { %v17830_v25 = vpack.c.bf16 %v1120_v24, %v1119_v23  ;;  %16404 = vmatpush3.bf16.msra.mxu0 %v18429_v21  ;;  %v18431_v23 = vld [vmem:[%s23653_s19 + $0x30] sm:$0xff]   ;;  %v18432_v24 = vld [vmem:[%s23653_s19 + $0x18] sm:$0xff]  }
 0x242   : > { %v1098_v26 = vpop.f32.mrb[32].mxu0  ;;  %16405 = vmatprep.subr.bf16.mxu0 %v19816_v0 }
 0x243   : > { %v1099_v27 = vadd.f32 %v20303_v14, %v1098_v26  ;;  %v16399_v28 = vpop.f32.mrb[33].mxu0  ;;  %17831 = vmatpush1.bf16.msra.mxu1 %v17830_v25  ;;  %v18433_v25 = vld [vmem:[%s23653_s19 + $0x38] sm:$0xff]  }
 0x244   : > { %v1101_v29 = vpop.f32.mrb[34].mxu0  ;;  %17832 = vmatprep.subr.bf16.mxu1 %v19818_v12 }
 0x245   : > { %v1102_v30 = vadd.f32 %v20303_v14, %v1101_v29  ;;  %v16400_v31 = vpop.f32.mrb[35].mxu0  ;;  %v1121_v32 = vmax.f32 %v1099_v27, 0.0  ;;  %v1128_v14 = vld [vmem:[%s23650_s25 + $0x28] sm:$0xff]  ;;  %16406 = vmatpush3.bf16.msra.mxu0 %v18431_v23 }
 0x246   : > { %16407 = vmatprep.subr.bf16.mxu0 %v19816_v0 }
 0x247   : > { %v1122_v33 = vmax.f32 %v1102_v30, 0.0 }
 0x249   : > { %v17833_v34 = vpack.c.bf16 %v1122_v33, %v1121_v32  ;;  %16408 = vmatpush3.bf16.msra.mxu0 %v18433_v25 }
 0x24a   : > { %16489 = vmatprep.subr.bf16.mxu0 %v19816_v0 }
 0x24b   : > { %17834 = vmatpush1.bf16.msra.mxu1 %v17833_v34 }
 0x24c   : > { %16445 = vmatprep.subr.bf16.mxu1 %v19816_v0 }
 0x24e   : > { %1304 = vmatmul.mubr.f32.vlgmr.msra.gmra.mrb[0].mxu1 %v1123_v35  ;;  %v18434_v35 = vld [vmem:[%s23653_s19 + $0x60] sm:$0xff]  }
 0x24f   : > { %14701 = vmatprep.mubr.msk.f32.mxu1 %vm1169_vm2, %v1126_v36  ;;  %16446 = vmatpush3.bf16.msra.mxu1 %v18426_v16 }
 0x250   : > { %16447 = vmatprep.subr.bf16.mxu1 %v19816_v0 }
 0x252   : > { %1309 = vmatmul.mubr.f32.gmra.mrb[2].mxu1 %v1125_v37 }
 0x253   : > { %14702 = vmatprep.mubr.msk.f32.mxu1 %vm1169_vm2, %v1128_v14  ;;  %16448 = vmatpush3.bf16.msra.mxu1 %v18428_v20 }
 0x254   : > { %16449 = vmatprep.subr.bf16.mxu1 %v19816_v0 }
 0x256   : > { %1314 = vmatmul.mubr.f32.gmra.mrb[4].mxu1 %v1127_v38 }
 0x257   : > { %14703 = vmatprep.mubr.msk.f32.mxu1 %vm1169_vm2, %v1130_v39  ;;  %16450 = vmatpush3.bf16.msra.mxu1 %v18430_v22 }
 0x258   : > { %16451 = vmatprep.subr.bf16.mxu1 %v19816_v0 }
 0x25a   : > { %1319 = vmatmul.mubr.f32.gmra.mrb[6].mxu1 %v1129_v40  ;;  %v18435_v40 = vld [vmem:[%s23653_s19 + $0x40] sm:$0xff]  }
 0x25b   : > { %14704 = vmatprep.mubr.msk.f32.mxu1 %vm1169_vm2, %v1132_v41  ;;  %16452 = vmatpush3.bf16.msra.mxu1 %v18432_v24 }
 0x25c   : > { %16533 = vmatprep.subr.bf16.mxu1 %v19816_v0 }
 0x25e   : > { %1324 = vmatmul.mubr.f32.gmra.mrb[8].mxu1 %v1131_v42 }
 0x25f   : > { %14705 = vmatprep.mubr.msk.f32.mxu1 %vm1169_vm2, %v1134_v43  ;;  %v18436_v43 = vld [vmem:[%s23653_s19 + $0x68] sm:$0xff]  }
 0x262   : > { %1329 = vmatmul.mubr.f32.gmra.mrb[10].mxu1 %v1133_v44 }
 0x263   : > { %14706 = vmatprep.mubr.msk.f32.mxu1 %vm1169_vm2, %v1136_v45 }
 0x266   : > { %1334 = vmatmul.mubr.f32.gmra.mrb[12].mxu1 %v1135_v46 }
 0x267   : > { %14707 = vmatprep.mubr.msk.f32.mxu1 %vm1169_vm2, %v1138_v47  ;;  %v18437_v47 = vld [vmem:[%s23653_s19 + $0x48] sm:$0xff]  }
 0x26a   : > { %1339 = vmatmul.mubr.f32.gmra.mrb[14].mxu1 %v1137_v48 }
 0x26b   : > { %14708 = vmatprep.mubr.msk.f32.mxu1 %vm1169_vm2, %v1140_v49 }
 0x26e   : > { %1344 = vmatmul.mubr.f32.gmra.mrb[16].mxu1 %v1139_v50  ;;  %v18438_v50 = vld [vmem:[%s23653_s19 + $0x70] sm:$0xff]  }
 0x26f   : > { %14709 = vmatprep.mubr.msk.f32.mxu1 %vm1169_vm2, %v1142_v51 }
 0x272   : > { %1349 = vmatmul.mubr.f32.gmra.mrb[18].mxu1 %v1141_v52 }
 0x273   : > { %14710 = vmatprep.mubr.msk.f32.mxu1 %vm1169_vm2, %v1144_v53 }
 0x276   : > { %1354 = vmatmul.mubr.f32.gmra.mrb[20].mxu1 %v1143_v54  ;;  %v18439_v54 = vld [vmem:[%s23653_s19 + $0x50] sm:$0xff]  }
 0x277   : > { %14711 = vmatprep.mubr.msk.f32.mxu1 %vm1169_vm2, %v1146_v55 }
 0x27a   : > { %1359 = vmatmul.mubr.f32.gmra.mrb[22].mxu1 %v1145_v56 }
 0x27b   : > { %14712 = vmatprep.mubr.msk.f32.mxu1 %vm1169_vm2, %v1148_v57  ;;  %v18440_v57 = vld [vmem:[%s23653_s19 + $0x78] sm:$0xff]  }
 0x27e   : > { %1364 = vmatmul.mubr.f32.gmra.mrb[24].mxu1 %v1147_v58 }
 0x27f   : > { %14713 = vmatprep.mubr.msk.f32.mxu1 %vm1169_vm2, %v1150_v59 }
 0x282   : > { %1369 = vmatmul.mubr.f32.gmra.mrb[26].mxu1 %v1149_v60 }
 0x283   : > { %14714 = vmatprep.mubr.msk.f32.mxu1 %vm1169_vm2, %v1152_v61  ;;  %v18441_v61 = vld [vmem:[%s23653_s19 + $0x58] sm:$0xff]  }
 0x286   : > { %1374 = vmatmul.mubr.f32.gmra.mrb[28].mxu1 %v1151_v62 }
 0x287   : > { %14715 = vmatprep.mubr.msk.f32.mxu1 %vm1169_vm2, %v1154_v63 }
 0x28a   : > { %1379 = vmatmul.mubr.f32.gmra.mrb[30].mxu1 %v1153_v1 }
 0x28b   : > { %14716 = vmatprep.mubr.msk.f32.mxu1 %vm1169_vm2, %v1156_v2 }
 0x28e   : > { %1384 = vmatmul.mubr.f32.gmra.mrb[32].mxu1 %v1155_v3 }
 0x28f   : > { %14717 = vmatprep.mubr.msk.f32.mxu1 %vm1169_vm2, %v1158_v4 }
 0x292   : > { %1389 = vmatmul.mubr.f32.gmra.mrb[34].mxu1 %v1157_v5 }
 0x293   : > { %14718 = vmatprep.mubr.msk.f32.mxu1 %vm1169_vm2, %v1160_v6 }
 0x296   : > { %1394 = vmatmul.mubr.f32.gmra.mrb[36].mxu1 %v1159_v7 }
 0x297   : > { %14719 = vmatprep.mubr.msk.f32.mxu1 %vm1169_vm2, %v1162_v8 }
 0x29a   : > { %1399 = vmatmul.mubr.f32.gmra.mrb[38].mxu1 %v1161_v9 }
 0x29b   : > { %14720 = vmatprep.mubr.msk.f32.mxu1 %vm1169_vm2, %v1164_v10 }
 0x29e   : > { %1404 = vmatmul.mubr.f32.gmra.mrb[40].mxu1 %v1163_v11 }
 0x29f   : > { %14721 = vmatprep.mubr.msk.f32.mxu1 %vm1169_vm2, %v1166_v13 }
 0x2a2   : > { %1409 = vmatmul.mubr.f32.gmra.mrb[42].mxu1 %v1165_v15 }
 0x2a3   : > { %14722 = vmatprep.mubr.msk.f32.mxu1 %vm1169_vm2, %v1168_v17 }
 0x2a6   : > { %1414 = vmatmul.mubr.f32.gmra.mrb[44].mxu1 %v1167_v18 }
 0x2a7   : > { %16453 = vmatprep.mubr.msk.bf16.mxu1 %vm19817_vm0, %v19816_v0 }
 0x321   : > { %v1305_v26 = vpop.f32.mrb[0].mxu1 }
 0x322   : > { %1420 = vst.msk [vmem:[#allocation2] sm:$0xff] %vm1419_vm3, %v1305_v26  ;;  %v1307_v27 = vpop.f32.mrb[1].mxu1 }
 0x325   : > { %v1310_v28 = vpop.f32.mrb[2].mxu1 }
 0x326   : > { %1421 = vst.msk [vmem:[#allocation2 + $0x8] sm:$0xff] %vm1419_vm3, %v1310_v28  ;;  %v1312_v29 = vpop.f32.mrb[3].mxu1 }
 0x329   : > { %v1315_v30 = vpop.f32.mrb[4].mxu1  ;;  %v1443_v33 = vld [vmem:[#allocation2] sm:$0xff] }
 0x32a   : > { %1422 = vst.msk [vmem:[#allocation2 + $0x10] sm:$0xff] %vm1419_vm3, %v1315_v30  ;;  %v1317_v31 = vpop.f32.mrb[5].mxu1 }
 0x32d   : > { %v1320_v32 = vpop.f32.mrb[6].mxu1  ;;  %v1444_v34 = vld [vmem:[#allocation2 + $0x8] sm:$0xff] }
 0x32e   : > { %1423 = vst.msk [vmem:[#allocation2 + $0x18] sm:$0xff] %vm1419_vm3, %v1320_v32  ;;  %v1322_v36 = vpop.f32.mrb[7].mxu1  ;;  %v1461_v37 = vpack.c.bf16 %v1444_v34, %v1443_v33  ;;  %v1478_v38 = vld [vmem:[#allocation2 + $0x1] sm:$0xff] }
 0x330   : > { %16454 = vmatmul.mubr.msk.bf16.vlgmr.msra.gmra.mrb[48].mxu1 %vm1419_vm3, %v1461_v37 }
 0x331   : > { %v1325_v14 = vpop.f32.mrb[8].mxu1  ;;  %v1479_v39 = vld [vmem:[#allocation2 + $0x9] sm:$0xff]  ;;  %16457 = vmatprep.mubr.msk.bf16.mxu1 %vm19817_vm0, %v19816_v0  ;;  %16534 = vmatpush3.bf16.msra.mxu1 %v18434_v35 }
 0x332   : > { %1424 = vst.msk [vmem:[#allocation2 + $0x20] sm:$0xff] %vm1419_vm3, %v1325_v14  ;;  %v1327_v41 = vpop.f32.mrb[9].mxu1  ;;  %v1496_v42 = vpack.c.bf16 %v1479_v39, %v1478_v38  ;;  %16535 = vmatprep.subr.bf16.mxu1 %v19816_v0  ;;  %v1445_v45 = vld [vmem:[#allocation2 + $0x10] sm:$0xff] }
 0x334   : > { %16410 = vmatmul.mubr.msk.bf16.vlgmr.msra.gmra.mrb[36].mxu0 %vm1419_vm3, %v1496_v42 }
 0x335   : > { %v1330_v44 = vpop.f32.mrb[10].mxu1  ;;  %v1446_v46 = vld [vmem:[#allocation2 + $0x18] sm:$0xff]  ;;  %16413 = vmatprep.mubr.msk.bf16.mxu0 %vm19817_vm0, %v19816_v0  ;;  %16490 = vmatpush3.bf16.msra.mxu0 %v18435_v40 }
 0x336   : > { %1425 = vst.msk [vmem:[#allocation2 + $0x28] sm:$0xff] %vm1419_vm3, %v1330_v44  ;;  %v1332_v48 = vpop.f32.mrb[11].mxu1  ;;  %v1462_v49 = vpack.c.bf16 %v1446_v46, %v1445_v45  ;;  %16536 = vmatpush3.bf16.msra.mxu1 %v18436_v43  ;;  %16491 = vmatprep.subr.bf16.mxu0 %v19816_v0  ;;  %v1480_v52 = vld [vmem:[#allocation2 + $0x11] sm:$0xff] }
 0x337   : > { %16537 = vmatprep.subr.bf16.mxu1 %v19816_v0 }
 0x338   : > { %16458 = vmatmul.mubr.msk.bf16.gmra.mrb[52].mxu1 %vm1419_vm3, %v1462_v49 }
 0x339   : > { %v1335_v51 = vpop.f32.mrb[12].mxu1  ;;  %v1481_v53 = vld [vmem:[#allocation2 + $0x19] sm:$0xff]  ;;  %16461 = vmatprep.mubr.msk.bf16.mxu1 %vm19817_vm0, %v19816_v0  ;;  %16492 = vmatpush3.bf16.msra.mxu0 %v18437_v47 }
 0x33a   : > { %1426 = vst.msk [vmem:[#allocation2 + $0x30] sm:$0xff] %vm1419_vm3, %v1335_v51  ;;  %v1337_v55 = vpop.f32.mrb[13].mxu1  ;;  %v1497_v56 = vpack.c.bf16 %v1481_v53, %v1480_v52  ;;  %16538 = vmatpush3.bf16.msra.mxu1 %v18438_v50  ;;  %16493 = vmatprep.subr.bf16.mxu0 %v19816_v0  ;;  %v1447_v59 = vld [vmem:[#allocation2 + $0x20] sm:$0xff] }
 0x33b   : > { %16539 = vmatprep.subr.bf16.mxu1 %v19816_v0 }
 0x33c   : > { %16414 = vmatmul.mubr.msk.bf16.gmra.mrb[40].mxu0 %vm1419_vm3, %v1497_v56 }
 0x33d   : > { %v1340_v58 = vpop.f32.mrb[14].mxu1  ;;  %v1448_v60 = vld [vmem:[#allocation2 + $0x28] sm:$0xff]  ;;  %16417 = vmatprep.mubr.msk.bf16.mxu0 %vm19817_vm0, %v19816_v0  ;;  %16494 = vmatpush3.bf16.msra.mxu0 %v18439_v54 }
 0x33e   : > { %1427 = vst.msk [vmem:[#allocation2 + $0x38] sm:$0xff] %vm1419_vm3, %v1340_v58  ;;  %v1342_v62 = vpop.f32.mrb[15].mxu1  ;;  %v1463_v63 = vpack.c.bf16 %v1448_v60, %v1447_v59  ;;  %16540 = vmatpush3.bf16.msra.mxu1 %v18440_v57  ;;  %16495 = vmatprep.subr.bf16.mxu0 %v19816_v0  ;;  %v1482_v2 = vld [vmem:[#allocation2 + $0x21] sm:$0xff] }
 0x33f   : > { %16621 = vmatprep.subr.bf16.mxu1 %v19816_v0 }
 0x340   : > { %16462 = vmatmul.mubr.msk.bf16.gmra.mrb[56].mxu1 %vm1419_vm3, %v1463_v63 }
 0x341   : > { %v1345_v1 = vpop.f32.mrb[16].mxu1  ;;  %v1483_v3 = vld [vmem:[#allocation2 + $0x29] sm:$0xff]  ;;  %16465 = vmatprep.mubr.msk.bf16.mxu1 %vm19817_vm0, %v19816_v0  ;;  %16496 = vmatpush3.bf16.msra.mxu0 %v18441_v61 }
 0x342   : > { %1428 = vst.msk [vmem:[#allocation2 + $0x40] sm:$0xff] %vm1419_vm3, %v1345_v1  ;;  %v1347_v4 = vpop.f32.mrb[17].mxu1  ;;  %v1498_v5 = vpack.c.bf16 %v1483_v3, %v1482_v2  ;;  %16577 = vmatprep.subr.bf16.mxu0 %v19816_v0  ;;  %v1449_v7 = vld [vmem:[#allocation2 + $0x30] sm:$0xff] }
 0x343   : > { %v2035_v4 = vld [vmem:[#allocation2 + $0x1a] sm:$0xff] }
 0x344   : > { %16418 = vmatmul.mubr.msk.bf16.gmra.mrb[44].mxu0 %vm1419_vm3, %v1498_v5  ;;  %v2034_v5 = vld [vmem:[#allocation2 + $0x12] sm:$0xff] }
 0x345   : > { %v1350_v6 = vpop.f32.mrb[18].mxu1  ;;  %v1450_v8 = vld [vmem:[#allocation2 + $0x38] sm:$0xff]  ;;  %16421 = vmatprep.mubr.msk.bf16.mxu0 %vm19817_vm0, %v19816_v0 }
 0x346   : > { %1429 = vst.msk [vmem:[#allocation2 + $0x48] sm:$0xff] %vm1419_vm3, %v1350_v6  ;;  %v1352_v9 = vpop.f32.mrb[19].mxu1  ;;  %v1464_v10 = vpack.c.bf16 %v1450_v8, %v1449_v7  ;;  %v1484_v13 = vld [vmem:[#allocation2 + $0x31] sm:$0xff]  ;;  %v18442_v6 = vld [vmem:[%s23653_s19 + $0xa0] sm:$0xff]   ;;  %v2052_v8 = vpack.c.bf16 %v2035_v4, %v2034_v5 }
 0x347   : > { %v2456_v4 = vld [vmem:[#allocation2 + $0x34] sm:$0xff] }
 0x348   : > { %16466 = vmatmul.mubr.msk.bf16.gmra.mrb[60].mxu1 %vm1419_vm3, %v1464_v10  ;;  %v1826_v10 = vld [vmem:[#allocation2 + $0xa] sm:$0xff]  ;;  %v18457_v5 = vld [vmem:[%s23653_s19 + $0xd8] sm:$0xff]  }
 0x349   : > { %v1355_v11 = vpop.f32.mrb[20].mxu1  ;;  %v1485_v15 = vld [vmem:[#allocation2 + $0x39] sm:$0xff]  ;;  %16469 = vmatprep.mubr.msk.bf16.mxu1 %vm19817_vm0, %v19816_v0 }
 0x34a   : > { %1430 = vst.msk [vmem:[#allocation2 + $0x50] sm:$0xff] %vm1419_vm3, %v1355_v11  ;;  %v1357_v16 = vpop.f32.mrb[21].mxu1  ;;  %v1499_v17 = vpack.c.bf16 %v1485_v15, %v1484_v13  ;;  %v1451_v19 = vld [vmem:[#allocation2 + $0x40] sm:$0xff] }
 0x34b   : > { %v1825_v11 = vld [vmem:[#allocation2 + $0x2] sm:$0xff] }
 0x34c   : > { %16422 = vmatmul.mubr.msk.bf16.gmra.mrb[48].mxu0 %vm1419_vm3, %v1499_v17  ;;  %v18443_v13 = vld [vmem:[%s23653_s19 + $0x80] sm:$0xff]   ;;  %v1843_v16 = vpack.c.bf16 %v1826_v10, %v1825_v11  ;;  %v18444_v17 = vld [vmem:[%s23653_s19 + $0xa8] sm:$0xff]  }
 0x34d   : > { %v1360_v18 = vpop.f32.mrb[22].mxu1  ;;  %v1452_v20 = vld [vmem:[#allocation2 + $0x48] sm:$0xff]  ;;  %16425 = vmatprep.mubr.msk.bf16.mxu0 %vm19817_vm0, %v19816_v0 }
 0x34e   : > { %1431 = vst.msk [vmem:[#allocation2 + $0x58] sm:$0xff] %vm1419_vm3, %v1360_v18  ;;  %v1362_v21 = vpop.f32.mrb[23].mxu1  ;;  %v1465_v22 = vpack.c.bf16 %v1452_v20, %v1451_v19  ;;  %v1486_v24 = vld [vmem:[#allocation2 + $0x41] sm:$0xff]  ;;  %v2037_v19 = vld [vmem:[#allocation2 + $0x2a] sm:$0xff] }
 0x34f   : > { %v2036_v20 = vld [vmem:[#allocation2 + $0x22] sm:$0xff] }
 0x350   : > { %16470 = vmatmul.mubr.msk.bf16.gmra.mrb[64].mxu1 %vm1419_vm3, %v1465_v22  ;;  %v18445_v21 = vld [vmem:[%s23653_s19 + $0x88] sm:$0xff]   ;;  %v2053_v22 = vpack.c.bf16 %v2037_v19, %v2036_v20 }
 0x351   : > { %v1365_v23 = vpop.f32.mrb[24].mxu1  ;;  %v1487_v25 = vld [vmem:[#allocation2 + $0x49] sm:$0xff]  ;;  %16473 = vmatprep.mubr.msk.bf16.mxu1 %vm19817_vm0, %v19816_v0 }
 0x352   : > { %1432 = vst.msk [vmem:[#allocation2 + $0x60] sm:$0xff] %vm1419_vm3, %v1365_v23  ;;  %v1367_v26 = vpop.f32.mrb[25].mxu1  ;;  %v1500_v27 = vpack.c.bf16 %v1487_v25, %v1486_v24  ;;  %v1453_v29 = vld [vmem:[#allocation2 + $0x50] sm:$0xff]  ;;  %v18448_v25 = vld [vmem:[%s23653_s19 + $0xb8] sm:$0xff]   ;;  %v2458_v11 = vld [vmem:[#allocation2 + $0x44] sm:$0xff] }
 0x353   : > { %v18446_v23 = vld [vmem:[%s23653_s19 + $0xb0] sm:$0xff]   ;;  %v2039_v26 = vld [vmem:[#allocation2 + $0x3a] sm:$0xff] }
 0x354   : > { %16426 = vmatmul.mubr.msk.bf16.gmra.mrb[52].mxu0 %vm1419_vm3, %v1500_v27  ;;  %v18447_v24 = vld [vmem:[%s23653_s19 + $0x90] sm:$0xff]  }
 0x355   : > { %v1370_v28 = vpop.f32.mrb[26].mxu1  ;;  %v1454_v30 = vld [vmem:[#allocation2 + $0x58] sm:$0xff]  ;;  %16429 = vmatprep.mubr.msk.bf16.mxu0 %vm19817_vm0, %v19816_v0  ;;  %v2459_v10 = vld [vmem:[#allocation2 + $0x4c] sm:$0xff] }
 0x356   : > { %1433 = vst.msk [vmem:[#allocation2 + $0x68] sm:$0xff] %vm1419_vm3, %v1370_v28  ;;  %v1372_v31 = vpop.f32.mrb[27].mxu1  ;;  %v1466_v32 = vpack.c.bf16 %v1454_v30, %v1453_v29  ;;  %v1488_v34 = vld [vmem:[#allocation2 + $0x51] sm:$0xff] }
 0x357   : > { %v2038_v27 = vld [vmem:[#allocation2 + $0x32] sm:$0xff]  ;;  %v2041_v30 = vld [vmem:[#allocation2 + $0x4a] sm:$0xff]  ;;  %v2040_v31 = vld [vmem:[#allocation2 + $0x42] sm:$0xff] }
 0x358   : > { %16474 = vmatmul.mubr.msk.bf16.gmra.mrb[68].mxu1 %vm1419_vm3, %v1466_v32  ;;  %v18449_v28 = vld [vmem:[%s23653_s19 + $0x98] sm:$0xff]   ;;  %v2054_v29 = vpack.c.bf16 %v2039_v26, %v2038_v27  ;;  %v2055_v32 = vpack.c.bf16 %v2041_v30, %v2040_v31 }
 0x359   : > { %v1375_v33 = vpop.f32.mrb[28].mxu1  ;;  %v1489_v35 = vld [vmem:[#allocation2 + $0x59] sm:$0xff]  ;;  %16477 = vmatprep.mubr.msk.bf16.mxu1 %vm19817_vm0, %v19816_v0 }
 0x35a   : > { %1434 = vst.msk [vmem:[#allocation2 + $0x70] sm:$0xff] %vm1419_vm3, %v1375_v33  ;;  %v1377_v36 = vpop.f32.mrb[29].mxu1  ;;  %v1501_v37 = vpack.c.bf16 %v1489_v35, %v1488_v34  ;;  %v1455_v38 = vld [vmem:[#allocation2 + $0x60] sm:$0xff]  ;;  %v2042_v34 = vld [vmem:[#allocation2 + $0x52] sm:$0xff] }
 0x35b   : > { %v2043_v33 = vld [vmem:[#allocation2 + $0x5a] sm:$0xff] }
 0x35c   : > { %16430 = vmatmul.mubr.msk.bf16.gmra.mrb[56].mxu0 %vm1419_vm3, %v1501_v37  ;;  %v2056_v35 = vpack.c.bf16 %v2043_v33, %v2042_v34  ;;  %v2460_v19 = vld [vmem:[#allocation2 + $0x54] sm:$0xff] }
 0x35d   : > { %v1380_v14 = vpop.f32.mrb[30].mxu1  ;;  %v1456_v39 = vld [vmem:[#allocation2 + $0x68] sm:$0xff]  ;;  %16433 = vmatprep.mubr.msk.bf16.mxu0 %vm19817_vm0, %v19816_v0 }
 0x35e   : > { %1435 = vst.msk [vmem:[#allocation2 + $0x78] sm:$0xff] %vm1419_vm3, %v1380_v14  ;;  %v1382_v40 = vpop.f32.mrb[31].mxu1  ;;  %v1467_v41 = vpack.c.bf16 %v1456_v39, %v1455_v38  ;;  %v1490_v43 = vld [vmem:[#allocation2 + $0x61] sm:$0xff] }
 0x35f   : > { %v2044_v37 = vld [vmem:[#allocation2 + $0x62] sm:$0xff] }
 0x360   : > { %16478 = vmatmul.mubr.msk.bf16.gmra.mrb[72].mxu1 %vm1419_vm3, %v1467_v41 }
 0x361   : > { %v1385_v42 = vpop.f32.mrb[32].mxu1  ;;  %v1491_v44 = vld [vmem:[#allocation2 + $0x69] sm:$0xff]  ;;  %16481 = vmatprep.mubr.msk.bf16.mxu1 %vm19817_vm0, %v19816_v0 }
 0x362   : > { %1436 = vst.msk [vmem:[#allocation2 + $0x80] sm:$0xff] %vm1419_vm3, %v1385_v42  ;;  %v1387_v45 = vpop.f32.mrb[33].mxu1  ;;  %v1502_v46 = vpack.c.bf16 %v1491_v44, %v1490_v43  ;;  %v1457_v48 = vld [vmem:[#allocation2 + $0x70] sm:$0xff] }
 0x363   : > { %v2045_v36 = vld [vmem:[#allocation2 + $0x6a] sm:$0xff] }
 0x364   : > { %16434 = vmatmul.mubr.msk.bf16.gmra.mrb[60].mxu0 %vm1419_vm3, %v1502_v46  ;;  %v2057_v14 = vpack.c.bf16 %v2045_v36, %v2044_v37  ;;  %v2254_v27 = vld [vmem:[#allocation2 + $0x6b] sm:$0xff] }
 0x365   : > { %v1390_v47 = vpop.f32.mrb[34].mxu1  ;;  %v1458_v49 = vld [vmem:[#allocation2 + $0x78] sm:$0xff]  ;;  %16437 = vmatprep.mubr.msk.bf16.mxu0 %vm19817_vm0, %v19816_v0 }
 0x366   : > { %1437 = vst.msk [vmem:[#allocation2 + $0x88] sm:$0xff] %vm1419_vm3, %v1390_v47  ;;  %v1392_v50 = vpop.f32.mrb[35].mxu1  ;;  %v1468_v51 = vpack.c.bf16 %v1458_v49, %v1457_v48  ;;  %v1492_v53 = vld [vmem:[#allocation2 + $0x71] sm:$0xff]  ;;  %v2453_v47 = vld [vmem:[#allocation2 + $0x1c] sm:$0xff] }
 0x367   : > { %v2046_v39 = vld [vmem:[#allocation2 + $0x72] sm:$0xff]  ;;  %v18450_v49 = vld [vmem:[%s23653_s19 + $0xe0] sm:$0xff]  }
 0x368   : > { %16482 = vmatmul.mubr.msk.bf16.gmra.mrb[76].mxu1 %vm1419_vm3, %v1468_v51  ;;  %v2452_v48 = vld [vmem:[#allocation2 + $0x14] sm:$0xff] }
 0x369   : > { %v1395_v52 = vpop.f32.mrb[36].mxu1  ;;  %v1493_v54 = vld [vmem:[#allocation2 + $0x79] sm:$0xff]  ;;  %16485 = vmatprep.mubr.msk.bf16.mxu1 %vm19817_vm0, %v19816_v0  ;;  %v2470_v50 = vpack.c.bf16 %v2453_v47, %v2452_v48  ;;  %v2871_v48 = vld [vmem:[#allocation2 + $0x2d] sm:$0xff] }
 0x36a   : > { %1438 = vst.msk [vmem:[#allocation2 + $0x90] sm:$0xff] %vm1419_vm3, %v1395_v52  ;;  %v1397_v55 = vpop.f32.mrb[37].mxu1  ;;  %v1503_v56 = vpack.c.bf16 %v1493_v54, %v1492_v53  ;;  %v1459_v58 = vld [vmem:[#allocation2 + $0x80] sm:$0xff]  ;;  %v2243_v52 = vld [vmem:[#allocation2 + $0x13] sm:$0xff] }
 0x36b   : > { %v2047_v38 = vld [vmem:[#allocation2 + $0x7a] sm:$0xff]  ;;  %v18452_v55 = vld [vmem:[%s23653_s19 + $0xe8] sm:$0xff]  }
 0x36c   : > { %16438 = vmatmul.mubr.msk.bf16.gmra.mrb[64].mxu0 %vm1419_vm3, %v1503_v56  ;;  %v2058_v40 = vpack.c.bf16 %v2047_v38, %v2046_v39  ;;  %v2244_v51 = vld [vmem:[#allocation2 + $0x1b] sm:$0xff]  ;;  %v2455_v56 = vld [vmem:[#allocation2 + $0x2c] sm:$0xff] }
 0x36d   : > { %v1400_v57 = vpop.f32.mrb[38].mxu1  ;;  %v1460_v59 = vld [vmem:[#allocation2 + $0x88] sm:$0xff]  ;;  %16441 = vmatprep.mubr.msk.bf16.mxu0 %vm19817_vm0, %v19816_v0  ;;  %v18451_v53 = vld [vmem:[%s23653_s19 + $0xc0] sm:$0xff]   ;;  %v2261_v54 = vpack.c.bf16 %v2244_v51, %v2243_v52  ;;  %v2464_v31 = vld [vmem:[#allocation2 + $0x74] sm:$0xff] }
 0x36e   : > { %1439 = vst.msk [vmem:[#allocation2 + $0x98] sm:$0xff] %vm1419_vm3, %v1400_v57  ;;  %v1402_v60 = vpop.f32.mrb[39].mxu1  ;;  %v1469_v61 = vpack.c.bf16 %v1460_v59, %v1459_v58  ;;  %v1494_v63 = vld [vmem:[#allocation2 + $0x81] sm:$0xff]  ;;  %v2255_v34 = vld [vmem:[#allocation2 + $0x73] sm:$0xff] }
 0x36f   : > { %v2048_v42 = vld [vmem:[#allocation2 + $0x82] sm:$0xff]  ;;  %v18454_v60 = vld [vmem:[%s23653_s19 + $0xf0] sm:$0xff]  }
 0x370   : > { %16486 = vmatmul.mubr.msk.bf16.gmra.mrb[80].mxu1 %vm1419_vm3, %v1469_v61  ;;  %v2454_v57 = vld [vmem:[#allocation2 + $0x24] sm:$0xff]  ;;  %v2465_v30 = vld [vmem:[#allocation2 + $0x7c] sm:$0xff] }
 0x371   : > { %v1405_v62 = vpop.f32.mrb[40].mxu1  ;;  %v1495_v1 = vld [vmem:[#allocation2 + $0x89] sm:$0xff]  ;;  %16541 = vmatprep.mubr.msk.bf16.mxu1 %vm19817_vm0, %v19816_v0  ;;  %v20737_v59 = vpack.c.bf16 %v2455_v56, %v2454_v57  ;;  %v2256_v33 = vld [vmem:[#allocation2 + $0x7b] sm:$0xff] }
 0x372   : > { %1440 = vst.msk [vmem:[#allocation2 + $0xa0] sm:$0xff] %vm1419_vm3, %v1405_v62  ;;  %v1504_v2 = vpack.c.bf16 %v1495_v1, %v1494_v63  ;;  %v1407_v3 = vpop.f32.mrb[41].mxu1  ;;  %v2049_v41 = vld [vmem:[#allocation2 + $0x8a] sm:$0xff] }
 0x373   : > { %v2059_v43 = vpack.c.bf16 %v2049_v41, %v2048_v42  ;;  %v18453_v58 = vld [vmem:[%s23653_s19 + $0xc8] sm:$0xff]   ;;  %v18455_v63 = vld [vmem:[%s23653_s19 + $0xd0] sm:$0xff]   ;;  %v2457_v3 = vld [vmem:[#allocation2 + $0x3c] sm:$0xff] }
 0x374   : > { %16442 = vmatmul.mubr.msk.bf16.gmra.mrb[68].mxu0 %vm1419_vm3, %v1504_v2  ;;  %v2246_v61 = vld [vmem:[#allocation2 + $0x2b] sm:$0xff]  ;;  %v2245_v62 = vld [vmem:[#allocation2 + $0x23] sm:$0xff]  ;;  %v18456_v2 = vld [vmem:[%s23653_s19 + $0xf8] sm:$0xff]  }
 0x375   : > { %16497 = vmatprep.mubr.msk.bf16.mxu0 %vm19817_vm0, %v19816_v0  ;;  %v1410_v7 = vpop.f32.mrb[42].mxu1  ;;  %v2050_v45 = vld [vmem:[#allocation2 + $0x92] sm:$0xff]  ;;  %v2262_v1 = vpack.c.bf16 %v2246_v61, %v2245_v62  ;;  %v2466_v37 = vld [vmem:[#allocation2 + $0x84] sm:$0xff] }
 0x376   : > { %1441 = vst.msk [vmem:[#allocation2 + $0xa8] sm:$0xff] %vm1419_vm3, %v1410_v7  ;;  %v1412_v9 = vpop.f32.mrb[43].mxu1  ;;  %v2248_v7 = vld [vmem:[#allocation2 + $0x3b] sm:$0xff]  ;;  %v2467_v36 = vld [vmem:[#allocation2 + $0x8c] sm:$0xff]  ;;  %v2257_v39 = vld [vmem:[#allocation2 + $0x83] sm:$0xff] }
 0x377   : > { %v2258_v38 = vld [vmem:[#allocation2 + $0x8b] sm:$0xff]  ;;  %v2468_v42 = vld [vmem:[#allocation2 + $0x94] sm:$0xff] }
 0x378   : > { %16542 = vmatmul.mubr.msk.bf16.vlgmr.msra.gmra.mrb[84].mxu1 %vm1419_vm3, %v2052_v8  ;;  %v2870_v51 = vld [vmem:[#allocation2 + $0x25] sm:$0xff] }
 0x379   : > { %16545 = vmatprep.mubr.msk.bf16.mxu1 %vm19817_vm0, %v19816_v0  ;;  %16622 = vmatpush3.bf16.msra.mxu1 %v18442_v6  ;;  %v1415_v15 = vpop.f32.mrb[44].mxu1  ;;  %v2051_v44 = vld [vmem:[#allocation2 + $0x9a] sm:$0xff]  ;;  %v20762_v6 = vpack.c.bf16 %v2457_v3, %v2456_v4  ;;  %v18459_v4 = vld [vmem:[%s23653_s19 + $0x108] sm:$0xff]  }
 0x37a   : > { %16623 = vmatprep.subr.bf16.mxu1 %v19816_v0  ;;  %1442 = vst.msk [vmem:[#allocation2 + $0xb0] sm:$0xff] %vm1419_vm3, %v1415_v15  ;;  %v1417_v18 = vpop.f32.mrb[45].mxu1  ;;  %v2060_v46 = vpack.c.bf16 %v2051_v44, %v2050_v45  ;;  %v2250_v15 = vld [vmem:[#allocation2 + $0x4b] sm:$0xff]  ;;  %v2469_v41 = vld [vmem:[#allocation2 + $0x9c] sm:$0xff]  ;;  %v2259_v45 = vld [vmem:[#allocation2 + $0x93] sm:$0xff] }
 0x37b   : > { %v2461_v18 = vld [vmem:[#allocation2 + $0x5c] sm:$0xff] }
 0x37c   : > { %16498 = vmatmul.mubr.msk.bf16.vlgmr.msra.gmra.mrb[72].mxu0 %vm1419_vm3, %v1843_v16  ;;  %v2249_v16 = vld [vmem:[#allocation2 + $0x43] sm:$0xff]  ;;  %v20783_v20 = vpack.c.bf16 %v2461_v18, %v2460_v19  ;;  %v2260_v44 = vld [vmem:[#allocation2 + $0x9b] sm:$0xff]  ;;  %v2875_v18 = vld [vmem:[#allocation2 + $0x4d] sm:$0xff] }
 0x37d   : > { %16501 = vmatprep.mubr.msk.bf16.mxu0 %vm19817_vm0, %v19816_v0  ;;  %16578 = vmatpush3.bf16.msra.mxu0 %v18443_v13  ;;  %v20774_v13 = vpack.c.bf16 %v2459_v10, %v2458_v11  ;;  %v2872_v3 = vld [vmem:[#allocation2 + $0x35] sm:$0xff] }
 0x37e   : > { %16624 = vmatpush3.bf16.msra.mxu1 %v18444_v17  ;;  %16579 = vmatprep.subr.bf16.mxu0 %v19816_v0  ;;  %v2264_v17 = vpack.c.bf16 %v2250_v15, %v2249_v16  ;;  %v18460_v11 = vld [vmem:[%s23653_s19 + $0x110] sm:$0xff]  }
 0x37f   : > { %16625 = vmatprep.subr.bf16.mxu1 %v19816_v0 }
 0x380   : > { %16546 = vmatmul.mubr.msk.bf16.gmra.mrb[88].mxu1 %vm1419_vm3, %v2053_v22 }
 0x381   : > { %16549 = vmatprep.mubr.msk.bf16.mxu1 %vm19817_vm0, %v19816_v0  ;;  %16580 = vmatpush3.bf16.msra.mxu0 %v18445_v21  ;;  %v2252_v21 = vld [vmem:[#allocation2 + $0x5b] sm:$0xff] }
 0x382   : > { %16626 = vmatpush3.bf16.msra.mxu1 %v18446_v23  ;;  %16581 = vmatprep.subr.bf16.mxu0 %v19816_v0 }
 0x383   : > { %16627 = vmatprep.subr.bf16.mxu1 %v19816_v0 }
 0x384   : > { %16502 = vmatmul.mubr.msk.bf16.gmra.mrb[76].mxu0 %vm1419_vm3, %v2052_v8  ;;  %v2247_v8 = vld [vmem:[#allocation2 + $0x33] sm:$0xff] }
 0x385   : > { %16505 = vmatprep.mubr.msk.bf16.mxu0 %vm19817_vm0, %v19816_v0  ;;  %16582 = vmatpush3.bf16.msra.mxu0 %v18447_v24  ;;  %v2263_v9 = vpack.c.bf16 %v2248_v7, %v2247_v8  ;;  %v2463_v24 = vld [vmem:[#allocation2 + $0x6c] sm:$0xff] }
 0x386   : > { %16628 = vmatpush3.bf16.msra.mxu1 %v18448_v25  ;;  %16583 = vmatprep.subr.bf16.mxu0 %v19816_v0  ;;  %v2462_v25 = vld [vmem:[#allocation2 + $0x64] sm:$0xff] }
 0x387   : > { %16709 = vmatprep.subr.bf16.mxu1 %v19816_v0  ;;  %v20792_v26 = vpack.c.bf16 %v2463_v24, %v2462_v25 }
 0x388   : > { %16550 = vmatmul.mubr.msk.bf16.gmra.mrb[92].mxu1 %vm1419_vm3, %v2054_v29 }
 0x389   : > { %16553 = vmatprep.mubr.msk.bf16.mxu1 %vm19817_vm0, %v19816_v0  ;;  %16584 = vmatpush3.bf16.msra.mxu0 %v18449_v28  ;;  %v2253_v28 = vld [vmem:[#allocation2 + $0x63] sm:$0xff] }
 0x38a   : > { %16665 = vmatprep.subr.bf16.mxu0 %v19816_v0 }
 0x38c   : > { %16506 = vmatmul.mubr.msk.bf16.gmra.mrb[80].mxu0 %vm1419_vm3, %v2053_v22  ;;  %v2251_v22 = vld [vmem:[#allocation2 + $0x53] sm:$0xff] }
 0x38d   : > { %16509 = vmatprep.mubr.msk.bf16.mxu0 %vm19817_vm0, %v19816_v0  ;;  %v2265_v23 = vpack.c.bf16 %v2252_v21, %v2251_v22  ;;  %v2874_v22 = vld [vmem:[#allocation2 + $0x45] sm:$0xff] }
 0x38e   : > { %v2890_v25 = vpack.c.bf16 %v2875_v18, %v2874_v22 }
 0x390   : > { %16554 = vmatmul.mubr.msk.bf16.gmra.mrb[96].mxu1 %vm1419_vm3, %v2055_v32 }
 0x391   : > { %16557 = vmatprep.mubr.msk.bf16.mxu1 %vm19817_vm0, %v19816_v0 }
 0x394   : > { %16510 = vmatmul.mubr.msk.bf16.gmra.mrb[84].mxu0 %vm1419_vm3, %v2054_v29  ;;  %v2266_v29 = vpack.c.bf16 %v2254_v27, %v2253_v28 }
 0x395   : > { %16513 = vmatprep.mubr.msk.bf16.mxu0 %vm19817_vm0, %v19816_v0 }
 0x398   : > { %16558 = vmatmul.mubr.msk.bf16.gmra.mrb[100].mxu1 %vm1419_vm3, %v2056_v35 }
 0x399   : > { %16561 = vmatprep.mubr.msk.bf16.mxu1 %vm19817_vm0, %v19816_v0 }
 0x39c   : > { %16514 = vmatmul.mubr.msk.bf16.gmra.mrb[88].mxu0 %vm1419_vm3, %v2055_v32  ;;  %v20801_v32 = vpack.c.bf16 %v2465_v30, %v2464_v31 }
 0x39d   : > { %16517 = vmatprep.mubr.msk.bf16.mxu0 %vm19817_vm0, %v19816_v0 }
 0x3a0   : > { %16562 = vmatmul.mubr.msk.bf16.gmra.mrb[104].mxu1 %vm1419_vm3, %v2057_v14 }
 0x3a1   : > { %16565 = vmatprep.mubr.msk.bf16.mxu1 %vm19817_vm0, %v19816_v0 }
 0x3a4   : > { %16518 = vmatmul.mubr.msk.bf16.gmra.mrb[92].mxu0 %vm1419_vm3, %v2056_v35  ;;  %v2267_v35 = vpack.c.bf16 %v2256_v33, %v2255_v34  ;;  %v2877_v34 = vld [vmem:[#allocation2 + $0x5d] sm:$0xff] }
 0x3a5   : > { %16521 = vmatprep.mubr.msk.bf16.mxu0 %vm19817_vm0, %v19816_v0 }
 0x3a8   : > { %16566 = vmatmul.mubr.msk.bf16.gmra.mrb[108].mxu1 %vm1419_vm3, %v2058_v40 }
 0x3a9   : > { %16569 = vmatprep.mubr.msk.bf16.mxu1 %vm19817_vm0, %v19816_v0 }
 0x3ac   : > { %16522 = vmatmul.mubr.msk.bf16.gmra.mrb[96].mxu0 %vm1419_vm3, %v2057_v14  ;;  %v20810_v14 = vpack.c.bf16 %v2467_v36, %v2466_v37  ;;  %v2876_v37 = vld [vmem:[#allocation2 + $0x55] sm:$0xff] }
 0x3ad   : > { %16525 = vmatprep.mubr.msk.bf16.mxu0 %vm19817_vm0, %v19816_v0 }
 0x3b0   : > { %16570 = vmatmul.mubr.msk.bf16.gmra.mrb[112].mxu1 %vm1419_vm3, %v2059_v43 }
 0x3b1   : > { %16573 = vmatprep.mubr.msk.bf16.mxu1 %vm19817_vm0, %v19816_v0 }
 0x3b4   : > { %16526 = vmatmul.mubr.msk.bf16.gmra.mrb[100].mxu0 %vm1419_vm3, %v2058_v40  ;;  %v2268_v40 = vpack.c.bf16 %v2258_v38, %v2257_v39  ;;  %v2891_v39 = vpack.c.bf16 %v2877_v34, %v2876_v37 }
 0x3b5   : > { %16529 = vmatprep.mubr.msk.bf16.mxu0 %vm19817_vm0, %v19816_v0 }
 0x3b8   : > { %16574 = vmatmul.mubr.msk.bf16.gmra.mrb[116].mxu1 %vm1419_vm3, %v2060_v46  ;;  %v2269_v46 = vpack.c.bf16 %v2260_v44, %v2259_v45 }
 0x3b9   : > { %16629 = vmatprep.mubr.msk.bf16.mxu1 %vm19817_vm0, %v19816_v0 }
 0x3bc   : > { %16530 = vmatmul.mubr.msk.bf16.gmra.mrb[104].mxu0 %vm1419_vm3, %v2059_v43  ;;  %v20819_v43 = vpack.c.bf16 %v2469_v41, %v2468_v42 }
 0x3bd   : > { %16585 = vmatprep.mubr.msk.bf16.mxu0 %vm19817_vm0, %v19816_v0 }
 0x3c0   : > { %16630 = vmatmul.mubr.msk.bf16.vlgmr.msra.gmra.mrb[120].mxu1 %vm1419_vm3, %v2470_v50 }
 0x3c1   : > { %16633 = vmatprep.mubr.msk.bf16.mxu1 %vm19817_vm0, %v19816_v0  ;;  %16710 = vmatpush3.bf16.msra.mxu1 %v18450_v49 }
 0x3c2   : > { %16711 = vmatprep.subr.bf16.mxu1 %v19816_v0 }
 0x3c4   : > { %16586 = vmatmul.mubr.msk.bf16.vlgmr.msra.gmra.mrb[108].mxu0 %vm1419_vm3, %v2261_v54 }
 0x3c5   : > { %16589 = vmatprep.mubr.msk.bf16.mxu0 %vm19817_vm0, %v19816_v0  ;;  %16666 = vmatpush3.bf16.msra.mxu0 %v18451_v53  ;;  %v2888_v53 = vpack.c.bf16 %v2871_v48, %v2870_v51 }
 0x3c6   : > { %16712 = vmatpush3.bf16.msra.mxu1 %v18452_v55  ;;  %16667 = vmatprep.subr.bf16.mxu0 %v19816_v0 }
 0x3c7   : > { %16713 = vmatprep.subr.bf16.mxu1 %v19816_v0 }
 0x3c8   : > { %16634 = vmatmul.mubr.msk.bf16.gmra.mrb[124].mxu1 %vm1419_vm3, %v20737_v59 }
 0x3c9   : > { %16637 = vmatprep.mubr.msk.bf16.mxu1 %vm19817_vm0, %v19816_v0  ;;  %16668 = vmatpush3.bf16.msra.mxu0 %v18453_v58  ;;  %v18458_v58 = vld [vmem:[%s23653_s19 + $0x100] sm:$0xff]  }
 0x3ca   : > { %16714 = vmatpush3.bf16.msra.mxu1 %v18454_v60  ;;  %16669 = vmatprep.subr.bf16.mxu0 %v19816_v0 }
 0x3cb   : > { %16715 = vmatprep.subr.bf16.mxu1 %v19816_v0 }
 0x3cc   : > { %16590 = vmatmul.mubr.msk.bf16.gmra.mrb[112].mxu0 %vm1419_vm3, %v2262_v1 }
 0x3cd   : > { %16593 = vmatprep.mubr.msk.bf16.mxu0 %vm19817_vm0, %v19816_v0  ;;  %16670 = vmatpush3.bf16.msra.mxu0 %v18455_v63  ;;  %v2873_v63 = vld [vmem:[#allocation2 + $0x3d] sm:$0xff] }
 0x3ce   : > { %16716 = vmatpush3.bf16.msra.mxu1 %v18456_v2  ;;  %16671 = vmatprep.subr.bf16.mxu0 %v19816_v0  ;;  %v2889_v7 = vpack.c.bf16 %v2873_v63, %v2872_v3 }
 0x3cf   : > { %17835 = vmatprep.subr.bf16.mxu1 %v19818_v12 }
 0x3d0   : > { %16638 = vmatmul.mubr.msk.bf16.gmra.mrb[128].mxu1 %vm1419_vm3, %v20762_v6 }
 0x3d1   : > { %16641 = vmatprep.mubr.msk.bf16.mxu1 %vm19817_vm0, %v19816_v0  ;;  %16672 = vmatpush3.bf16.msra.mxu0 %v18457_v5 }
 0x3d2   : > { %16753 = vmatprep.subr.bf16.mxu0 %v19816_v0 }
 0x3d4   : > { %16594 = vmatmul.mubr.msk.bf16.gmra.mrb[116].mxu0 %vm1419_vm3, %v2263_v9 }
 0x3d5   : > { %16597 = vmatprep.mubr.msk.bf16.mxu0 %vm19817_vm0, %v19816_v0 }
 0x3d8   : > { %16642 = vmatmul.mubr.msk.bf16.gmra.mrb[132].mxu1 %vm1419_vm3, %v20774_v13 }
 0x3d9   : > { %16645 = vmatprep.mubr.msk.bf16.mxu1 %vm19817_vm0, %v19816_v0 }
 0x3dc   : > { %16598 = vmatmul.mubr.msk.bf16.gmra.mrb[120].mxu0 %vm1419_vm3, %v2264_v17 }
 0x3dd   : > { %16601 = vmatprep.mubr.msk.bf16.mxu0 %vm19817_vm0, %v19816_v0 }
 0x3e0   : > { %16646 = vmatmul.mubr.msk.bf16.gmra.mrb[136].mxu1 %vm1419_vm3, %v20783_v20 }
 0x3e1   : > { %16649 = vmatprep.mubr.msk.bf16.mxu1 %vm19817_vm0, %v19816_v0 }
 0x3e4   : > { %16602 = vmatmul.mubr.msk.bf16.gmra.mrb[124].mxu0 %vm1419_vm3, %v2265_v23  ;;  %v18461_v23 = vld [vmem:[%s23653_s19 + $0x118] sm:$0xff]  }
 0x3e5   : > { %16605 = vmatprep.mubr.msk.bf16.mxu0 %vm19817_vm0, %v19816_v0 }
 0x3e8   : > { %16650 = vmatmul.mubr.msk.bf16.gmra.mrb[140].mxu1 %vm1419_vm3, %v20792_v26 }
 0x3e9   : > { %16653 = vmatprep.mubr.msk.bf16.mxu1 %vm19817_vm0, %v19816_v0 }
 0x3ec   : > { %16606 = vmatmul.mubr.msk.bf16.gmra.mrb[128].mxu0 %vm1419_vm3, %v2266_v29 }
 0x3ed   : > { %16609 = vmatprep.mubr.msk.bf16.mxu0 %vm19817_vm0, %v19816_v0 }
 0x3f0   : > { %16654 = vmatmul.mubr.msk.bf16.gmra.mrb[144].mxu1 %vm1419_vm3, %v20801_v32 }
 0x3f1   : > { %16657 = vmatprep.mubr.msk.bf16.mxu1 %vm19817_vm0, %v19816_v0 }
 0x3f4   : > { %16610 = vmatmul.mubr.msk.bf16.gmra.mrb[132].mxu0 %vm1419_vm3, %v2267_v35 }
 0x3f5   : > { %16613 = vmatprep.mubr.msk.bf16.mxu0 %vm19817_vm0, %v19816_v0 }
 0x3f8   : > { %16658 = vmatmul.mubr.msk.bf16.gmra.mrb[148].mxu1 %vm1419_vm3, %v20810_v14 }
 0x3f9   : > { %16661 = vmatprep.mubr.msk.bf16.mxu1 %vm19817_vm0, %v19816_v0 }
 0x3fc   : > { %16614 = vmatmul.mubr.msk.bf16.gmra.mrb[136].mxu0 %vm1419_vm3, %v2268_v40 }
 0x3fd   : > { %16617 = vmatprep.mubr.msk.bf16.mxu0 %vm19817_vm0, %v19816_v0 }
 0x400   : > { %16662 = vmatmul.mubr.msk.bf16.gmra.mrb[152].mxu1 %vm1419_vm3, %v20819_v43 }
 0x401   : > { %16717 = vmatprep.mubr.msk.bf16.mxu1 %vm19817_vm0, %v19816_v0 }
 0x403   : > { %v1754_v47 = vpop.f32.mrb[48].mxu1 }
 0x404   : > { %v16455_v49 = vpop.f32.mrb[49].mxu1  ;;  %16618 = vmatmul.mubr.msk.bf16.gmra.mrb[140].mxu0 %vm1419_vm3, %v2269_v46 }
 0x405   : > { %v1757_v50 = vpop.f32.mrb[50].mxu1  ;;  %16673 = vmatprep.mubr.msk.bf16.mxu0 %vm19817_vm0, %v19816_v0 }
 0x406   : > { %v16456_v52 = vpop.f32.mrb[51].mxu1 }
 0x407   : > { %v1598_v54 = vpop.f32.mrb[36].mxu0 }
 0x408   : > { %v16411_v55 = vpop.f32.mrb[37].mxu0  ;;  %16718 = vmatmul.mubr.msk.bf16.vlgmr.msra.gmra.mrb[156].mxu1 %vm1419_vm3, %v2888_v53  ;;  %v20829_v56 = vadd.f32 %v1754_v47, %v1598_v54  ;;  %v2879_v47 = vld [vmem:[#allocation2 + $0x6d] sm:$0xff] }
 0x409   : > { %v1601_v57 = vpop.f32.mrb[38].mxu0  ;;  %16721 = vmatprep.mubr.msk.bf16.mxu1 %vm19817_vm0, %v19816_v0 }
 0x40a   : > { %v16412_v60 = vpop.f32.mrb[39].mxu0  ;;  %v20836_v61 = vadd.f32 %v1757_v50, %v1601_v57  ;;  %v2878_v50 = vld [vmem:[#allocation2 + $0x65] sm:$0xff] }
 0x40b   : > { %v1762_v62 = vpop.f32.mrb[52].mxu1  ;;  %v2892_v52 = vpack.c.bf16 %v2879_v47, %v2878_v50  ;;  %v2887_v47 = vld [vmem:[#allocation2 + $0xad] sm:$0xff] }
 0x40c   : > { %v16459_v1 = vpop.f32.mrb[53].mxu1  ;;  %16674 = vmatmul.mubr.msk.bf16.vlgmr.msra.gmra.mrb[144].mxu0 %vm1419_vm3, %v20737_v59 }
 0x40d   : > { %v1765_v2 = vpop.f32.mrb[54].mxu1  ;;  %16677 = vmatprep.mubr.msk.bf16.mxu0 %vm19817_vm0, %v19816_v0  ;;  %16754 = vmatpush3.bf16.msra.mxu0 %v18458_v58 }
 0x40e   : > { %v16460_v5 = vpop.f32.mrb[55].mxu1  ;;  %16755 = vmatprep.subr.bf16.mxu0 %v19816_v0 }
 0x40f   : > { %v1606_v8 = vpop.f32.mrb[40].mxu0 }
 0x410   : > { %v16415_v9 = vpop.f32.mrb[41].mxu0  ;;  %16722 = vmatmul.mubr.msk.bf16.gmra.mrb[160].mxu1 %vm1419_vm3, %v2889_v7  ;;  %v20847_v10 = vadd.f32 %v1762_v62, %v1606_v8  ;;  %v2881_v62 = vld [vmem:[#allocation2 + $0x7d] sm:$0xff] }
 0x411   : > { %v1609_v59 = vpop.f32.mrb[42].mxu0  ;;  %16725 = vmatprep.mubr.msk.bf16.mxu1 %vm19817_vm0, %v19816_v0  ;;  %16756 = vmatpush3.bf16.msra.mxu0 %v18459_v4 }
 0x412   : > { %v16416_v15 = vpop.f32.mrb[43].mxu0  ;;  %16757 = vmatprep.subr.bf16.mxu0 %v19816_v0  ;;  %v20855_v16 = vadd.f32 %v1765_v2, %v1609_v59  ;;  %v2880_v2 = vld [vmem:[#allocation2 + $0x75] sm:$0xff] }
 0x413   : > { %v1770_v17 = vpop.f32.mrb[56].mxu1  ;;  %v2893_v4 = vpack.c.bf16 %v2881_v62, %v2880_v2  ;;  %v2883_v15 = vld [vmem:[#allocation2 + $0x8d] sm:$0xff] }
 0x414   : > { %v16463_v19 = vpop.f32.mrb[57].mxu1  ;;  %16678 = vmatmul.mubr.msk.bf16.gmra.mrb[148].mxu0 %vm1419_vm3, %v20762_v6 }
 0x415   : > { %v1773_v21 = vpop.f32.mrb[58].mxu1  ;;  %16681 = vmatprep.mubr.msk.bf16.mxu0 %vm19817_vm0, %v19816_v0  ;;  %16758 = vmatpush3.bf16.msra.mxu0 %v18460_v11  ;;  %v2882_v19 = vld [vmem:[#allocation2 + $0x85] sm:$0xff] }
 0x416   : > { %v16464_v24 = vpop.f32.mrb[59].mxu1  ;;  %16759 = vmatprep.subr.bf16.mxu0 %v19816_v0  ;;  %v2894_v22 = vpack.c.bf16 %v2883_v15, %v2882_v19  ;;  %v3079_v15 = vld [vmem:[#allocation2 + $0x26] sm:$0xff] }
 0x417   : > { %v1614_v27 = vpop.f32.mrb[44].mxu0 }
 0x418   : > { %v16419_v28 = vpop.f32.mrb[45].mxu0  ;;  %16726 = vmatmul.mubr.msk.bf16.gmra.mrb[164].mxu1 %vm1419_vm3, %v2890_v25  ;;  %v20866_v29 = vadd.f32 %v1770_v17, %v1614_v27 }
 0x419   : > { %v1617_v6 = vpop.f32.mrb[46].mxu0  ;;  %16729 = vmatprep.mubr.msk.bf16.mxu1 %vm19817_vm0, %v19816_v0  ;;  %16760 = vmatpush3.bf16.msra.mxu0 %v18461_v23 }
 0x41a   : > { %v16420_v30 = vpop.f32.mrb[47].mxu0  ;;  %v20870_v31 = vadd.f32 %v1773_v21, %v1617_v6 }
 0x41b   : > { %v1778_v33 = vpop.f32.mrb[60].mxu1  ;;  %v2885_v30 = vld [vmem:[#allocation2 + $0x9d] sm:$0xff] }
 0x41c   : > { %v16467_v35 = vpop.f32.mrb[61].mxu1  ;;  %16682 = vmatmul.mubr.msk.bf16.gmra.mrb[152].mxu0 %vm1419_vm3, %v20774_v13 }
 0x41d   : > { %v1781_v36 = vpop.f32.mrb[62].mxu1  ;;  %16685 = vmatprep.mubr.msk.bf16.mxu0 %vm19817_vm0, %v19816_v0  ;;  %v2884_v35 = vld [vmem:[#allocation2 + $0x95] sm:$0xff] }
 0x41e   : > { %v16468_v38 = vpop.f32.mrb[63].mxu1  ;;  %v2895_v37 = vpack.c.bf16 %v2885_v30, %v2884_v35 }
 0x41f   : > { %v1622_v40 = vpop.f32.mrb[48].mxu0 }
 0x420   : > { %v16423_v41 = vpop.f32.mrb[49].mxu0  ;;  %16730 = vmatmul.mubr.msk.bf16.gmra.mrb[168].mxu1 %vm1419_vm3, %v2891_v39  ;;  %v20877_v42 = vadd.f32 %v1778_v33, %v1622_v40 }
 0x421   : > { %v1625_v44 = vpop.f32.mrb[50].mxu0  ;;  %16733 = vmatprep.mubr.msk.bf16.mxu1 %vm19817_vm0, %v19816_v0 }
 0x422   : > { %v16424_v45 = vpop.f32.mrb[51].mxu0  ;;  %v20881_v46 = vadd.f32 %v1781_v36, %v1625_v44 }
 0x423   : > { %v1786_v13 = vpop.f32.mrb[64].mxu1 }
 0x424   : > { %v16471_v48 = vpop.f32.mrb[65].mxu1  ;;  %16686 = vmatmul.mubr.msk.bf16.gmra.mrb[156].mxu0 %vm1419_vm3, %v20783_v20 }
 0x425   : > { %v1789_v49 = vpop.f32.mrb[66].mxu1  ;;  %16689 = vmatprep.mubr.msk.bf16.mxu0 %vm19817_vm0, %v19816_v0 }
 0x426   : > { %v16472_v51 = vpop.f32.mrb[67].mxu1 }
 0x427   : > { %v1630_v53 = vpop.f32.mrb[52].mxu0 }
 0x428   : > { %v16427_v54 = vpop.f32.mrb[53].mxu0  ;;  %16734 = vmatmul.mubr.msk.bf16.gmra.mrb[172].mxu1 %vm1419_vm3, %v2892_v52  ;;  %v20888_v55 = vadd.f32 %v1786_v13, %v1630_v53  ;;  %v2886_v13 = vld [vmem:[#allocation2 + $0xa5] sm:$0xff] }
 0x429   : > { %v1633_v57 = vpop.f32.mrb[54].mxu0  ;;  %16737 = vmatprep.mubr.msk.bf16.mxu1 %vm19817_vm0, %v19816_v0  ;;  %v2896_v51 = vpack.c.bf16 %v2887_v47, %v2886_v13  ;;  %v2677_v53 = vld [vmem:[#allocation2 + $0xa4] sm:$0xff]  ;;  %v2678_v54 = vld [vmem:[#allocation2 + $0xac] sm:$0xff] }
 0x42a   : > { %v16428_v58 = vpop.f32.mrb[55].mxu0  ;;  %v20892_v60 = vadd.f32 %v1789_v49, %v1633_v57  ;;  %v3084_v47 = vld [vmem:[#allocation2 + $0x4e] sm:$0xff] }
 0x42b   : > { %v1794_v20 = vpop.f32.mrb[68].mxu1 }
 0x42c   : > { %v16475_v63 = vpop.f32.mrb[69].mxu1  ;;  %16690 = vmatmul.mubr.msk.bf16.gmra.mrb[160].mxu0 %vm1419_vm3, %v20792_v26 }
 0x42d   : > { %v1797_v1 = vpop.f32.mrb[70].mxu1  ;;  %16693 = vmatprep.mubr.msk.bf16.mxu0 %vm19817_vm0, %v19816_v0 }
 0x42e   : > { %v16476_v3 = vpop.f32.mrb[71].mxu1 }
 0x42f   : > { %v1638_v5 = vpop.f32.mrb[56].mxu0 }
 0x430   : > { %v16431_v7 = vpop.f32.mrb[57].mxu0  ;;  %16738 = vmatmul.mubr.msk.bf16.gmra.mrb[176].mxu1 %vm1419_vm3, %v2893_v4  ;;  %v20899_v8 = vadd.f32 %v1794_v20, %v1638_v5 }
 0x431   : > { %v1641_v9 = vpop.f32.mrb[58].mxu0  ;;  %16741 = vmatprep.mubr.msk.bf16.mxu1 %vm19817_vm0, %v19816_v0  ;;  %v3080_v7 = vld [vmem:[#allocation2 + $0x2e] sm:$0xff] }
 0x432   : > { %v16432_v59 = vpop.f32.mrb[59].mxu0  ;;  %v20903_v11 = vadd.f32 %v1797_v1, %v1641_v9  ;;  %v2687_v1 = vpack.c.bf16 %v2678_v54, %v2677_v53  ;;  %v3097_v19 = vpack.c.bf16 %v3080_v7, %v3079_v15 }
 0x433   : > { %v1802_v26 = vpop.f32.mrb[72].mxu1 }
 0x434   : > { %v16479_v17 = vpop.f32.mrb[73].mxu1  ;;  %16694 = vmatmul.mubr.msk.bf16.gmra.mrb[164].mxu0 %vm1419_vm3, %v20801_v32 }
 0x435   : > { %v1805_v18 = vpop.f32.mrb[74].mxu1  ;;  %16697 = vmatprep.mubr.msk.bf16.mxu0 %vm19817_vm0, %v19816_v0 }
 0x436   : > { %v16480_v21 = vpop.f32.mrb[75].mxu1 }
 0x437   : > { %v1646_v23 = vpop.f32.mrb[60].mxu0 }
 0x438   : > { %v16435_v24 = vpop.f32.mrb[61].mxu0  ;;  %16742 = vmatmul.mubr.msk.bf16.gmra.mrb[180].mxu1 %vm1419_vm3, %v2894_v22  ;;  %v20910_v25 = vadd.f32 %v1802_v26, %v1646_v23 }
 0x439   : > { %v1649_v27 = vpop.f32.mrb[62].mxu0  ;;  %16745 = vmatprep.mubr.msk.bf16.mxu1 %vm19817_vm0, %v19816_v0 }
 0x43a   : > { %v16436_v28 = vpop.f32.mrb[63].mxu0  ;;  %v20914_v6 = vadd.f32 %v1805_v18, %v1649_v27 }
 0x43b   : > { %v1810_v32 = vpop.f32.mrb[76].mxu1 }
 0x43c   : > { %v16483_v33 = vpop.f32.mrb[77].mxu1  ;;  %16698 = vmatmul.mubr.msk.bf16.gmra.mrb[168].mxu0 %vm1419_vm3, %v20810_v14 }
 0x43d   : > { %v1813_v34 = vpop.f32.mrb[78].mxu1  ;;  %16701 = vmatprep.mubr.msk.bf16.mxu0 %vm19817_vm0, %v19816_v0 }
 0x43e   : > { %v16484_v36 = vpop.f32.mrb[79].mxu1 }
 0x43f   : > { %v1654_v38 = vpop.f32.mrb[64].mxu0 }
 0x440   : > { %v20920_v39 = vadd.f32 %v1810_v32, %v1654_v38  ;;  %v16439_v40 = vpop.f32.mrb[65].mxu0  ;;  %16746 = vmatmul.mubr.msk.bf16.gmra.mrb[184].mxu1 %vm1419_vm3, %v2895_v37  ;;  %v3082_v32 = vld [vmem:[#allocation2 + $0x3e] sm:$0xff] }
 0x441   : > { %v1657_v41 = vpop.f32.mrb[66].mxu0  ;;  %16749 = vmatprep.mubr.msk.bf16.mxu1 %vm19817_vm0, %v19816_v0 }
 0x442   : > { %v20925_v44 = vadd.f32 %v1813_v34, %v1657_v41  ;;  %v16440_v14 = vpop.f32.mrb[67].mxu0  ;;  %v3081_v34 = vld [vmem:[#allocation2 + $0x36] sm:$0xff] }
 0x443   : > { %v1818_v45 = vpop.f32.mrb[80].mxu1  ;;  %v3098_v37 = vpack.c.bf16 %v3082_v32, %v3081_v34 }
 0x444   : > { %v16487_v48 = vpop.f32.mrb[81].mxu1  ;;  %16702 = vmatmul.mubr.msk.bf16.gmra.mrb[172].mxu0 %vm1419_vm3, %v20819_v43 }
 0x445   : > { %v1821_v49 = vpop.f32.mrb[82].mxu1  ;;  %16705 = vmatprep.mubr.msk.bf16.mxu0 %vm19817_vm0, %v19816_v0 }
 0x446   : > { %v16488_v50 = vpop.f32.mrb[83].mxu1 }
 0x447   : > { %v1662_v52 = vpop.f32.mrb[68].mxu0  ;;  %v3083_v50 = vld [vmem:[#allocation2 + $0x46] sm:$0xff] }
 0x448   : > { %v20931_v57 = vadd.f32 %v1818_v45, %v1662_v52  ;;  %v16443_v58 = vpop.f32.mrb[69].mxu0  ;;  %16750 = vmatmul.mubr.msk.bf16.gmra.mrb[188].mxu1 %vm1419_vm3, %v2896_v51  ;;  %v3099_v53 = vpack.c.bf16 %v3084_v47, %v3083_v50 }
 0x449   : > { %v1665_v20 = vpop.f32.mrb[70].mxu0 }
 0x44a   : > { %v20934_v62 = vadd.f32 %v1821_v49, %v1665_v20  ;;  %v16444_v63 = vpop.f32.mrb[71].mxu0 }
 0x44b   : > { %v2154_v43 = vpop.f32.mrb[84].mxu1 }
 0x44c   : > { %v16543_v2 = vpop.f32.mrb[85].mxu1  ;;  %16706 = vmatmul.mubr.msk.bf16.gmra.mrb[176].mxu0 %vm1419_vm3, %v2687_v1 }
 0x44d   : > { %v2157_v3 = vpop.f32.mrb[86].mxu1  ;;  %16761 = vmatprep.mubr.msk.bf16.mxu0 %vm19817_vm0, %v19816_v0  ;;  %v3086_v2 = vld [vmem:[#allocation2 + $0x5e] sm:$0xff] }
 0x44e   : > { %v16544_v4 = vpop.f32.mrb[87].mxu1 }
 0x44f   : > { %v1945_v5 = vpop.f32.mrb[72].mxu0 }
 0x450   : > { %v2016_v9 = vadd.f32 %v1945_v5, %v20829_v56  ;;  %v16499_v59 = vpop.f32.mrb[73].mxu0  ;;  %v3085_v5 = vld [vmem:[#allocation2 + $0x56] sm:$0xff] }
 0x451   : > { %v1948_v26 = vpop.f32.mrb[74].mxu0  ;;  %v3100_v59 = vpack.c.bf16 %v3086_v2, %v3085_v5 }
 0x452   : > { %v2017_v17 = vadd.f32 %v1948_v26, %v20836_v61  ;;  %v16500_v18 = vpop.f32.mrb[75].mxu0  ;;  %v20941_v21 = vadd.f32 %v2154_v43, %v2016_v9 }
 0x453   : > { %v2162_v22 = vpop.f32.mrb[88].mxu1 }
 0x454   : > { %v16547_v23 = vpop.f32.mrb[89].mxu1  ;;  %16762 = vmatmul.mubr.msk.bf16.vlgmr.msra.gmra.mrb[180].mxu0 %vm1419_vm3, %v3097_v19  ;;  %v20944_v24 = vadd.f32 %v2157_v3, %v2017_v17 }
 0x455   : > { %v2165_v27 = vpop.f32.mrb[90].mxu1  ;;  %16765 = vmatprep.mubr.msk.bf16.mxu0 %vm19817_vm0, %v19816_v0  ;;  %v3088_v23 = vld [vmem:[#allocation2 + $0x6e] sm:$0xff] }
 0x456   : > { %v16548_v56 = vpop.f32.mrb[91].mxu1 }
 0x457   : > { %v1953_v28 = vpop.f32.mrb[76].mxu0 }
 0x458   : > { %v2018_v30 = vadd.f32 %v1953_v28, %v20847_v10  ;;  %v16503_v61 = vpop.f32.mrb[77].mxu0  ;;  %v3087_v28 = vld [vmem:[#allocation2 + $0x66] sm:$0xff] }
 0x459   : > { %v1956_v33 = vpop.f32.mrb[78].mxu0  ;;  %v3101_v61 = vpack.c.bf16 %v3088_v23, %v3087_v28 }
 0x45a   : > { %v2019_v35 = vadd.f32 %v1956_v33, %v20855_v16  ;;  %v16504_v36 = vpop.f32.mrb[79].mxu0  ;;  %v20950_v38 = vadd.f32 %v2162_v22, %v2018_v30 }
 0x45b   : > { %v2170_v40 = vpop.f32.mrb[92].mxu1 }
 0x45c   : > { %v16551_v41 = vpop.f32.mrb[93].mxu1  ;;  %16766 = vmatmul.mubr.msk.bf16.gmra.mrb[184].mxu0 %vm1419_vm3, %v3098_v37  ;;  %v20953_v14 = vadd.f32 %v2165_v27, %v2019_v35 }
 0x45d   : > { %v2173_v45 = vpop.f32.mrb[94].mxu1  ;;  %16769 = vmatprep.mubr.msk.bf16.mxu0 %vm19817_vm0, %v19816_v0  ;;  %v3090_v41 = vld [vmem:[#allocation2 + $0x7e] sm:$0xff] }
 0x45e   : > { %v16552_v10 = vpop.f32.mrb[95].mxu1 }
 0x45f   : > { %v1961_v13 = vpop.f32.mrb[80].mxu0 }
 0x460   : > { %v2020_v48 = vadd.f32 %v1961_v13, %v20866_v29  ;;  %v16507_v16 = vpop.f32.mrb[81].mxu0  ;;  %v3089_v13 = vld [vmem:[#allocation2 + $0x76] sm:$0xff] }
 0x461   : > { %v1964_v49 = vpop.f32.mrb[82].mxu0  ;;  %v3102_v16 = vpack.c.bf16 %v3090_v41, %v3089_v13 }
 0x462   : > { %v2021_v51 = vadd.f32 %v1964_v49, %v20870_v31  ;;  %v16508_v52 = vpop.f32.mrb[83].mxu0  ;;  %v20959_v54 = vadd.f32 %v2170_v40, %v2020_v48 }
 0x463   : > { %v2178_v58 = vpop.f32.mrb[96].mxu1 }
 0x464   : > { %v16555_v20 = vpop.f32.mrb[97].mxu1  ;;  %16770 = vmatmul.mubr.msk.bf16.gmra.mrb[188].mxu0 %vm1419_vm3, %v3099_v53  ;;  %v20962_v63 = vadd.f32 %v2173_v45, %v2021_v51 }
 0x465   : > { %v2181_v1 = vpop.f32.mrb[98].mxu1  ;;  %16773 = vmatprep.mubr.msk.bf16.mxu0 %vm19817_vm0, %v19816_v0  ;;  %v3092_v20 = vld [vmem:[#allocation2 + $0x8e] sm:$0xff] }
 0x466   : > { %v16556_v29 = vpop.f32.mrb[99].mxu1 }
 0x467   : > { %v1969_v43 = vpop.f32.mrb[84].mxu0 }
 0x468   : > { %v2022_v3 = vadd.f32 %v1969_v43, %v20877_v42  ;;  %v16511_v31 = vpop.f32.mrb[85].mxu0  ;;  %v3091_v43 = vld [vmem:[#allocation2 + $0x86] sm:$0xff] }
 0x469   : > { %v1972_v4 = vpop.f32.mrb[86].mxu0  ;;  %v3103_v31 = vpack.c.bf16 %v3092_v20, %v3091_v43 }
 0x46a   : > { %v2023_v7 = vadd.f32 %v1972_v4, %v20881_v46  ;;  %v16512_v9 = vpop.f32.mrb[87].mxu0  ;;  %v20968_v26 = vadd.f32 %v2178_v58, %v2022_v3 }
 0x46b   : > { %v2186_v15 = vpop.f32.mrb[100].mxu1 }
 0x46c   : > { %v16559_v17 = vpop.f32.mrb[101].mxu1  ;;  %16774 = vmatmul.mubr.msk.bf16.gmra.mrb[192].mxu0 %vm1419_vm3, %v3100_v59  ;;  %v20971_v18 = vadd.f32 %v2181_v1, %v2023_v7 }
 0x46d   : > { %v2189_v19 = vpop.f32.mrb[102].mxu1  ;;  %16777 = vmatprep.mubr.msk.bf16.mxu0 %vm19817_vm0, %v19816_v0  ;;  %v3094_v17 = vld [vmem:[#allocation2 + $0x9e] sm:$0xff] }
 0x46e   : > { %v16560_v42 = vpop.f32.mrb[103].mxu1 }
 0x46f   : > { %v1977_v22 = vpop.f32.mrb[88].mxu0 }
 0x470   : > { %v2024_v27 = vadd.f32 %v1977_v22, %v20888_v55  ;;  %v16515_v46 = vpop.f32.mrb[89].mxu0  ;;  %v3093_v22 = vld [vmem:[#allocation2 + $0x96] sm:$0xff] }
 0x471   : > { %v1980_v56 = vpop.f32.mrb[90].mxu0  ;;  %v3104_v46 = vpack.c.bf16 %v3094_v17, %v3093_v22 }
 0x472   : > { %v2025_v32 = vadd.f32 %v1980_v56, %v20892_v60  ;;  %v16516_v30 = vpop.f32.mrb[91].mxu0  ;;  %v20977_v33 = vadd.f32 %v2186_v15, %v2024_v27 }
 0x473   : > { %v2194_v34 = vpop.f32.mrb[104].mxu1 }
 0x474   : > { %v16563_v35 = vpop.f32.mrb[105].mxu1  ;;  %16778 = vmatmul.mubr.msk.bf16.gmra.mrb[196].mxu0 %vm1419_vm3, %v3101_v61  ;;  %v20980_v36 = vadd.f32 %v2189_v19, %v2025_v32 }
 0x475   : > { %v2197_v37 = vpop.f32.mrb[106].mxu1  ;;  %16781 = vmatprep.mubr.msk.bf16.mxu0 %vm19817_vm0, %v19816_v0  ;;  %v3095_v35 = vld [vmem:[#allocation2 + $0xa6] sm:$0xff] }
 0x476   : > { %v16564_v55 = vpop.f32.mrb[107].mxu1 }
 0x477   : > { %v1985_v40 = vpop.f32.mrb[92].mxu0 }
 0x478   : > { %v2026_v45 = vadd.f32 %v1985_v40, %v20899_v8  ;;  %v16519_v60 = vpop.f32.mrb[93].mxu0 }
 0x479   : > { %v1988_v10 = vpop.f32.mrb[94].mxu0 }
 0x47a   : > { %v2027_v47 = vadd.f32 %v1988_v10, %v20903_v11  ;;  %v16520_v48 = vpop.f32.mrb[95].mxu0  ;;  %v20986_v49 = vadd.f32 %v2194_v34, %v2026_v45 }
 0x47b   : > { %v2202_v50 = vpop.f32.mrb[108].mxu1 }
 0x47c   : > { %v16567_v51 = vpop.f32.mrb[109].mxu1  ;;  %16782 = vmatmul.mubr.msk.bf16.gmra.mrb[200].mxu0 %vm1419_vm3, %v3102_v16  ;;  %v20989_v52 = vadd.f32 %v2197_v37, %v2027_v47  ;;  %v3096_v37 = vld [vmem:[#allocation2 + $0xae] sm:$0xff] }
 0x47d   : > { %v2205_v53 = vpop.f32.mrb[110].mxu1  ;;  %16785 = vmatprep.mubr.msk.bf16.mxu0 %vm19817_vm0, %v19816_v0  ;;  %v3105_v60 = vpack.c.bf16 %v3096_v37, %v3095_v35 }
 0x47e   : > { %v16568_v8 = vpop.f32.mrb[111].mxu1 }
 0x47f   : > { %v1993_v58 = vpop.f32.mrb[96].mxu0 }
 0x480   : > { %v2028_v1 = vadd.f32 %v1993_v58, %v20910_v25  ;;  %v16523_v11 = vpop.f32.mrb[97].mxu0 }
 0x481   : > { %v1996_v29 = vpop.f32.mrb[98].mxu0 }
 0x482   : > { %v2029_v2 = vadd.f32 %v1996_v29, %v20914_v6  ;;  %v16524_v3 = vpop.f32.mrb[99].mxu0  ;;  %v20995_v4 = vadd.f32 %v2202_v50, %v2028_v1 }
 0x483   : > { %v2210_v5 = vpop.f32.mrb[112].mxu1 }
 0x484   : > { %v16571_v7 = vpop.f32.mrb[113].mxu1  ;;  %16786 = vmatmul.mubr.msk.bf16.gmra.mrb[204].mxu0 %vm1419_vm3, %v3103_v31  ;;  %v20998_v9 = vadd.f32 %v2205_v53, %v2029_v2 }
 0x485   : > { %v2213_v59 = vpop.f32.mrb[114].mxu1  ;;  %16789 = vmatprep.mubr.msk.bf16.mxu0 %vm19817_vm0, %v19816_v0 }
 0x486   : > { %v16572_v25 = vpop.f32.mrb[115].mxu1 }
 0x487   : > { %v2001_v15 = vpop.f32.mrb[100].mxu0 }
 0x488   : > { %v2030_v19 = vadd.f32 %v2001_v15, %v20920_v39  ;;  %v16527_v6 = vpop.f32.mrb[101].mxu0 }
 0x489   : > { %v2004_v42 = vpop.f32.mrb[102].mxu0 }
 0x48a   : > { %v2031_v23 = vadd.f32 %v2004_v42, %v20925_v44  ;;  %v16528_v27 = vpop.f32.mrb[103].mxu0  ;;  %v21004_v56 = vadd.f32 %v2210_v5, %v2030_v19 }
 0x48b   : > { %v2218_v28 = vpop.f32.mrb[116].mxu1 }
 0x48c   : > { %v16575_v32 = vpop.f32.mrb[117].mxu1  ;;  %16790 = vmatmul.mubr.msk.bf16.gmra.mrb[208].mxu0 %vm1419_vm3, %v3104_v46  ;;  %v21007_v30 = vadd.f32 %v2213_v59, %v2031_v23 }
 0x48d   : > { %v2221_v61 = vpop.f32.mrb[118].mxu1  ;;  %16793 = vmatprep.mubr.msk.bf16.mxu0 %vm19817_vm0, %v19816_v0 }
 0x48e   : > { %v16576_v39 = vpop.f32.mrb[119].mxu1 }
 0x48f   : > { %v2009_v34 = vpop.f32.mrb[104].mxu0 }
 0x490   : > { %v2032_v44 = vadd.f32 %v2009_v34, %v20931_v57  ;;  %v16531_v55 = vpop.f32.mrb[105].mxu0 }
 0x491   : > { %v2012_v40 = vpop.f32.mrb[106].mxu0 }
 0x492   : > { %v2033_v41 = vadd.f32 %v2012_v40, %v20934_v62  ;;  %v16532_v45 = vpop.f32.mrb[107].mxu0  ;;  %v21013_v10 = vadd.f32 %v2218_v28, %v2032_v44 }
 0x493   : > { %v2572_v13 = vpop.f32.mrb[120].mxu1 }
 0x494   : > { %v16631_v47 = vpop.f32.mrb[121].mxu1  ;;  %16794 = vmatmul.mubr.msk.bf16.gmra.mrb[212].mxu0 %vm1419_vm3, %v3105_v60  ;;  %v21016_v48 = vadd.f32 %v2221_v61, %v2033_v41 }
 0x495   : > { %v2575_v16 = vpop.f32.mrb[122].mxu1 }
 0x496   : > { %v16632_v50 = vpop.f32.mrb[123].mxu1 }
 0x497   : > { %v2363_v51 = vpop.f32.mrb[108].mxu0 }
 0x498   : > { %v2434_v53 = vadd.f32 %v2363_v51, %v20941_v21  ;;  %v16587_v57 = vpop.f32.mrb[109].mxu0 }
 0x499   : > { %v2366_v8 = vpop.f32.mrb[110].mxu0 }
 0x49a   : > { %v2435_v58 = vadd.f32 %v2366_v8, %v20944_v24  ;;  %v16588_v62 = vpop.f32.mrb[111].mxu0  ;;  %v21020_v20 = vadd.f32 %v2572_v13, %v2434_v53 }
 0x49b   : > { %v2580_v1 = vpop.f32.mrb[124].mxu1 }
 0x49c   : > { %v16635_v11 = vpop.f32.mrb[125].mxu1  ;;  %v21022_v29 = vadd.f32 %v2575_v16, %v2435_v58 }
 0x49d   : > { %v2583_v43 = vpop.f32.mrb[126].mxu1 }
 0x49e   : > { %v16636_v2 = vpop.f32.mrb[127].mxu1 }
 0x49f   : > { %v2371_v3 = vpop.f32.mrb[112].mxu0 }
 0x4a0   : > { %v2436_v31 = vadd.f32 %v2371_v3, %v20950_v38  ;;  %v16591_v5 = vpop.f32.mrb[113].mxu0 }
 0x4a1   : > { %v2374_v7 = vpop.f32.mrb[114].mxu0 }
 0x4a2   : > { %v2437_v21 = vadd.f32 %v2374_v7, %v20953_v14  ;;  %v16592_v59 = vpop.f32.mrb[115].mxu0  ;;  %v21026_v25 = vadd.f32 %v2580_v1, %v2436_v31 }
 0x4a3   : > { %v2588_v24 = vpop.f32.mrb[128].mxu1 }
 0x4a4   : > { %v16639_v15 = vpop.f32.mrb[129].mxu1  ;;  %v21028_v17 = vadd.f32 %v2583_v43, %v2437_v21 }
 0x4a5   : > { %v2591_v19 = vpop.f32.mrb[130].mxu1 }
 0x4a6   : > { %v16640_v6 = vpop.f32.mrb[131].mxu1 }
 0x4a7   : > { %v2379_v42 = vpop.f32.mrb[116].mxu0 }
 0x4a8   : > { %v2438_v22 = vadd.f32 %v2379_v42, %v20959_v54  ;;  %v16595_v23 = vpop.f32.mrb[117].mxu0 }
 0x4a9   : > { %v2382_v27 = vpop.f32.mrb[118].mxu0 }
 0x4aa   : > { %v2439_v38 = vadd.f32 %v2382_v27, %v20962_v63  ;;  %v16596_v46 = vpop.f32.mrb[119].mxu0  ;;  %v21032_v28 = vadd.f32 %v2588_v24, %v2438_v22 }
 0x4ab   : > { %v2596_v14 = vpop.f32.mrb[132].mxu1 }
 0x4ac   : > { %v16643_v32 = vpop.f32.mrb[133].mxu1  ;;  %v21034_v61 = vadd.f32 %v2591_v19, %v2439_v38 }
 0x4ad   : > { %v2599_v39 = vpop.f32.mrb[134].mxu1 }
 0x4ae   : > { %v16644_v34 = vpop.f32.mrb[135].mxu1 }
 0x4af   : > { %v2387_v35 = vpop.f32.mrb[120].mxu0 }
 0x4b0   : > { %v2440_v37 = vadd.f32 %v2387_v35, %v20968_v26  ;;  %v16599_v44 = vpop.f32.mrb[121].mxu0 }
 0x4b1   : > { %v2390_v55 = vpop.f32.mrb[122].mxu0 }
 0x4b2   : > { %v2441_v54 = vadd.f32 %v2390_v55, %v20971_v18  ;;  %v16600_v40 = vpop.f32.mrb[123].mxu0  ;;  %v21038_v41 = vadd.f32 %v2596_v14, %v2440_v37 }
 0x4b3   : > { %v2604_v63 = vpop.f32.mrb[136].mxu1 }
 0x4b4   : > { %v16647_v45 = vpop.f32.mrb[137].mxu1  ;;  %v21040_v60 = vadd.f32 %v2599_v39, %v2441_v54 }
 0x4b5   : > { %v2607_v13 = vpop.f32.mrb[138].mxu1 }
 0x4b6   : > { %v16648_v47 = vpop.f32.mrb[139].mxu1 }
 0x4b7   : > { %v2395_v16 = vpop.f32.mrb[124].mxu0 }
 0x4b8   : > { %v2442_v50 = vadd.f32 %v2395_v16, %v20977_v33  ;;  %v16603_v51 = vpop.f32.mrb[125].mxu0 }
 0x4b9   : > { %v2398_v53 = vpop.f32.mrb[126].mxu0 }
 0x4ba   : > { %v2443_v26 = vadd.f32 %v2398_v53, %v20980_v36  ;;  %v16604_v57 = vpop.f32.mrb[127].mxu0  ;;  %v21044_v8 = vadd.f32 %v2604_v63, %v2442_v50 }
 0x4bb   : > { %v2612_v18 = vpop.f32.mrb[140].mxu1 }
 0x4bc   : > { %v16651_v58 = vpop.f32.mrb[141].mxu1  ;;  %v21046_v62 = vadd.f32 %v2607_v13, %v2443_v26 }
 0x4bd   : > { %v2615_v1 = vpop.f32.mrb[142].mxu1 }
 0x4be   : > { %v16652_v11 = vpop.f32.mrb[143].mxu1 }
 0x4bf   : > { %v2403_v43 = vpop.f32.mrb[128].mxu0 }
 0x4c0   : > { %v2444_v2 = vadd.f32 %v2403_v43, %v20986_v49  ;;  %v16607_v3 = vpop.f32.mrb[129].mxu0 }
 0x4c1   : > { %v2406_v31 = vpop.f32.mrb[130].mxu0 }
 0x4c2   : > { %v2445_v33 = vadd.f32 %v2406_v31, %v20989_v52  ;;  %v16608_v5 = vpop.f32.mrb[131].mxu0  ;;  %v21050_v7 = vadd.f32 %v2612_v18, %v2444_v2 }
 0x4c3   : > { %v2620_v36 = vpop.f32.mrb[144].mxu1 }
 0x4c4   : > { %v16655_v21 = vpop.f32.mrb[145].mxu1  ;;  %v21052_v59 = vadd.f32 %v2615_v1, %v2445_v33 }
 0x4c5   : > { %v2623_v24 = vpop.f32.mrb[146].mxu1 }
 0x4c6   : > { %v16656_v15 = vpop.f32.mrb[147].mxu1 }
 0x4c7   : > { %v2411_v19 = vpop.f32.mrb[132].mxu0 }
 0x4c8   : > { %v2446_v6 = vadd.f32 %v2411_v19, %v20995_v4  ;;  %v16611_v42 = vpop.f32.mrb[133].mxu0 }
 0x4c9   : > { %v2414_v22 = vpop.f32.mrb[134].mxu0 }
 0x4ca   : > { %v2447_v49 = vadd.f32 %v2414_v22, %v20998_v9  ;;  %v16612_v23 = vpop.f32.mrb[135].mxu0  ;;  %v21056_v27 = vadd.f32 %v2620_v36, %v2446_v6 }
 0x4cb   : > { %v2628_v52 = vpop.f32.mrb[148].mxu1 }
 0x4cc   : > { %v16659_v38 = vpop.f32.mrb[149].mxu1  ;;  %v21058_v46 = vadd.f32 %v2623_v24, %v2447_v49 }
 0x4cd   : > { %v2631_v14 = vpop.f32.mrb[150].mxu1 }
 0x4ce   : > { %v16660_v32 = vpop.f32.mrb[151].mxu1 }
 0x4cf   : > { %v2419_v39 = vpop.f32.mrb[136].mxu0 }
 0x4d0   : > { %v2448_v34 = vadd.f32 %v2419_v39, %v21004_v56  ;;  %v16615_v35 = vpop.f32.mrb[137].mxu0 }
 0x4d1   : > { %v2422_v37 = vpop.f32.mrb[138].mxu0 }
 0x4d2   : > { %v2449_v4 = vadd.f32 %v2422_v37, %v21007_v30  ;;  %v16616_v44 = vpop.f32.mrb[139].mxu0  ;;  %v21062_v55 = vadd.f32 %v2628_v52, %v2448_v34 }
 0x4d3   : > { %v2636_v9 = vpop.f32.mrb[152].mxu1 }
 0x4d4   : > { %v16663_v54 = vpop.f32.mrb[153].mxu1  ;;  %v21064_v40 = vadd.f32 %v2631_v14, %v2449_v4 }
 0x4d5   : > { %v2639_v63 = vpop.f32.mrb[154].mxu1 }
 0x4d6   : > { %v16664_v45 = vpop.f32.mrb[155].mxu1 }
 0x4d7   : > { %v2427_v13 = vpop.f32.mrb[140].mxu0 }
 0x4d8   : > { %v2450_v47 = vadd.f32 %v2427_v13, %v21013_v10  ;;  %v16619_v16 = vpop.f32.mrb[141].mxu0 }
 0x4d9   : > { %v2430_v50 = vpop.f32.mrb[142].mxu0 }
 0x4da   : > { %v2451_v56 = vadd.f32 %v2430_v50, %v21016_v48  ;;  %v16620_v51 = vpop.f32.mrb[143].mxu0  ;;  %v21068_v53 = vadd.f32 %v2636_v9, %v2450_v47 }
 0x4db   : > { %v2990_v30 = vpop.f32.mrb[156].mxu1 }
 0x4dc   : > { %v16719_v26 = vpop.f32.mrb[157].mxu1  ;;  %v21070_v57 = vadd.f32 %v2639_v63, %v2451_v56 }
 0x4dd   : > { %v2993_v18 = vpop.f32.mrb[158].mxu1 }
 0x4de   : > { %v16720_v58 = vpop.f32.mrb[159].mxu1 }
 0x4df   : > { %v2781_v1 = vpop.f32.mrb[144].mxu0 }
 0x4e0   : > { %v2852_v11 = vadd.f32 %v2781_v1, %v21020_v20  ;;  %v16675_v43 = vpop.f32.mrb[145].mxu0 }
 0x4e1   : > { %v2784_v2 = vpop.f32.mrb[146].mxu0 }
 0x4e2   : > { %v2853_v10 = vadd.f32 %v2784_v2, %v21022_v29  ;;  %v16676_v3 = vpop.f32.mrb[147].mxu0  ;;  %v21074_v31 = vadd.f32 %v2990_v30, %v2852_v11 }
 0x4e3   : > { %v2998_v48 = vpop.f32.mrb[160].mxu1 }
 0x4e4   : > { %v16723_v33 = vpop.f32.mrb[161].mxu1  ;;  %v21076_v5 = vadd.f32 %v2993_v18, %v2853_v10 }
 0x4e5   : > { %v3001_v36 = vpop.f32.mrb[162].mxu1 }
 0x4e6   : > { %v16724_v21 = vpop.f32.mrb[163].mxu1 }
 0x4e7   : > { %v2789_v24 = vpop.f32.mrb[148].mxu0 }
 0x4e8   : > { %v2854_v15 = vadd.f32 %v2789_v24, %v21026_v25  ;;  %v16679_v19 = vpop.f32.mrb[149].mxu0 }
 0x4e9   : > { %v2792_v6 = vpop.f32.mrb[150].mxu0 }
 0x4ea   : > { %v2855_v20 = vadd.f32 %v2792_v6, %v21028_v17  ;;  %v16680_v42 = vpop.f32.mrb[151].mxu0  ;;  %v21080_v22 = vadd.f32 %v2998_v48, %v2854_v15  ;;  %v3332_v17 = vld [vmem:[%s23654_s29 + $0x8] sm:$0xff]  ;;  %s878_s29 = sand.u32 1, %s23661_s2  }
 0x4eb   : > { %v3006_v29 = vpop.f32.mrb[164].mxu1  ;;  %14841 = vmatprep.mubr.msk.f32.mxu1 %vm1169_vm2, %v3332_v17  ;;  %s14501_s9 = scalar_lea.sflag [#allocation9], %s878_s29 }
 0x4ec   : > { %v16727_v49 = vpop.f32.mrb[165].mxu1  ;;  %v21082_v23 = vadd.f32 %v3001_v36, %v2855_v20 }
 0x4ed   : > { %v3009_v52 = vpop.f32.mrb[166].mxu1 }
 0x4ee   : > { %v16728_v38 = vpop.f32.mrb[167].mxu1 }
 0x4ef   : > { %v2797_v14 = vpop.f32.mrb[152].mxu0 }
 0x4f0   : > { %v2856_v32 = vadd.f32 %v2797_v14, %v21032_v28  ;;  %v16683_v39 = vpop.f32.mrb[153].mxu0 }
 0x4f1   : > { %v2800_v34 = vpop.f32.mrb[154].mxu0 }
 0x4f2   : > { %v2857_v25 = vadd.f32 %v2800_v34, %v21034_v61  ;;  %v16684_v35 = vpop.f32.mrb[155].mxu0  ;;  %v21086_v37 = vadd.f32 %v3006_v29, %v2856_v32 }
 0x4f3   : > { %v3014_v4 = vpop.f32.mrb[168].mxu1 }
 0x4f4   : > { %v16731_v44 = vpop.f32.mrb[169].mxu1  ;;  %v21092_v9 = vadd.f32 %v3009_v52, %v2857_v25 }
 0x4f5   : > { %v3017_v54 = vpop.f32.mrb[170].mxu1 }
 0x4f6   : > { %v16732_v63 = vpop.f32.mrb[171].mxu1 }
 0x4f7   : > { %v2805_v28 = vpop.f32.mrb[156].mxu0 }
 0x4f8   : > { %v2858_v45 = vadd.f32 %v2805_v28, %v21038_v41  ;;  %v16687_v13 = vpop.f32.mrb[157].mxu0 }
 0x4f9   : > { %v2808_v61 = vpop.f32.mrb[158].mxu0 }
 0x4fa   : > { %v2859_v47 = vadd.f32 %v2808_v61, %v21040_v60  ;;  %v16688_v16 = vpop.f32.mrb[159].mxu0  ;;  %v21096_v50 = vadd.f32 %v3014_v4, %v2858_v45 }
 0x4fb   : > { %v3022_v56 = vpop.f32.mrb[172].mxu1 }
 0x4fc   : > { %v16735_v51 = vpop.f32.mrb[173].mxu1  ;;  %v21098_v30 = vadd.f32 %v3017_v54, %v2859_v47 }
 0x4fd   : > { %v3025_v26 = vpop.f32.mrb[174].mxu1 }
 0x4fe   : > { %v16736_v18 = vpop.f32.mrb[175].mxu1 }
 0x4ff   : > { %v2813_v58 = vpop.f32.mrb[160].mxu0 }
 0x500   : > { %v2860_v1 = vadd.f32 %v2813_v58, %v21044_v8  ;;  %v16691_v11 = vpop.f32.mrb[161].mxu0 }
 0x501   : > { %v2816_v43 = vpop.f32.mrb[162].mxu0 }
 0x502   : > { %v2861_v41 = vadd.f32 %v2816_v43, %v21046_v62  ;;  %v16692_v2 = vpop.f32.mrb[163].mxu0  ;;  %v21102_v10 = vadd.f32 %v3022_v56, %v2860_v1 }
 0x503   : > { %v3030_v60 = vpop.f32.mrb[176].mxu1  ;;  %v21133_v2 = vld [vmem:[%s23656_s30] ss:$0 sm:$0xff]  ;;  %s23658_s30 = sld [smem:[#allocation50_spill]] }
 0x504   : > { %v16739_v3 = vpop.f32.mrb[177].mxu1  ;;  %v21104_v48 = vadd.f32 %v3025_v26, %v2861_v41 }
 0x505   : > { %v3033_v33 = vpop.f32.mrb[178].mxu1 }
 0x506   : > { %v16740_v36 = vpop.f32.mrb[179].mxu1 }
 0x507   : > { %v2821_v21 = vpop.f32.mrb[164].mxu0 }
 0x508   : > { %v2862_v24 = vadd.f32 %v2821_v21, %v21050_v7  ;;  %v16695_v15 = vpop.f32.mrb[165].mxu0 }
 0x509   : > { %v2824_v19 = vpop.f32.mrb[166].mxu0  ;;  %s23659_s20 = smov %s23658_s30 }
 0x50a   : > { %v2863_v8 = vadd.f32 %v2824_v19, %v21052_v59  ;;  %v16696_v6 = vpop.f32.mrb[167].mxu0  ;;  %v21108_v20 = vadd.f32 %v3030_v60, %v2862_v24 }
 0x50b   : > { %v3038_v62 = vpop.f32.mrb[180].mxu1 }
 0x50c   : > { %v16743_v42 = vpop.f32.mrb[181].mxu1  ;;  %v21110_v29 = vadd.f32 %v3033_v33, %v2863_v8 }
 0x50d   : > { %v3041_v49 = vpop.f32.mrb[182].mxu1 }
 0x50e   : > { %v16744_v52 = vpop.f32.mrb[183].mxu1 }
 0x50f   : > { %v2829_v38 = vpop.f32.mrb[168].mxu0 }
 0x510   : > { %v2864_v14 = vadd.f32 %v2829_v38, %v21056_v27  ;;  %v16699_v32 = vpop.f32.mrb[169].mxu0 }
 0x511   : > { %v2832_v39 = vpop.f32.mrb[170].mxu0 }
 0x512   : > { %v2865_v7 = vadd.f32 %v2832_v39, %v21058_v46  ;;  %v16700_v34 = vpop.f32.mrb[171].mxu0  ;;  %v21114_v25 = vadd.f32 %v3038_v62, %v2864_v14 }
 0x513   : > { %v3046_v59 = vpop.f32.mrb[184].mxu1 }
 0x514   : > { %v16747_v35 = vpop.f32.mrb[185].mxu1  ;;  %v21116_v17 = vadd.f32 %v3041_v49, %v2865_v7 }
 0x515   : > { %v3049_v4 = vpop.f32.mrb[186].mxu1 }
 0x516   : > { %v16748_v44 = vpop.f32.mrb[187].mxu1 }
 0x517   : > { %v2837_v54 = vpop.f32.mrb[172].mxu0 }
 0x518   : > { %v2866_v63 = vadd.f32 %v2837_v54, %v21062_v55  ;;  %v16703_v28 = vpop.f32.mrb[173].mxu0 }
 0x519   : > { %v2840_v45 = vpop.f32.mrb[174].mxu0 }
 0x51a   : > { %v2867_v27 = vadd.f32 %v2840_v45, %v21064_v40  ;;  %v16704_v13 = vpop.f32.mrb[175].mxu0  ;;  %v21120_v61 = vadd.f32 %v3046_v59, %v2866_v63 }
 0x51b   : > { %v3054_v46 = vpop.f32.mrb[188].mxu1 }
 0x51c   : > { %v16751_v47 = vpop.f32.mrb[189].mxu1  ;;  %v21122_v16 = vadd.f32 %v3049_v4, %v2867_v27 }
 0x51d   : > { %v3057_v56 = vpop.f32.mrb[190].mxu1 }
 0x51e   : > { %v16752_v51 = vpop.f32.mrb[191].mxu1 }
 0x51f   : > { %v2845_v26 = vpop.f32.mrb[176].mxu0 }
 0x520   : > { %v2868_v18 = vadd.f32 %v2845_v26, %v21068_v53  ;;  %v16707_v58 = vpop.f32.mrb[177].mxu0 }
 0x521   : > { %v2848_v1 = vpop.f32.mrb[178].mxu0 }
 0x522   : > { %v2869_v55 = vadd.f32 %v2848_v1, %v21070_v57  ;;  %v16708_v11 = vpop.f32.mrb[179].mxu0  ;;  %v21126_v43 = vadd.f32 %v3054_v46, %v2868_v18 }
 0x524   : > { %v21128_v40 = vadd.f32 %v3057_v56, %v2869_v55 }
 0x527   : > { %v3199_v41 = vpop.f32.mrb[180].mxu0 }
 0x528   : > { %v3270_v60 = vadd.f32 %v3199_v41, %v21074_v31  ;;  %v16763_v3 = vpop.f32.mrb[181].mxu0 }
 0x529   : > { %v3202_v33 = vpop.f32.mrb[182].mxu0 }
 0x52a   : > { %v3295_v53 = vadd.f32 %v21133_v2, %v3270_v60  ;;  %v3271_v36 = vadd.f32 %v3202_v33, %v21076_v5  ;;  %v16764_v57 = vpop.f32.mrb[183].mxu0 }
 0x52c   : > { %v3296_v21 = vadd.f32 %v21133_v2, %v3271_v36  ;;  %v3313_v24 = vmax.f32 %v3295_v53, 0.0 }
 0x52e   : > { %v3314_v15 = vmax.f32 %v3296_v21, 0.0 }
 0x52f   : > { %v3207_v19 = vpop.f32.mrb[184].mxu0 }
 0x530   : > { %v17836_v8 = vpack.c.bf16 %v3314_v15, %v3313_v24  ;;  %v3272_v6 = vadd.f32 %v3207_v19, %v21080_v22  ;;  %v16767_v62 = vpop.f32.mrb[185].mxu0 }
 0x531   : > { %v3210_v42 = vpop.f32.mrb[186].mxu0 }
 0x532   : > { %v3297_v49 = vadd.f32 %v21133_v2, %v3272_v6  ;;  %v3273_v31 = vadd.f32 %v3210_v42, %v21082_v23  ;;  %v16768_v52 = vpop.f32.mrb[187].mxu0  ;;  %17837 = vmatpush1.bf16.msra.mxu1 %v17836_v8 }
 0x533   : > { %17838 = vmatprep.subr.bf16.mxu1 %v19818_v12 }
 0x534   : > { %v3298_v5 = vadd.f32 %v21133_v2, %v3273_v31  ;;  %v3315_v38 = vmax.f32 %v3297_v49, 0.0 }
 0x536   : > { %v3316_v14 = vmax.f32 %v3298_v5, 0.0 }
 0x537   : > { %v3215_v32 = vpop.f32.mrb[188].mxu0 }
 0x538   : > { %v17839_v39 = vpack.c.bf16 %v3316_v14, %v3315_v38  ;;  %v3274_v7 = vadd.f32 %v3215_v32, %v21086_v37  ;;  %v16771_v34 = vpop.f32.mrb[189].mxu0 }
 0x539   : > { %v3218_v22 = vpop.f32.mrb[190].mxu0 }
 0x53a   : > { %v3299_v59 = vadd.f32 %v21133_v2, %v3274_v7  ;;  %v3275_v35 = vadd.f32 %v3218_v22, %v21092_v9  ;;  %v16772_v4 = vpop.f32.mrb[191].mxu0  ;;  %17840 = vmatpush1.bf16.msra.mxu1 %v17839_v39 }
 0x53b   : > { %17841 = vmatprep.subr.bf16.mxu1 %v19818_v12 }
 0x53c   : > { %v3300_v23 = vadd.f32 %v21133_v2, %v3275_v35  ;;  %v3317_v44 = vmax.f32 %v3299_v59, 0.0 }
 0x53e   : > { %v3318_v54 = vmax.f32 %v3300_v23, 0.0 }
 0x53f   : > { %v3223_v63 = vpop.f32.mrb[192].mxu0 }
 0x540   : > { %v17842_v28 = vpack.c.bf16 %v3318_v54, %v3317_v44  ;;  %v3276_v45 = vadd.f32 %v3223_v63, %v21096_v50  ;;  %v16775_v27 = vpop.f32.mrb[193].mxu0 }
 0x541   : > { %v3226_v37 = vpop.f32.mrb[194].mxu0 }
 0x542   : > { %v3301_v13 = vadd.f32 %v21133_v2, %v3276_v45  ;;  %v3277_v46 = vadd.f32 %v3226_v37, %v21098_v30  ;;  %v16776_v47 = vpop.f32.mrb[195].mxu0  ;;  %17843 = vmatpush1.bf16.msra.mxu1 %v17842_v28 }
 0x543   : > { %17844 = vmatprep.subr.bf16.mxu1 %v19818_v12 }
 0x544   : > { %v3302_v9 = vadd.f32 %v21133_v2, %v3277_v46  ;;  %v3319_v56 = vmax.f32 %v3301_v13, 0.0 }
 0x546   : > { %v3320_v51 = vmax.f32 %v3302_v9, 0.0  ;;  %v3334_v9 = vld [vmem:[%s23655_s21 + $0x18] sm:$0xff] }
 0x547   : > { %v3231_v26 = vpop.f32.mrb[196].mxu0 }
 0x548   : > { %v17845_v18 = vpack.c.bf16 %v3320_v51, %v3319_v56  ;;  %v3278_v58 = vadd.f32 %v3231_v26, %v21102_v10  ;;  %v16779_v1 = vpop.f32.mrb[197].mxu0  ;;  %v3335_v56 = vld [vmem:[%s23655_s21 + $0x20] sm:$0xff]  ;;  %v3338_v51 = vld [vmem:[%s23655_s21 + $0x38] sm:$0xff]  ;;  %v3337_v26 = vld [vmem:[%s23655_s21 + $0x30] sm:$0xff] }
 0x549   : > { %v3234_v50 = vpop.f32.mrb[198].mxu0  ;;  %v3342_v1 = vld [vmem:[%s23655_s21 + $0x58] sm:$0xff] }
 0x54a   : > { %v3303_v55 = vadd.f32 %v21133_v2, %v3278_v58  ;;  %v3279_v11 = vadd.f32 %v3234_v50, %v21104_v48  ;;  %v16780_v41 = vpop.f32.mrb[199].mxu0  ;;  %17846 = vmatpush1.bf16.msra.mxu1 %v17845_v18  ;;  %v3340_v18 = vld [vmem:[%s23655_s21 + $0x48] sm:$0xff]  ;;  %v3339_v58 = vld [vmem:[%s23655_s21 + $0x40] sm:$0xff]  ;;  %v3341_v50 = vld [vmem:[%s23655_s21 + $0x50] sm:$0xff] }
 0x54b   : > { %17847 = vmatprep.subr.bf16.mxu1 %v19818_v12  ;;  %v3346_v41 = vld [vmem:[%s23655_s21 + $0x78] sm:$0xff] }
 0x54c   : > { %v3304_v30 = vadd.f32 %v21133_v2, %v3279_v11  ;;  %v3321_v60 = vmax.f32 %v3303_v55, 0.0  ;;  %v3344_v55 = vld [vmem:[%s23655_s21 + $0x68] sm:$0xff]  ;;  %v3343_v11 = vld [vmem:[%s23655_s21 + $0x60] sm:$0xff] }
 0x54e   : > { %v3322_v3 = vmax.f32 %v3304_v30, 0.0  ;;  %v3345_v30 = vld [vmem:[%s23655_s21 + $0x70] sm:$0xff] }
 0x54f   : > { %v3239_v33 = vpop.f32.mrb[200].mxu0 }
 0x550   : > { %v17848_v53 = vpack.c.bf16 %v3322_v3, %v3321_v60  ;;  %v3280_v36 = vadd.f32 %v3239_v33, %v21108_v20  ;;  %v16783_v57 = vpop.f32.mrb[201].mxu0  ;;  %v3348_v60 = vld [vmem:[%s23655_s21 + $0x88] sm:$0xff]  ;;  %v3347_v3 = vld [vmem:[%s23655_s21 + $0x80] sm:$0xff]  ;;  %v3350_v33 = vld [vmem:[%s23655_s21 + $0x98] sm:$0xff] }
 0x551   : > { %v3242_v10 = vpop.f32.mrb[202].mxu0  ;;  %v3351_v57 = vld [vmem:[%s23655_s21 + $0xa0] sm:$0xff] }
 0x552   : > { %v3305_v21 = vadd.f32 %v21133_v2, %v3280_v36  ;;  %v3281_v24 = vadd.f32 %v3242_v10, %v21110_v29  ;;  %v16784_v15 = vpop.f32.mrb[203].mxu0  ;;  %17849 = vmatpush1.bf16.msra.mxu1 %v17848_v53  ;;  %v3349_v53 = vld [vmem:[%s23655_s21 + $0x90] sm:$0xff]  ;;  %v3352_v36 = vld [vmem:[%s23655_s21 + $0xa8] sm:$0xff]  ;;  %v3354_v10 = vld [vmem:[%s23655_s21 + $0xb8] sm:$0xff] }
 0x553   : > { %17850 = vmatprep.subr.bf16.mxu1 %v19818_v12  ;;  %v3355_v15 = vld [vmem:[%s23655_s21 + $0xc0] sm:$0xff] }
 0x554   : > { %v3306_v48 = vadd.f32 %v21133_v2, %v3281_v24  ;;  %v3323_v19 = vmax.f32 %v3305_v21, 0.0  ;;  %v3353_v21 = vld [vmem:[%s23655_s21 + $0xb0] sm:$0xff]  ;;  %v3356_v24 = vld [vmem:[%s23655_s21 + $0xc8] sm:$0xff] }
 0x556   : > { %v3324_v8 = vmax.f32 %v3306_v48, 0.0  ;;  %v3358_v48 = vld [vmem:[%s23655_s21 + $0xd8] sm:$0xff] }
 0x557   : > { %v3247_v6 = vpop.f32.mrb[204].mxu0 }
 0x558   : > { %v17851_v62 = vpack.c.bf16 %v3324_v8, %v3323_v19  ;;  %v3282_v42 = vadd.f32 %v3247_v6, %v21114_v25  ;;  %v16787_v49 = vpop.f32.mrb[205].mxu0  ;;  %v3357_v19 = vld [vmem:[%s23655_s21 + $0xd0] sm:$0xff]  ;;  %v3360_v8 = vld [vmem:[%s23655_s21 + $0xe8] sm:$0xff]  ;;  %v3359_v6 = vld [vmem:[%s23655_s21 + $0xe0] sm:$0xff] }
 0x559   : > { %v3250_v20 = vpop.f32.mrb[206].mxu0  ;;  %v3364_v49 = vld [vmem:[%s23655_s21 + $0x108] sm:$0xff] }
 0x55a   : > { %v3307_v31 = vadd.f32 %v21133_v2, %v3282_v42  ;;  %v3283_v52 = vadd.f32 %v3250_v20, %v21116_v17  ;;  %v16788_v5 = vpop.f32.mrb[207].mxu0  ;;  %17852 = vmatpush1.bf16.msra.mxu1 %v17851_v62  ;;  %v3362_v62 = vld [vmem:[%s23655_s21 + $0xf8] sm:$0xff]  ;;  %v3361_v42 = vld [vmem:[%s23655_s21 + $0xf0] sm:$0xff]  ;;  %v3363_v20 = vld [vmem:[%s23655_s21 + $0x100] sm:$0xff] }
 0x55b   : > { %17853 = vmatprep.subr.bf16.mxu1 %v19818_v12  ;;  %v3368_v5 = vld [vmem:[%s23655_s21 + $0x128] sm:$0xff] }
 0x55c   : > { %v3308_v29 = vadd.f32 %v21133_v2, %v3283_v52  ;;  %v3325_v38 = vmax.f32 %v3307_v31, 0.0  ;;  %v3366_v31 = vld [vmem:[%s23655_s21 + $0x118] sm:$0xff]  ;;  %v3365_v52 = vld [vmem:[%s23655_s21 + $0x110] sm:$0xff] }
 0x55e   : > { %v3326_v14 = vmax.f32 %v3308_v29, 0.0  ;;  %v3367_v29 = vld [vmem:[%s23655_s21 + $0x120] sm:$0xff] }
 0x55f   : > { %v3255_v32 = vpop.f32.mrb[208].mxu0 }
 0x560   : > { %v17854_v39 = vpack.c.bf16 %v3326_v14, %v3325_v38  ;;  %v3284_v7 = vadd.f32 %v3255_v32, %v21120_v61  ;;  %v16791_v34 = vpop.f32.mrb[209].mxu0  ;;  %v3370_v38 = vld [vmem:[%s23655_s21 + $0x138] sm:$0xff]  ;;  %v3369_v14 = vld [vmem:[%s23655_s21 + $0x130] sm:$0xff]  ;;  %v3372_v32 = vld [vmem:[%s23655_s21 + $0x148] sm:$0xff] }
 0x561   : > { %v3258_v25 = vpop.f32.mrb[210].mxu0  ;;  %v18463_v34 = vld [vmem:[#allocation10 + $0x28] sm:$0xff]  }
 0x562   : > { %v3309_v22 = vadd.f32 %v21133_v2, %v3284_v7  ;;  %v3285_v59 = vadd.f32 %v3258_v25, %v21122_v16  ;;  %v16792_v35 = vpop.f32.mrb[211].mxu0  ;;  %17855 = vmatpush1.bf16.msra.mxu1 %v17854_v39  ;;  %v3371_v39 = vld [vmem:[%s23655_s21 + $0x140] sm:$0xff]  ;;  %v18462_v7 = vld [vmem:[#allocation10 + $0x20] sm:$0xff]  }
 0x563   : > { %17856 = vmatprep.subr.bf16.mxu1 %v19818_v12  ;;  %16797 = vmatprep.subr.bf16.mxu0 %v18462_v7  ;;  %v18464_v25 = vld [vmem:[#allocation10 + $0x30] sm:$0xff]   ;;  %v3374_v35 = vld [vmem:[%s23655_s21 + $0x158] sm:$0xff] }
 0x564   : > { %v3310_v17 = vadd.f32 %v21133_v2, %v3285_v59  ;;  %v3327_v4 = vmax.f32 %v3309_v22, 0.0  ;;  %16798 = vmatpush3.bf16.msra.mxu0 %v18462_v7  ;;  %v18465_v22 = vld [vmem:[#allocation10 + $0x38] sm:$0xff]   ;;  %v18466_v59 = vld [vmem:[#allocation10] sm:$0xff]  }
 0x565   : > { %16799 = vmatprep.subr.bf16.mxu0 %v18463_v34 }
 0x566   : > { %v3328_v23 = vmax.f32 %v3310_v17, 0.0  ;;  %v3373_v17 = vld [vmem:[%s23655_s21 + $0x150] sm:$0xff] }
 0x567   : > { %v3263_v44 = vpop.f32.mrb[212].mxu0 }
 0x568   : > { %v17857_v54 = vpack.c.bf16 %v3328_v23, %v3327_v4  ;;  %v3286_v63 = vadd.f32 %v3263_v44, %v21126_v43  ;;  %v16795_v28 = vpop.f32.mrb[213].mxu0  ;;  %v3331_v43 = vld [vmem:[%s23655_s21] sm:$0xff]  ;;  %16800 = vmatpush3.bf16.msra.mxu0 %v18463_v34  ;;  %v3376_v4 = vld [vmem:[%s23655_s21 + $0x168] sm:$0xff] }
 0x569   : > { %v3266_v61 = vpop.f32.mrb[214].mxu0  ;;  %16801 = vmatprep.subr.bf16.mxu0 %v18464_v25  ;;  %v3375_v23 = vld [vmem:[%s23655_s21 + $0x160] sm:$0xff] }
 0x56a   : > { %v3311_v45 = vadd.f32 %v21133_v2, %v3286_v63  ;;  %v3287_v27 = vadd.f32 %v3266_v61, %v21128_v40  ;;  %v16796_v37 = vpop.f32.mrb[215].mxu0  ;;  %17858 = vmatpush1.bf16.msra.mxu1 %v17857_v54  ;;  %v3333_v40 = vld [vmem:[%s23655_s21 + $0x10] sm:$0xff] }
 0x56b   : > { %17859 = vmatprep.subr.bf16.mxu1 %v19818_v12 }
 0x56c   : > { %v3312_v16 = vadd.f32 %v21133_v2, %v3287_v27  ;;  %v3329_v13 = vmax.f32 %v3311_v45, 0.0  ;;  %v3336_v2 = vld [vmem:[%s23655_s21 + $0x28] sm:$0xff]  ;;  %16802 = vmatpush3.bf16.msra.mxu0 %v18464_v25 }
 0x56d   : > { %16803 = vmatprep.subr.bf16.mxu0 %v18465_v22 }
 0x56e   : > { %v3330_v46 = vmax.f32 %v3312_v16, 0.0 }
 0x570   : > { %v17860_v47 = vpack.c.bf16 %v3330_v46, %v3329_v13  ;;  %16804 = vmatpush3.bf16.msra.mxu0 %v18465_v22 }
 0x571   : > { %16821 = vmatprep.subr.bf16.mxu0 %v18466_v59 }
 0x572   : > { %17861 = vmatpush1.bf16.msra.mxu1 %v17860_v47 }
 0x575   : > { %3516 = vmatmul.mubr.f32.vlgmr.msra.gmra.mrb[46].mxu1 %v3331_v43 }
 0x576   : > { %14842 = vmatprep.mubr.msk.f32.mxu1 %vm1169_vm2, %v3334_v9 }
 0x579   : > { %3521 = vmatmul.mubr.f32.gmra.mrb[192].mxu1 %v3333_v40 }
 0x57a   : > { %14843 = vmatprep.mubr.msk.f32.mxu1 %vm1169_vm2, %v3336_v2 }
 0x57d   : > { %3526 = vmatmul.mubr.f32.gmra.mrb[194].mxu1 %v3335_v56 }
 0x57e   : > { %14844 = vmatprep.mubr.msk.f32.mxu1 %vm1169_vm2, %v3338_v51 }
 0x581   : > { %3531 = vmatmul.mubr.f32.gmra.mrb[196].mxu1 %v3337_v26 }
 0x582   : > { %14845 = vmatprep.mubr.msk.f32.mxu1 %vm1169_vm2, %v3340_v18 }
 0x585   : > { %3536 = vmatmul.mubr.f32.gmra.mrb[198].mxu1 %v3339_v58  ;;  %v18467_v58 = vld [vmem:[#allocation10 + $0x8] sm:$0xff]  }
 0x586   : > { %14846 = vmatprep.mubr.msk.f32.mxu1 %vm1169_vm2, %v3342_v1 }
 0x589   : > { %3541 = vmatmul.mubr.f32.gmra.mrb[200].mxu1 %v3341_v50 }
 0x58a   : > { %14847 = vmatprep.mubr.msk.f32.mxu1 %vm1169_vm2, %v3344_v55  ;;  %v18468_v55 = vld [vmem:[#allocation10 + $0x10] sm:$0xff]  }
 0x58d   : > { %3546 = vmatmul.mubr.f32.gmra.mrb[202].mxu1 %v3343_v11 }
 0x58e   : > { %14848 = vmatprep.mubr.msk.f32.mxu1 %vm1169_vm2, %v3346_v41 }
 0x591   : > { %3551 = vmatmul.mubr.f32.gmra.mrb[204].mxu1 %v3345_v30 }
 0x592   : > { %14849 = vmatprep.mubr.msk.f32.mxu1 %vm1169_vm2, %v3348_v60 }
 0x595   : > { %3556 = vmatmul.mubr.f32.gmra.mrb[206].mxu1 %v3347_v3 }
 0x596   : > { %14850 = vmatprep.mubr.msk.f32.mxu1 %vm1169_vm2, %v3350_v33  ;;  %v18469_v33 = vld [vmem:[#allocation10 + $0x18] sm:$0xff]  }
 0x599   : > { %3561 = vmatmul.mubr.f32.gmra.mrb[208].mxu1 %v3349_v53 }
 0x59a   : > { %14851 = vmatprep.mubr.msk.f32.mxu1 %vm1169_vm2, %v3352_v36 }
 0x59d   : > { %3566 = vmatmul.mubr.f32.gmra.mrb[210].mxu1 %v3351_v57  ;;  %v21349_v57 = vld [vmem:[#allocation10 + $0x40] sm:$0xff]  }
 0x59e   : > { %14852 = vmatprep.mubr.msk.f32.mxu1 %vm1169_vm2, %v3354_v10 }
 0x5a1   : > { %3571 = vmatmul.mubr.f32.gmra.mrb[212].mxu1 %v3353_v21 }
 0x5a2   : > { %14853 = vmatprep.mubr.msk.f32.mxu1 %vm1169_vm2, %v3356_v24 }
 0x5a5   : > { %3576 = vmatmul.mubr.f32.gmra.mrb[214].mxu1 %v3355_v15 }
 0x5a6   : > { %14854 = vmatprep.mubr.msk.f32.mxu1 %vm1169_vm2, %v3358_v48 }
 0x5a9   : > { %3581 = vmatmul.mubr.f32.gmra.mrb[216].mxu1 %v3357_v19 }
 0x5aa   : > { %14855 = vmatprep.mubr.msk.f32.mxu1 %vm1169_vm2, %v3360_v8 }
 0x5ad   : > { %3586 = vmatmul.mubr.f32.gmra.mrb[218].mxu1 %v3359_v6 }
 0x5ae   : > { %14856 = vmatprep.mubr.msk.f32.mxu1 %vm1169_vm2, %v3362_v62 }
 0x5b1   : > { %3591 = vmatmul.mubr.f32.gmra.mrb[220].mxu1 %v3361_v42 }
 0x5b2   : > { %14857 = vmatprep.mubr.msk.f32.mxu1 %vm1169_vm2, %v3364_v49 }
 0x5b5   : > { %3596 = vmatmul.mubr.f32.gmra.mrb[222].mxu1 %v3363_v20 }
 0x5b6   : > { %14858 = vmatprep.mubr.msk.f32.mxu1 %vm1169_vm2, %v3366_v31 }
 0x5b9   : > { %3601 = vmatmul.mubr.f32.gmra.mrb[224].mxu1 %v3365_v52 }
 0x5ba   : > { %14859 = vmatprep.mubr.msk.f32.mxu1 %vm1169_vm2, %v3368_v5 }
 0x5bd   : > { %3606 = vmatmul.mubr.f32.gmra.mrb[226].mxu1 %v3367_v29 }
 0x5be   : > { %14860 = vmatprep.mubr.msk.f32.mxu1 %vm1169_vm2, %v3370_v38 }
 0x5c1   : > { %3611 = vmatmul.mubr.f32.gmra.mrb[228].mxu1 %v3369_v14 }
 0x5c2   : > { %14861 = vmatprep.mubr.msk.f32.mxu1 %vm1169_vm2, %v3372_v32 }
 0x5c5   : > { %3616 = vmatmul.mubr.f32.gmra.mrb[230].mxu1 %v3371_v39 }
 0x5c6   : > { %14862 = vmatprep.mubr.msk.f32.mxu1 %vm1169_vm2, %v3374_v35 }
 0x5c9   : > { %3621 = vmatmul.mubr.f32.gmra.mrb[232].mxu1 %v3373_v17 }
 0x5ca   : > { %14863 = vmatprep.mubr.msk.f32.mxu1 %vm1169_vm2, %v3376_v4 }
 0x5cd   : > { %3626 = vmatmul.mubr.f32.gmra.mrb[234].mxu1 %v3375_v23 }
 0x648   : > { %v3517_v44 = vpop.f32.mrb[46].mxu1 }
 0x649   : > { %3636 = vst.msk [vmem:[#allocation3] sm:$0xff] %vm1419_vm3, %v3517_v44  ;;  %v3519_v54 = vpop.f32.mrb[47].mxu1 }
 0x64c   : > { %v3522_v63 = vpop.f32.mrb[192].mxu1 }
 0x64d   : > { %3637 = vst.msk [vmem:[#allocation3 + $0x8] sm:$0xff] %vm1419_vm3, %v3522_v63  ;;  %v3524_v28 = vpop.f32.mrb[193].mxu1 }
 0x650   : > { %v3527_v61 = vpop.f32.mrb[194].mxu1 }
 0x651   : > { %3638 = vst.msk [vmem:[#allocation3 + $0x10] sm:$0xff] %vm1419_vm3, %v3527_v61  ;;  %v3529_v45 = vpop.f32.mrb[195].mxu1  ;;  %v3660_v61 = vld [vmem:[#allocation3] sm:$0xff] }
 0x654   : > { %v3532_v27 = vpop.f32.mrb[196].mxu1  ;;  %v3692_v13 = vld [vmem:[#allocation3 + $0x1] sm:$0xff] }
 0x655   : > { %3639 = vst.msk [vmem:[#allocation3 + $0x18] sm:$0xff] %vm1419_vm3, %v3532_v27  ;;  %v3534_v37 = vpop.f32.mrb[197].mxu1  ;;  %v3661_v23 = vld [vmem:[#allocation3 + $0x8] sm:$0xff] }
 0x656   : > { %v3676_v27 = vpack.c.bf16 %v3661_v23, %v3660_v61 }
 0x658   : > { %v3537_v16 = vpop.f32.mrb[198].mxu1  ;;  %v3693_v46 = vld [vmem:[#allocation3 + $0x9] sm:$0xff] }
 0x659   : > { %3640 = vst.msk [vmem:[#allocation3 + $0x20] sm:$0xff] %vm1419_vm3, %v3537_v16  ;;  %v3539_v47 = vpop.f32.mrb[199].mxu1  ;;  %v3708_v43 = vpack.c.bf16 %v3693_v46, %v3692_v13 }
 0x65a   : > { %v3662_v47 = vld [vmem:[#allocation3 + $0x10] sm:$0xff] }
 0x65b   : > { %16805 = vmatprep.mubr.msk.bf16.mxu0 %vm1419_vm3, %v3708_v43 }
 0x65c   : > { %v3542_v9 = vpop.f32.mrb[200].mxu1  ;;  %v3694_v56 = vld [vmem:[#allocation3 + $0x11] sm:$0xff] }
 0x65d   : > { %3641 = vst.msk [vmem:[#allocation3 + $0x28] sm:$0xff] %vm1419_vm3, %v3542_v9  ;;  %v3544_v40 = vpop.f32.mrb[201].mxu1  ;;  %v3663_v13 = vld [vmem:[#allocation3 + $0x18] sm:$0xff] }
 0x65e   : > { %v3677_v9 = vpack.c.bf16 %v3663_v13, %v3662_v47  ;;  %v4209_v13 = vld [vmem:[#allocation3 + $0x13] sm:$0xff] }
 0x660   : > { %v3547_v2 = vpop.f32.mrb[202].mxu1  ;;  %v3695_v51 = vld [vmem:[#allocation3 + $0x19] sm:$0xff] }
 0x661   : > { %3642 = vst.msk [vmem:[#allocation3 + $0x30] sm:$0xff] %vm1419_vm3, %v3547_v2  ;;  %v3549_v26 = vpop.f32.mrb[203].mxu1  ;;  %v3709_v18 = vpack.c.bf16 %v3695_v51, %v3694_v56  ;;  %v3664_v40 = vld [vmem:[#allocation3 + $0x20] sm:$0xff] }
 0x662   : > { %v18471_v2 = vld [vmem:[#allocation10 + $0x48] sm:$0xff]   ;;  %v18472_v26 = vld [vmem:[#allocation10 + $0x50] sm:$0xff]  }
 0x663   : > { %16806 = vmatmul.mubr.msk.bf16.vlgmr.msra.gmra.mrb[216].mxu0 %vm1419_vm3, %v3709_v18 }
 0x664   : > { %v3552_v1 = vpop.f32.mrb[204].mxu1  ;;  %16822 = vmatpush3.bf16.msra.mxu0 %v18466_v59  ;;  %v3696_v41 = vld [vmem:[#allocation3 + $0x21] sm:$0xff] }
 0x665   : > { %3643 = vst.msk [vmem:[#allocation3 + $0x38] sm:$0xff] %vm1419_vm3, %v3552_v1  ;;  %v3554_v50 = vpop.f32.mrb[205].mxu1  ;;  %16823 = vmatprep.subr.bf16.mxu0 %v18467_v58  ;;  %v3665_v46 = vld [vmem:[#allocation3 + $0x28] sm:$0xff] }
 0x666   : > { %v3678_v51 = vpack.c.bf16 %v3665_v46, %v3664_v40  ;;  %v4211_v47 = vld [vmem:[#allocation3 + $0x23] sm:$0xff] }
 0x667   : > { %v18480_v40 = vld [vmem:[#allocation10 + $0x90] sm:$0xff]  }
 0x668   : > { %v3557_v11 = vpop.f32.mrb[206].mxu1  ;;  %v3697_v30 = vld [vmem:[#allocation3 + $0x29] sm:$0xff]  ;;  %16824 = vmatpush3.bf16.msra.mxu0 %v18467_v58 }
 0x669   : > { %3644 = vst.msk [vmem:[#allocation3 + $0x40] sm:$0xff] %vm1419_vm3, %v3557_v11  ;;  %v3559_v60 = vpop.f32.mrb[207].mxu1  ;;  %v3710_v3 = vpack.c.bf16 %v3697_v30, %v3696_v41  ;;  %16825 = vmatprep.subr.bf16.mxu0 %v18468_v55  ;;  %v3666_v1 = vld [vmem:[#allocation3 + $0x30] sm:$0xff]  ;;  %v18474_v30 = vld [vmem:[#allocation10 + $0x60] sm:$0xff]  }
 0x66a   : > { %v18473_v11 = vld [vmem:[#allocation10 + $0x58] sm:$0xff]  }
 0x66b   : > { %16809 = vmatprep.mubr.msk.bf16.mxu0 %vm1419_vm3, %v3710_v3 }
 0x66c   : > { %v3562_v53 = vpop.f32.mrb[208].mxu1  ;;  %16826 = vmatpush3.bf16.msra.mxu0 %v18468_v55  ;;  %v3698_v21 = vld [vmem:[#allocation3 + $0x31] sm:$0xff] }
 0x66d   : > { %3645 = vst.msk [vmem:[#allocation3 + $0x48] sm:$0xff] %vm1419_vm3, %v3562_v53  ;;  %v3564_v36 = vpop.f32.mrb[209].mxu1  ;;  %16827 = vmatprep.subr.bf16.mxu0 %v18469_v33  ;;  %v3667_v18 = vld [vmem:[#allocation3 + $0x38] sm:$0xff] }
 0x66e   : > { %v3679_v50 = vpack.c.bf16 %v3667_v18, %v3666_v1 }
 0x670   : > { %v3567_v10 = vpop.f32.mrb[210].mxu1  ;;  %v3699_v24 = vld [vmem:[#allocation3 + $0x39] sm:$0xff]  ;;  %16828 = vmatpush3.bf16.msra.mxu0 %v18469_v33 }
 0x671   : > { %3646 = vst.msk [vmem:[#allocation3 + $0x50] sm:$0xff] %vm1419_vm3, %v3567_v10  ;;  %v3569_v15 = vpop.f32.mrb[211].mxu1  ;;  %v3711_v48 = vpack.c.bf16 %v3699_v24, %v3698_v21  ;;  %16845 = vmatprep.subr.bf16.mxu0 %v21349_v57  ;;  %v3668_v55 = vld [vmem:[#allocation3 + $0x40] sm:$0xff]  ;;  %v3377_v21 = vld [vmem:[%s23655_s21 + $0x170] sm:$0xff] }
 0x672   : > { %v3378_v10 = vld [vmem:[%s23655_s21 + $0x178] sm:$0xff]  ;;  %v4015_v15 = vld [vmem:[#allocation3 + $0xa] sm:$0xff] }
 0x673   : > { %16810 = vmatmul.mubr.msk.bf16.gmra.mrb[220].mxu0 %vm1419_vm3, %v3711_v48  ;;  %14864 = vmatprep.mubr.msk.f32.mxu1 %vm1169_vm2, %v3378_v10  ;;  %v18484_v10 = vld [vmem:[#allocation10 + $0xb0] sm:$0xff]  }
 0x674   : > { %v3572_v19 = vpop.f32.mrb[212].mxu1  ;;  %v3700_v62 = vld [vmem:[#allocation3 + $0x41] sm:$0xff]  ;;  %3631 = vmatmul.mubr.f32.gmra.mrb[236].mxu1 %v3377_v21  ;;  %v18485_v21 = vld [vmem:[#allocation10 + $0xb8] sm:$0xff]  }
 0x675   : > { %3647 = vst.msk [vmem:[#allocation3 + $0x58] sm:$0xff] %vm1419_vm3, %v3572_v19  ;;  %v3574_v8 = vpop.f32.mrb[213].mxu1  ;;  %v3669_v58 = vld [vmem:[#allocation3 + $0x48] sm:$0xff] }
 0x676   : > { %v3680_v41 = vpack.c.bf16 %v3669_v58, %v3668_v55  ;;  %v4014_v8 = vld [vmem:[#allocation3 + $0x2] sm:$0xff]  ;;  %v18481_v58 = vld [vmem:[#allocation10 + $0x98] sm:$0xff]  }
 0x677   : > { %v4215_v18 = vld [vmem:[#allocation3 + $0x43] sm:$0xff] }
 0x678   : > { %v3577_v6 = vpop.f32.mrb[214].mxu1  ;;  %v3701_v42 = vld [vmem:[#allocation3 + $0x49] sm:$0xff] }
 0x679   : > { %3648 = vst.msk [vmem:[#allocation3 + $0x60] sm:$0xff] %vm1419_vm3, %v3577_v6  ;;  %v3579_v49 = vpop.f32.mrb[215].mxu1  ;;  %v3712_v20 = vpack.c.bf16 %v3701_v42, %v3700_v62  ;;  %v3670_v33 = vld [vmem:[#allocation3 + $0x50] sm:$0xff]  ;;  %v4030_v6 = vpack.c.bf16 %v4015_v15, %v4014_v8  ;;  %v4017_v62 = vld [vmem:[#allocation3 + $0x1a] sm:$0xff] }
 0x67a   : > { %v4019_v42 = vld [vmem:[#allocation3 + $0x2a] sm:$0xff]  ;;  %v4016_v49 = vld [vmem:[#allocation3 + $0x12] sm:$0xff] }
 0x67b   : > { %16813 = vmatprep.mubr.msk.bf16.mxu0 %vm1419_vm3, %v3712_v20  ;;  %v21385_v20 = vpack.c.bf16 %v4017_v62, %v4016_v49  ;;  %v18487_v49 = vld [vmem:[#allocation10 + $0xc8] sm:$0xff]  }
 0x67c   : > { %v3582_v31 = vpop.f32.mrb[216].mxu1  ;;  %v3702_v29 = vld [vmem:[#allocation3 + $0x51] sm:$0xff] }
 0x67d   : > { %3649 = vst.msk [vmem:[#allocation3 + $0x68] sm:$0xff] %vm1419_vm3, %v3582_v31  ;;  %v3584_v52 = vpop.f32.mrb[217].mxu1  ;;  %v3671_v60 = vld [vmem:[#allocation3 + $0x58] sm:$0xff]  ;;  %v4018_v31 = vld [vmem:[#allocation3 + $0x22] sm:$0xff] }
 0x67e   : > { %v3681_v53 = vpack.c.bf16 %v3671_v60, %v3670_v33  ;;  %v18475_v52 = vld [vmem:[#allocation10 + $0x68] sm:$0xff]  }
 0x680   : > { %v3587_v5 = vpop.f32.mrb[218].mxu1  ;;  %v3703_v38 = vld [vmem:[#allocation3 + $0x59] sm:$0xff] }
 0x681   : > { %3650 = vst.msk [vmem:[#allocation3 + $0x70] sm:$0xff] %vm1419_vm3, %v3587_v5  ;;  %v3589_v14 = vpop.f32.mrb[219].mxu1  ;;  %v3713_v32 = vpack.c.bf16 %v3703_v38, %v3702_v29  ;;  %v3672_v36 = vld [vmem:[#allocation3 + $0x60] sm:$0xff]  ;;  %v21387_v5 = vpack.c.bf16 %v4019_v42, %v4018_v31  ;;  %v18476_v29 = vld [vmem:[#allocation10 + $0x70] sm:$0xff]   ;;  %v18489_v31 = vld [vmem:[#allocation10 + $0xd8] sm:$0xff]  }
 0x682   : > { %v4021_v38 = vld [vmem:[#allocation3 + $0x3a] sm:$0xff]  ;;  %v4023_v14 = vld [vmem:[#allocation3 + $0x4a] sm:$0xff] }
 0x683   : > { %16814 = vmatmul.mubr.msk.bf16.gmra.mrb[224].mxu0 %vm1419_vm3, %v3713_v32  ;;  %v4020_v32 = vld [vmem:[#allocation3 + $0x32] sm:$0xff]  ;;  %v4218_v55 = vld [vmem:[#allocation3 + $0x5b] sm:$0xff] }
 0x684   : > { %v3592_v39 = vpop.f32.mrb[220].mxu1  ;;  %v3704_v25 = vld [vmem:[#allocation3 + $0x61] sm:$0xff] }
 0x685   : > { %3651 = vst.msk [vmem:[#allocation3 + $0x78] sm:$0xff] %vm1419_vm3, %v3592_v39  ;;  %v3594_v7 = vpop.f32.mrb[221].mxu1  ;;  %v3673_v3 = vld [vmem:[#allocation3 + $0x68] sm:$0xff]  ;;  %v21393_v39 = vpack.c.bf16 %v4021_v38, %v4020_v32  ;;  %v4786_v32 = vld [vmem:[#allocation3 + $0x14] sm:$0xff] }
 0x686   : > { %v4022_v7 = vld [vmem:[#allocation3 + $0x42] sm:$0xff] }
 0x687   : > { %v4026_v23 = vld [vmem:[#allocation3 + $0x62] sm:$0xff] }
 0x688   : > { %v3597_v34 = vpop.f32.mrb[222].mxu1  ;;  %v3705_v22 = vld [vmem:[#allocation3 + $0x69] sm:$0xff] }
 0x689   : > { %3652 = vst.msk [vmem:[#allocation3 + $0x80] sm:$0xff] %vm1419_vm3, %v3597_v34  ;;  %v3599_v59 = vpop.f32.mrb[223].mxu1  ;;  %v3714_v35 = vpack.c.bf16 %v3705_v22, %v3704_v25  ;;  %v3674_v48 = vld [vmem:[#allocation3 + $0x70] sm:$0xff]  ;;  %v21395_v25 = vpack.c.bf16 %v4023_v14, %v4022_v7  ;;  %v18478_v22 = vld [vmem:[#allocation10 + $0x80] sm:$0xff]   ;;  %v4219_v60 = vld [vmem:[#allocation3 + $0x63] sm:$0xff] }
 0x68a   : > { %v18477_v34 = vld [vmem:[#allocation10 + $0x78] sm:$0xff]   ;;  %v4025_v59 = vld [vmem:[#allocation3 + $0x5a] sm:$0xff] }
 0x68b   : > { %16817 = vmatprep.mubr.msk.bf16.mxu0 %vm1419_vm3, %v3714_v35  ;;  %v4027_v35 = vld [vmem:[#allocation3 + $0x6a] sm:$0xff] }
 0x68c   : > { %v3602_v17 = vpop.f32.mrb[224].mxu1  ;;  %v3706_v54 = vld [vmem:[#allocation3 + $0x71] sm:$0xff] }
 0x68d   : > { %3653 = vst.msk [vmem:[#allocation3 + $0x88] sm:$0xff] %vm1419_vm3, %v3602_v17  ;;  %v3604_v4 = vpop.f32.mrb[225].mxu1  ;;  %v3675_v24 = vld [vmem:[#allocation3 + $0x78] sm:$0xff]  ;;  %v4789_v7 = vld [vmem:[#allocation3 + $0x2c] sm:$0xff] }
 0x68e   : > { %v3683_v19 = vpack.c.bf16 %v3675_v24, %v3674_v48  ;;  %v4024_v17 = vld [vmem:[#allocation3 + $0x52] sm:$0xff] }
 0x68f   : > { %v21401_v4 = vpack.c.bf16 %v4025_v59, %v4024_v17  ;;  %v18486_v48 = vld [vmem:[#allocation10 + $0xc0] sm:$0xff]  }
 0x690   : > { %v3607_v44 = vpop.f32.mrb[226].mxu1  ;;  %v3707_v63 = vld [vmem:[#allocation3 + $0x79] sm:$0xff] }
 0x691   : > { %3654 = vst.msk [vmem:[#allocation3 + $0x90] sm:$0xff] %vm1419_vm3, %v3607_v44  ;;  %v3715_v28 = vpack.c.bf16 %v3707_v63, %v3706_v54  ;;  %v3609_v45 = vpop.f32.mrb[227].mxu1  ;;  %v21403_v44 = vpack.c.bf16 %v4027_v35, %v4026_v23  ;;  %v4029_v54 = vld [vmem:[#allocation3 + $0x7a] sm:$0xff]  ;;  %v4208_v63 = vld [vmem:[#allocation3 + $0xb] sm:$0xff] }
 0x692   : > { %v4207_v45 = vld [vmem:[#allocation3 + $0x3] sm:$0xff]  ;;  %v4222_v33 = vld [vmem:[#allocation3 + $0x7b] sm:$0xff]  ;;  %v4793_v23 = vld [vmem:[#allocation3 + $0x4c] sm:$0xff] }
 0x693   : > { %16818 = vmatmul.mubr.msk.bf16.gmra.mrb[228].mxu0 %vm1419_vm3, %v3715_v28  ;;  %v4028_v28 = vld [vmem:[#allocation3 + $0x72] sm:$0xff]  ;;  %v18491_v35 = vld [vmem:[#allocation10 + $0xe8] sm:$0xff]  }
 0x694   : > { %16829 = vmatprep.mubr.msk.bf16.mxu0 %vm1419_vm3, %v3676_v27  ;;  %v3612_v37 = vpop.f32.mrb[228].mxu1  ;;  %v21409_v61 = vpack.c.bf16 %v4029_v54, %v4028_v28  ;;  %v4223_v27 = vpack.c.bf16 %v4208_v63, %v4207_v45  ;;  %v4414_v62 = vld [vmem:[#allocation3 + $0x82] sm:$0xff]  ;;  %v4790_v59 = vld [vmem:[#allocation3 + $0x34] sm:$0xff] }
 0x695   : > { %3655 = vst.msk [vmem:[#allocation3 + $0x98] sm:$0xff] %vm1419_vm3, %v3612_v37  ;;  %v3614_v16 = vpop.f32.mrb[229].mxu1  ;;  %v4210_v37 = vld [vmem:[#allocation3 + $0x1b] sm:$0xff]  ;;  %v4607_v38 = vld [vmem:[#allocation3 + $0x83] sm:$0xff] }
 0x696   : > { %v4212_v16 = vld [vmem:[#allocation3 + $0x2b] sm:$0xff]  ;;  %v21414_v46 = vpack.c.bf16 %v4210_v37, %v4209_v13  ;;  %v4794_v28 = vld [vmem:[#allocation3 + $0x54] sm:$0xff] }
 0x697   : > { %v4792_v54 = vld [vmem:[#allocation3 + $0x44] sm:$0xff]  ;;  %v4797_v37 = vld [vmem:[#allocation3 + $0x6c] sm:$0xff] }
 0x698   : > { %v3617_v43 = vpop.f32.mrb[230].mxu1  ;;  %v21463_v63 = vpack.c.bf16 %v4793_v23, %v4792_v54  ;;  %v4796_v13 = vld [vmem:[#allocation3 + $0x64] sm:$0xff] }
 0x699   : > { %3656 = vst.msk [vmem:[#allocation3 + $0xa0] sm:$0xff] %vm1419_vm3, %v3617_v43  ;;  %v3619_v56 = vpop.f32.mrb[231].mxu1  ;;  %v18479_v43 = vld [vmem:[#allocation10 + $0x88] sm:$0xff]  }
 0x69a   : > { %v4216_v56 = vld [vmem:[#allocation3 + $0x4b] sm:$0xff]  ;;  %v5561_v54 = vld [vmem:[#allocation3 + $0x3e] sm:$0xff] }
 0x69b   : > { %16830 = vmatmul.mubr.msk.bf16.vlgmr.msra.gmra.mrb[216].mxu0 %vm1419_vm3, %v3677_v9  ;;  %v21416_v9 = vpack.c.bf16 %v4212_v16, %v4211_v47  ;;  %v4227_v1 = vpack.c.bf16 %v4216_v56, %v4215_v18  ;;  %v4799_v16 = vld [vmem:[#allocation3 + $0x7c] sm:$0xff]  ;;  %v4798_v47 = vld [vmem:[#allocation3 + $0x74] sm:$0xff]  ;;  %v5558_v23 = vld [vmem:[#allocation3 + $0x26] sm:$0xff] }
 0x69c   : > { %16833 = vmatprep.mubr.msk.bf16.mxu0 %vm1419_vm3, %v3678_v51  ;;  %16846 = vmatpush3.bf16.msra.mxu0 %v21349_v57  ;;  %v3682_v57 = vpack.c.bf16 %v3673_v3, %v3672_v36  ;;  %v4213_v51 = vld [vmem:[#allocation3 + $0x33] sm:$0xff]  ;;  %v3622_v24 = vpop.f32.mrb[232].mxu1 }
 0x69d   : > { %16847 = vmatprep.subr.bf16.mxu0 %v18471_v2  ;;  %3657 = vst.msk [vmem:[#allocation3 + $0xa8] sm:$0xff] %vm1419_vm3, %v3622_v24  ;;  %v3624_v15 = vpop.f32.mrb[233].mxu1  ;;  %v4982_v18 = vld [vmem:[#allocation3 + $0x2d] sm:$0xff] }
 0x69e   : > { %v4990_v24 = vld [vmem:[#allocation3 + $0x6d] sm:$0xff]  ;;  %v4992_v15 = vld [vmem:[#allocation3 + $0x7d] sm:$0xff] }
 0x6a0   : > { %16848 = vmatpush3.bf16.msra.mxu0 %v18471_v2  ;;  %v4214_v2 = vld [vmem:[#allocation3 + $0x3b] sm:$0xff] }
 0x6a1   : > { %16849 = vmatprep.subr.bf16.mxu0 %v18472_v26 }
 0x6a3   : > { %16834 = vmatmul.mubr.msk.bf16.gmra.mrb[220].mxu0 %vm1419_vm3, %v3679_v50  ;;  %v18482_v50 = vld [vmem:[#allocation10 + $0xa0] sm:$0xff]  }
 0x6a4   : > { %16837 = vmatprep.mubr.msk.bf16.mxu0 %vm1419_vm3, %v3680_v41  ;;  %16850 = vmatpush3.bf16.msra.mxu0 %v18472_v26  ;;  %v4226_v26 = vpack.c.bf16 %v4214_v2, %v4213_v51  ;;  %v4217_v41 = vld [vmem:[#allocation3 + $0x53] sm:$0xff]  ;;  %v4800_v2 = vld [vmem:[#allocation3 + $0x84] sm:$0xff] }
 0x6a5   : > { %16851 = vmatprep.subr.bf16.mxu0 %v18473_v11  ;;  %v4979_v51 = vld [vmem:[#allocation3 + $0x15] sm:$0xff] }
 0x6a8   : > { %16852 = vmatpush3.bf16.msra.mxu0 %v18473_v11  ;;  %v4220_v11 = vld [vmem:[#allocation3 + $0x6b] sm:$0xff] }
 0x6a9   : > { %16869 = vmatprep.subr.bf16.mxu0 %v18474_v30  ;;  %v4229_v3 = vpack.c.bf16 %v4220_v11, %v4219_v60  ;;  %v18495_v11 = vld [vmem:[#allocation10 + $0x108] sm:$0xff]   ;;  %v4986_v60 = vld [vmem:[#allocation3 + $0x4d] sm:$0xff] }
 0x6ab   : > { %16838 = vmatmul.mubr.msk.bf16.gmra.mrb[224].mxu0 %vm1419_vm3, %v3681_v53  ;;  %v4221_v53 = vld [vmem:[#allocation3 + $0x73] sm:$0xff] }
 0x6ac   : > { %16841 = vmatprep.mubr.msk.bf16.mxu0 %vm1419_vm3, %v3682_v57  ;;  %v4230_v36 = vpack.c.bf16 %v4222_v33, %v4221_v53  ;;  %v18483_v57 = vld [vmem:[#allocation10 + $0xa8] sm:$0xff]  }
 0x6ad   : > { %v4985_v33 = vld [vmem:[#allocation3 + $0x45] sm:$0xff] }
 0x6ae   : > { %v4998_v53 = vpack.c.bf16 %v4986_v60, %v4985_v33  ;;  %v5751_v60 = vld [vmem:[#allocation3 + $0x27] sm:$0xff]  ;;  %v5754_v33 = vld [vmem:[#allocation3 + $0x3f] sm:$0xff] }
 0x6b3   : > { %16842 = vmatmul.mubr.msk.bf16.gmra.mrb[228].mxu0 %vm1419_vm3, %v3683_v19  ;;  %v3627_v19 = vpop.f32.mrb[234].mxu1 }
 0x6b4   : > { %16853 = vmatprep.mubr.msk.bf16.mxu0 %vm1419_vm3, %v4030_v6  ;;  %3658 = vst.msk [vmem:[#allocation3 + $0xb0] sm:$0xff] %vm1419_vm3, %v3627_v19  ;;  %v3629_v8 = vpop.f32.mrb[235].mxu1  ;;  %v4415_v6 = vld [vmem:[#allocation3 + $0x8a] sm:$0xff] }
 0x6b5   : > { %v4423_v42 = vpack.c.bf16 %v4415_v6, %v4414_v62  ;;  %v4991_v8 = vld [vmem:[#allocation3 + $0x75] sm:$0xff]  ;;  %v4994_v62 = vld [vmem:[#allocation3 + $0x8d] sm:$0xff] }
 0x6b6   : > { %v5001_v6 = vpack.c.bf16 %v4992_v15, %v4991_v8  ;;  %v18512_v15 = vld [vmem:[#allocation10 + $0x190] sm:$0xff]   ;;  %v5757_v8 = vld [vmem:[#allocation3 + $0x57] sm:$0xff] }
 0x6bb   : > { %16854 = vmatmul.mubr.msk.bf16.vlgmr.msra.gmra.mrb[216].mxu0 %vm1419_vm3, %v21385_v20 }
 0x6bc   : > { %16857 = vmatprep.mubr.msk.bf16.mxu0 %vm1419_vm3, %v21387_v5  ;;  %16870 = vmatpush3.bf16.msra.mxu0 %v18474_v30  ;;  %v4228_v30 = vpack.c.bf16 %v4218_v55, %v4217_v41  ;;  %v4983_v55 = vld [vmem:[#allocation3 + $0x35] sm:$0xff] }
 0x6bd   : > { %16871 = vmatprep.subr.bf16.mxu0 %v18475_v52 }
 0x6c0   : > { %16872 = vmatpush3.bf16.msra.mxu0 %v18475_v52  ;;  %v18490_v52 = vld [vmem:[#allocation10 + $0xe0] sm:$0xff]  }
 0x6c1   : > { %16873 = vmatprep.subr.bf16.mxu0 %v18476_v29 }
 0x6c3   : > { %16858 = vmatmul.mubr.msk.bf16.gmra.mrb[220].mxu0 %vm1419_vm3, %v21393_v39 }
 0x6c4   : > { %16861 = vmatprep.mubr.msk.bf16.mxu0 %vm1419_vm3, %v21395_v25  ;;  %16874 = vmatpush3.bf16.msra.mxu0 %v18476_v29  ;;  %v4787_v29 = vld [vmem:[#allocation3 + $0x1c] sm:$0xff] }
 0x6c5   : > { %16875 = vmatprep.subr.bf16.mxu0 %v18477_v34 }
 0x6c8   : > { %16876 = vmatpush3.bf16.msra.mxu0 %v18477_v34  ;;  %v4791_v34 = vld [vmem:[#allocation3 + $0x3c] sm:$0xff] }
 0x6c9   : > { %16893 = vmatprep.subr.bf16.mxu0 %v18478_v22  ;;  %v21457_v17 = vpack.c.bf16 %v4791_v34, %v4790_v59  ;;  %v18504_v34 = vld [vmem:[#allocation10 + $0x150] sm:$0xff]   ;;  %v5379_v59 = vld [vmem:[#allocation3 + $0x95] sm:$0xff] }
 0x6cb   : > { %16862 = vmatmul.mubr.msk.bf16.gmra.mrb[224].mxu0 %vm1419_vm3, %v21401_v4 }
 0x6cc   : > { %16865 = vmatprep.mubr.msk.bf16.mxu0 %vm1419_vm3, %v21403_v44 }
 0x6d3   : > { %16866 = vmatmul.mubr.msk.bf16.gmra.mrb[228].mxu0 %vm1419_vm3, %v21409_v61 }
 0x6d4   : > { %16877 = vmatprep.mubr.msk.bf16.mxu0 %vm1419_vm3, %v4223_v27  ;;  %v18494_v27 = vld [vmem:[#allocation10 + $0x100] sm:$0xff]  }
 0x6db   : > { %16878 = vmatmul.mubr.msk.bf16.vlgmr.msra.gmra.mrb[216].mxu0 %vm1419_vm3, %v21414_v46 }
 0x6dc   : > { %16881 = vmatprep.mubr.msk.bf16.mxu0 %vm1419_vm3, %v21416_v9  ;;  %16894 = vmatpush3.bf16.msra.mxu0 %v18478_v22 }
 0x6dd   : > { %16895 = vmatprep.subr.bf16.mxu0 %v18479_v43 }
 0x6e0   : > { %16896 = vmatpush3.bf16.msra.mxu0 %v18479_v43  ;;  %v21473_v43 = vpack.c.bf16 %v4799_v16, %v4798_v47  ;;  %v18508_v16 = vld [vmem:[#allocation10 + $0x170] sm:$0xff]   ;;  %v5564_v47 = vld [vmem:[#allocation3 + $0x56] sm:$0xff] }
 0x6e1   : > { %16897 = vmatprep.subr.bf16.mxu0 %v18480_v40 }
 0x6e3   : > { %16882 = vmatmul.mubr.msk.bf16.gmra.mrb[220].mxu0 %vm1419_vm3, %v4226_v26 }
 0x6e4   : > { %16885 = vmatprep.mubr.msk.bf16.mxu0 %vm1419_vm3, %v4227_v1  ;;  %16898 = vmatpush3.bf16.msra.mxu0 %v18480_v40  ;;  %v4980_v40 = vld [vmem:[#allocation3 + $0x1d] sm:$0xff] }
 0x6e5   : > { %16899 = vmatprep.subr.bf16.mxu0 %v18481_v58 }
 0x6e8   : > { %16900 = vmatpush3.bf16.msra.mxu0 %v18481_v58  ;;  %v4984_v58 = vld [vmem:[#allocation3 + $0x3d] sm:$0xff] }
 0x6e9   : > { %16917 = vmatprep.subr.bf16.mxu0 %v18482_v50  ;;  %v4997_v41 = vpack.c.bf16 %v4984_v58, %v4983_v55  ;;  %v5572_v55 = vld [vmem:[#allocation3 + $0x96] sm:$0xff] }
 0x6eb   : > { %16886 = vmatmul.mubr.msk.bf16.gmra.mrb[224].mxu0 %vm1419_vm3, %v4228_v30 }
 0x6ec   : > { %16889 = vmatprep.mubr.msk.bf16.mxu0 %vm1419_vm3, %v4229_v3 }
 0x6f3   : > { %16890 = vmatmul.mubr.msk.bf16.gmra.mrb[228].mxu0 %vm1419_vm3, %v4230_v36 }
 0x6f4   : > { %16901 = vmatprep.mubr.msk.bf16.mxu0 %vm1419_vm3, %v21385_v20  ;;  %v18488_v20 = vld [vmem:[#allocation10 + $0xd0] sm:$0xff]  }
 0x6fb   : > { %16902 = vmatmul.mubr.msk.bf16.vlgmr.msra.gmra.mrb[216].mxu0 %vm1419_vm3, %v21387_v5  ;;  %v4608_v5 = vld [vmem:[#allocation3 + $0x8b] sm:$0xff] }
 0x6fc   : > { %16905 = vmatprep.mubr.msk.bf16.mxu0 %vm1419_vm3, %v21393_v39  ;;  %16918 = vmatpush3.bf16.msra.mxu0 %v18482_v50  ;;  %v4616_v14 = vpack.c.bf16 %v4608_v5, %v4607_v38  ;;  %v4802_v39 = vpack.c.bf16 %v4787_v29, %v4786_v32  ;;  %v18502_v38 = vld [vmem:[#allocation10 + $0x140] sm:$0xff]  }
 0x6fd   : > { %16919 = vmatprep.subr.bf16.mxu0 %v18483_v57  ;;  %v5187_v32 = vld [vmem:[#allocation3 + $0x9c] sm:$0xff] }
 0x700   : > { %16920 = vmatpush3.bf16.msra.mxu0 %v18483_v57  ;;  %v18497_v57 = vld [vmem:[#allocation10 + $0x118] sm:$0xff]  }
 0x701   : > { %16921 = vmatprep.subr.bf16.mxu0 %v18484_v10 }
 0x703   : > { %16906 = vmatmul.mubr.msk.bf16.gmra.mrb[220].mxu0 %vm1419_vm3, %v21395_v25  ;;  %v4788_v25 = vld [vmem:[#allocation3 + $0x24] sm:$0xff] }
 0x704   : > { %16909 = vmatprep.mubr.msk.bf16.mxu0 %vm1419_vm3, %v21401_v4  ;;  %16922 = vmatpush3.bf16.msra.mxu0 %v18484_v10  ;;  %v21455_v22 = vpack.c.bf16 %v4789_v7, %v4788_v25  ;;  %v18492_v4 = vld [vmem:[#allocation10 + $0xf0] sm:$0xff]   ;;  %v18503_v7 = vld [vmem:[#allocation10 + $0x148] sm:$0xff]   ;;  %v18505_v25 = vld [vmem:[#allocation10 + $0x158] sm:$0xff]  }
 0x705   : > { %16923 = vmatprep.subr.bf16.mxu0 %v18485_v21 }
 0x708   : > { %16924 = vmatpush3.bf16.msra.mxu0 %v18485_v21  ;;  %v18498_v21 = vld [vmem:[#allocation10 + $0x120] sm:$0xff]  }
 0x709   : > { %16941 = vmatprep.subr.bf16.mxu0 %v18486_v48 }
 0x70b   : > { %16910 = vmatmul.mubr.msk.bf16.gmra.mrb[224].mxu0 %vm1419_vm3, %v21403_v44  ;;  %v4795_v44 = vld [vmem:[#allocation3 + $0x5c] sm:$0xff] }
 0x70c   : > { %16913 = vmatprep.mubr.msk.bf16.mxu0 %vm1419_vm3, %v21409_v61  ;;  %v18493_v61 = vld [vmem:[#allocation10 + $0xf8] sm:$0xff]   ;;  %v21465_v45 = vpack.c.bf16 %v4795_v44, %v4794_v28 }
 0x70d   : > { %v5560_v28 = vld [vmem:[#allocation3 + $0x36] sm:$0xff] }
 0x713   : > { %16914 = vmatmul.mubr.msk.bf16.gmra.mrb[228].mxu0 %vm1419_vm3, %v4423_v42  ;;  %v4993_v42 = vld [vmem:[#allocation3 + $0x85] sm:$0xff] }
 0x714   : > { %16925 = vmatprep.mubr.msk.bf16.mxu0 %vm1419_vm3, %v21414_v46  ;;  %v21471_v46 = vpack.c.bf16 %v4797_v37, %v4796_v13  ;;  %v5565_v13 = vld [vmem:[#allocation3 + $0x5e] sm:$0xff] }
 0x71b   : > { %16926 = vmatmul.mubr.msk.bf16.vlgmr.msra.gmra.mrb[216].mxu0 %vm1419_vm3, %v21416_v9  ;;  %v4801_v9 = vld [vmem:[#allocation3 + $0x8c] sm:$0xff] }
 0x71c   : > { %16929 = vmatprep.mubr.msk.bf16.mxu0 %vm1419_vm3, %v4226_v26  ;;  %16942 = vmatpush3.bf16.msra.mxu0 %v18486_v48  ;;  %v21479_v56 = vpack.c.bf16 %v4801_v9, %v4800_v2  ;;  %v4995_v26 = vpack.c.bf16 %v4980_v40, %v4979_v51  ;;  %v4989_v48 = vld [vmem:[#allocation3 + $0x65] sm:$0xff]  ;;  %v18509_v40 = vld [vmem:[#allocation10 + $0x178] sm:$0xff]  }
 0x71d   : > { %16943 = vmatprep.subr.bf16.mxu0 %v18487_v49  ;;  %v5000_v19 = vpack.c.bf16 %v4990_v24, %v4989_v48  ;;  %v5566_v9 = vld [vmem:[#allocation3 + $0x66] sm:$0xff]  ;;  %v5569_v51 = vld [vmem:[#allocation3 + $0x7e] sm:$0xff] }
 0x71e   : > { %v5758_v48 = vld [vmem:[#allocation3 + $0x5f] sm:$0xff] }
 0x720   : > { %16944 = vmatpush3.bf16.msra.mxu0 %v18487_v49  ;;  %v5002_v49 = vpack.c.bf16 %v4994_v62, %v4993_v42  ;;  %v5759_v62 = vld [vmem:[#allocation3 + $0x67] sm:$0xff]  ;;  %v18513_v42 = vld [vmem:[#allocation10 + $0x198] sm:$0xff]  }
 0x721   : > { %16945 = vmatprep.subr.bf16.mxu0 %v18488_v20 }
 0x723   : > { %16930 = vmatmul.mubr.msk.bf16.gmra.mrb[220].mxu0 %vm1419_vm3, %v4227_v1  ;;  %v4981_v1 = vld [vmem:[#allocation3 + $0x25] sm:$0xff] }
 0x724   : > { %16933 = vmatprep.mubr.msk.bf16.mxu0 %vm1419_vm3, %v4228_v30  ;;  %16946 = vmatpush3.bf16.msra.mxu0 %v18488_v20  ;;  %v21484_v50 = vpack.c.bf16 %v4982_v18, %v4981_v1  ;;  %v18496_v30 = vld [vmem:[#allocation10 + $0x110] sm:$0xff]   ;;  %v18499_v20 = vld [vmem:[#allocation10 + $0x128] sm:$0xff]   ;;  %v5568_v18 = vld [vmem:[#allocation3 + $0x76] sm:$0xff] }
 0x725   : > { %16947 = vmatprep.subr.bf16.mxu0 %v18489_v31  ;;  %v21536_v58 = vpack.c.bf16 %v5569_v51, %v5568_v18  ;;  %v5570_v1 = vld [vmem:[#allocation3 + $0x86] sm:$0xff]  ;;  %v6337_v51 = vld [vmem:[#allocation3 + $0x70] sm:$0xff] }
 0x726   : > { %v6336_v18 = vld [vmem:[#allocation3 + $0x68] sm:$0xff] }
 0x728   : > { %16948 = vmatpush3.bf16.msra.mxu0 %v18489_v31  ;;  %v18500_v31 = vld [vmem:[#allocation10 + $0x130] sm:$0xff]  }
 0x729   : > { %16965 = vmatprep.subr.bf16.mxu0 %v18490_v52 }
 0x72b   : > { %16934 = vmatmul.mubr.msk.bf16.gmra.mrb[224].mxu0 %vm1419_vm3, %v4229_v3  ;;  %v4988_v3 = vld [vmem:[#allocation3 + $0x5d] sm:$0xff] }
 0x72c   : > { %16937 = vmatprep.mubr.msk.bf16.mxu0 %vm1419_vm3, %v4230_v36  ;;  %v4987_v36 = vld [vmem:[#allocation3 + $0x55] sm:$0xff] }
 0x72d   : > { %v4999_v10 = vpack.c.bf16 %v4988_v3, %v4987_v36  ;;  %v5753_v36 = vld [vmem:[#allocation3 + $0x37] sm:$0xff] }
 0x733   : > { %16938 = vmatmul.mubr.msk.bf16.gmra.mrb[228].mxu0 %vm1419_vm3, %v4616_v14  ;;  %v5186_v14 = vld [vmem:[#allocation3 + $0x94] sm:$0xff] }
 0x734   : > { %16949 = vmatprep.mubr.msk.bf16.mxu0 %vm1419_vm3, %v4802_v39  ;;  %v5195_v39 = vpack.c.bf16 %v5187_v32, %v5186_v14  ;;  %v5765_v32 = vld [vmem:[#allocation3 + $0x97] sm:$0xff] }
 0x73b   : > { %16950 = vmatmul.mubr.msk.bf16.vlgmr.msra.gmra.mrb[216].mxu0 %vm1419_vm3, %v21455_v22 }
 0x73c   : > { %16953 = vmatprep.mubr.msk.bf16.mxu0 %vm1419_vm3, %v21457_v17  ;;  %16966 = vmatpush3.bf16.msra.mxu0 %v18490_v52  ;;  %v18501_v52 = vld [vmem:[#allocation10 + $0x138] sm:$0xff]  }
 0x73d   : > { %16967 = vmatprep.subr.bf16.mxu0 %v18491_v35 }
 0x740   : > { %16968 = vmatpush3.bf16.msra.mxu0 %v18491_v35  ;;  %v5380_v35 = vld [vmem:[#allocation3 + $0x9d] sm:$0xff] }
 0x741   : > { %16969 = vmatprep.subr.bf16.mxu0 %v18492_v4 }
 0x743   : > { %16954 = vmatmul.mubr.msk.bf16.gmra.mrb[220].mxu0 %vm1419_vm3, %v21463_v63 }
 0x744   : > { %16957 = vmatprep.mubr.msk.bf16.mxu0 %vm1419_vm3, %v21465_v45  ;;  %16970 = vmatpush3.bf16.msra.mxu0 %v18492_v4  ;;  %v5388_v4 = vpack.c.bf16 %v5380_v35, %v5379_v59  ;;  %v18518_v59 = vld [vmem:[#allocation10 + $0x1c0] sm:$0xff]   ;;  %v5958_v35 = vld [vmem:[#allocation3 + $0xa6] sm:$0xff] }
 0x745   : > { %16971 = vmatprep.subr.bf16.mxu0 %v18493_v61 }
 0x747   : > { %v3632_v5 = vpop.f32.mrb[236].mxu1 }
 0x748   : > { %16972 = vmatpush3.bf16.msra.mxu0 %v18493_v61  ;;  %3659 = vst.msk [vmem:[#allocation3 + $0xb8] sm:$0xff] %vm1419_vm3, %v3632_v5  ;;  %v3634_v29 = vpop.f32.mrb[237].mxu1  ;;  %v21520_v61 = vpack.c.bf16 %v5561_v54, %v5560_v28  ;;  %v5761_v5 = vld [vmem:[#allocation3 + $0x77] sm:$0xff]  ;;  %v6151_v28 = vld [vmem:[#allocation3 + $0xa7] sm:$0xff] }
 0x749   : > { %16989 = vmatprep.subr.bf16.mxu0 %v18494_v27  ;;  %v18521_v54 = vld [vmem:[#allocation10 + $0x1d8] sm:$0xff]  }
 0x74b   : > { %16958 = vmatmul.mubr.msk.bf16.gmra.mrb[224].mxu0 %vm1419_vm3, %v21471_v46 }
 0x74c   : > { %16961 = vmatprep.mubr.msk.bf16.mxu0 %vm1419_vm3, %v21473_v43 }
 0x753   : > { %16962 = vmatmul.mubr.msk.bf16.gmra.mrb[228].mxu0 %vm1419_vm3, %v21479_v56 }
 0x754   : > { %16973 = vmatprep.mubr.msk.bf16.mxu0 %vm1419_vm3, %v4995_v26  ;;  %v5571_v26 = vld [vmem:[#allocation3 + $0x8e] sm:$0xff] }
 0x75b   : > { %16974 = vmatmul.mubr.msk.bf16.vlgmr.msra.gmra.mrb[216].mxu0 %vm1419_vm3, %v21484_v50 }
 0x75c   : > { %16977 = vmatprep.mubr.msk.bf16.mxu0 %vm1419_vm3, %v4997_v41  ;;  %16990 = vmatpush3.bf16.msra.mxu0 %v18494_v27  ;;  %v18507_v27 = vld [vmem:[#allocation10 + $0x168] sm:$0xff]  }
 0x75d   : > { %16991 = vmatprep.subr.bf16.mxu0 %v18495_v11 }
 0x760   : > { %16992 = vmatpush3.bf16.msra.mxu0 %v18495_v11  ;;  %v5573_v11 = vld [vmem:[#allocation3 + $0x9e] sm:$0xff] }
 0x761   : > { %16993 = vmatprep.subr.bf16.mxu0 %v18496_v30 }
 0x763   : > { %16978 = vmatmul.mubr.msk.bf16.gmra.mrb[220].mxu0 %vm1419_vm3, %v4998_v53 }
 0x764   : > { %16981 = vmatprep.mubr.msk.bf16.mxu0 %vm1419_vm3, %v4999_v10  ;;  %16994 = vmatpush3.bf16.msra.mxu0 %v18496_v30  ;;  %v21544_v30 = vpack.c.bf16 %v5573_v11, %v5572_v55  ;;  %v6340_v11 = vld [vmem:[#allocation3 + $0x88] sm:$0xff] }
 0x765   : > { %16995 = vmatprep.subr.bf16.mxu0 %v18497_v57 }
 0x768   : > { %16996 = vmatpush3.bf16.msra.mxu0 %v18497_v57  ;;  %v5768_v57 = vpack.c.bf16 %v5754_v33, %v5753_v36  ;;  %v6345_v36 = vld [vmem:[#allocation3 + $0xb0] sm:$0xff] }
 0x769   : > { %17013 = vmatprep.subr.bf16.mxu0 %v18498_v21 }
 0x76b   : > { %16982 = vmatmul.mubr.msk.bf16.gmra.mrb[224].mxu0 %vm1419_vm3, %v5000_v19 }
 0x76c   : > { %16985 = vmatprep.mubr.msk.bf16.mxu0 %vm1419_vm3, %v5001_v6 }
 0x773   : > { %16986 = vmatmul.mubr.msk.bf16.gmra.mrb[228].mxu0 %vm1419_vm3, %v5002_v49 }
 0x774   : > { %16997 = vmatprep.mubr.msk.bf16.mxu0 %vm1419_vm3, %v21455_v22  ;;  %v18506_v22 = vld [vmem:[#allocation10 + $0x160] sm:$0xff]  }
 0x77b   : > { %16998 = vmatmul.mubr.msk.bf16.vlgmr.msra.gmra.mrb[216].mxu0 %vm1419_vm3, %v21457_v17  ;;  %v5559_v17 = vld [vmem:[#allocation3 + $0x2e] sm:$0xff] }
 0x77c   : > { %17001 = vmatprep.mubr.msk.bf16.mxu0 %vm1419_vm3, %v21463_v63  ;;  %17014 = vmatpush3.bf16.msra.mxu0 %v18498_v21  ;;  %v5574_v44 = vpack.c.bf16 %v5559_v17, %v5558_v23  ;;  %v5563_v63 = vld [vmem:[#allocation3 + $0x4e] sm:$0xff]  ;;  %v18511_v21 = vld [vmem:[#allocation10 + $0x188] sm:$0xff]  }
 0x77d   : > { %17015 = vmatprep.subr.bf16.mxu0 %v18499_v20  ;;  %v5959_v17 = vld [vmem:[#allocation3 + $0xae] sm:$0xff]  ;;  %v18519_v23 = vld [vmem:[#allocation10 + $0x1c8] sm:$0xff]  }
 0x780   : > { %17016 = vmatpush3.bf16.msra.mxu0 %v18499_v20  ;;  %v18514_v20 = vld [vmem:[#allocation10 + $0x1a0] sm:$0xff]  }
 0x781   : > { %17017 = vmatprep.subr.bf16.mxu0 %v18500_v31 }
 0x783   : > { %17002 = vmatmul.mubr.msk.bf16.gmra.mrb[220].mxu0 %vm1419_vm3, %v21465_v45  ;;  %v5562_v45 = vld [vmem:[#allocation3 + $0x46] sm:$0xff] }
 0x784   : > { %17005 = vmatprep.mubr.msk.bf16.mxu0 %vm1419_vm3, %v21471_v46  ;;  %17018 = vmatpush3.bf16.msra.mxu0 %v18500_v31  ;;  %v21522_v37 = vpack.c.bf16 %v5563_v63, %v5562_v45  ;;  %v5567_v46 = vld [vmem:[#allocation3 + $0x6e] sm:$0xff]  ;;  %v5762_v31 = vld [vmem:[#allocation3 + $0x7f] sm:$0xff] }
 0x785   : > { %17019 = vmatprep.subr.bf16.mxu0 %v18501_v52  ;;  %v21530_v2 = vpack.c.bf16 %v5567_v46, %v5566_v9  ;;  %v5772_v29 = vpack.c.bf16 %v5762_v31, %v5761_v5  ;;  %v18522_v63 = vld [vmem:[#allocation10 + $0x1e0] sm:$0xff]   ;;  %v6331_v45 = vld [vmem:[#allocation3 + $0x40] sm:$0xff] }
 0x786   : > { %v6335_v46 = vld [vmem:[#allocation3 + $0x60] sm:$0xff]  ;;  %v6334_v9 = vld [vmem:[#allocation3 + $0x58] sm:$0xff] }
 0x788   : > { %17020 = vmatpush3.bf16.msra.mxu0 %v18501_v52  ;;  %v5764_v52 = vld [vmem:[#allocation3 + $0x8f] sm:$0xff] }
 0x789   : > { %17037 = vmatprep.subr.bf16.mxu0 %v18502_v38 }
 0x78b   : > { %17006 = vmatmul.mubr.msk.bf16.gmra.mrb[224].mxu0 %vm1419_vm3, %v21473_v43  ;;  %v21528_v43 = vpack.c.bf16 %v5565_v13, %v5564_v47  ;;  %v6333_v13 = vld [vmem:[#allocation3 + $0x50] sm:$0xff]  ;;  %v6332_v47 = vld [vmem:[#allocation3 + $0x48] sm:$0xff] }
 0x78c   : > { %17009 = vmatprep.mubr.msk.bf16.mxu0 %vm1419_vm3, %v21479_v56  ;;  %v18510_v56 = vld [vmem:[#allocation10 + $0x180] sm:$0xff]  }
 0x793   : > { %17010 = vmatmul.mubr.msk.bf16.gmra.mrb[228].mxu0 %vm1419_vm3, %v5195_v39  ;;  %v5766_v39 = vld [vmem:[#allocation3 + $0x9f] sm:$0xff] }
 0x794   : > { %17021 = vmatprep.mubr.msk.bf16.mxu0 %vm1419_vm3, %v21484_v50  ;;  %v21538_v50 = vpack.c.bf16 %v5571_v26, %v5570_v1  ;;  %v6339_v26 = vld [vmem:[#allocation3 + $0x80] sm:$0xff]  ;;  %v6338_v1 = vld [vmem:[#allocation3 + $0x78] sm:$0xff] }
 0x795   : > { %v6350_v55 = vpack.c.bf16 %v6339_v26, %v6338_v1 }
 0x79b   : > { %17022 = vmatmul.mubr.msk.bf16.vlgmr.msra.gmra.mrb[216].mxu0 %vm1419_vm3, %v4997_v41  ;;  %v5752_v41 = vld [vmem:[#allocation3 + $0x2f] sm:$0xff] }
 0x79c   : > { %17025 = vmatprep.mubr.msk.bf16.mxu0 %vm1419_vm3, %v4998_v53  ;;  %17038 = vmatpush3.bf16.msra.mxu0 %v18502_v38  ;;  %v5767_v3 = vpack.c.bf16 %v5752_v41, %v5751_v60  ;;  %v5756_v53 = vld [vmem:[#allocation3 + $0x4f] sm:$0xff]  ;;  %v5763_v38 = vld [vmem:[#allocation3 + $0x87] sm:$0xff] }
 0x79d   : > { %17039 = vmatprep.subr.bf16.mxu0 %v18503_v7  ;;  %v5773_v14 = vpack.c.bf16 %v5764_v52, %v5763_v38  ;;  %v6341_v41 = vld [vmem:[#allocation3 + $0x90] sm:$0xff]  ;;  %v6343_v60 = vld [vmem:[#allocation3 + $0xa0] sm:$0xff] }
 0x79e   : > { %v6531_v52 = vld [vmem:[#allocation3 + $0x79] sm:$0xff]  ;;  %v6534_v38 = vld [vmem:[#allocation3 + $0x91] sm:$0xff] }
 0x7a0   : > { %17040 = vmatpush3.bf16.msra.mxu0 %v18503_v7  ;;  %v5774_v7 = vpack.c.bf16 %v5766_v39, %v5765_v32  ;;  %v6536_v32 = vld [vmem:[#allocation3 + $0xa1] sm:$0xff] }
 0x7a1   : > { %17041 = vmatprep.subr.bf16.mxu0 %v18504_v34 }
 0x7a3   : > { %17026 = vmatmul.mubr.msk.bf16.gmra.mrb[220].mxu0 %vm1419_vm3, %v4999_v10  ;;  %v5755_v10 = vld [vmem:[#allocation3 + $0x47] sm:$0xff] }
 0x7a4   : > { %17029 = vmatprep.mubr.msk.bf16.mxu0 %vm1419_vm3, %v5000_v19  ;;  %17042 = vmatpush3.bf16.msra.mxu0 %v18504_v34  ;;  %v5769_v24 = vpack.c.bf16 %v5756_v53, %v5755_v10  ;;  %v5760_v19 = vld [vmem:[#allocation3 + $0x6f] sm:$0xff]  ;;  %v18515_v34 = vld [vmem:[#allocation10 + $0x1a8] sm:$0xff]  }
 0x7a5   : > { %17043 = vmatprep.subr.bf16.mxu0 %v18505_v25  ;;  %v6344_v53 = vld [vmem:[#allocation3 + $0xa8] sm:$0xff] }
 0x7a6   : > { %v6353_v10 = vpack.c.bf16 %v6345_v36, %v6344_v53 }
 0x7a8   : > { %17044 = vmatpush3.bf16.msra.mxu0 %v18505_v25  ;;  %v18516_v25 = vld [vmem:[#allocation10 + $0x1b0] sm:$0xff]  }
 0x7a9   : > { %17061 = vmatprep.subr.bf16.mxu0 %v18506_v22 }
 0x7ab   : > { %17030 = vmatmul.mubr.msk.bf16.gmra.mrb[224].mxu0 %vm1419_vm3, %v5001_v6  ;;  %v5770_v6 = vpack.c.bf16 %v5758_v48, %v5757_v8  ;;  %v6528_v48 = vld [vmem:[#allocation3 + $0x61] sm:$0xff] }
 0x7ac   : > { %17033 = vmatprep.mubr.msk.bf16.mxu0 %vm1419_vm3, %v5002_v49  ;;  %v5771_v49 = vpack.c.bf16 %v5760_v19, %v5759_v62  ;;  %v6525_v19 = vld [vmem:[#allocation3 + $0x49] sm:$0xff] }
 0x7b3   : > { %17034 = vmatmul.mubr.msk.bf16.gmra.mrb[228].mxu0 %vm1419_vm3, %v5388_v4  ;;  %v5967_v4 = vpack.c.bf16 %v5959_v17, %v5958_v35  ;;  %v15057_v35 = vld [vmem:[%s23657_s28] ss:$0 sm:$0xff]  ;;  %s879_s28 = scalar_lea.vmem [#allocation22], %s878_s29 }
 0x7b4   : > { %17045 = vmatprep.mubr.msk.bf16.mxu0 %vm1419_vm3, %v5574_v44  ;;  %v18520_v44 = vld [vmem:[#allocation10 + $0x1d0] sm:$0xff]  }
 0x7bb   : > { %17046 = vmatmul.mubr.msk.bf16.vlgmr.msra.gmra.mrb[216].mxu0 %vm1419_vm3, %v21520_v61 }
 0x7bc   : > { %17049 = vmatprep.mubr.msk.bf16.mxu0 %vm1419_vm3, %v21522_v37  ;;  %17062 = vmatpush3.bf16.msra.mxu0 %v18506_v22  ;;  %v18517_v22 = vld [vmem:[#allocation10 + $0x1b8] sm:$0xff]  }
 0x7bd   : > { %17063 = vmatprep.subr.bf16.mxu0 %v18507_v27 }
 0x7c0   : > { %17064 = vmatpush3.bf16.msra.mxu0 %v18507_v27 }
 0x7c1   : > { %17065 = vmatprep.subr.bf16.mxu0 %v18508_v16 }
 0x7c3   : > { %17050 = vmatmul.mubr.msk.bf16.gmra.mrb[220].mxu0 %vm1419_vm3, %v21528_v43 }
 0x7c4   : > { %17053 = vmatprep.mubr.msk.bf16.mxu0 %vm1419_vm3, %v21530_v2  ;;  %17066 = vmatpush3.bf16.msra.mxu0 %v18508_v16 }
 0x7c5   : > { %17067 = vmatprep.subr.bf16.mxu0 %v18509_v40 }
 0x7c8   : > { %17068 = vmatpush3.bf16.msra.mxu0 %v18509_v40  ;;  %v18523_v40 = vld [vmem:[#allocation10 + $0x1e8] sm:$0xff]  }
 0x7c9   : > { %17085 = vmatprep.subr.bf16.mxu0 %v18510_v56 }
 0x7cb   : > { %17054 = vmatmul.mubr.msk.bf16.gmra.mrb[224].mxu0 %vm1419_vm3, %v21536_v58 }
 0x7cc   : > { %17057 = vmatprep.mubr.msk.bf16.mxu0 %vm1419_vm3, %v21538_v50 }
 0x7d3   : > { %17058 = vmatmul.mubr.msk.bf16.gmra.mrb[228].mxu0 %vm1419_vm3, %v21544_v30 }
 0x7d4   : > { %17069 = vmatprep.mubr.msk.bf16.mxu0 %vm1419_vm3, %v5767_v3  ;;  %v6351_v3 = vpack.c.bf16 %v6341_v41, %v6340_v11 }
 0x7db   : > { %17070 = vmatmul.mubr.msk.bf16.vlgmr.msra.gmra.mrb[216].mxu0 %vm1419_vm3, %v5768_v57 }
 0x7dc   : > { %17073 = vmatprep.mubr.msk.bf16.mxu0 %vm1419_vm3, %v5769_v24  ;;  %17086 = vmatpush3.bf16.msra.mxu0 %v18510_v56  ;;  %v18524_v56 = vld [vmem:[#allocation10 + $0x1f0] sm:$0xff]  }
 0x7dd   : > { %17087 = vmatprep.subr.bf16.mxu0 %v18511_v21 }
 0x7e0   : > { %17088 = vmatpush3.bf16.msra.mxu0 %v18511_v21  ;;  %v6523_v21 = vld [vmem:[#allocation3 + $0x39] sm:$0xff] }
 0x7e1   : > { %17089 = vmatprep.subr.bf16.mxu0 %v18512_v15 }
 0x7e3   : > { %17074 = vmatmul.mubr.msk.bf16.gmra.mrb[220].mxu0 %vm1419_vm3, %v5770_v6 }
 0x7e4   : > { %17077 = vmatprep.mubr.msk.bf16.mxu0 %vm1419_vm3, %v5771_v49  ;;  %17090 = vmatpush3.bf16.msra.mxu0 %v18512_v15  ;;  %v6526_v15 = vld [vmem:[#allocation3 + $0x51] sm:$0xff] }
 0x7e5   : > { %17091 = vmatprep.subr.bf16.mxu0 %v18513_v42  ;;  %v6540_v8 = vpack.c.bf16 %v6526_v15, %v6525_v19 }
 0x7e8   : > { %17092 = vmatpush3.bf16.msra.mxu0 %v18513_v42  ;;  %v6530_v42 = vld [vmem:[#allocation3 + $0x71] sm:$0xff] }
 0x7e9   : > { %17109 = vmatprep.subr.bf16.mxu0 %v18514_v20 }
 0x7eb   : > { %17078 = vmatmul.mubr.msk.bf16.gmra.mrb[224].mxu0 %vm1419_vm3, %v5772_v29 }
 0x7ec   : > { %17081 = vmatprep.mubr.msk.bf16.mxu0 %vm1419_vm3, %v5773_v14 }
 0x7f3   : > { %17082 = vmatmul.mubr.msk.bf16.gmra.mrb[228].mxu0 %vm1419_vm3, %v5774_v7 }
 0x7f4   : > { %17093 = vmatprep.mubr.msk.bf16.mxu0 %vm1419_vm3, %v21520_v61  ;;  %v6152_v61 = vld [vmem:[#allocation3 + $0xaf] sm:$0xff] }
 0x7f5   : > { %v6160_v27 = vpack.c.bf16 %v6152_v61, %v6151_v28 }
 0x7fb   : > { %17094 = vmatmul.mubr.msk.bf16.vlgmr.msra.gmra.mrb[216].mxu0 %vm1419_vm3, %v21522_v37  ;;  %v6330_v37 = vld [vmem:[#allocation3 + $0x38] sm:$0xff] }
 0x7fc   : > { %17097 = vmatprep.mubr.msk.bf16.mxu0 %vm1419_vm3, %v21528_v43  ;;  %17110 = vmatpush3.bf16.msra.mxu0 %v18514_v20  ;;  %v6346_v16 = vpack.c.bf16 %v6331_v45, %v6330_v37  ;;  %v6347_v43 = vpack.c.bf16 %v6333_v13, %v6332_v47  ;;  %v6529_v20 = vld [vmem:[#allocation3 + $0x69] sm:$0xff] }
 0x7fd   : > { %17111 = vmatprep.subr.bf16.mxu0 %v18515_v34  ;;  %v6542_v31 = vpack.c.bf16 %v6530_v42, %v6529_v20 }
 0x800   : > { %17112 = vmatpush3.bf16.msra.mxu0 %v18515_v34  ;;  %v6537_v34 = vld [vmem:[#allocation3 + $0xa9] sm:$0xff] }
 0x801   : > { %17113 = vmatprep.subr.bf16.mxu0 %v18516_v25 }
 0x803   : > { %17098 = vmatmul.mubr.msk.bf16.gmra.mrb[220].mxu0 %vm1419_vm3, %v21530_v2  ;;  %v6348_v2 = vpack.c.bf16 %v6335_v46, %v6334_v9 }
 0x804   : > { %17101 = vmatprep.mubr.msk.bf16.mxu0 %vm1419_vm3, %v21536_v58  ;;  %17114 = vmatpush3.bf16.msra.mxu0 %v18516_v25  ;;  %v6349_v58 = vpack.c.bf16 %v6337_v51, %v6336_v18  ;;  %v6538_v25 = vld [vmem:[#allocation3 + $0xb1] sm:$0xff] }
 0x805   : > { %17115 = vmatprep.subr.bf16.mxu0 %v18517_v22 }
 0x808   : > { %17116 = vmatpush3.bf16.msra.mxu0 %v18517_v22  ;;  %v6546_v22 = vpack.c.bf16 %v6538_v25, %v6537_v34  ;;  %v18526_v34 = vld [vmem:[%s23557_s10 + $0x40] sm:$0xff]  }
 0x809   : > { %17133 = vmatprep.subr.bf16.mxu0 %v18518_v59  ;;  %v6757_v25 = vld [vmem:[#allocation12 + $0x10] sm:$0xff] }
 0x80b   : > { %17102 = vmatmul.mubr.msk.bf16.gmra.mrb[224].mxu0 %vm1419_vm3, %v21538_v50  ;;  %v18525_v50 = vld [vmem:[#allocation10 + $0x1f8] sm:$0xff]  }
 0x80c   : > { %17105 = vmatprep.mubr.msk.bf16.mxu0 %vm1419_vm3, %v21544_v30  ;;  %v6342_v30 = vld [vmem:[#allocation3 + $0x98] sm:$0xff] }
 0x80d   : > { %v6352_v33 = vpack.c.bf16 %v6343_v60, %v6342_v30 }
 0x813   : > { %17106 = vmatmul.mubr.msk.bf16.gmra.mrb[228].mxu0 %vm1419_vm3, %v5967_v4 }
 0x814   : > { %17117 = vmatprep.mubr.msk.bf16.mxu0 %vm1419_vm3, %v5768_v57  ;;  %v6524_v57 = vld [vmem:[#allocation3 + $0x41] sm:$0xff] }
 0x81b   : > { %17118 = vmatmul.mubr.msk.bf16.vlgmr.msra.gmra.mrb[216].mxu0 %vm1419_vm3, %v5769_v24  ;;  %v6539_v24 = vpack.c.bf16 %v6524_v57, %v6523_v21 }
 0x81c   : > { %17121 = vmatprep.mubr.msk.bf16.mxu0 %vm1419_vm3, %v5770_v6  ;;  %17134 = vmatpush3.bf16.msra.mxu0 %v18518_v59  ;;  %v6527_v6 = vld [vmem:[#allocation3 + $0x59] sm:$0xff] }
 0x81d   : > { %17135 = vmatprep.subr.bf16.mxu0 %v18519_v23  ;;  %v6541_v62 = vpack.c.bf16 %v6528_v48, %v6527_v6  ;;  %v6755_v59 = vld [vmem:[#allocation12] sm:$0xff] }
 0x81e   : > { %17213 = vmatprep.mubr.f32.mxu1 %v6755_v59  ;;  %v18527_v59 = vld [vmem:[%s23557_s10 + $0x48] sm:$0xff]  }
 0x820   : > { %17136 = vmatpush3.bf16.msra.mxu0 %v18519_v23 }
 0x821   : > { %17137 = vmatprep.subr.bf16.mxu0 %v18520_v44 }
 0x823   : > { %17122 = vmatmul.mubr.msk.bf16.gmra.mrb[220].mxu0 %vm1419_vm3, %v5771_v49  ;;  %v6532_v49 = vld [vmem:[#allocation3 + $0x81] sm:$0xff] }
 0x824   : > { %17125 = vmatprep.mubr.msk.bf16.mxu0 %vm1419_vm3, %v5772_v29  ;;  %17138 = vmatpush3.bf16.msra.mxu0 %v18520_v44  ;;  %v6543_v5 = vpack.c.bf16 %v6532_v49, %v6531_v52  ;;  %v6533_v29 = vld [vmem:[#allocation3 + $0x89] sm:$0xff] }
 0x825   : > { %17139 = vmatprep.subr.bf16.mxu0 %v18521_v54  ;;  %v6544_v39 = vpack.c.bf16 %v6534_v38, %v6533_v29 }
 0x828   : > { %17140 = vmatpush3.bf16.msra.mxu0 %v18521_v54 }
 0x829   : > { %17157 = vmatprep.subr.bf16.mxu0 %v18522_v63 }
 0x82b   : > { %17126 = vmatmul.mubr.msk.bf16.gmra.mrb[224].mxu0 %vm1419_vm3, %v5773_v14  ;;  %v6535_v14 = vld [vmem:[#allocation3 + $0x99] sm:$0xff] }
 0x82c   : > { %17129 = vmatprep.mubr.msk.bf16.mxu0 %vm1419_vm3, %v5774_v7  ;;  %v6545_v7 = vpack.c.bf16 %v6536_v32, %v6535_v14 }
 0x833   : > { %17130 = vmatmul.mubr.msk.bf16.gmra.mrb[228].mxu0 %vm1419_vm3, %v6160_v27 }
 0x834   : > { %17141 = vmatprep.mubr.msk.bf16.mxu0 %vm1419_vm3, %v6346_v16 }
 0x83b   : > { %17142 = vmatmul.mubr.msk.bf16.vlgmr.msra.gmra.mrb[216].mxu0 %vm1419_vm3, %v6347_v43 }
 0x83c   : > { %17145 = vmatprep.mubr.msk.bf16.mxu0 %vm1419_vm3, %v6348_v2  ;;  %17158 = vmatpush3.bf16.msra.mxu0 %v18522_v63 }
 0x83d   : > { %17159 = vmatprep.subr.bf16.mxu0 %v18523_v40 }
 0x840   : > { %17160 = vmatpush3.bf16.msra.mxu0 %v18523_v40 }
 0x841   : > { %17161 = vmatprep.subr.bf16.mxu0 %v18524_v56 }
 0x843   : > { %17146 = vmatmul.mubr.msk.bf16.gmra.mrb[220].mxu0 %vm1419_vm3, %v6349_v58 }
 0x844   : > { %17149 = vmatprep.mubr.msk.bf16.mxu0 %vm1419_vm3, %v6350_v55  ;;  %17162 = vmatpush3.bf16.msra.mxu0 %v18524_v56 }
 0x845   : > { %17163 = vmatprep.subr.bf16.mxu0 %v18525_v50 }
 0x848   : > { %17164 = vmatpush3.bf16.msra.mxu0 %v18525_v50 }
 0x849   : > { %17583 = vmatprep.subr.bf16.mxu0 %v19816_v0 }
 0x84b   : > { %17150 = vmatmul.mubr.msk.bf16.gmra.mrb[224].mxu0 %vm1419_vm3, %v6351_v3 }
 0x84c   : > { %17153 = vmatprep.mubr.msk.bf16.mxu0 %vm1419_vm3, %v6352_v33 }
 0x853   : > { %17154 = vmatmul.mubr.msk.bf16.gmra.mrb[228].mxu0 %vm1419_vm3, %v6353_v10 }
 0x854   : > { %17165 = vmatprep.mubr.msk.bf16.mxu0 %vm1419_vm3, %v6539_v24 }
 0x85b   : > { %17166 = vmatmul.mubr.msk.bf16.vlgmr.msra.gmra.mrb[216].mxu0 %vm1419_vm3, %v6540_v8 }
 0x85c   : > { %17169 = vmatprep.mubr.msk.bf16.mxu0 %vm1419_vm3, %v6541_v62 }
 0x863   : > { %17170 = vmatmul.mubr.msk.bf16.gmra.mrb[220].mxu0 %vm1419_vm3, %v6542_v31 }
 0x864   : > { %17173 = vmatprep.mubr.msk.bf16.mxu0 %vm1419_vm3, %v6543_v5 }
 0x86b   : > { %17174 = vmatmul.mubr.msk.bf16.gmra.mrb[224].mxu0 %vm1419_vm3, %v6544_v39 }
 0x86c   : > { %17177 = vmatprep.mubr.msk.bf16.mxu0 %vm1419_vm3, %v6545_v7  ;;  %v6756_v7 = vld [vmem:[#allocation12 + $0x8] sm:$0xff] }
 0x873   : > { %17178 = vmatmul.mubr.msk.bf16.gmra.mrb[228].mxu0 %vm1419_vm3, %v6546_v22  ;;  %v6758_v22 = vld [vmem:[#allocation12 + $0x18] sm:$0xff] }
 0x874   : > { %17599 = vmatprep.mubr.msk.bf16.mxu0 %vm19817_vm0, %v19816_v0 }
 0x92e   : > { %v17167_v17 = vpop.f32.mrb[216].mxu0 }
 0x92f   : > { %v6725_v4 = vadd.f32 %v17167_v17, %v15057_v35  ;;  %v6637_v23 = vpop.f32.mrb[217].mxu0  ;;  %v6760_v17 = vld [vmem:[#allocation12 + $0x28] sm:$0xff] }
 0x930   : > { %v6723_v44 = vadd.f32 %v15057_v35, %v6637_v23  ;;  %v17168_v54 = vpop.f32.mrb[218].mxu0  ;;  %v6761_v23 = vld [vmem:[#allocation12 + $0x30] sm:$0xff] }
 0x931   : > { %v6726_v63 = vadd.f32 %v17168_v54, %v15057_v35  ;;  %v6640_v28 = vpop.f32.mrb[219].mxu0  ;;  %v6741_v45 = vmax.f32 %v6725_v4, 0.0  ;;  %v18528_v4 = vld [vmem:[%s23557_s10 + $0x50] sm:$0xff]   ;;  %v18529_v54 = vld [vmem:[%s23557_s10 + $0x58] sm:$0xff]  }
 0x932   : > { %v6724_v61 = vadd.f32 %v15057_v35, %v6640_v28  ;;  %v6739_v37 = vmax.f32 %v6723_v44, 0.0  ;;  %v6762_v44 = vld [vmem:[#allocation12 + $0x38] sm:$0xff] }
 0x933   : > { %v6742_v27 = vmax.f32 %v6726_v63, 0.0  ;;  %v18530_v63 = vld [vmem:[%s23557_s10 + $0x60] sm:$0xff]   ;;  %v18531_v28 = vld [vmem:[%s23557_s10 + $0x68] sm:$0xff]  }
 0x934   : > { %v6740_v16 = vmax.f32 %v6724_v61, 0.0  ;;  %v18532_v61 = vld [vmem:[%s23557_s10 + $0x70] sm:$0xff]  }
 0x935   : > { %v17866_v13 = vpack.c.bf16 %v6742_v27, %v6741_v45  ;;  %v18533_v45 = vld [vmem:[%s23557_s10 + $0x78] sm:$0xff]  }
 0x936   : > { %v17862_v46 = vpack.c.bf16 %v6740_v16, %v6739_v37  ;;  %v17171_v47 = vpop.f32.mrb[220].mxu0 }
 0x937   : > { %v6729_v43 = vadd.f32 %v17171_v47, %v15057_v35  ;;  %v6653_v9 = vpop.f32.mrb[221].mxu0 }
 0x938   : > { %v6727_v40 = vadd.f32 %v15057_v35, %v6653_v9  ;;  %v17172_v2 = vpop.f32.mrb[222].mxu0  ;;  %17863 = vmatprep.subr.bf16.mxu1 %v17862_v46 }
 0x939   : > { %v6730_v56 = vadd.f32 %v17172_v2, %v15057_v35  ;;  %v6656_v51 = vpop.f32.mrb[223].mxu0  ;;  %17865 = vmatpush3.bf16.msra.mxu1 %v17862_v46  ;;  %v6745_v18 = vmax.f32 %v6729_v43, 0.0 }
 0x93a   : > { %v6728_v26 = vadd.f32 %v15057_v35, %v6656_v51  ;;  %17867 = vmatprep.subr.bf16.mxu1 %v17866_v13  ;;  %v6743_v1 = vmax.f32 %v6727_v40, 0.0 }
 0x93b   : > { %v6746_v58 = vmax.f32 %v6730_v56, 0.0 }
 0x93c   : > { %v6744_v50 = vmax.f32 %v6728_v26, 0.0  ;;  %v18534_v26 = vld [vmem:[%s23557_s10] sm:$0xff]  }
 0x93d   : > { %v17874_v55 = vpack.c.bf16 %v6746_v58, %v6745_v18  ;;  %17869 = vmatpush3.bf16.msra.mxu1 %v17866_v13  ;;  %v18535_v58 = vld [vmem:[%s23557_s10 + $0x8] sm:$0xff]  }
 0x93e   : > { %v17870_v11 = vpack.c.bf16 %v6744_v50, %v6743_v1  ;;  %v17175_v41 = vpop.f32.mrb[224].mxu0  ;;  %v18536_v50 = vld [vmem:[%s23557_s10 + $0x10] sm:$0xff]  }
 0x93f   : > { %v6733_v30 = vadd.f32 %v17175_v41, %v15057_v35  ;;  %v6669_v60 = vpop.f32.mrb[225].mxu0  ;;  %v18537_v41 = vld [vmem:[%s23557_s10 + $0x18] sm:$0xff]  }
 0x940   : > { %v6731_v3 = vadd.f32 %v15057_v35, %v6669_v60  ;;  %v17176_v33 = vpop.f32.mrb[226].mxu0  ;;  %17871 = vmatprep.subr.bf16.mxu1 %v17870_v11 }
 0x941   : > { %v6734_v53 = vadd.f32 %v17176_v33, %v15057_v35  ;;  %v6672_v36 = vpop.f32.mrb[227].mxu0  ;;  %17873 = vmatpush3.bf16.msra.mxu1 %v17870_v11  ;;  %v6749_v10 = vmax.f32 %v6733_v30, 0.0  ;;  %v18539_v33 = vld [vmem:[%s23557_s10 + $0x28] sm:$0xff]  }
 0x942   : > { %v6732_v57 = vadd.f32 %v15057_v35, %v6672_v36  ;;  %17875 = vmatprep.subr.bf16.mxu1 %v17874_v55  ;;  %v6747_v24 = vmax.f32 %v6731_v3, 0.0  ;;  %v18538_v3 = vld [vmem:[%s23557_s10 + $0x20] sm:$0xff]   ;;  %v18541_v36 = vld [vmem:[%s23557_s10 + $0x38] sm:$0xff]  }
 0x943   : > { %v6750_v21 = vmax.f32 %v6734_v53, 0.0  ;;  %v18540_v53 = vld [vmem:[%s23557_s10 + $0x30] sm:$0xff]  }
 0x944   : > { %v6748_v15 = vmax.f32 %v6732_v57, 0.0  ;;  %v18542_v57 = vld [vmem:[%s23557_s10 + $0x80] sm:$0xff]  }
 0x945   : > { %v17882_v48 = vpack.c.bf16 %v6750_v21, %v6749_v10  ;;  %17877 = vmatpush3.bf16.msra.mxu1 %v17874_v55  ;;  %v18543_v10 = vld [vmem:[%s23557_s10 + $0x88] sm:$0xff]   ;;  %v18544_v21 = vld [vmem:[%s23557_s10 + $0x90] sm:$0xff]  }
 0x946   : > { %v17878_v19 = vpack.c.bf16 %v6748_v15, %v6747_v24  ;;  %v17179_v8 = vpop.f32.mrb[228].mxu0  ;;  %v18545_v24 = vld [vmem:[%s23557_s10 + $0x98] sm:$0xff]   ;;  %v18546_v15 = vld [vmem:[%s23557_s10 + $0xa0] sm:$0xff]  }
 0x947   : > { %v6737_v6 = vadd.f32 %v17179_v8, %v15057_v35  ;;  %v6685_v62 = vpop.f32.mrb[229].mxu0  ;;  %v18548_v8 = vld [vmem:[%s23557_s10 + $0xb0] sm:$0xff]  }
 0x948   : > { %v6735_v42 = vadd.f32 %v15057_v35, %v6685_v62  ;;  %v17180_v49 = vpop.f32.mrb[230].mxu0  ;;  %17879 = vmatprep.subr.bf16.mxu1 %v17878_v19 }
 0x949   : > { %v6738_v20 = vadd.f32 %v17180_v49, %v15057_v35  ;;  %v6688_v31 = vpop.f32.mrb[231].mxu0  ;;  %17881 = vmatpush3.bf16.msra.mxu1 %v17878_v19  ;;  %v6753_v5 = vmax.f32 %v6737_v6, 0.0  ;;  %v18547_v19 = vld [vmem:[%s23557_s10 + $0xa8] sm:$0xff]   ;;  %v18549_v6 = vld [vmem:[%s23557_s10 + $0xb8] sm:$0xff]   ;;  %v18550_v49 = vld [vmem:[%s23557_s10 + $0xc0] sm:$0xff]  }
 0x94a   : > { %v6736_v52 = vadd.f32 %v15057_v35, %v6688_v31  ;;  %17883 = vmatprep.subr.bf16.mxu1 %v17882_v48  ;;  %v6751_v38 = vmax.f32 %v6735_v42, 0.0  ;;  %v6759_v35 = vld [vmem:[#allocation12 + $0x20] sm:$0xff]  ;;  %v18551_v31 = vld [vmem:[%s23557_s10 + $0xc8] sm:$0xff]  }
 0x94b   : > { %v6754_v29 = vmax.f32 %v6738_v20, 0.0 }
 0x94c   : > { %v6752_v14 = vmax.f32 %v6736_v52, 0.0 }
 0x94d   : > { %v17890_v32 = vpack.c.bf16 %v6754_v29, %v6753_v5  ;;  %17885 = vmatpush3.bf16.msra.mxu1 %v17882_v48  ;;  %v18552_v29 = vld [vmem:[%s23557_s10 + $0xd0] sm:$0xff]  }
 0x94e   : > { %v17886_v39 = vpack.c.bf16 %v6752_v14, %v6751_v38  ;;  %v18553_v14 = vld [vmem:[%s23557_s10 + $0xd8] sm:$0xff]  }
 0x950   : > { %17887 = vmatprep.subr.bf16.mxu1 %v17886_v39 }
 0x951   : > { %17889 = vmatpush3.bf16.msra.mxu1 %v17886_v39  ;;  %v18554_v39 = vld [vmem:[%s23557_s10 + $0xe0] sm:$0xff]  }
 0x952   : > { %17891 = vmatprep.subr.bf16.mxu1 %v17890_v32 }
 0x955   : > { %17893 = vmatpush3.bf16.msra.mxu1 %v17890_v32 }
 0x956   : > { %17225 = vmatprep.subr.bf16.mxu1 %v19816_v0 }
 0x958   : > { %17214 = vmatmul.mubr.f32.vlgmr.msra.gmra.mrb[238].mxu1 %v6756_v7 }
 0x959   : > { %17216 = vmatprep.mubr.f32.mxu1 %v6757_v25  ;;  %17226 = vmatpush3.bf16.msra.mxu1 %v18526_v34  ;;  %v18555_v34 = vld [vmem:[%s23557_s10 + $0xe8] sm:$0xff]   ;;  %v18556_v25 = vld [vmem:[%s23557_s10 + $0xf0] sm:$0xff]  }
 0x95a   : > { %17227 = vmatprep.subr.bf16.mxu1 %v19816_v0 }
 0x95c   : > { %17217 = vmatmul.mubr.f32.gmra.mrb[240].mxu1 %v6758_v22  ;;  %v18557_v22 = vld [vmem:[%s23557_s10 + $0xf8] sm:$0xff]  }
 0x95d   : > { %17219 = vmatprep.mubr.f32.mxu1 %v6759_v35  ;;  %17228 = vmatpush3.bf16.msra.mxu1 %v18527_v59  ;;  %v18558_v59 = vld [vmem:[%s23557_s10 + $0x100] sm:$0xff]  }
 0x95e   : > { %17229 = vmatprep.subr.bf16.mxu1 %v19816_v0 }
 0x960   : > { %17220 = vmatmul.mubr.f32.gmra.mrb[242].mxu1 %v6760_v17  ;;  %v18559_v17 = vld [vmem:[%s23557_s10 + $0x108] sm:$0xff]  }
 0x961   : > { %17222 = vmatprep.mubr.f32.mxu1 %v6761_v23  ;;  %17230 = vmatpush3.bf16.msra.mxu1 %v18528_v4  ;;  %v18560_v4 = vld [vmem:[%s23557_s10 + $0x110] sm:$0xff]  }
 0x962   : > { %17231 = vmatprep.subr.bf16.mxu1 %v19816_v0 }
 0x964   : > { %17223 = vmatmul.mubr.f32.gmra.mrb[244].mxu1 %v6762_v44  ;;  %v18561_v44 = vld [vmem:[%s23557_s10 + $0x118] sm:$0xff]  }
 0x965   : > { %17232 = vmatpush3.bf16.msra.mxu1 %v18529_v54  ;;  %17241 = vmatprep.mubr.msk.bf16.mxu1 %vm19817_vm0, %v19816_v0 }
 0x966   : > { %17233 = vmatprep.subr.bf16.mxu1 %v19816_v0 }
 0x969   : > { %17234 = vmatpush3.bf16.msra.mxu1 %v18530_v63  ;;  %v18562_v63 = vld [vmem:[%s23557_s10 + $0x120] sm:$0xff]  }
 0x96a   : > { %17235 = vmatprep.subr.bf16.mxu1 %v19816_v0 }
 0x96d   : > { %17236 = vmatpush3.bf16.msra.mxu1 %v18531_v28 }
 0x96e   : > { %17237 = vmatprep.subr.bf16.mxu1 %v19816_v0 }
 0x971   : > { %17238 = vmatpush3.bf16.msra.mxu1 %v18532_v61  ;;  %v18563_v61 = vld [vmem:[%s23557_s10 + $0x128] sm:$0xff]  }
 0x972   : > { %17239 = vmatprep.subr.bf16.mxu1 %v19816_v0 }
 0x975   : > { %17240 = vmatpush3.bf16.msra.mxu1 %v18533_v45  ;;  %v18564_v45 = vld [vmem:[%s23557_s10 + $0x130] sm:$0xff]  }
 0x976   : > { %17253 = vmatprep.subr.bf16.mxu1 %v19816_v0 }
 0xa2b   : > { %v17215_v27 = vpop.f32.mrb[238].mxu1 }
 0xa2c   : > { %6869 = vst [vmem:[#allocation4 + $0x8] sm:$0xff] %v17215_v27  ;;  %v6829_v37 = vpop.f32.mrb[239].mxu1 }
 0xa2d   : > { %6868 = vst [vmem:[#allocation4] sm:$0xff] %v6829_v37  ;;  %v6881_v16 = vpack.c.bf16 %v17215_v27, %v6829_v37  ;;  %v18565_v27 = vld [vmem:[%s23557_s10 + $0x138] sm:$0xff]  }
 0xa2f   : > { %v17218_v13 = vpop.f32.mrb[240].mxu1 }
 0xa30   : > { %6871 = vst [vmem:[#allocation4 + $0x18] sm:$0xff] %v17218_v13  ;;  %v6839_v46 = vpop.f32.mrb[241].mxu1 }
 0xa31   : > { %6870 = vst [vmem:[#allocation4 + $0x10] sm:$0xff] %v6839_v46  ;;  %v6882_v47 = vpack.c.bf16 %v17218_v13, %v6839_v46  ;;  %v18566_v13 = vld [vmem:[%s23557_s10 + $0x140] sm:$0xff]  }
 0xa33   : > { %v17221_v43 = vpop.f32.mrb[242].mxu1 }
 0xa34   : > { %6873 = vst [vmem:[#allocation4 + $0x28] sm:$0xff] %v17221_v43  ;;  %v6849_v9 = vpop.f32.mrb[243].mxu1  ;;  %v6900_v56 = vld [vmem:[#allocation4 + $0x1] sm:$0xff] }
 0xa35   : > { %6872 = vst [vmem:[#allocation4 + $0x20] sm:$0xff] %v6849_v9  ;;  %v6883_v48 = vpack.c.bf16 %v6849_v9, %v6849_v9  ;;  %v7132_v42 = vld [vmem:[#allocation4 + $0x2] sm:$0xff] }
 0xa37   : > { %v17224_v40 = vpop.f32.mrb[244].mxu1 }
 0xa38   : > { %6875 = vst [vmem:[#allocation4 + $0x38] sm:$0xff] %v17224_v40  ;;  %v6859_v2 = vpop.f32.mrb[245].mxu1  ;;  %v6901_v51 = vld [vmem:[#allocation4 + $0x9] sm:$0xff]  ;;  %v6902_v55 = vld [vmem:[#allocation4 + $0x11] sm:$0xff] }
 0xa39   : > { %6874 = vst [vmem:[#allocation4 + $0x30] sm:$0xff] %v6859_v2  ;;  %v6905_v18 = vpack.c.bf16 %v6901_v51, %v6900_v56  ;;  %v7133_v62 = vld [vmem:[#allocation4 + $0xa] sm:$0xff]  ;;  %v7266_v5 = vld [vmem:[#allocation4 + $0x12] sm:$0xff]  ;;  %v18569_v56 = vld [vmem:[%s23557_s10 + $0x158] sm:$0xff]  }
 0xa3a   : > { %v7137_v20 = vpack.c.bf16 %v7133_v62, %v7132_v42  ;;  %v7270_v35 = vpack.c.bf16 %v7266_v5, %v7133_v62  ;;  %v7398_v37 = vld [vmem:[#allocation4 + $0xb] sm:$0xff]  ;;  %v18568_v40 = vld [vmem:[%s23557_s10 + $0x150] sm:$0xff]  }
 0xa3b   : > { %17242 = vmatmul.mubr.bf16.vlgmr.msra.gmra.mrb[248].mxu1 %v6905_v18  ;;  %v18583_v62 = vld [vmem:[%s23557_s10 + $0x1c8] sm:$0xff]   ;;  %v18584_v42 = vld [vmem:[%s23557_s10 + $0x1d0] sm:$0xff]  }
 0xa3c   : > { %17254 = vmatpush3.bf16.msra.mxu1 %v18534_v26  ;;  %17245 = vmatprep.mubr.msk.bf16.mxu1 %vm19817_vm0, %v19816_v0  ;;  %v6903_v1 = vld [vmem:[#allocation4 + $0x19] sm:$0xff]  ;;  %v6904_v30 = vld [vmem:[#allocation4 + $0x21] sm:$0xff] }
 0xa3d   : > { %17255 = vmatprep.subr.bf16.mxu1 %v19816_v0  ;;  %v6906_v11 = vpack.c.bf16 %v6903_v1, %v6902_v55  ;;  %v6907_v60 = vpack.c.bf16 %v6904_v30, %v6904_v30  ;;  %v7135_v52 = vld [vmem:[#allocation4 + $0x1a] sm:$0xff]  ;;  %v7136_v32 = vld [vmem:[#allocation4 + $0x22] sm:$0xff]  ;;  %v7531_v55 = vld [vmem:[#allocation4 + $0xc] sm:$0xff] }
 0xa3e   : > { %v7138_v38 = vpack.c.bf16 %v7135_v52, %v7266_v5  ;;  %v7139_v7 = vpack.c.bf16 %v7136_v32, %v7136_v32  ;;  %v7271_v23 = vpack.c.bf16 %v7136_v32, %v7135_v52  ;;  %v7400_v43 = vld [vmem:[#allocation4 + $0x1b] sm:$0xff]  ;;  %v7401_v9 = vld [vmem:[#allocation4 + $0x23] sm:$0xff] }
 0xa3f   : > { %v7404_v2 = vpack.c.bf16 %v7401_v9, %v7400_v43  ;;  %v18570_v26 = vld [vmem:[%s23557_s10 + $0x160] sm:$0xff]   ;;  %v18572_v1 = vld [vmem:[%s23557_s10 + $0x170] sm:$0xff]  }
 0xa40   : > { %17256 = vmatpush3.bf16.msra.mxu1 %v18535_v58  ;;  %v7269_v54 = vld [vmem:[#allocation4 + $0x2a] sm:$0xff]  ;;  %v18588_v32 = vld [vmem:[%s23557_s10 + $0x1f0] sm:$0xff]  }
 0xa41   : > { %17257 = vmatprep.subr.bf16.mxu1 %v19816_v0  ;;  %v7272_v28 = vpack.c.bf16 %v7269_v54, %v7269_v54  ;;  %v7402_v51 = vld [vmem:[#allocation4 + $0x2b] sm:$0xff] }
 0xa42   : > { %v7405_v18 = vpack.c.bf16 %v7402_v51, %v7402_v51  ;;  %v18571_v58 = vld [vmem:[%s23557_s10 + $0x168] sm:$0xff]   ;;  %v18586_v52 = vld [vmem:[%s23557_s10 + $0x1e0] sm:$0xff]  }
 0xa43   : > { %17246 = vmatmul.mubr.bf16.gmra.mrb[252].mxu1 %v6906_v11  ;;  %v7532_v11 = vld [vmem:[#allocation4 + $0x14] sm:$0xff]  ;;  %v18594_v43 = vld [vmem:[%s23557_s10 + $0x220] sm:$0xff]  }
 0xa44   : > { %17258 = vmatpush3.bf16.msra.mxu1 %v18536_v50  ;;  %17249 = vmatprep.mubr.msk.bf16.mxu1 %vm19817_vm0, %v19816_v0  ;;  %v18573_v50 = vld [vmem:[%s23557_s10 + $0x178] sm:$0xff]   ;;  %v7536_v30 = vpack.c.bf16 %v7532_v11, %v7531_v55  ;;  %v18591_v54 = vld [vmem:[%s23557_s10 + $0x208] sm:$0xff]  }
 0xa45   : > { %17259 = vmatprep.subr.bf16.mxu1 %v19816_v0  ;;  %v7931_v55 = vld [vmem:[#allocation4 + $0x1e] sm:$0xff] }
 0xa48   : > { %17260 = vmatpush3.bf16.msra.mxu1 %v18537_v41  ;;  %v18574_v41 = vld [vmem:[%s23557_s10 + $0x180] sm:$0xff]  }
 0xa49   : > { %17261 = vmatprep.subr.bf16.mxu1 %v19816_v0 }
 0xa4b   : > { %17250 = vmatmul.mubr.bf16.gmra.mrb[0].mxu1 %v6907_v60  ;;  %v18575_v60 = vld [vmem:[%s23557_s10 + $0x188] sm:$0xff]  }
 0xa4c   : > { %17262 = vmatpush3.bf16.msra.mxu1 %v18538_v3  ;;  %17269 = vmatprep.mubr.msk.bf16.mxu1 %vm19817_vm0, %v19816_v0  ;;  %v7665_v3 = vld [vmem:[#allocation4 + $0x1c] sm:$0xff] }
 0xa4d   : > { %17263 = vmatprep.subr.bf16.mxu1 %v19816_v0 }
 0xa50   : > { %17264 = vmatpush3.bf16.msra.mxu1 %v18539_v33  ;;  %v7534_v33 = vld [vmem:[#allocation4 + $0x24] sm:$0xff] }
 0xa51   : > { %17265 = vmatprep.subr.bf16.mxu1 %v19816_v0 }
 0xa54   : > { %17266 = vmatpush3.bf16.msra.mxu1 %v18540_v53  ;;  %v18576_v53 = vld [vmem:[%s23557_s10 + $0x190] sm:$0xff]  }
 0xa55   : > { %17267 = vmatprep.subr.bf16.mxu1 %v19816_v0 }
 0xa58   : > { %17268 = vmatpush3.bf16.msra.mxu1 %v18541_v36  ;;  %v7537_v36 = vpack.c.bf16 %v7534_v33, %v7665_v3 }
 0xa59   : > { %17281 = vmatprep.subr.bf16.mxu1 %v19816_v0 }
 0xa5b   : > { %17270 = vmatmul.mubr.bf16.vlgmr.msra.gmra.mrb[4].mxu1 %v6881_v16  ;;  %v7399_v16 = vld [vmem:[#allocation4 + $0x13] sm:$0xff] }
 0xa5c   : > { %17282 = vmatpush3.bf16.msra.mxu1 %v18542_v57  ;;  %17273 = vmatprep.mubr.msk.bf16.mxu1 %vm19817_vm0, %v19816_v0  ;;  %v7403_v46 = vpack.c.bf16 %v7399_v16, %v7398_v37  ;;  %v18577_v57 = vld [vmem:[%s23557_s10 + $0x198] sm:$0xff]  }
 0xa5d   : > { %17283 = vmatprep.subr.bf16.mxu1 %v19816_v0 }
 0xa60   : > { %17284 = vmatpush3.bf16.msra.mxu1 %v18543_v10  ;;  %v7535_v10 = vld [vmem:[#allocation4 + $0x2c] sm:$0xff] }
 0xa61   : > { %17285 = vmatprep.subr.bf16.mxu1 %v19816_v0 }
 0xa63   : > { %17274 = vmatmul.mubr.bf16.gmra.mrb[8].mxu1 %v6882_v47  ;;  %v18567_v47 = vld [vmem:[%s23557_s10 + $0x148] sm:$0xff]  }
 0xa64   : > { %17286 = vmatpush3.bf16.msra.mxu1 %v18544_v21  ;;  %17277 = vmatprep.mubr.msk.bf16.mxu1 %vm19817_vm0, %v19816_v0  ;;  %v18578_v21 = vld [vmem:[%s23557_s10 + $0x1a0] sm:$0xff]  }
 0xa65   : > { %17287 = vmatprep.subr.bf16.mxu1 %v19816_v0 }
 0xa68   : > { %17288 = vmatpush3.bf16.msra.mxu1 %v18545_v24  ;;  %v7538_v24 = vpack.c.bf16 %v7535_v10, %v7535_v10 }
 0xa69   : > { %17289 = vmatprep.subr.bf16.mxu1 %v19816_v0 }
 0xa6b   : > { %17278 = vmatmul.mubr.bf16.gmra.mrb[12].mxu1 %v6883_v48  ;;  %v18580_v48 = vld [vmem:[%s23557_s10 + $0x1b0] sm:$0xff]  }
 0xa6c   : > { %17290 = vmatpush3.bf16.msra.mxu1 %v18546_v15  ;;  %17297 = vmatprep.mubr.msk.bf16.mxu1 %vm19817_vm0, %v19816_v0  ;;  %v18579_v15 = vld [vmem:[%s23557_s10 + $0x1a8] sm:$0xff]  }
 0xa6d   : > { %17291 = vmatprep.subr.bf16.mxu1 %v19816_v0 }
 0xa70   : > { %17292 = vmatpush3.bf16.msra.mxu1 %v18547_v19  ;;  %v18581_v19 = vld [vmem:[%s23557_s10 + $0x1b8] sm:$0xff]  }
 0xa71   : > { %17293 = vmatprep.subr.bf16.mxu1 %v19816_v0 }
 0xa74   : > { %17294 = vmatpush3.bf16.msra.mxu1 %v18548_v8  ;;  %v18582_v8 = vld [vmem:[%s23557_s10 + $0x1c0] sm:$0xff]  }
 0xa75   : > { %17295 = vmatprep.subr.bf16.mxu1 %v19816_v0 }
 0xa78   : > { %17296 = vmatpush3.bf16.msra.mxu1 %v18549_v6  ;;  %v7669_v6 = vpack.c.bf16 %v7665_v3, %v7532_v11 }
 0xa79   : > { %17309 = vmatprep.subr.bf16.mxu1 %v19816_v0 }
 0xa7b   : > { %17298 = vmatmul.mubr.bf16.vlgmr.msra.gmra.mrb[16].mxu1 %v7137_v20  ;;  %v18585_v20 = vld [vmem:[%s23557_s10 + $0x1d8] sm:$0xff]  }
 0xa7c   : > { %17310 = vmatpush3.bf16.msra.mxu1 %v18550_v49  ;;  %17301 = vmatprep.mubr.msk.bf16.mxu1 %vm19817_vm0, %v19816_v0  ;;  %v7670_v49 = vpack.c.bf16 %v7535_v10, %v7534_v33  ;;  %v7932_v10 = vld [vmem:[#allocation4 + $0x26] sm:$0xff] }
 0xa7d   : > { %17311 = vmatprep.subr.bf16.mxu1 %v19816_v0 }
 0xa80   : > { %17312 = vmatpush3.bf16.msra.mxu1 %v18551_v31  ;;  %v7668_v31 = vld [vmem:[#allocation4 + $0x34] sm:$0xff] }
 0xa81   : > { %17313 = vmatprep.subr.bf16.mxu1 %v19816_v0  ;;  %v7671_v5 = vpack.c.bf16 %v7668_v31, %v7668_v31 }
 0xa83   : > { %17302 = vmatmul.mubr.bf16.gmra.mrb[20].mxu1 %v7138_v38 }
 0xa84   : > { %17314 = vmatpush3.bf16.msra.mxu1 %v18552_v29  ;;  %17305 = vmatprep.mubr.msk.bf16.mxu1 %vm19817_vm0, %v19816_v0  ;;  %v18587_v29 = vld [vmem:[%s23557_s10 + $0x1e8] sm:$0xff]  }
 0xa85   : > { %17315 = vmatprep.subr.bf16.mxu1 %v19816_v0 }
 0xa88   : > { %17316 = vmatpush3.bf16.msra.mxu1 %v18553_v14 }
 0xa89   : > { %17317 = vmatprep.subr.bf16.mxu1 %v19816_v0 }
 0xa8b   : > { %17306 = vmatmul.mubr.bf16.gmra.mrb[24].mxu1 %v7139_v7 }
 0xa8c   : > { %17318 = vmatpush3.bf16.msra.mxu1 %v18554_v39  ;;  %17325 = vmatprep.mubr.msk.bf16.mxu1 %vm19817_vm0, %v19816_v0 }
 0xa8d   : > { %17319 = vmatprep.subr.bf16.mxu1 %v19816_v0 }
 0xa90   : > { %17320 = vmatpush3.bf16.msra.mxu1 %v18555_v34  ;;  %v18589_v34 = vld [vmem:[%s23557_s10 + $0x1f8] sm:$0xff]  }
 0xa91   : > { %17321 = vmatprep.subr.bf16.mxu1 %v19816_v0 }
 0xa94   : > { %17322 = vmatpush3.bf16.msra.mxu1 %v18556_v25  ;;  %v7798_v25 = vld [vmem:[#allocation4 + $0x1d] sm:$0xff] }
 0xa95   : > { %17323 = vmatprep.subr.bf16.mxu1 %v19816_v0 }
 0xa98   : > { %17324 = vmatpush3.bf16.msra.mxu1 %v18557_v22 }
 0xa99   : > { %17337 = vmatprep.subr.bf16.mxu1 %v19816_v0 }
 0xa9b   : > { %17326 = vmatmul.mubr.bf16.vlgmr.msra.gmra.mrb[28].mxu1 %v7270_v35  ;;  %v7797_v35 = vld [vmem:[#allocation4 + $0x15] sm:$0xff] }
 0xa9c   : > { %17338 = vmatpush3.bf16.msra.mxu1 %v18558_v59  ;;  %17329 = vmatprep.mubr.msk.bf16.mxu1 %vm19817_vm0, %v19816_v0 }
 0xa9d   : > { %17339 = vmatprep.subr.bf16.mxu1 %v19816_v0 }
 0xaa0   : > { %17340 = vmatpush3.bf16.msra.mxu1 %v18559_v17  ;;  %v18590_v17 = vld [vmem:[%s23557_s10 + $0x200] sm:$0xff]  }
 0xaa1   : > { %17341 = vmatprep.subr.bf16.mxu1 %v19816_v0 }
 0xaa3   : > { %17330 = vmatmul.mubr.bf16.gmra.mrb[32].mxu1 %v7271_v23  ;;  %v7802_v23 = vpack.c.bf16 %v7798_v25, %v7797_v35 }
 0xaa4   : > { %17342 = vmatpush3.bf16.msra.mxu1 %v18560_v4  ;;  %17333 = vmatprep.mubr.msk.bf16.mxu1 %vm19817_vm0, %v19816_v0 }
 0xaa5   : > { %17343 = vmatprep.subr.bf16.mxu1 %v19816_v0 }
 0xaa8   : > { %17344 = vmatpush3.bf16.msra.mxu1 %v18561_v44 }
 0xaa9   : > { %17345 = vmatprep.subr.bf16.mxu1 %v19816_v0 }
 0xaab   : > { %17334 = vmatmul.mubr.bf16.gmra.mrb[36].mxu1 %v7272_v28  ;;  %v7800_v28 = vld [vmem:[#allocation4 + $0x2d] sm:$0xff] }
 0xaac   : > { %17346 = vmatpush3.bf16.msra.mxu1 %v18562_v63  ;;  %17353 = vmatprep.mubr.msk.bf16.mxu1 %vm19817_vm0, %v19816_v0  ;;  %v7799_v63 = vld [vmem:[#allocation4 + $0x25] sm:$0xff] }
 0xaad   : > { %17347 = vmatprep.subr.bf16.mxu1 %v19816_v0  ;;  %v7803_v16 = vpack.c.bf16 %v7800_v28, %v7799_v63 }
 0xab0   : > { %17348 = vmatpush3.bf16.msra.mxu1 %v18563_v61 }
 0xab1   : > { %17349 = vmatprep.subr.bf16.mxu1 %v19816_v0 }
 0xab4   : > { %17350 = vmatpush3.bf16.msra.mxu1 %v18564_v45 }
 0xab5   : > { %17351 = vmatprep.subr.bf16.mxu1 %v19816_v0 }
 0xab8   : > { %17352 = vmatpush3.bf16.msra.mxu1 %v18565_v27  ;;  %v18592_v27 = vld [vmem:[%s23557_s10 + $0x210] sm:$0xff]  }
 0xab9   : > { %17365 = vmatprep.subr.bf16.mxu1 %v19816_v0 }
 0xabb   : > { %17354 = vmatmul.mubr.bf16.vlgmr.msra.gmra.mrb[40].mxu1 %v7403_v46  ;;  %v18593_v46 = vld [vmem:[%s23557_s10 + $0x218] sm:$0xff]  }
 0xabc   : > { %17366 = vmatpush3.bf16.msra.mxu1 %v18566_v13  ;;  %17357 = vmatprep.mubr.msk.bf16.mxu1 %vm19817_vm0, %v19816_v0 }
 0xabd   : > { %17367 = vmatprep.subr.bf16.mxu1 %v19816_v0 }
 0xac0   : > { %17368 = vmatpush3.bf16.msra.mxu1 %v18567_v47  ;;  %v7801_v47 = vld [vmem:[#allocation4 + $0x35] sm:$0xff] }
 0xac1   : > { %17369 = vmatprep.subr.bf16.mxu1 %v19816_v0  ;;  %v7804_v9 = vpack.c.bf16 %v7801_v47, %v7801_v47 }
 0xac3   : > { %17358 = vmatmul.mubr.bf16.gmra.mrb[48].mxu1 %v7404_v2 }
 0xac4   : > { %17370 = vmatpush3.bf16.msra.mxu1 %v18568_v40  ;;  %17361 = vmatprep.mubr.msk.bf16.mxu1 %vm19817_vm0, %v19816_v0  ;;  %v18595_v40 = vld [vmem:[%s23557_s10 + $0x228] sm:$0xff]  }
 0xac5   : > { %17371 = vmatprep.subr.bf16.mxu1 %v19816_v0 }
 0xac8   : > { %17372 = vmatpush3.bf16.msra.mxu1 %v18569_v56 }
 0xac9   : > { %17373 = vmatprep.subr.bf16.mxu1 %v19816_v0 }
 0xacb   : > { %17362 = vmatmul.mubr.bf16.gmra.mrb[52].mxu1 %v7405_v18  ;;  %v18596_v18 = vld [vmem:[%s23557_s10 + $0x230] sm:$0xff]  }
 0xacc   : > { %17374 = vmatpush3.bf16.msra.mxu1 %v18570_v26  ;;  %17381 = vmatprep.mubr.msk.bf16.mxu1 %vm19817_vm0, %v19816_v0 }
 0xacd   : > { %17375 = vmatprep.subr.bf16.mxu1 %v19816_v0 }
 0xad0   : > { %17376 = vmatpush3.bf16.msra.mxu1 %v18571_v58 }
 0xad1   : > { %17377 = vmatprep.subr.bf16.mxu1 %v19816_v0 }
 0xad4   : > { %17378 = vmatpush3.bf16.msra.mxu1 %v18572_v1 }
 0xad5   : > { %17379 = vmatprep.subr.bf16.mxu1 %v19816_v0 }
 0xad8   : > { %17380 = vmatpush3.bf16.msra.mxu1 %v18573_v50  ;;  %v18597_v50 = vld [vmem:[%s23557_s10 + $0x238] sm:$0xff]  }
 0xad9   : > { %17393 = vmatprep.subr.bf16.mxu1 %v19816_v0 }
 0xadb   : > { %17382 = vmatmul.mubr.bf16.vlgmr.msra.gmra.mrb[56].mxu1 %v7536_v30 }
 0xadc   : > { %17394 = vmatpush3.bf16.msra.mxu1 %v18574_v41  ;;  %17385 = vmatprep.mubr.msk.bf16.mxu1 %vm19817_vm0, %v19816_v0 }
 0xadd   : > { %17395 = vmatprep.subr.bf16.mxu1 %v19816_v0 }
 0xae0   : > { %17396 = vmatpush3.bf16.msra.mxu1 %v18575_v60  ;;  %v7930_v60 = vld [vmem:[#allocation4 + $0x16] sm:$0xff] }
 0xae1   : > { %17397 = vmatprep.subr.bf16.mxu1 %v19816_v0  ;;  %v7935_v33 = vpack.c.bf16 %v7931_v55, %v7930_v60 }
 0xae3   : > { %17386 = vmatmul.mubr.bf16.gmra.mrb[60].mxu1 %v7537_v36 }
 0xae4   : > { %17398 = vmatpush3.bf16.msra.mxu1 %v18576_v53  ;;  %17389 = vmatprep.mubr.msk.bf16.mxu1 %vm19817_vm0, %v19816_v0 }
 0xae5   : > { %17399 = vmatprep.subr.bf16.mxu1 %v19816_v0 }
 0xae8   : > { %17400 = vmatpush3.bf16.msra.mxu1 %v18577_v57 }
 0xae9   : > { %17401 = vmatprep.subr.bf16.mxu1 %v19816_v0 }
 0xaeb   : > { %17390 = vmatmul.mubr.bf16.gmra.mrb[64].mxu1 %v7538_v24 }
 0xaec   : > { %17402 = vmatpush3.bf16.msra.mxu1 %v18578_v21  ;;  %17409 = vmatprep.mubr.msk.bf16.mxu1 %vm19817_vm0, %v19816_v0  ;;  %v7933_v21 = vld [vmem:[#allocation4 + $0x2e] sm:$0xff] }
 0xaed   : > { %17403 = vmatprep.subr.bf16.mxu1 %v19816_v0 }
 0xaf0   : > { %17404 = vmatpush3.bf16.msra.mxu1 %v18579_v15 }
 0xaf1   : > { %17405 = vmatprep.subr.bf16.mxu1 %v19816_v0 }
 0xaf4   : > { %17406 = vmatpush3.bf16.msra.mxu1 %v18580_v48 }
 0xaf5   : > { %17407 = vmatprep.subr.bf16.mxu1 %v19816_v0 }
 0xaf8   : > { %17408 = vmatpush3.bf16.msra.mxu1 %v18581_v19  ;;  %v7936_v19 = vpack.c.bf16 %v7933_v21, %v7932_v10 }
 0xaf9   : > { %17421 = vmatprep.subr.bf16.mxu1 %v19816_v0 }
 0xafb   : > { %17410 = vmatmul.mubr.bf16.vlgmr.msra.gmra.mrb[68].mxu1 %v7669_v6  ;;  %v7934_v6 = vld [vmem:[#allocation4 + $0x36] sm:$0xff] }
 0xafc   : > { %17422 = vmatpush3.bf16.msra.mxu1 %v18582_v8  ;;  %17413 = vmatprep.mubr.msk.bf16.mxu1 %vm19817_vm0, %v19816_v0 }
 0xafd   : > { %17423 = vmatprep.subr.bf16.mxu1 %v19816_v0 }
 0xb00   : > { %17424 = vmatpush3.bf16.msra.mxu1 %v18583_v62  ;;  %v7937_v62 = vpack.c.bf16 %v7934_v6, %v7934_v6 }
 0xb01   : > { %17425 = vmatprep.subr.bf16.mxu1 %v19816_v0 }
 0xb03   : > { %17414 = vmatmul.mubr.bf16.gmra.mrb[72].mxu1 %v7670_v49 }
 0xb04   : > { %17426 = vmatpush3.bf16.msra.mxu1 %v18584_v42  ;;  %17417 = vmatprep.mubr.msk.bf16.mxu1 %vm19817_vm0, %v19816_v0 }
 0xb05   : > { %17427 = vmatprep.subr.bf16.mxu1 %v19816_v0 }
 0xb08   : > { %17428 = vmatpush3.bf16.msra.mxu1 %v18585_v20 }
 0xb09   : > { %17429 = vmatprep.subr.bf16.mxu1 %v19816_v0 }
 0xb0b   : > { %17418 = vmatmul.mubr.bf16.gmra.mrb[76].mxu1 %v7671_v5 }
 0xb0c   : > { %17430 = vmatpush3.bf16.msra.mxu1 %v18586_v52  ;;  %17437 = vmatprep.mubr.msk.bf16.mxu1 %vm19817_vm0, %v19816_v0 }
 0xb0d   : > { %17431 = vmatprep.subr.bf16.mxu1 %v19816_v0 }
 0xb0e   : > { %v7006_v38 = vpop.f32.mrb[248].mxu1 }
 0xb0f   : > { %v17243_v14 = vpop.f32.mrb[249].mxu1 }
 0xb10   : > { %17432 = vmatpush3.bf16.msra.mxu1 %v18587_v29  ;;  %v7009_v39 = vpop.f32.mrb[250].mxu1 }
 0xb11   : > { %17433 = vmatprep.subr.bf16.mxu1 %v19816_v0  ;;  %v17244_v7 = vpop.f32.mrb[251].mxu1 }
 0xb14   : > { %17434 = vmatpush3.bf16.msra.mxu1 %v18588_v32 }
 0xb15   : > { %17435 = vmatprep.subr.bf16.mxu1 %v19816_v0 }
 0xb16   : > { %v7014_v22 = vpop.f32.mrb[252].mxu1 }
 0xb17   : > { %v17247_v59 = vpop.f32.mrb[253].mxu1 }
 0xb18   : > { %17436 = vmatpush3.bf16.msra.mxu1 %v18589_v34  ;;  %v7017_v4 = vpop.f32.mrb[254].mxu1 }
 0xb19   : > { %17449 = vmatprep.subr.bf16.mxu1 %v19816_v0  ;;  %v17248_v44 = vpop.f32.mrb[255].mxu1 }
 0xb1b   : > { %17438 = vmatmul.mubr.bf16.vlgmr.msra.gmra.mrb[80].mxu1 %v7802_v23 }
 0xb1c   : > { %17450 = vmatpush3.bf16.msra.mxu1 %v18590_v17  ;;  %17441 = vmatprep.mubr.msk.bf16.mxu1 %vm19817_vm0, %v19816_v0 }
 0xb1d   : > { %17451 = vmatprep.subr.bf16.mxu1 %v19816_v0 }
 0xb1e   : > { %v7022_v61 = vpop.f32.mrb[0].mxu1 }
 0xb1f   : > { %v17251_v45 = vpop.f32.mrb[1].mxu1 }
 0xb20   : > { %17452 = vmatpush3.bf16.msra.mxu1 %v18591_v54  ;;  %v7025_v37 = vpop.f32.mrb[2].mxu1 }
 0xb21   : > { %17453 = vmatprep.subr.bf16.mxu1 %v19816_v0  ;;  %v17252_v13 = vpop.f32.mrb[3].mxu1 }
 0xb23   : > { %17442 = vmatmul.mubr.bf16.gmra.mrb[84].mxu1 %v7803_v16 }
 0xb24   : > { %17454 = vmatpush3.bf16.msra.mxu1 %v18592_v27  ;;  %17445 = vmatprep.mubr.msk.bf16.mxu1 %vm19817_vm0, %v19816_v0 }
 0xb25   : > { %17455 = vmatprep.subr.bf16.mxu1 %v19816_v0 }
 0xb28   : > { %17456 = vmatpush3.bf16.msra.mxu1 %v18593_v46 }
 0xb29   : > { %17457 = vmatprep.subr.bf16.mxu1 %v19816_v0 }
 0xb2b   : > { %17446 = vmatmul.mubr.bf16.gmra.mrb[88].mxu1 %v7804_v9 }
 0xb2c   : > { %17458 = vmatpush3.bf16.msra.mxu1 %v18594_v43  ;;  %17465 = vmatprep.mubr.msk.bf16.mxu1 %vm19817_vm0, %v19816_v0 }
 0xb2d   : > { %17459 = vmatprep.subr.bf16.mxu1 %v19816_v0 }
 0xb2e   : > { %v7110_v2 = vpop.f32.mrb[4].mxu1 }
 0xb2f   : > { %v7111_v56 = vadd.f32 %v7110_v2, %v7006_v38  ;;  %v17271_v51 = vpop.f32.mrb[5].mxu1 }
 0xb30   : > { %17460 = vmatpush3.bf16.msra.mxu1 %v18595_v40  ;;  %v7113_v26 = vpop.f32.mrb[6].mxu1 }
 0xb31   : > { %v7114_v58 = vadd.f32 %v7113_v26, %v7009_v39  ;;  %v17272_v1 = vpop.f32.mrb[7].mxu1  ;;  %17461 = vmatprep.subr.bf16.mxu1 %v19816_v0 }
 0xb34   : > { %17462 = vmatpush3.bf16.msra.mxu1 %v18596_v18 }
 0xb35   : > { %17463 = vmatprep.subr.bf16.mxu1 %v19816_v0 }
 0xb36   : > { %v7118_v11 = vpop.f32.mrb[8].mxu1 }
 0xb37   : > { %v7119_v41 = vadd.f32 %v7118_v11, %v7014_v22  ;;  %v17275_v30 = vpop.f32.mrb[9].mxu1 }
 0xb38   : > { %v7121_v3 = vpop.f32.mrb[10].mxu1  ;;  %17464 = vmatpush3.bf16.msra.mxu1 %v18597_v50 }
 0xb39   : > { %v7122_v53 = vadd.f32 %v7121_v3, %v7017_v4  ;;  %v17276_v36 = vpop.f32.mrb[11].mxu1 }
 0xb3a   : > { %v8080_v36 = vld [vmem:[%s23559_s12] sm:$0xff] }
 0xb3b   : > { %17466 = vmatmul.mubr.bf16.vlgmr.msra.gmra.mrb[92].mxu1 %v7935_v33 }
 0xb3c   : > { %17469 = vmatprep.mubr.msk.bf16.mxu1 %vm19817_vm0, %v19816_v0 }
 0xb3e   : > { %v7126_v57 = vpop.f32.mrb[12].mxu1 }
 0xb3f   : > { %v7127_v24 = vadd.f32 %v7126_v57, %v7022_v61  ;;  %v17279_v15 = vpop.f32.mrb[13].mxu1 }
 0xb40   : > { %v7129_v48 = vpop.f32.mrb[14].mxu1 }
 0xb41   : > { %v17280_v8 = vpop.f32.mrb[15].mxu1 }
 0xb42   : > { %v18601_v8 = vld [vmem:[%s23560_s13 + $0xc8] sm:$0xff]  }
 0xb43   : > { %17470 = vmatmul.mubr.bf16.gmra.mrb[96].mxu1 %v7936_v19  ;;  %v18599_v19 = vld [vmem:[%s23560_s13 + $0xc0] sm:$0xff]  }
 0xb44   : > { %17473 = vmatprep.mubr.msk.bf16.mxu1 %vm19817_vm0, %v19816_v0  ;;  %17584 = vmatpush3.bf16.msra.mxu0 %v18599_v19 }
 0xb45   : > { %17585 = vmatprep.subr.bf16.mxu0 %v19816_v0 }
 0xb48   : > { %17586 = vmatpush3.bf16.msra.mxu0 %v18601_v8 }
 0xb49   : > { %17587 = vmatprep.subr.bf16.mxu0 %v19816_v0 }
 0xb4b   : > { %17474 = vmatmul.mubr.bf16.gmra.mrb[100].mxu1 %v7937_v62 }
 0xb4c   : > { %17487 = vmatprep.mubr.msk.f32.mxu1 %vm8088_vm4, %v8080_v36 }
 0xb4e   : > { %v7238_v42 = vpop.f32.mrb[16].mxu1 }
 0xb4f   : > { %v7260_v49 = vadd.f32 %v7238_v42, %v7111_v56  ;;  %v17299_v20 = vpop.f32.mrb[17].mxu1 }
 0xb50   : > { %v7241_v31 = vpop.f32.mrb[18].mxu1 }
 0xb51   : > { %v7261_v52 = vadd.f32 %v7241_v31, %v7114_v58  ;;  %v17300_v5 = vpop.f32.mrb[19].mxu1 }
 0xb52   : > { %v18605_v5 = vld [vmem:[%s23560_s13 + $0xd8] sm:$0xff]  }
 0xb56   : > { %v7246_v29 = vpop.f32.mrb[20].mxu1 }
 0xb57   : > { %v7262_v38 = vadd.f32 %v7246_v29, %v7119_v41  ;;  %v17303_v14 = vpop.f32.mrb[21].mxu1 }
 0xb58   : > { %v7249_v32 = vpop.f32.mrb[22].mxu1 }
 0xb59   : > { %v7263_v39 = vadd.f32 %v7249_v32, %v7122_v53  ;;  %v17304_v7 = vpop.f32.mrb[23].mxu1 }
 0xb5a   : > { %v18607_v7 = vld [vmem:[%s23560_s13 + $0xe0] sm:$0xff]  }
 0xb5e   : > { %v7254_v34 = vpop.f32.mrb[24].mxu1 }
 0xb5f   : > { %v7264_v25 = vadd.f32 %v7254_v34, %v7127_v24  ;;  %v17307_v22 = vpop.f32.mrb[25].mxu1 }
 0xb60   : > { %v7257_v59 = vpop.f32.mrb[26].mxu1 }
 0xb61   : > { %v17308_v35 = vpop.f32.mrb[27].mxu1 }
 0xb6e   : > { %v7371_v17 = vpop.f32.mrb[28].mxu1 }
 0xb6f   : > { %v7393_v4 = vadd.f32 %v7371_v17, %v7260_v49  ;;  %v17327_v23 = vpop.f32.mrb[29].mxu1 }
 0xb70   : > { %v7374_v44 = vpop.f32.mrb[30].mxu1 }
 0xb71   : > { %v7394_v54 = vadd.f32 %v7374_v44, %v7261_v52  ;;  %v17328_v63 = vpop.f32.mrb[31].mxu1  ;;  %v18603_v52 = vld [vmem:[%s23560_s13 + $0xd0] sm:$0xff]  }
 0xb72   : > { %17588 = vmatpush3.bf16.msra.mxu0 %v18603_v52 }
 0xb73   : > { %17589 = vmatprep.subr.bf16.mxu0 %v19816_v0 }
 0xb76   : > { %v7379_v28 = vpop.f32.mrb[32].mxu1  ;;  %17590 = vmatpush3.bf16.msra.mxu0 %v18605_v5 }
 0xb77   : > { %v7395_v61 = vadd.f32 %v7379_v28, %v7262_v38  ;;  %v17331_v45 = vpop.f32.mrb[33].mxu1  ;;  %17591 = vmatprep.subr.bf16.mxu0 %v19816_v0 }
 0xb78   : > { %v7382_v27 = vpop.f32.mrb[34].mxu1 }
 0xb79   : > { %v7396_v37 = vadd.f32 %v7382_v27, %v7263_v39  ;;  %v17332_v16 = vpop.f32.mrb[35].mxu1 }
 0xb7a   : > { %17592 = vmatpush3.bf16.msra.mxu0 %v18607_v7 }
 0xb7b   : > { %17593 = vmatprep.subr.bf16.mxu0 %v19816_v0 }
 0xb7e   : > { %v7387_v13 = vpop.f32.mrb[36].mxu1 }
 0xb7f   : > { %v7397_v46 = vadd.f32 %v7387_v13, %v7264_v25  ;;  %v17335_v47 = vpop.f32.mrb[37].mxu1 }
 0xb80   : > { %v7390_v43 = vpop.f32.mrb[38].mxu1 }
 0xb81   : > { %v17336_v9 = vpop.f32.mrb[39].mxu1 }
 0xb8e   : > { %v7504_v40 = vpop.f32.mrb[40].mxu1 }
 0xb8f   : > { %v7526_v2 = vadd.f32 %v7504_v40, %v7393_v4  ;;  %v17355_v56 = vpop.f32.mrb[41].mxu1 }
 0xb90   : > { %v7507_v51 = vpop.f32.mrb[42].mxu1 }
 0xb91   : > { %v7527_v26 = vadd.f32 %v7507_v51, %v7394_v54  ;;  %v17356_v18 = vpop.f32.mrb[43].mxu1 }
 0xb96   : > { %v7512_v58 = vpop.f32.mrb[48].mxu1 }
 0xb97   : > { %v7528_v1 = vadd.f32 %v7512_v58, %v7395_v61  ;;  %v17359_v50 = vpop.f32.mrb[49].mxu1 }
 0xb98   : > { %v7515_v55 = vpop.f32.mrb[50].mxu1 }
 0xb99   : > { %v7529_v11 = vadd.f32 %v7515_v55, %v7396_v37  ;;  %v17360_v41 = vpop.f32.mrb[51].mxu1 }
 0xb9e   : > { %v7520_v30 = vpop.f32.mrb[52].mxu1 }
 0xb9f   : > { %v7530_v60 = vadd.f32 %v7520_v30, %v7397_v46  ;;  %v17363_v3 = vpop.f32.mrb[53].mxu1 }
 0xba0   : > { %v7523_v33 = vpop.f32.mrb[54].mxu1 }
 0xba1   : > { %v17364_v53 = vpop.f32.mrb[55].mxu1 }
 0xbae   : > { %v7637_v57 = vpop.f32.mrb[56].mxu1 }
 0xbaf   : > { %v7659_v10 = vadd.f32 %v7637_v57, %v7526_v2  ;;  %v17383_v21 = vpop.f32.mrb[57].mxu1 }
 0xbb0   : > { %v7640_v24 = vpop.f32.mrb[58].mxu1 }
 0xbb1   : > { %v7660_v15 = vadd.f32 %v7640_v24, %v7527_v26  ;;  %v17384_v48 = vpop.f32.mrb[59].mxu1 }
 0xbb6   : > { %v7645_v6 = vpop.f32.mrb[60].mxu1 }
 0xbb7   : > { %v7661_v62 = vadd.f32 %v7645_v6, %v7528_v1  ;;  %v17387_v42 = vpop.f32.mrb[61].mxu1 }
 0xbb8   : > { %v7648_v49 = vpop.f32.mrb[62].mxu1 }
 0xbb9   : > { %v7662_v20 = vadd.f32 %v7648_v49, %v7529_v11  ;;  %v17388_v31 = vpop.f32.mrb[63].mxu1 }
 0xbbe   : > { %v7653_v29 = vpop.f32.mrb[64].mxu1 }
 0xbbf   : > { %v7663_v38 = vadd.f32 %v7653_v29, %v7530_v60  ;;  %v17391_v14 = vpop.f32.mrb[65].mxu1  ;;  %v15130_v60 = vld [vmem:[#allocation13] ss:$0 sm:$0xff] }
 0xbc0   : > { %v7656_v32 = vpop.f32.mrb[66].mxu1 }
 0xbc1   : > { %v17392_v39 = vpop.f32.mrb[67].mxu1 }
 0xbce   : > { %v7770_v34 = vpop.f32.mrb[68].mxu1 }
 0xbcf   : > { %v7792_v25 = vadd.f32 %v7770_v34, %v7659_v10  ;;  %v17411_v22 = vpop.f32.mrb[69].mxu1 }
 0xbd0   : > { %v7773_v59 = vpop.f32.mrb[70].mxu1  ;;  %v8081_v22 = vld [vmem:[%s23559_s12 + $0x8] sm:$0xff] }
 0xbd1   : > { %v7793_v35 = vadd.f32 %v7773_v59, %v7660_v15  ;;  %v17412_v17 = vpop.f32.mrb[71].mxu1  ;;  %v18598_v59 = vld [vmem:[%s23560_s13 + $0x40] sm:$0xff]  }
 0xbd2   : > { %v8083_v17 = vld [vmem:[%s23559_s12 + $0x18] sm:$0xff] }
 0xbd6   : > { %v7778_v4 = vpop.f32.mrb[72].mxu1 }
 0xbd7   : > { %v7794_v23 = vadd.f32 %v7778_v4, %v7661_v62  ;;  %v17415_v44 = vpop.f32.mrb[73].mxu1  ;;  %v18600_v4 = vld [vmem:[%s23560_s13 + $0x48] sm:$0xff]  }
 0xbd8   : > { %v7781_v54 = vpop.f32.mrb[74].mxu1  ;;  %v8085_v44 = vld [vmem:[%s23559_s12 + $0x28] sm:$0xff] }
 0xbd9   : > { %v7795_v63 = vadd.f32 %v7781_v54, %v7662_v20  ;;  %v17416_v28 = vpop.f32.mrb[75].mxu1  ;;  %v18602_v54 = vld [vmem:[%s23560_s13 + $0x50] sm:$0xff]  }
 0xbda   : > { %v8087_v28 = vld [vmem:[%s23559_s12 + $0x38] sm:$0xff] }
 0xbde   : > { %v7786_v61 = vpop.f32.mrb[76].mxu1 }
 0xbdf   : > { %v7796_v45 = vadd.f32 %v7786_v61, %v7663_v38  ;;  %v17419_v27 = vpop.f32.mrb[77].mxu1  ;;  %v18604_v61 = vld [vmem:[%s23560_s13 + $0x58] sm:$0xff]  }
 0xbe0   : > { %v7789_v37 = vpop.f32.mrb[78].mxu1  ;;  %v18608_v27 = vld [vmem:[%s23560_s13 + $0x68] sm:$0xff]  }
 0xbe1   : > { %v17420_v16 = vpop.f32.mrb[79].mxu1  ;;  %v18609_v37 = vld [vmem:[%s23560_s13 + $0xe8] sm:$0xff]  }
 0xbe2   : > { %17594 = vmatpush3.bf16.msra.mxu0 %v18609_v37  ;;  %v18610_v16 = vld [vmem:[%s23560_s13 + $0x70] sm:$0xff]   ;;  %v18636_v37 = vld [vmem:[%s23560_s13 + $0x98] sm:$0xff]  }
 0xbe3   : > { %17595 = vmatprep.subr.bf16.mxu0 %v19816_v0 }
 0xbee   : > { %v7903_v13 = vpop.f32.mrb[80].mxu1 }
 0xbef   : > { %v7925_v46 = vadd.f32 %v7903_v13, %v7792_v25  ;;  %v17439_v47 = vpop.f32.mrb[81].mxu1  ;;  %v18611_v13 = vld [vmem:[%s23560_s13 + $0xf0] sm:$0xff]  }
 0xbf0   : > { %v7906_v43 = vpop.f32.mrb[82].mxu1  ;;  %17596 = vmatpush3.bf16.msra.mxu0 %v18611_v13  ;;  %v18613_v47 = vld [vmem:[%s23560_s13 + $0xf8] sm:$0xff]   ;;  %v18638_v13 = vld [vmem:[%s23560_s13 + $0xa0] sm:$0xff]  }
 0xbf1   : > { %v7926_v9 = vadd.f32 %v7906_v43, %v7793_v35  ;;  %v17440_v40 = vpop.f32.mrb[83].mxu1  ;;  %v8082_v35 = vld [vmem:[%s23559_s12 + $0x10] sm:$0xff]  ;;  %17597 = vmatprep.subr.bf16.mxu0 %v19816_v0 }
 0xbf4   : > { %17598 = vmatpush3.bf16.msra.mxu0 %v18613_v47  ;;  %v18639_v47 = vld [vmem:[%s23560_s13 + $0x1e0] sm:$0xff]  }
 0xbf5   : > { %17639 = vmatprep.subr.bf16.mxu0 %v19816_v0 }
 0xbf6   : > { %v7911_v2 = vpop.f32.mrb[84].mxu1 }
 0xbf7   : > { %v7927_v56 = vadd.f32 %v7911_v2, %v7794_v23  ;;  %v17443_v51 = vpop.f32.mrb[85].mxu1  ;;  %v8084_v23 = vld [vmem:[%s23559_s12 + $0x20] sm:$0xff] }
 0xbf8   : > { %v7914_v26 = vpop.f32.mrb[86].mxu1 }
 0xbf9   : > { %v7928_v18 = vadd.f32 %v7914_v26, %v7795_v63  ;;  %v17444_v58 = vpop.f32.mrb[87].mxu1  ;;  %v8086_v63 = vld [vmem:[%s23559_s12 + $0x30] sm:$0xff] }
 0xbfa   : > { %v18614_v58 = vld [vmem:[%s23560_s13] sm:$0xff]  }
 0xbfe   : > { %v7919_v1 = vpop.f32.mrb[88].mxu1 }
 0xbff   : > { %v7929_v50 = vadd.f32 %v7919_v1, %v7796_v45  ;;  %v17447_v55 = vpop.f32.mrb[89].mxu1  ;;  %v18606_v45 = vld [vmem:[%s23560_s13 + $0x60] sm:$0xff]  }
 0xc00   : > { %v7922_v11 = vpop.f32.mrb[90].mxu1 }
 0xc01   : > { %v17448_v41 = vpop.f32.mrb[91].mxu1 }
 0xc0e   : > { %v8036_v30 = vpop.f32.mrb[92].mxu1 }
 0xc0f   : > { %v8058_v3 = vadd.f32 %v8036_v30, %v7925_v46  ;;  %v17467_v33 = vpop.f32.mrb[93].mxu1  ;;  %v18612_v46 = vld [vmem:[%s23560_s13 + $0x78] sm:$0xff]  }
 0xc10   : > { %v8039_v53 = vpop.f32.mrb[94].mxu1 }
 0xc11   : > { %v8070_v36 = vadd.f32 %v15130_v60, %v8058_v3  ;;  %v8059_v57 = vadd.f32 %v8039_v53, %v7926_v9  ;;  %v17468_v10 = vpop.f32.mrb[95].mxu1  ;;  %v18615_v3 = vld [vmem:[%s23560_s13 + $0x140] sm:$0xff]  }
 0xc13   : > { %v8071_v21 = vadd.f32 %v15130_v60, %v8059_v57  ;;  %v8075_v24 = vmax.f32 %v8070_v36, 0.0  ;;  %v18616_v57 = vld [vmem:[%s23560_s13 + $0x8] sm:$0xff]  }
 0xc15   : > { %v8076_v15 = vmax.f32 %v8071_v21, 0.0  ;;  %v18617_v21 = vld [vmem:[%s23560_s13 + $0x148] sm:$0xff]  }
 0xc16   : > { %v8044_v48 = vpop.f32.mrb[96].mxu1 }
 0xc17   : > { %v8060_v19 = vadd.f32 %v8044_v48, %v7927_v56  ;;  %v17471_v8 = vpop.f32.mrb[97].mxu1  ;;  %v17894_v6 = vpack.c.bf16 %v8076_v15, %v8075_v24  ;;  %v18618_v15 = vld [vmem:[%s23560_s13 + $0x10] sm:$0xff]  }
 0xc18   : > { %v8047_v62 = vpop.f32.mrb[98].mxu1 }
 0xc19   : > { %v8072_v42 = vadd.f32 %v15130_v60, %v8060_v19  ;;  %v8061_v49 = vadd.f32 %v8047_v62, %v7928_v18  ;;  %v17472_v20 = vpop.f32.mrb[99].mxu1  ;;  %17895 = vmatprep.subr.bf16.mxu1 %v17894_v6 }
 0xc1a   : > { %17897 = vmatpush3.bf16.msra.mxu1 %v17894_v6  ;;  %v18619_v20 = vld [vmem:[%s23560_s13 + $0x150] sm:$0xff]  }
 0xc1b   : > { %v8073_v31 = vadd.f32 %v15130_v60, %v8061_v49  ;;  %v8077_v52 = vmax.f32 %v8072_v42, 0.0 }
 0xc1d   : > { %v8078_v5 = vmax.f32 %v8073_v31, 0.0 }
 0xc1e   : > { %v8052_v29 = vpop.f32.mrb[100].mxu1 }
 0xc1f   : > { %v8062_v38 = vadd.f32 %v8052_v29, %v7929_v50  ;;  %v17475_v14 = vpop.f32.mrb[101].mxu1  ;;  %v17898_v32 = vpack.c.bf16 %v8078_v5, %v8077_v52  ;;  %v18620_v52 = vld [vmem:[%s23560_s13 + $0x18] sm:$0xff]  }
 0xc20   : > { %v8055_v39 = vpop.f32.mrb[102].mxu1  ;;  %v18621_v29 = vld [vmem:[%s23560_s13 + $0x158] sm:$0xff]  }
 0xc21   : > { %v8074_v7 = vadd.f32 %v15130_v60, %v8062_v38  ;;  %v17476_v34 = vpop.f32.mrb[103].mxu1  ;;  %17899 = vmatprep.subr.bf16.mxu1 %v17898_v32 }
 0xc22   : > { %17901 = vmatpush3.bf16.msra.mxu1 %v17898_v32  ;;  %v18622_v32 = vld [vmem:[%s23560_s13 + $0x20] sm:$0xff]   ;;  %v18624_v34 = vld [vmem:[%s23560_s13 + $0x28] sm:$0xff]  }
 0xc23   : > { %v8079_v25 = vmax.f32 %v8074_v7, 0.0  ;;  %v18623_v7 = vld [vmem:[%s23560_s13 + $0x160] sm:$0xff]  }
 0xc25   : > { %17485 = vmatprep.subr.mxu1 %v8079_v25 }
 0xc26   : > { %17486 = vmatpush3.msra.mxu1 %v8079_v25  ;;  %v18625_v25 = vld [vmem:[%s23560_s13 + $0x168] sm:$0xff]  }
 0xc27   : > { %17488 = vmatmul.mubr.msk.f32.vlgmr.msra.gmra.mrb[246].mxu1 %vm8088_vm4, %v8081_v22  ;;  %17499 = vmatprep.subr.bf16.mxu1 %v19816_v0  ;;  %v18626_v22 = vld [vmem:[%s23560_s13 + $0x30] sm:$0xff]  }
 0xc28   : > { %17490 = vmatprep.mubr.msk.f32.mxu1 %vm8088_vm4, %v8082_v35  ;;  %17500 = vmatpush3.bf16.msra.mxu1 %v18598_v59  ;;  %v18627_v59 = vld [vmem:[%s23560_s13 + $0x170] sm:$0xff]   ;;  %v18628_v35 = vld [vmem:[%s23560_s13 + $0x38] sm:$0xff]  }
 0xc29   : > { %17501 = vmatprep.subr.bf16.mxu1 %v19816_v0 }
 0xc2b   : > { %17491 = vmatmul.mubr.msk.f32.gmra.mrb[44].mxu1 %vm8088_vm4, %v8083_v17  ;;  %v18629_v17 = vld [vmem:[%s23560_s13 + $0x178] sm:$0xff]  }
 0xc2c   : > { %17493 = vmatprep.mubr.msk.f32.mxu1 %vm8088_vm4, %v8084_v23  ;;  %17502 = vmatpush3.bf16.msra.mxu1 %v18600_v4  ;;  %v18630_v23 = vld [vmem:[%s23560_s13 + $0x80] sm:$0xff]  }
 0xc2d   : > { %17503 = vmatprep.subr.bf16.mxu1 %v19816_v0 }
 0xc2f   : > { %17494 = vmatmul.mubr.msk.f32.gmra.mrb[104].mxu1 %vm8088_vm4, %v8085_v44  ;;  %v18631_v44 = vld [vmem:[%s23560_s13 + $0x1c0] sm:$0xff]  }
 0xc30   : > { %17496 = vmatprep.mubr.msk.f32.mxu1 %vm8088_vm4, %v8086_v63  ;;  %17504 = vmatpush3.bf16.msra.mxu1 %v18602_v54  ;;  %v18632_v63 = vld [vmem:[%s23560_s13 + $0x88] sm:$0xff]  }
 0xc31   : > { %17505 = vmatprep.subr.bf16.mxu1 %v19816_v0 }
 0xc33   : > { %17497 = vmatmul.mubr.msk.f32.gmra.mrb[106].mxu1 %vm8088_vm4, %v8087_v28  ;;  %v18633_v28 = vld [vmem:[%s23560_s13 + $0x1c8] sm:$0xff]  }
 0xc34   : > { %17506 = vmatpush3.bf16.msra.mxu1 %v18604_v61  ;;  %17515 = vmatprep.mubr.msk.bf16.mxu1 %vm19817_vm0, %v19816_v0  ;;  %v18634_v61 = vld [vmem:[%s23560_s13 + $0x90] sm:$0xff]  }
 0xc35   : > { %17507 = vmatprep.subr.bf16.mxu1 %v19816_v0 }
 0xc38   : > { %17508 = vmatpush3.bf16.msra.mxu1 %v18606_v45  ;;  %v18635_v45 = vld [vmem:[%s23560_s13 + $0x1d0] sm:$0xff]  }
 0xc39   : > { %17509 = vmatprep.subr.bf16.mxu1 %v19816_v0 }
 0xc3c   : > { %17510 = vmatpush3.bf16.msra.mxu1 %v18608_v27 }
 0xc3d   : > { %17511 = vmatprep.subr.bf16.mxu1 %v19816_v0 }
 0xc40   : > { %17512 = vmatpush3.bf16.msra.mxu1 %v18610_v16  ;;  %v18637_v16 = vld [vmem:[%s23560_s13 + $0x1d8] sm:$0xff]  }
 0xc41   : > { %17513 = vmatprep.subr.bf16.mxu1 %v19816_v0 }
 0xc44   : > { %17514 = vmatpush3.bf16.msra.mxu1 %v18612_v46 }
 0xc45   : > { %17527 = vmatprep.subr.bf16.mxu1 %v19816_v0 }
 0xcfa   : > { %v22042_v43 = vpop.f32.mrb[246].mxu1 }
 0xcfb   : > { %8219 = vst [vmem:[#allocation5 + $0x8] sm:$0xff] %v22042_v43  ;;  %v22045_v9 = vpop.f32.mrb[247].mxu1 }
 0xcfc   : > { %8218 = vst [vmem:[#allocation5] sm:$0xff] %v22045_v9  ;;  %v8231_v40 = vpack.c.bf16 %v22042_v43, %v22045_v9  ;;  %v18640_v9 = vld [vmem:[%s23560_s13 + $0xa8] sm:$0xff]  }
 0xcfe   : > { %v22050_v2 = vpop.f32.mrb[44].mxu1 }
 0xcff   : > { %8221 = vst [vmem:[#allocation5 + $0x18] sm:$0xff] %v22050_v2  ;;  %v22053_v56 = vpop.f32.mrb[45].mxu1 }
 0xd00   : > { %8220 = vst [vmem:[#allocation5 + $0x10] sm:$0xff] %v22053_v56  ;;  %v8232_v51 = vpack.c.bf16 %v22050_v2, %v22053_v56  ;;  %v18642_v2 = vld [vmem:[%s23560_s13 + $0xb0] sm:$0xff]  }
 0xd01   : > { %v18643_v56 = vld [vmem:[%s23560_s13 + $0x1f0] sm:$0xff]  }
 0xd02   : > { %v17495_v26 = vpop.f32.mrb[104].mxu1 }
 0xd03   : > { %8223 = vst [vmem:[#allocation5 + $0x28] sm:$0xff] %v17495_v26  ;;  %v22058_v18 = vpop.f32.mrb[105].mxu1  ;;  %v8250_v50 = vld [vmem:[#allocation5 + $0x1] sm:$0xff] }
 0xd04   : > { %8222 = vst [vmem:[#allocation5 + $0x20] sm:$0xff] %v22058_v18  ;;  %v8233_v46 = vpack.c.bf16 %v22058_v18, %v22058_v18  ;;  %v18645_v26 = vld [vmem:[%s23560_s13 + $0x1f8] sm:$0xff]  }
 0xd05   : > { %v8482_v18 = vld [vmem:[#allocation5 + $0x2] sm:$0xff] }
 0xd06   : > { %v17498_v1 = vpop.f32.mrb[106].mxu1 }
 0xd07   : > { %v8251_v55 = vld [vmem:[#allocation5 + $0x9] sm:$0xff]  ;;  %8225 = vst [vmem:[#allocation5 + $0x38] sm:$0xff] %v17498_v1  ;;  %v8209_v41 = vpop.f32.mrb[107].mxu1  ;;  %v22066_v60 = vld [vmem:[#allocation5 + $0x12] sm:$0xff] }
 0xd08   : > { %v22064_v11 = vld [vmem:[#allocation5 + $0xa] sm:$0xff]  ;;  %v8255_v30 = vpack.c.bf16 %v8251_v55, %v8250_v50  ;;  %8224 = vst [vmem:[#allocation5 + $0x30] sm:$0xff] %v8209_v41  ;;  %v22073_v53 = vld [vmem:[#allocation5 + $0x14] sm:$0xff] }
 0xd09   : > { %v8620_v33 = vpack.c.bf16 %v22066_v60, %v22064_v11  ;;  %v8252_v48 = vld [vmem:[#allocation5 + $0x11] sm:$0xff]  ;;  %v18646_v1 = vld [vmem:[%s23560_s13 + $0x100] sm:$0xff]   ;;  %v8487_v50 = vpack.c.bf16 %v22064_v11, %v8482_v18 }
 0xd0a   : > { %17516 = vmatmul.mubr.bf16.vlgmr.msra.gmra.mrb[108].mxu1 %v8255_v30  ;;  %v8881_v4 = vld [vmem:[#allocation5 + $0xc] sm:$0xff]  ;;  %v9147_v55 = vld [vmem:[#allocation5 + $0x15] sm:$0xff] }
 0xd0b   : > { %17528 = vmatpush3.bf16.msra.mxu1 %v18614_v58  ;;  %v22075_v36 = vld [vmem:[#allocation5 + $0x1c] sm:$0xff]  ;;  %17519 = vmatprep.mubr.msk.bf16.mxu1 %vm19817_vm0, %v19816_v0  ;;  %v22098_v6 = vld [vmem:[#allocation5 + $0x24] sm:$0xff]  ;;  %v8886_v54 = vpack.c.bf16 %v22073_v53, %v8881_v4  ;;  %v18647_v30 = vld [vmem:[%s23560_s13 + $0x108] sm:$0xff]  }
 0xd0c   : > { %17600 = vmatmul.mubr.bf16.vlgmr.msra.gmra.mrb[232].mxu0 %v8620_v33  ;;  %17529 = vmatprep.subr.bf16.mxu1 %v19816_v0  ;;  %v9019_v10 = vpack.c.bf16 %v22075_v36, %v22073_v53  ;;  %v8253_v24 = vld [vmem:[#allocation5 + $0x19] sm:$0xff]  ;;  %v22096_v8 = vld [vmem:[#allocation5 + $0x22] sm:$0xff]  ;;  %v8887_v27 = vpack.c.bf16 %v22098_v6, %v22075_v36 }
 0xd0d   : > { %17640 = vmatpush3.bf16.msra.mxu0 %v18615_v3  ;;  %17603 = vmatprep.mubr.msk.bf16.mxu0 %vm19817_vm0, %v19816_v0  ;;  %v22094_v19 = vld [vmem:[#allocation5 + $0x1a] sm:$0xff]  ;;  %v8256_v42 = vpack.c.bf16 %v8253_v24, %v8252_v48  ;;  %v9149_v11 = vld [vmem:[#allocation5 + $0x25] sm:$0xff]  ;;  %v8489_v48 = vpack.c.bf16 %v22096_v8, %v22096_v8 }
 0xd0e   : > { %17641 = vmatprep.subr.bf16.mxu0 %v19816_v0  ;;  %v8621_v31 = vpack.c.bf16 %v22096_v8, %v22094_v19  ;;  %v8254_v5 = vld [vmem:[#allocation5 + $0x21] sm:$0xff]  ;;  %v18648_v33 = vld [vmem:[%s23560_s13 + $0x110] sm:$0xff]  }
 0xd0f   : > { %17530 = vmatpush3.bf16.msra.mxu1 %v18616_v57  ;;  %v22100_v62 = vld [vmem:[#allocation5 + $0x2c] sm:$0xff]  ;;  %v8257_v14 = vpack.c.bf16 %v8254_v5, %v8254_v5  ;;  %v9148_v58 = vld [vmem:[#allocation5 + $0x1d] sm:$0xff]  ;;  %v8488_v57 = vpack.c.bf16 %v22094_v19, %v22066_v60  ;;  %v9018_v36 = vld [vmem:[#allocation5 + $0x34] sm:$0xff] }
 0xd10   : > { %17531 = vmatprep.subr.bf16.mxu1 %v19816_v0  ;;  %v9020_v49 = vpack.c.bf16 %v22100_v62, %v22098_v6  ;;  %v8619_v38 = vld [vmem:[#allocation5 + $0x2a] sm:$0xff]  ;;  %v8888_v43 = vpack.c.bf16 %v22100_v62, %v22100_v62  ;;  %v9152_v41 = vpack.c.bf16 %v9148_v58, %v9147_v55  ;;  %v18649_v24 = vld [vmem:[%s23560_s13 + $0x118] sm:$0xff]   ;;  %v18652_v8 = vld [vmem:[%s23560_s13 + $0x130] sm:$0xff]  }
 0xd11   : > { %17642 = vmatpush3.bf16.msra.mxu0 %v18617_v21  ;;  %v8622_v39 = vpack.c.bf16 %v8619_v38, %v8619_v38  ;;  %v9150_v3 = vld [vmem:[#allocation5 + $0x2d] sm:$0xff]  ;;  %v18661_v4 = vld [vmem:[%s23560_s13 + $0x1b8] sm:$0xff]   ;;  %v18668_v62 = vld [vmem:[%s23560_s13 + $0x230] sm:$0xff]  }
 0xd12   : > { %17643 = vmatprep.subr.bf16.mxu0 %v19816_v0  ;;  %17520 = vmatmul.mubr.bf16.gmra.mrb[112].mxu1 %v8256_v42  ;;  %v9153_v21 = vpack.c.bf16 %v9150_v3, %v9149_v11  ;;  %v18650_v60 = vld [vmem:[%s23560_s13 + $0x120] sm:$0xff]   ;;  %v18651_v42 = vld [vmem:[%s23560_s13 + $0x128] sm:$0xff]   ;;  %v18665_v53 = vld [vmem:[%s23560_s13 + $0x218] sm:$0xff]  }
 0xd13   : > { %17532 = vmatpush3.bf16.msra.mxu1 %v18618_v15  ;;  %17523 = vmatprep.mubr.msk.bf16.mxu1 %vm19817_vm0, %v19816_v0  ;;  %v9151_v15 = vld [vmem:[#allocation5 + $0x35] sm:$0xff]  ;;  %v18654_v5 = vld [vmem:[%s23560_s13 + $0x180] sm:$0xff]  }
 0xd14   : > { %17533 = vmatprep.subr.bf16.mxu1 %v19816_v0  ;;  %17604 = vmatmul.mubr.bf16.gmra.mrb[236].mxu0 %v8621_v31  ;;  %v9154_v19 = vpack.c.bf16 %v9151_v15, %v9151_v15  ;;  %v8748_v31 = vld [vmem:[#allocation5 + $0xb] sm:$0xff] }
 0xd15   : > { %17644 = vmatpush3.bf16.msra.mxu0 %v18619_v20  ;;  %17607 = vmatprep.mubr.msk.bf16.mxu0 %vm19817_vm0, %v19816_v0  ;;  %v18653_v20 = vld [vmem:[%s23560_s13 + $0x138] sm:$0xff]   ;;  %v18655_v38 = vld [vmem:[%s23560_s13 + $0x188] sm:$0xff]  }
 0xd16   : > { %17645 = vmatprep.subr.bf16.mxu0 %v19816_v0  ;;  %v18667_v6 = vld [vmem:[%s23560_s13 + $0x228] sm:$0xff]  }
 0xd17   : > { %17534 = vmatpush3.bf16.msra.mxu1 %v18620_v52  ;;  %v8749_v52 = vld [vmem:[#allocation5 + $0x13] sm:$0xff] }
 0xd18   : > { %17535 = vmatprep.subr.bf16.mxu1 %v19816_v0 }
 0xd19   : > { %17646 = vmatpush3.bf16.msra.mxu0 %v18621_v29  ;;  %v8753_v29 = vpack.c.bf16 %v8749_v52, %v8748_v31 }
 0xd1a   : > { %17647 = vmatprep.subr.bf16.mxu0 %v19816_v0  ;;  %17524 = vmatmul.mubr.bf16.gmra.mrb[116].mxu1 %v8257_v14  ;;  %v8750_v14 = vld [vmem:[#allocation5 + $0x1b] sm:$0xff] }
 0xd1b   : > { %17536 = vmatpush3.bf16.msra.mxu1 %v18622_v32  ;;  %17543 = vmatprep.mubr.msk.bf16.mxu1 %vm19817_vm0, %v19816_v0  ;;  %v8751_v32 = vld [vmem:[#allocation5 + $0x23] sm:$0xff] }
 0xd1c   : > { %17537 = vmatprep.subr.bf16.mxu1 %v19816_v0  ;;  %17608 = vmatmul.mubr.bf16.gmra.mrb[240].mxu0 %v8622_v39  ;;  %v18656_v39 = vld [vmem:[%s23560_s13 + $0x190] sm:$0xff]  }
 0xd1d   : > { %17648 = vmatpush3.bf16.msra.mxu0 %v18623_v7  ;;  %17655 = vmatprep.mubr.msk.bf16.mxu0 %vm19817_vm0, %v19816_v0  ;;  %v8754_v7 = vpack.c.bf16 %v8751_v32, %v8750_v14 }
 0xd1e   : > { %17649 = vmatprep.subr.bf16.mxu0 %v19816_v0 }
 0xd1f   : > { %17538 = vmatpush3.bf16.msra.mxu1 %v18624_v34  ;;  %v18657_v34 = vld [vmem:[%s23560_s13 + $0x198] sm:$0xff]  }
 0xd20   : > { %17539 = vmatprep.subr.bf16.mxu1 %v19816_v0 }
 0xd21   : > { %17650 = vmatpush3.bf16.msra.mxu0 %v18625_v25  ;;  %v8752_v25 = vld [vmem:[#allocation5 + $0x2b] sm:$0xff] }
 0xd22   : > { %17651 = vmatprep.subr.bf16.mxu0 %v19816_v0 }
 0xd23   : > { %17540 = vmatpush3.bf16.msra.mxu1 %v18626_v22  ;;  %v18658_v22 = vld [vmem:[%s23560_s13 + $0x1a0] sm:$0xff]  }
 0xd24   : > { %17541 = vmatprep.subr.bf16.mxu1 %v19816_v0 }
 0xd25   : > { %17652 = vmatpush3.bf16.msra.mxu0 %v18627_v59  ;;  %v8755_v59 = vpack.c.bf16 %v8752_v25, %v8752_v25 }
 0xd26   : > { %17653 = vmatprep.subr.bf16.mxu0 %v19816_v0 }
 0xd27   : > { %17542 = vmatpush3.bf16.msra.mxu1 %v18628_v35  ;;  %v18659_v35 = vld [vmem:[%s23560_s13 + $0x1a8] sm:$0xff]  }
 0xd28   : > { %17555 = vmatprep.subr.bf16.mxu1 %v19816_v0 }
 0xd29   : > { %17654 = vmatpush3.bf16.msra.mxu0 %v18629_v17  ;;  %v18660_v17 = vld [vmem:[%s23560_s13 + $0x1b0] sm:$0xff]  }
 0xd2a   : > { %17544 = vmatmul.mubr.bf16.vlgmr.msra.gmra.mrb[120].mxu1 %v8231_v40  ;;  %17695 = vmatprep.subr.bf16.mxu0 %v19816_v0  ;;  %v18641_v40 = vld [vmem:[%s23560_s13 + $0x1e8] sm:$0xff]  }
 0xd2b   : > { %17556 = vmatpush3.bf16.msra.mxu1 %v18630_v23  ;;  %17547 = vmatprep.mubr.msk.bf16.mxu1 %vm19817_vm0, %v19816_v0  ;;  %v18662_v23 = vld [vmem:[%s23560_s13 + $0x200] sm:$0xff]  }
 0xd2c   : > { %17656 = vmatmul.mubr.bf16.vlgmr.msra.gmra.mrb[244].mxu0 %v8886_v54  ;;  %17557 = vmatprep.subr.bf16.mxu1 %v19816_v0  ;;  %v18664_v54 = vld [vmem:[%s23560_s13 + $0x210] sm:$0xff]  }
 0xd2d   : > { %17696 = vmatpush3.bf16.msra.mxu0 %v18631_v44  ;;  %17659 = vmatprep.mubr.msk.bf16.mxu0 %vm19817_vm0, %v19816_v0  ;;  %v18663_v44 = vld [vmem:[%s23560_s13 + $0x208] sm:$0xff]  }
 0xd2e   : > { %17697 = vmatprep.subr.bf16.mxu0 %v19816_v0 }
 0xd2f   : > { %17558 = vmatpush3.bf16.msra.mxu1 %v18632_v63  ;;  %v9021_v63 = vpack.c.bf16 %v9018_v36, %v9018_v36 }
 0xd30   : > { %17559 = vmatprep.subr.bf16.mxu1 %v19816_v0 }
 0xd31   : > { %17698 = vmatpush3.bf16.msra.mxu0 %v18633_v28  ;;  %v9281_v28 = vld [vmem:[#allocation5 + $0x1e] sm:$0xff] }
 0xd32   : > { %17548 = vmatmul.mubr.bf16.gmra.mrb[124].mxu1 %v8232_v51  ;;  %17699 = vmatprep.subr.bf16.mxu0 %v19816_v0  ;;  %v18644_v51 = vld [vmem:[%s23560_s13 + $0xb8] sm:$0xff]  }
 0xd33   : > { %17560 = vmatpush3.bf16.msra.mxu1 %v18634_v61  ;;  %17551 = vmatprep.mubr.msk.bf16.mxu1 %vm19817_vm0, %v19816_v0  ;;  %v9280_v61 = vld [vmem:[#allocation5 + $0x16] sm:$0xff] }
 0xd34   : > { %17660 = vmatmul.mubr.bf16.gmra.mrb[248].mxu0 %v8887_v27  ;;  %17561 = vmatprep.subr.bf16.mxu1 %v19816_v0  ;;  %v9282_v27 = vld [vmem:[#allocation5 + $0x26] sm:$0xff] }
 0xd35   : > { %17700 = vmatpush3.bf16.msra.mxu0 %v18635_v45  ;;  %17663 = vmatprep.mubr.msk.bf16.mxu0 %vm19817_vm0, %v19816_v0  ;;  %v9285_v45 = vpack.c.bf16 %v9281_v28, %v9280_v61 }
 0xd36   : > { %17701 = vmatprep.subr.bf16.mxu0 %v19816_v0 }
 0xd37   : > { %17562 = vmatpush3.bf16.msra.mxu1 %v18636_v37  ;;  %v9283_v37 = vld [vmem:[#allocation5 + $0x2e] sm:$0xff] }
 0xd38   : > { %17563 = vmatprep.subr.bf16.mxu1 %v19816_v0 }
 0xd39   : > { %17702 = vmatpush3.bf16.msra.mxu0 %v18637_v16  ;;  %v9286_v16 = vpack.c.bf16 %v9283_v37, %v9282_v27 }
 0xd3a   : > { %17703 = vmatprep.subr.bf16.mxu0 %v19816_v0  ;;  %17552 = vmatmul.mubr.bf16.gmra.mrb[128].mxu1 %v8233_v46 }
 0xd3b   : > { %17564 = vmatpush3.bf16.msra.mxu1 %v18638_v13  ;;  %17571 = vmatprep.mubr.msk.bf16.mxu1 %vm19817_vm0, %v19816_v0  ;;  %v9284_v13 = vld [vmem:[#allocation5 + $0x36] sm:$0xff] }
 0xd3c   : > { %17565 = vmatprep.subr.bf16.mxu1 %v19816_v0  ;;  %17664 = vmatmul.mubr.bf16.gmra.mrb[252].mxu0 %v8888_v43  ;;  %v9287_v46 = vpack.c.bf16 %v9284_v13, %v9284_v13 }
 0xd3d   : > { %17704 = vmatpush3.bf16.msra.mxu0 %v18639_v47  ;;  %17711 = vmatprep.mubr.msk.bf16.mxu0 %vm19817_vm0, %v19816_v0 }
 0xd3e   : > { %17705 = vmatprep.subr.bf16.mxu0 %v19816_v0 }
 0xd3f   : > { %17566 = vmatpush3.bf16.msra.mxu1 %v18640_v9 }
 0xd40   : > { %17567 = vmatprep.subr.bf16.mxu1 %v19816_v0 }
 0xd41   : > { %17706 = vmatpush3.bf16.msra.mxu0 %v18641_v40 }
 0xd42   : > { %17707 = vmatprep.subr.bf16.mxu0 %v19816_v0 }
 0xd43   : > { %17568 = vmatpush3.bf16.msra.mxu1 %v18642_v2 }
 0xd44   : > { %17569 = vmatprep.subr.bf16.mxu1 %v19816_v0 }
 0xd45   : > { %17708 = vmatpush3.bf16.msra.mxu0 %v18643_v56 }
 0xd46   : > { %17709 = vmatprep.subr.bf16.mxu0 %v19816_v0 }
 0xd47   : > { %17570 = vmatpush3.bf16.msra.mxu1 %v18644_v51 }
 0xd48   : > { %17611 = vmatprep.subr.bf16.mxu1 %v19816_v0 }
 0xd49   : > { %17710 = vmatpush3.bf16.msra.mxu0 %v18645_v26 }
 0xd4a   : > { %17572 = vmatmul.mubr.bf16.vlgmr.msra.gmra.mrb[132].mxu1 %v8487_v50  ;;  %17902 = vmatprep.subr.bf16.mxu0 %v19818_v12 }
 0xd4b   : > { %17612 = vmatpush3.bf16.msra.mxu1 %v18646_v1  ;;  %17575 = vmatprep.mubr.msk.bf16.mxu1 %vm19817_vm0, %v19816_v0 }
 0xd4c   : > { %17712 = vmatmul.mubr.bf16.vlgmr.msra.gmra.mrb[0].mxu0 %v9152_v41  ;;  %17613 = vmatprep.subr.bf16.mxu1 %v19816_v0 }
 0xd4d   : > { %17715 = vmatprep.mubr.msk.bf16.mxu0 %vm19817_vm0, %v19816_v0 }
 0xd4f   : > { %17614 = vmatpush3.bf16.msra.mxu1 %v18647_v30 }
 0xd50   : > { %17615 = vmatprep.subr.bf16.mxu1 %v19816_v0 }
 0xd52   : > { %17576 = vmatmul.mubr.bf16.gmra.mrb[136].mxu1 %v8488_v57 }
 0xd53   : > { %17616 = vmatpush3.bf16.msra.mxu1 %v18648_v33  ;;  %17579 = vmatprep.mubr.msk.bf16.mxu1 %vm19817_vm0, %v19816_v0 }
 0xd54   : > { %17716 = vmatmul.mubr.bf16.gmra.mrb[4].mxu0 %v9153_v21  ;;  %17617 = vmatprep.subr.bf16.mxu1 %v19816_v0 }
 0xd55   : > { %17719 = vmatprep.mubr.msk.bf16.mxu0 %vm19817_vm0, %v19816_v0 }
 0xd57   : > { %17618 = vmatpush3.bf16.msra.mxu1 %v18649_v24 }
 0xd58   : > { %17619 = vmatprep.subr.bf16.mxu1 %v19816_v0 }
 0xd5a   : > { %17580 = vmatmul.mubr.bf16.gmra.mrb[140].mxu1 %v8489_v48 }
 0xd5b   : > { %17620 = vmatpush3.bf16.msra.mxu1 %v18650_v60  ;;  %17627 = vmatprep.mubr.msk.bf16.mxu1 %vm19817_vm0, %v19816_v0 }
 0xd5c   : > { %17621 = vmatprep.subr.bf16.mxu1 %v19816_v0  ;;  %17720 = vmatmul.mubr.bf16.gmra.mrb[8].mxu0 %v9154_v19 }
 0xd5d   : > { %17761 = vmatprep.mubr.msk.f32.mxu0 %vm19817_vm0, %v19816_v0 }
 0xd5f   : > { %17622 = vmatpush3.bf16.msra.mxu1 %v18651_v42 }
 0xd60   : > { %17623 = vmatprep.subr.bf16.mxu1 %v19816_v0 }
 0xd63   : > { %17624 = vmatpush3.bf16.msra.mxu1 %v18652_v8 }
 0xd64   : > { %17625 = vmatprep.subr.bf16.mxu1 %v19816_v0 }
 0xd67   : > { %17626 = vmatpush3.bf16.msra.mxu1 %v18653_v20 }
 0xd68   : > { %17667 = vmatprep.subr.bf16.mxu1 %v19816_v0 }
 0xd6a   : > { %17628 = vmatmul.mubr.bf16.vlgmr.msra.gmra.mrb[144].mxu1 %v8753_v29 }
 0xd6b   : > { %17668 = vmatpush3.bf16.msra.mxu1 %v18654_v5  ;;  %17631 = vmatprep.mubr.msk.bf16.mxu1 %vm19817_vm0, %v19816_v0 }
 0xd6c   : > { %17669 = vmatprep.subr.bf16.mxu1 %v19816_v0 }
 0xd6f   : > { %17670 = vmatpush3.bf16.msra.mxu1 %v18655_v38 }
 0xd70   : > { %17671 = vmatprep.subr.bf16.mxu1 %v19816_v0 }
 0xd72   : > { %17632 = vmatmul.mubr.bf16.gmra.mrb[148].mxu1 %v8754_v7 }
 0xd73   : > { %17672 = vmatpush3.bf16.msra.mxu1 %v18656_v39  ;;  %17635 = vmatprep.mubr.msk.bf16.mxu1 %vm19817_vm0, %v19816_v0 }
 0xd74   : > { %17673 = vmatprep.subr.bf16.mxu1 %v19816_v0 }
 0xd77   : > { %17674 = vmatpush3.bf16.msra.mxu1 %v18657_v34 }
 0xd78   : > { %17675 = vmatprep.subr.bf16.mxu1 %v19816_v0 }
 0xd7a   : > { %17636 = vmatmul.mubr.bf16.gmra.mrb[152].mxu1 %v8755_v59 }
 0xd7b   : > { %17676 = vmatpush3.bf16.msra.mxu1 %v18658_v22  ;;  %17683 = vmatprep.mubr.msk.bf16.mxu1 %vm19817_vm0, %v19816_v0 }
 0xd7c   : > { %17677 = vmatprep.subr.bf16.mxu1 %v19816_v0 }
 0xd7f   : > { %17678 = vmatpush3.bf16.msra.mxu1 %v18659_v35 }
 0xd80   : > { %17679 = vmatprep.subr.bf16.mxu1 %v19816_v0 }
 0xd83   : > { %17680 = vmatpush3.bf16.msra.mxu1 %v18660_v17 }
 0xd84   : > { %17681 = vmatprep.subr.bf16.mxu1 %v19816_v0 }
 0xd87   : > { %17682 = vmatpush3.bf16.msra.mxu1 %v18661_v4 }
 0xd88   : > { %17723 = vmatprep.subr.bf16.mxu1 %v19816_v0 }
 0xd8a   : > { %17684 = vmatmul.mubr.bf16.vlgmr.msra.gmra.mrb[156].mxu1 %v9019_v10  ;;  %v18666_v10 = vld [vmem:[%s23560_s13 + $0x220] sm:$0xff]  }
 0xd8b   : > { %17724 = vmatpush3.bf16.msra.mxu1 %v18662_v23  ;;  %17687 = vmatprep.mubr.msk.bf16.mxu1 %vm19817_vm0, %v19816_v0 }
 0xd8c   : > { %17725 = vmatprep.subr.bf16.mxu1 %v19816_v0 }
 0xd8f   : > { %17726 = vmatpush3.bf16.msra.mxu1 %v18663_v44 }
 0xd90   : > { %17727 = vmatprep.subr.bf16.mxu1 %v19816_v0 }
 0xd92   : > { %17688 = vmatmul.mubr.bf16.gmra.mrb[160].mxu1 %v9020_v49  ;;  %v18669_v49 = vld [vmem:[%s23560_s13 + $0x238] sm:$0xff]  }
 0xd93   : > { %17728 = vmatpush3.bf16.msra.mxu1 %v18664_v54  ;;  %17691 = vmatprep.mubr.msk.bf16.mxu1 %vm19817_vm0, %v19816_v0 }
 0xd94   : > { %17729 = vmatprep.subr.bf16.mxu1 %v19816_v0 }
 0xd97   : > { %17730 = vmatpush3.bf16.msra.mxu1 %v18665_v53 }
 0xd98   : > { %17731 = vmatprep.subr.bf16.mxu1 %v19816_v0 }
 0xd9a   : > { %17692 = vmatmul.mubr.bf16.gmra.mrb[164].mxu1 %v9021_v63 }
 0xd9b   : > { %17732 = vmatpush3.bf16.msra.mxu1 %v18666_v10  ;;  %17739 = vmatprep.mubr.msk.bf16.mxu1 %vm19817_vm0, %v19816_v0 }
 0xd9c   : > { %17733 = vmatprep.subr.bf16.mxu1 %v19816_v0 }
 0xd9f   : > { %17734 = vmatpush3.bf16.msra.mxu1 %v18667_v6 }
 0xda0   : > { %17735 = vmatprep.subr.bf16.mxu1 %v19816_v0 }
 0xda3   : > { %17736 = vmatpush3.bf16.msra.mxu1 %v18668_v62 }
 0xda4   : > { %17737 = vmatprep.subr.bf16.mxu1 %v19816_v0 }
 0xda7   : > { %17738 = vmatpush3.bf16.msra.mxu1 %v18669_v49 }
 0xdaa   : > { %17740 = vmatmul.mubr.bf16.vlgmr.msra.gmra.mrb[168].mxu1 %v9285_v45 }
 0xdab   : > { %17743 = vmatprep.mubr.msk.bf16.mxu1 %vm19817_vm0, %v19816_v0 }
 0xdb2   : > { %17744 = vmatmul.mubr.bf16.gmra.mrb[172].mxu1 %v9286_v16 }
 0xdb3   : > { %17747 = vmatprep.mubr.msk.bf16.mxu1 %vm19817_vm0, %v19816_v0 }
 0xdba   : > { %17748 = vmatmul.mubr.bf16.gmra.mrb[176].mxu1 %v9287_v46 }
 0xddd   : > { %v8356_v47 = vpop.f32.mrb[108].mxu1 }
 0xdde   : > { %v17517_v43 = vpop.f32.mrb[109].mxu1 }
 0xddf   : > { %v8721_v9 = vpop.f32.mrb[232].mxu0  ;;  %v8359_v40 = vpop.f32.mrb[110].mxu1 }
 0xde0   : > { %v17601_v2 = vpop.f32.mrb[233].mxu0  ;;  %v17518_v56 = vpop.f32.mrb[111].mxu1 }
 0xde1   : > { %v8724_v51 = vpop.f32.mrb[234].mxu0 }
 0xde2   : > { %v17602_v26 = vpop.f32.mrb[235].mxu0 }
 0xde5   : > { %v8364_v18 = vpop.f32.mrb[112].mxu1 }
 0xde6   : > { %v17521_v58 = vpop.f32.mrb[113].mxu1 }
 0xde7   : > { %v22384_v1 = vpop.f32.mrb[236].mxu0  ;;  %v8367_v50 = vpop.f32.mrb[114].mxu1 }
 0xde8   : > { %v17605_v55 = vpop.f32.mrb[237].mxu0  ;;  %v17522_v41 = vpop.f32.mrb[115].mxu1 }
 0xde9   : > { %v8732_v30 = vpop.f32.mrb[238].mxu0 }
 0xdea   : > { %v17606_v11 = vpop.f32.mrb[239].mxu0 }
 0xded   : > { %v8372_v3 = vpop.f32.mrb[116].mxu1 }
 0xdee   : > { %v17525_v33 = vpop.f32.mrb[117].mxu1 }
 0xdef   : > { %v22386_v57 = vpop.f32.mrb[240].mxu0  ;;  %v8375_v21 = vpop.f32.mrb[118].mxu1 }
 0xdf0   : > { %v17609_v24 = vpop.f32.mrb[241].mxu0  ;;  %v17526_v15 = vpop.f32.mrb[119].mxu1 }
 0xdf1   : > { %v8740_v60 = vpop.f32.mrb[242].mxu0  ;;  %v18672_v24 = vld [vmem:[%s23563_s16 + $0x84] ss:$8 sps:$4 sm:$0xff]  }
 0xdf2   : > { %v17610_v48 = vpop.f32.mrb[243].mxu0  ;;  %9709 = vmatprep.subr.bf16.mxu1 %v18672_v24 }
 0xdfd   : > { %v8460_v19 = vpop.f32.mrb[120].mxu1 }
 0xdfe   : > { %v8461_v42 = vadd.f32 %v8460_v19, %v8356_v47  ;;  %v17545_v8 = vpop.f32.mrb[121].mxu1 }
 0xdff   : > { %v22388_v20 = vpop.f32.mrb[244].mxu0  ;;  %v8463_v31 = vpop.f32.mrb[122].mxu1 }
 0xe00   : > { %v17657_v52 = vpop.f32.mrb[245].mxu0  ;;  %v8464_v5 = vadd.f32 %v8463_v31, %v8359_v40  ;;  %v17546_v29 = vpop.f32.mrb[123].mxu1  ;;  %v18673_v31 = vld [vmem:[%s23563_s16 + $0x90] ss:$8 sps:$4 sm:$0xff]  }
 0xe01   : > { %v22390_v38 = vpop.f32.mrb[246].mxu0  ;;  %v18675_v52 = vld [vmem:[%s23563_s16 + $0x94] ss:$8 sps:$4 sm:$0xff]   ;;  %v18678_v29 = vld [vmem:[%s23563_s16 + $0xa4] ss:$8 sps:$4 sm:$0xff]  }
 0xe02   : > { %v17658_v14 = vpop.f32.mrb[247].mxu0 }
 0xe03   : > { %v18681_v14 = vld [vmem:[%s23563_s16 + $0xb4] ss:$8 sps:$4 sm:$0xff]  }
 0xe05   : > { %v8468_v32 = vpop.f32.mrb[124].mxu1 }
 0xe06   : > { %v8469_v39 = vadd.f32 %v8468_v32, %v8364_v18  ;;  %v17549_v7 = vpop.f32.mrb[125].mxu1  ;;  %v18679_v32 = vld [vmem:[%s23563_s16 + $0xb0] ss:$8 sps:$4 sm:$0xff]  }
 0xe07   : > { %v22392_v34 = vpop.f32.mrb[248].mxu0  ;;  %v8471_v25 = vpop.f32.mrb[126].mxu1  ;;  %v18682_v7 = vld [vmem:[%s23563_s16 + $0xc0] ss:$8 sps:$4 sm:$0xff]  }
 0xe08   : > { %v17661_v22 = vpop.f32.mrb[249].mxu0  ;;  %v8472_v59 = vadd.f32 %v8471_v25, %v8367_v50  ;;  %v17550_v35 = vpop.f32.mrb[127].mxu1 }
 0xe09   : > { %v22394_v17 = vpop.f32.mrb[250].mxu0 }
 0xe0a   : > { %v17662_v4 = vpop.f32.mrb[251].mxu0 }
 0xe0d   : > { %v8476_v23 = vpop.f32.mrb[128].mxu1 }
 0xe0e   : > { %v8477_v44 = vadd.f32 %v8476_v23, %v8372_v3  ;;  %v17553_v54 = vpop.f32.mrb[129].mxu1 }
 0xe0f   : > { %v22396_v53 = vpop.f32.mrb[252].mxu0  ;;  %v8479_v36 = vpop.f32.mrb[130].mxu1 }
 0xe10   : > { %v17665_v10 = vpop.f32.mrb[253].mxu0  ;;  %v17554_v63 = vpop.f32.mrb[131].mxu1 }
 0xe11   : > { %v9006_v6 = vpop.f32.mrb[254].mxu0 }
 0xe12   : > { %v17666_v62 = vpop.f32.mrb[255].mxu0 }
 0xe1d   : > { %v8588_v49 = vpop.f32.mrb[132].mxu1 }
 0xe1e   : > { %v8610_v28 = vadd.f32 %v8588_v49, %v8461_v42  ;;  %v17573_v61 = vpop.f32.mrb[133].mxu1 }
 0xe1f   : > { %v22398_v45 = vpop.f32.mrb[0].mxu0  ;;  %v8591_v27 = vpop.f32.mrb[134].mxu1 }
 0xe20   : > { %v17713_v37 = vpop.f32.mrb[1].mxu0  ;;  %v8611_v16 = vadd.f32 %v8591_v27, %v8464_v5  ;;  %v17574_v13 = vpop.f32.mrb[135].mxu1  ;;  %v8743_v46 = vadd.f32 %v8721_v9, %v8610_v28 }
 0xe21   : > { %v22400_v47 = vpop.f32.mrb[2].mxu0 }
 0xe22   : > { %v17714_v43 = vpop.f32.mrb[3].mxu0  ;;  %v8744_v40 = vadd.f32 %v8724_v51, %v8611_v16  ;;  %v18670_v51 = vld [vmem:[%s23563_s16 + $0x80] ss:$8 sps:$4 sm:$0xff]  }
 0xe23   : > { %9710 = vmatpush1.bf16.msra.mxu1 %v18670_v51 }
 0xe24   : > { %9711 = vmatprep.subr.bf16.mxu1 %v18675_v52 }
 0xe25   : > { %v8596_v2 = vpop.f32.mrb[136].mxu1 }
 0xe26   : > { %v8612_v56 = vadd.f32 %v8596_v2, %v8469_v39  ;;  %v17577_v26 = vpop.f32.mrb[137].mxu1  ;;  %v18684_v39 = vld [vmem:[%s23563_s16 + $0xc4] ss:$8 sps:$4 sm:$0xff]  }
 0xe27   : > { %v22402_v18 = vpop.f32.mrb[4].mxu0  ;;  %v8599_v58 = vpop.f32.mrb[138].mxu1  ;;  %9712 = vmatpush1.bf16.msra.mxu1 %v18673_v31 }
 0xe28   : > { %v17717_v50 = vpop.f32.mrb[5].mxu0  ;;  %v8613_v55 = vadd.f32 %v8599_v58, %v8472_v59  ;;  %v17578_v41 = vpop.f32.mrb[139].mxu1  ;;  %v8745_v11 = vadd.f32 %v22384_v1, %v8612_v56  ;;  %9713 = vmatprep.subr.bf16.mxu1 %v18678_v29 }
 0xe29   : > { %v22405_v3 = vpop.f32.mrb[6].mxu0 }
 0xe2a   : > { %v17718_v33 = vpop.f32.mrb[7].mxu0  ;;  %v8746_v21 = vadd.f32 %v8732_v30, %v8613_v55 }
 0xe2d   : > { %v8604_v9 = vpop.f32.mrb[140].mxu1 }
 0xe2e   : > { %v8614_v15 = vadd.f32 %v8604_v9, %v8477_v44  ;;  %v17581_v60 = vpop.f32.mrb[141].mxu1 }
 0xe2f   : > { %v8607_v48 = vpop.f32.mrb[142].mxu1  ;;  %v22413_v19 = vpop.f32.mrb[8].mxu0 }
 0xe30   : > { %v17582_v1 = vpop.f32.mrb[143].mxu1  ;;  %v8747_v42 = vadd.f32 %v22386_v57, %v8614_v15  ;;  %v17721_v8 = vpop.f32.mrb[9].mxu0  ;;  %v18676_v57 = vld [vmem:[%s23563_s16 + $0xa0] ss:$8 sps:$4 sm:$0xff]  }
 0xe31   : > { %v9272_v30 = vpop.f32.mrb[10].mxu0  ;;  %9714 = vmatpush1.bf16.msra.mxu1 %v18676_v57  ;;  %v15211_v1 = vld [vmem:[#allocation15] ss:$0 sm:$0xff] }
 0xe32   : > { %v17722_v5 = vpop.f32.mrb[11].mxu0  ;;  %9715 = vmatprep.subr.bf16.mxu1 %v18681_v14 }
 0xe35   : > { %9716 = vmatpush1.bf16.msra.mxu1 %v18679_v32 }
 0xe36   : > { %9717 = vmatprep.subr.bf16.mxu1 %v18684_v39 }
 0xe39   : > { %9718 = vmatpush1.bf16.msra.mxu1 %v18682_v7 }
 0xe3d   : > { %v8854_v25 = vpop.f32.mrb[144].mxu1 }
 0xe3e   : > { %v8876_v22 = vadd.f32 %v8854_v25, %v8743_v46  ;;  %v17629_v59 = vpop.f32.mrb[145].mxu1 }
 0xe3f   : > { %v8857_v35 = vpop.f32.mrb[146].mxu1 }
 0xe40   : > { %v8877_v4 = vadd.f32 %v8857_v35, %v8744_v40  ;;  %v17630_v23 = vpop.f32.mrb[147].mxu1  ;;  %v9009_v44 = vadd.f32 %v22388_v20, %v8876_v22 }
 0xe42   : > { %v9010_v54 = vadd.f32 %v22390_v38, %v8877_v4 }
 0xe45   : > { %v8862_v36 = vpop.f32.mrb[148].mxu1 }
 0xe46   : > { %v8878_v10 = vadd.f32 %v8862_v36, %v8745_v11  ;;  %v17633_v63 = vpop.f32.mrb[149].mxu1 }
 0xe47   : > { %v8865_v6 = vpop.f32.mrb[150].mxu1 }
 0xe48   : > { %v8879_v62 = vadd.f32 %v8865_v6, %v8746_v21  ;;  %v17634_v49 = vpop.f32.mrb[151].mxu1  ;;  %v9011_v28 = vadd.f32 %v22392_v34, %v8878_v10 }
 0xe49   : > { %v9432_v49 = vld [vmem:[%s23562_s15 + $0x10] sm:$0xff] }
 0xe4a   : > { %v9012_v61 = vadd.f32 %v22394_v17, %v8879_v62  ;;  %v9430_v62 = vld [vmem:[%s23562_s15] sm:$0xff] }
 0xe4d   : > { %v8870_v27 = vpop.f32.mrb[152].mxu1 }
 0xe4e   : > { %v8880_v37 = vadd.f32 %v8870_v27, %v8747_v42  ;;  %v17637_v16 = vpop.f32.mrb[153].mxu1  ;;  %v9435_v27 = vld [vmem:[%s23562_s15 + $0x28] sm:$0xff] }
 0xe4f   : > { %v8873_v13 = vpop.f32.mrb[154].mxu1  ;;  %v9437_v16 = vld [vmem:[%s23562_s15 + $0x38] sm:$0xff] }
 0xe50   : > { %v17638_v46 = vpop.f32.mrb[155].mxu1  ;;  %v9013_v20 = vadd.f32 %v22396_v53, %v8880_v37  ;;  %v9436_v37 = vld [vmem:[%s23562_s15 + $0x30] sm:$0xff] }
 0xe51   : > { %v18687_v13 = vld [vmem:[%s23563_s16 + $0xd4] ss:$8 sps:$4 sm:$0xff]   ;;  %v18685_v46 = vld [vmem:[%s23563_s16 + $0xd0] ss:$8 sps:$4 sm:$0xff]  }
 0xe52   : > { %9719 = vmatprep.subr.bf16.mxu1 %v18687_v13  ;;  %v18741_v13 = vld [vmem:[%s23563_s16 + $0x174] ss:$8 sps:$4 sm:$0xff]  }
 0xe53   : > { %9720 = vmatpush1.bf16.msra.mxu1 %v18685_v46  ;;  %v18739_v46 = vld [vmem:[%s23563_s16 + $0x170] ss:$8 sps:$4 sm:$0xff]  }
 0xe5d   : > { %v9120_v43 = vpop.f32.mrb[156].mxu1 }
 0xe5e   : > { %v9142_v40 = vadd.f32 %v9120_v43, %v9009_v44  ;;  %v17685_v38 = vpop.f32.mrb[157].mxu1  ;;  %v18688_v43 = vld [vmem:[%s23563_s16 + $0xe0] ss:$8 sps:$4 sm:$0xff]  }
 0xe5f   : > { %v9123_v2 = vpop.f32.mrb[158].mxu1  ;;  %v18691_v38 = vld [vmem:[%s23563_s16 + $0xf0] ss:$8 sps:$4 sm:$0xff]  }
 0xe60   : > { %v9143_v56 = vadd.f32 %v9123_v2, %v9010_v54  ;;  %v17686_v26 = vpop.f32.mrb[159].mxu1  ;;  %v9275_v58 = vadd.f32 %v22398_v45, %v9142_v40  ;;  %v18693_v40 = vld [vmem:[%s23563_s16 + $0xf4] ss:$8 sps:$4 sm:$0xff]   ;;  %v18696_v2 = vld [vmem:[%s23563_s16 + $0x4] ss:$8 sps:$4 sm:$0xff]  }
 0xe61   : > { %v9438_v26 = vld [vmem:[%s23562_s15 + $0x40] sm:$0xff] }
 0xe62   : > { %v9276_v50 = vadd.f32 %v22400_v47, %v9143_v56  ;;  %v19819_v56 = vmov 0  }
 0xe63   : > { %9741 = vmatprep.mubr.bf16.mxu1 %v19819_v56 }
 0xe65   : > { %v9128_v34 = vpop.f32.mrb[160].mxu1 }
 0xe66   : > { %v9144_v55 = vadd.f32 %v9128_v34, %v9011_v28  ;;  %v17689_v17 = vpop.f32.mrb[161].mxu1  ;;  %v9433_v28 = vld [vmem:[%s23562_s15 + $0x18] sm:$0xff] }
 0xe67   : > { %v9131_v41 = vpop.f32.mrb[162].mxu1 }
 0xe68   : > { %v9145_v11 = vadd.f32 %v9131_v41, %v9012_v61  ;;  %v17690_v33 = vpop.f32.mrb[163].mxu1  ;;  %v9277_v21 = vadd.f32 %v22402_v18, %v9144_v55  ;;  %v9434_v61 = vld [vmem:[%s23562_s15 + $0x20] sm:$0xff] }
 0xe6a   : > { %v9278_v53 = vadd.f32 %v22405_v3, %v9145_v11 }
 0xe6d   : > { %v9136_v9 = vpop.f32.mrb[164].mxu1 }
 0xe6e   : > { %v9146_v51 = vadd.f32 %v9136_v9, %v9013_v20  ;;  %v17693_v24 = vpop.f32.mrb[165].mxu1  ;;  %v18690_v20 = vld [vmem:[%s23563_s16 + $0xe4] ss:$8 sps:$4 sm:$0xff]  }
 0xe6f   : > { %v9139_v15 = vpop.f32.mrb[166].mxu1  ;;  %9721 = vmatprep.subr.bf16.mxu1 %v18690_v20  ;;  %v18694_v24 = vld [vmem:[%s23563_s16] ss:$8 sps:$4 sm:$0xff]   ;;  %v18744_v20 = vld [vmem:[%s23563_s16 + $0x184] ss:$8 sps:$4 sm:$0xff]  }
 0xe70   : > { %v9279_v60 = vadd.f32 %v22413_v19, %v9146_v51  ;;  %v17694_v48 = vpop.f32.mrb[167].mxu1  ;;  %9722 = vmatpush1.bf16.msra.mxu1 %v18688_v43 }
 0xe71   : > { %9723 = vmatprep.subr.bf16.mxu1 %v18693_v40  ;;  %v18699_v48 = vld [vmem:[%s23563_s16 + $0x14] ss:$8 sps:$4 sm:$0xff]  }
 0xe74   : > { %9724 = vmatpush1.bf16.msra.mxu1 %v18691_v38  ;;  %v18742_v38 = vld [vmem:[%s23563_s16 + $0x180] ss:$8 sps:$4 sm:$0xff]  }
 0xe75   : > { %9842 = vmatprep.subr.bf16.mxu1 %v18696_v2 }
 0xe7d   : > { %v9386_v45 = vpop.f32.mrb[168].mxu1 }
 0xe7e   : > { %v9408_v47 = vadd.f32 %v9386_v45, %v9275_v58  ;;  %v17741_v42 = vpop.f32.mrb[169].mxu1 }
 0xe7f   : > { %v9389_v8 = vpop.f32.mrb[170].mxu1  ;;  %v18702_v42 = vld [vmem:[%s23563_s16 + $0x24] ss:$8 sps:$4 sm:$0xff]  }
 0xe80   : > { %v9420_v30 = vadd.f32 %v15211_v1, %v9408_v47  ;;  %v9409_v31 = vadd.f32 %v9389_v8, %v9276_v50  ;;  %v17742_v52 = vpop.f32.mrb[171].mxu1 }
 0xe82   : > { %v9421_v5 = vadd.f32 %v15211_v1, %v9409_v31  ;;  %v9425_v29 = vmax.f32 %v9420_v30, 0.0  ;;  %v18700_v31 = vld [vmem:[%s23563_s16 + $0x20] ss:$8 sps:$4 sm:$0xff]  }
 0xe84   : > { %v9426_v18 = vmax.f32 %v9421_v5, 0.0  ;;  %v18705_v5 = vld [vmem:[%s23563_s16 + $0x34] ss:$8 sps:$4 sm:$0xff]  }
 0xe85   : > { %v9394_v57 = vpop.f32.mrb[172].mxu1 }
 0xe86   : > { %v17903_v3 = vpack.c.bf16 %v9426_v18, %v9425_v29  ;;  %v9410_v14 = vadd.f32 %v9394_v57, %v9277_v21  ;;  %v17745_v32 = vpop.f32.mrb[173].mxu1 }
 0xe87   : > { %v9397_v39 = vpop.f32.mrb[174].mxu1  ;;  %v18708_v32 = vld [vmem:[%s23563_s16 + $0x44] ss:$8 sps:$4 sm:$0xff]  }
 0xe88   : > { %v9422_v7 = vadd.f32 %v15211_v1, %v9410_v14  ;;  %v9411_v25 = vadd.f32 %v9397_v39, %v9278_v53  ;;  %v17746_v19 = vpop.f32.mrb[175].mxu1  ;;  %17904 = vmatpush3.bf16.msra.mxu0 %v17903_v3  ;;  %v18703_v14 = vld [vmem:[%s23563_s16 + $0x30] ss:$8 sps:$4 sm:$0xff]   ;;  %v18706_v39 = vld [vmem:[%s23563_s16 + $0x40] ss:$8 sps:$4 sm:$0xff]  }
 0xe89   : > { %17905 = vmatprep.subr.bf16.mxu0 %v19818_v12  ;;  %v9431_v12 = vld [vmem:[%s23562_s15 + $0x8] sm:$0xff] }
 0xe8a   : > { %v9423_v22 = vadd.f32 %v15211_v1, %v9411_v25  ;;  %v9427_v59 = vmax.f32 %v9422_v7, 0.0  ;;  %v18711_v7 = vld [vmem:[%s23563_s16 + $0x54] ss:$8 sps:$4 sm:$0xff]  }
 0xe8c   : > { %v9428_v35 = vmax.f32 %v9423_v22, 0.0  ;;  %v18709_v22 = vld [vmem:[%s23563_s16 + $0x50] ss:$8 sps:$4 sm:$0xff]  }
 0xe8d   : > { %v9402_v4 = vpop.f32.mrb[176].mxu1 }
 0xe8e   : > { %v17906_v23 = vpack.c.bf16 %v9428_v35, %v9427_v59  ;;  %v9412_v44 = vadd.f32 %v9402_v4, %v9279_v60  ;;  %v17749_v54 = vpop.f32.mrb[177].mxu1  ;;  %v18714_v59 = vld [vmem:[%s23563_s16 + $0x64] ss:$8 sps:$4 sm:$0xff]   ;;  %v18712_v35 = vld [vmem:[%s23563_s16 + $0x60] ss:$8 sps:$4 sm:$0xff]  }
 0xe8f   : > { %v9405_v36 = vpop.f32.mrb[178].mxu1  ;;  %v18717_v4 = vld [vmem:[%s23563_s16 + $0x74] ss:$8 sps:$4 sm:$0xff]   ;;  %v18718_v54 = vld [vmem:[%s23563_s16 + $0x100] ss:$8 sps:$4 sm:$0xff]  }
 0xe90   : > { %v9424_v10 = vadd.f32 %v15211_v1, %v9412_v44  ;;  %v17750_v63 = vpop.f32.mrb[179].mxu1  ;;  %17907 = vmatpush3.bf16.msra.mxu0 %v17906_v23  ;;  %v18697_v1 = vld [vmem:[%s23563_s16 + $0x10] ss:$8 sps:$4 sm:$0xff]   ;;  %v18720_v44 = vld [vmem:[%s23563_s16 + $0x104] ss:$8 sps:$4 sm:$0xff]  }
 0xe91   : > { %17759 = vmatprep.subr.mxu0 %v19816_v0  ;;  %v18715_v23 = vld [vmem:[%s23563_s16 + $0x70] ss:$8 sps:$4 sm:$0xff]   ;;  %v18723_v36 = vld [vmem:[%s23563_s16 + $0x114] ss:$8 sps:$4 sm:$0xff]   ;;  %v18726_v63 = vld [vmem:[%s23563_s16 + $0x124] ss:$8 sps:$4 sm:$0xff]  }
 0xe92   : > { %v9429_v6 = vmax.f32 %v9424_v10, 0.0  ;;  %v18721_v10 = vld [vmem:[%s23563_s16 + $0x110] ss:$8 sps:$4 sm:$0xff]  }
 0xe94   : > { %17760 = vmatpush3.msra.mxu0 %v9429_v6  ;;  %v18724_v6 = vld [vmem:[%s23563_s16 + $0x120] ss:$8 sps:$4 sm:$0xff]  }
 0xe95   : > { %17762 = vmatmul.mubr.msk.f32.vlgmr.msra.gmra.mrb[12].mxu0 %vm8088_vm4, %v9430_v62  ;;  %v18729_v62 = vld [vmem:[%s23563_s16 + $0x134] ss:$8 sps:$4 sm:$0xff]  }
 0xe96   : > { %17764 = vmatprep.mubr.msk.f32.mxu0 %vm19817_vm0, %v19816_v0 }
 0xe99   : > { %17765 = vmatmul.mubr.msk.f32.gmra.mrb[14].mxu0 %vm8088_vm4, %v9431_v12  ;;  %v18727_v12 = vld [vmem:[%s23563_s16 + $0x130] ss:$8 sps:$4 sm:$0xff]  }
 0xe9a   : > { %17767 = vmatprep.mubr.msk.f32.mxu0 %vm19817_vm0, %v19816_v0 }
 0xe9d   : > { %17768 = vmatmul.mubr.msk.f32.gmra.mrb[16].mxu0 %vm8088_vm4, %v9432_v49  ;;  %v18732_v49 = vld [vmem:[%s23563_s16 + $0x144] ss:$8 sps:$4 sm:$0xff]  }
 0xe9e   : > { %17770 = vmatprep.mubr.msk.f32.mxu0 %vm19817_vm0, %v19816_v0 }
 0xea1   : > { %17771 = vmatmul.mubr.msk.f32.gmra.mrb[18].mxu0 %vm8088_vm4, %v9433_v28  ;;  %v18730_v28 = vld [vmem:[%s23563_s16 + $0x140] ss:$8 sps:$4 sm:$0xff]  }
 0xea2   : > { %17773 = vmatprep.mubr.msk.f32.mxu0 %vm19817_vm0, %v19816_v0 }
 0xea5   : > { %17774 = vmatmul.mubr.msk.f32.gmra.mrb[20].mxu0 %vm8088_vm4, %v9434_v61  ;;  %v18735_v61 = vld [vmem:[%s23563_s16 + $0x154] ss:$8 sps:$4 sm:$0xff]  }
 0xea6   : > { %17776 = vmatprep.mubr.msk.f32.mxu0 %vm19817_vm0, %v19816_v0 }
 0xea9   : > { %17777 = vmatmul.mubr.msk.f32.gmra.mrb[22].mxu0 %vm8088_vm4, %v9435_v27  ;;  %v18733_v27 = vld [vmem:[%s23563_s16 + $0x150] ss:$8 sps:$4 sm:$0xff]  }
 0xeaa   : > { %17779 = vmatprep.mubr.msk.f32.mxu0 %vm19817_vm0, %v19816_v0 }
 0xead   : > { %17780 = vmatmul.mubr.msk.f32.gmra.mrb[24].mxu0 %vm8088_vm4, %v9436_v37  ;;  %v18738_v37 = vld [vmem:[%s23563_s16 + $0x164] ss:$8 sps:$4 sm:$0xff]  }
 0xeae   : > { %17782 = vmatprep.mubr.msk.f32.mxu0 %vm19817_vm0, %v19816_v0 }
 0xeb1   : > { %17783 = vmatmul.mubr.msk.f32.gmra.mrb[26].mxu0 %vm8088_vm4, %v9437_v16  ;;  %v18736_v16 = vld [vmem:[%s23563_s16 + $0x160] ss:$8 sps:$4 sm:$0xff]  }
 0xeb2   : > { %17785 = vmatprep.mubr.msk.f32.mxu0 %vm19817_vm0, %v19816_v0 }
 0xeb5   : > { %17786 = vmatmul.mubr.msk.f32.gmra.mrb[28].mxu0 %vm8088_vm4, %v9438_v26  ;;  %v18747_v26 = vld [vmem:[%s23563_s16 + $0x194] ss:$8 sps:$4 sm:$0xff]  }
 0xeb6   : > { %12273 = vmatprep.mubr.f32.mxu0 %v19816_v0 }
 0xf68   : > { %v22527_v58 = vpop.f32.mrb[12].mxu0 }
 0xf69   : > { %9576 = vst [vmem:[#allocation6] sm:$0xff] %v22527_v58  ;;  %v17763_v50 = vpop.f32.mrb[13].mxu0 }
 0xf6a   : > { %v18750_v50 = vld [vmem:[%s23563_s16 + $0x1a4] ss:$8 sps:$4 sm:$0xff]  }
 0xf6c   : > { %v22530_v34 = vpop.f32.mrb[14].mxu0 }
 0xf6d   : > { %9577 = vst [vmem:[#allocation6 + $0x8] sm:$0xff] %v22530_v34  ;;  %v9589_v55 = vpack.c.bf16 %v22530_v34, %v22527_v58  ;;  %v17766_v17 = vpop.f32.mrb[15].mxu0  ;;  %v18745_v58 = vld [vmem:[%s23563_s16 + $0x190] ss:$8 sps:$4 sm:$0xff]  }
 0xf6e   : > { %v18748_v17 = vld [vmem:[%s23563_s16 + $0x1a0] ss:$8 sps:$4 sm:$0xff]  }
 0xf70   : > { %v22535_v41 = vpop.f32.mrb[16].mxu0 }
 0xf71   : > { %9578 = vst [vmem:[#allocation6 + $0x10] sm:$0xff] %v22535_v41  ;;  %v17769_v11 = vpop.f32.mrb[17].mxu0 }
 0xf72   : > { %v18753_v11 = vld [vmem:[%s23563_s16 + $0x1b4] ss:$8 sps:$4 sm:$0xff]  }
 0xf74   : > { %v22538_v33 = vpop.f32.mrb[18].mxu0  ;;  %v9607_v9 = vld [vmem:[#allocation6 + $0x1] sm:$0xff] }
 0xf75   : > { %9579 = vst [vmem:[#allocation6 + $0x18] sm:$0xff] %v22538_v33  ;;  %v17772_v21 = vpop.f32.mrb[19].mxu0  ;;  %v9590_v53 = vpack.c.bf16 %v22538_v33, %v22535_v41  ;;  %v9895_v40 = vld [vmem:[#allocation6 + $0x2] sm:$0xff] }
 0xf76   : > { %v18751_v33 = vld [vmem:[%s23563_s16 + $0x1b0] ss:$8 sps:$4 sm:$0xff]   ;;  %v18756_v21 = vld [vmem:[%s23563_s16 + $0x1c4] ss:$8 sps:$4 sm:$0xff]  }
 0xf78   : > { %v9608_v51 = vld [vmem:[#allocation6 + $0x9] sm:$0xff]  ;;  %v22546_v15 = vpop.f32.mrb[20].mxu0 }
 0xf79   : > { %v9611_v60 = vpack.c.bf16 %v9608_v51, %v9607_v9  ;;  %9580 = vst [vmem:[#allocation6 + $0x20] sm:$0xff] %v22546_v15  ;;  %v17775_v45 = vpop.f32.mrb[21].mxu0  ;;  %v22657_v43 = vld [vmem:[#allocation6 + $0xa] sm:$0xff]  ;;  %v18759_v9 = vld [vmem:[%s23563_s16 + $0x1d4] ss:$8 sps:$4 sm:$0xff]  }
 0xf7a   : > { %v9899_v2 = vpack.c.bf16 %v22657_v43, %v9895_v40  ;;  %v18757_v51 = vld [vmem:[%s23563_s16 + $0x1d0] ss:$8 sps:$4 sm:$0xff]   ;;  %v18810_v40 = vld [vmem:[%s23563_s16 + $0x2e4] ss:$8 sps:$4 sm:$0xff]  }
 0xf7b   : > { %9742 = vmatmul.mubr.bf16.vlgmr.msra.gmra.mrb[180].mxu1 %v9611_v60  ;;  %v18760_v60 = vld [vmem:[%s23563_s16 + $0x1e0] ss:$8 sps:$4 sm:$0xff]   ;;  %v18763_v45 = vld [vmem:[%s23563_s16 + $0x1f0] ss:$8 sps:$4 sm:$0xff]  }
 0xf7c   : > { %9843 = vmatpush1.bf16.msra.mxu1 %v18694_v24  ;;  %9751 = vmatprep.mubr.bf16.mxu1 %v19819_v56  ;;  %v22556_v47 = vpop.f32.mrb[22].mxu0  ;;  %v9609_v29 = vld [vmem:[#allocation6 + $0x11] sm:$0xff] }
 0xf7d   : > { %9844 = vmatprep.subr.bf16.mxu1 %v18699_v48  ;;  %9581 = vst [vmem:[#allocation6 + $0x28] sm:$0xff] %v22556_v47  ;;  %v11855_v8 = vpack.c.bf16 %v22556_v47, %v22546_v15  ;;  %v17778_v30 = vpop.f32.mrb[23].mxu0  ;;  %v18762_v24 = vld [vmem:[%s23563_s16 + $0x1e4] ss:$8 sps:$4 sm:$0xff]   ;;  %v18765_v48 = vld [vmem:[%s23563_s16 + $0x1f4] ss:$8 sps:$4 sm:$0xff]  }
 0xf7e   : > { %v10058_v30 = vld [vmem:[#allocation6 + $0x3] sm:$0xff] }
 0xf80   : > { %9845 = vmatpush1.bf16.msra.mxu1 %v18697_v1  ;;  %v9562_v52 = vpop.f32.mrb[24].mxu0  ;;  %v9610_v18 = vld [vmem:[#allocation6 + $0x19] sm:$0xff]  ;;  %v18768_v1 = vld [vmem:[%s23563_s16 + $0x204] ss:$8 sps:$4 sm:$0xff]  }
 0xf81   : > { %9846 = vmatprep.subr.bf16.mxu1 %v18702_v42  ;;  %9582 = vst [vmem:[#allocation6 + $0x30] sm:$0xff] %v9562_v52  ;;  %v17781_v57 = vpop.f32.mrb[25].mxu0  ;;  %v9612_v3 = vpack.c.bf16 %v9610_v18, %v9609_v29  ;;  %v22673_v34 = vld [vmem:[#allocation6 + $0x1a] sm:$0xff]  ;;  %v22716_v42 = vld [vmem:[#allocation6 + $0xb] sm:$0xff] }
 0xf82   : > { %v10062_v52 = vpack.c.bf16 %v22716_v42, %v10058_v30  ;;  %v18769_v29 = vld [vmem:[%s23563_s16 + $0x210] ss:$8 sps:$4 sm:$0xff]   ;;  %v18774_v18 = vld [vmem:[%s23563_s16 + $0x224] ss:$8 sps:$4 sm:$0xff]  }
 0xf83   : > { %9752 = vmatmul.mubr.bf16.gmra.mrb[184].mxu1 %v9612_v3  ;;  %v22732_v57 = vld [vmem:[#allocation6 + $0x1b] sm:$0xff]  ;;  %v22734_v3 = vld [vmem:[#allocation6 + $0x13] sm:$0xff] }
 0xf84   : > { %9847 = vmatpush1.bf16.msra.mxu1 %v18700_v31  ;;  %9874 = vmatprep.mubr.bf16.mxu1 %v19819_v56  ;;  %v9567_v25 = vpop.f32.mrb[26].mxu0  ;;  %v18766_v31 = vld [vmem:[%s23563_s16 + $0x200] ss:$8 sps:$4 sm:$0xff]   ;;  %v18835_v30 = vld [vmem:[%s23563_s16 + $0x370] ss:$8 sps:$4 sm:$0xff]  }
 0xf85   : > { %9848 = vmatprep.subr.bf16.mxu1 %v18705_v5  ;;  %9583 = vst [vmem:[#allocation6 + $0x38] sm:$0xff] %v9567_v25  ;;  %v17784_v19 = vpop.f32.mrb[27].mxu0  ;;  %v18771_v5 = vld [vmem:[%s23563_s16 + $0x214] ss:$8 sps:$4 sm:$0xff]   ;;  %v18780_v25 = vld [vmem:[%s23563_s16 + $0x244] ss:$8 sps:$4 sm:$0xff]  }
 0xf86   : > { %v18778_v19 = vld [vmem:[%s23563_s16 + $0x240] ss:$8 sps:$4 sm:$0xff]  }
 0xf88   : > { %9849 = vmatpush1.bf16.msra.mxu1 %v18703_v14  ;;  %v18772_v14 = vld [vmem:[%s23563_s16 + $0x220] ss:$8 sps:$4 sm:$0xff]  }
 0xf89   : > { %9850 = vmatprep.subr.bf16.mxu1 %v18708_v32  ;;  %v10063_v32 = vpack.c.bf16 %v22732_v57, %v22734_v3 }
 0xf8c   : > { %9851 = vmatpush1.bf16.msra.mxu1 %v18706_v39  ;;  %v18777_v39 = vld [vmem:[%s23563_s16 + $0x234] ss:$8 sps:$4 sm:$0xff]  }
 0xf8d   : > { %9852 = vmatprep.subr.bf16.mxu1 %v18711_v7  ;;  %v18775_v7 = vld [vmem:[%s23563_s16 + $0x230] ss:$8 sps:$4 sm:$0xff]  }
 0xf8e   : > { %v19466_v15 = vld [vmem:[#allocation6 + $0x38] sm:$0xff] }
 0xf90   : > { %9853 = vmatpush1.bf16.msra.mxu1 %v18709_v22  ;;  %v18783_v22 = vld [vmem:[%s23563_s16 + $0x254] ss:$8 sps:$4 sm:$0xff]  }
 0xf91   : > { %9854 = vmatprep.subr.bf16.mxu1 %v18714_v59  ;;  %v18781_v59 = vld [vmem:[%s23563_s16 + $0x250] ss:$8 sps:$4 sm:$0xff]  }
 0xf94   : > { %9855 = vmatpush1.bf16.msra.mxu1 %v18712_v35  ;;  %v18786_v35 = vld [vmem:[%s23563_s16 + $0x264] ss:$8 sps:$4 sm:$0xff]  }
 0xf95   : > { %9856 = vmatprep.subr.bf16.mxu1 %v18717_v4  ;;  %v18784_v4 = vld [vmem:[%s23563_s16 + $0x260] ss:$8 sps:$4 sm:$0xff]  }
 0xf98   : > { %9857 = vmatpush1.bf16.msra.mxu1 %v18715_v23  ;;  %v18789_v23 = vld [vmem:[%s23563_s16 + $0x274] ss:$8 sps:$4 sm:$0xff]  }
 0xf99   : > { %9997 = vmatprep.subr.bf16.mxu1 %v18720_v44  ;;  %v18787_v44 = vld [vmem:[%s23563_s16 + $0x270] ss:$8 sps:$4 sm:$0xff]  }
 0xf9b   : > { %9875 = vmatmul.mubr.bf16.vlgmr.msra.gmra.mrb[180].mxu1 %v9589_v55  ;;  %v22675_v55 = vld [vmem:[#allocation6 + $0x12] sm:$0xff] }
 0xf9c   : > { %9998 = vmatpush1.bf16.msra.mxu1 %v18718_v54  ;;  %9884 = vmatprep.mubr.bf16.mxu1 %v19819_v56  ;;  %v9900_v41 = vpack.c.bf16 %v22673_v34, %v22675_v55  ;;  %v18792_v54 = vld [vmem:[%s23563_s16 + $0x284] ss:$8 sps:$4 sm:$0xff]  }
 0xf9d   : > { %9999 = vmatprep.subr.bf16.mxu1 %v18723_v36  ;;  %v18790_v36 = vld [vmem:[%s23563_s16 + $0x280] ss:$8 sps:$4 sm:$0xff]  }
 0xfa0   : > { %10000 = vmatpush1.bf16.msra.mxu1 %v18721_v10  ;;  %v10225_v10 = vpack.c.bf16 %v22675_v55, %v22657_v43  ;;  %v18805_v43 = vld [vmem:[%s23563_s16 + $0x2d0] ss:$8 sps:$4 sm:$0xff]   ;;  %v18819_v55 = vld [vmem:[%s23563_s16 + $0x314] ss:$8 sps:$4 sm:$0xff]  }
 0xfa1   : > { %10001 = vmatprep.subr.bf16.mxu1 %v18726_v63  ;;  %v18795_v63 = vld [vmem:[%s23563_s16 + $0x294] ss:$8 sps:$4 sm:$0xff]  }
 0xfa3   : > { %9885 = vmatmul.mubr.bf16.gmra.mrb[184].mxu1 %v9590_v53  ;;  %v18754_v53 = vld [vmem:[%s23563_s16 + $0x1c0] ss:$8 sps:$4 sm:$0xff]  }
 0xfa4   : > { %10002 = vmatpush1.bf16.msra.mxu1 %v18724_v6  ;;  %10029 = vmatprep.mubr.bf16.mxu1 %v19819_v56  ;;  %v18793_v6 = vld [vmem:[%s23563_s16 + $0x290] ss:$8 sps:$4 sm:$0xff]  }
 0xfa5   : > { %10003 = vmatprep.subr.bf16.mxu1 %v18729_v62  ;;  %v18798_v62 = vld [vmem:[%s23563_s16 + $0x2a4] ss:$8 sps:$4 sm:$0xff]  }
 0xfa8   : > { %10004 = vmatpush1.bf16.msra.mxu1 %v18727_v12  ;;  %v10224_v12 = vld [vmem:[#allocation6 + $0x22] sm:$0xff] }
 0xfa9   : > { %10005 = vmatprep.subr.bf16.mxu1 %v18732_v49  ;;  %v18796_v49 = vld [vmem:[%s23563_s16 + $0x2a0] ss:$8 sps:$4 sm:$0xff]  }
 0xfac   : > { %10006 = vmatpush1.bf16.msra.mxu1 %v18730_v28  ;;  %v10226_v28 = vpack.c.bf16 %v10224_v12, %v22673_v34  ;;  %v10388_v34 = vpack.c.bf16 %v22734_v3, %v22716_v42  ;;  %v18837_v42 = vld [vmem:[%s23563_s16 + $0x374] ss:$8 sps:$4 sm:$0xff]   ;;  %v18841_v3 = vld [vmem:[%s23563_s16 + $0x390] ss:$8 sps:$4 sm:$0xff]   ;;  %v18862_v12 = vld [vmem:[%s23563_s16 + $0x400] ss:$8 sps:$4 sm:$0xff]  }
 0xfad   : > { %10007 = vmatprep.subr.bf16.mxu1 %v18735_v61  ;;  %v18801_v61 = vld [vmem:[%s23563_s16 + $0x2b4] ss:$8 sps:$4 sm:$0xff]  }
 0xfb0   : > { %10008 = vmatpush1.bf16.msra.mxu1 %v18733_v27  ;;  %v18799_v27 = vld [vmem:[%s23563_s16 + $0x2b0] ss:$8 sps:$4 sm:$0xff]  }
 0xfb1   : > { %10009 = vmatprep.subr.bf16.mxu1 %v18738_v37  ;;  %v18804_v37 = vld [vmem:[%s23563_s16 + $0x2c4] ss:$8 sps:$4 sm:$0xff]  }
 0xfb4   : > { %10010 = vmatpush1.bf16.msra.mxu1 %v18736_v16  ;;  %v18802_v16 = vld [vmem:[%s23563_s16 + $0x2c0] ss:$8 sps:$4 sm:$0xff]  }
 0xfb5   : > { %10011 = vmatprep.subr.bf16.mxu1 %v18741_v13  ;;  %v18807_v13 = vld [vmem:[%s23563_s16 + $0x2d4] ss:$8 sps:$4 sm:$0xff]  }
 0xfb8   : > { %10012 = vmatpush1.bf16.msra.mxu1 %v18739_v46  ;;  %v9572_v46 = vpop.f32.mrb[28].mxu0 }
 0xfb9   : > { %10160 = vmatprep.subr.bf16.mxu1 %v18744_v20  ;;  %9584 = vst [vmem:[#allocation6 + $0x40] sm:$0xff] %v9572_v46  ;;  %v17787_v20 = vpop.f32.mrb[29].mxu0 }
 0xfba   : > { %v18873_v20 = vld [vmem:[%s23563_s16 + $0x434] ss:$8 sps:$4 sm:$0xff]  }
 0xfbb   : > { %10030 = vmatmul.mubr.bf16.vlgmr.msra.gmra.mrb[180].mxu1 %v9899_v2  ;;  %v18813_v2 = vld [vmem:[%s23563_s16 + $0x2f4] ss:$8 sps:$4 sm:$0xff]  }
 0xfbc   : > { %10161 = vmatpush1.bf16.msra.mxu1 %v18742_v38  ;;  %10039 = vmatprep.mubr.bf16.mxu1 %v19819_v56  ;;  %v18808_v38 = vld [vmem:[%s23563_s16 + $0x2e0] ss:$8 sps:$4 sm:$0xff]  }
 0xfbd   : > { %10162 = vmatprep.subr.bf16.mxu1 %v18747_v26  ;;  %v18811_v26 = vld [vmem:[%s23563_s16 + $0x2f0] ss:$8 sps:$4 sm:$0xff]  }
 0xfc0   : > { %10163 = vmatpush1.bf16.msra.mxu1 %v18745_v58  ;;  %v18816_v58 = vld [vmem:[%s23563_s16 + $0x304] ss:$8 sps:$4 sm:$0xff]  }
 0xfc1   : > { %10164 = vmatprep.subr.bf16.mxu1 %v18750_v50  ;;  %v18814_v50 = vld [vmem:[%s23563_s16 + $0x300] ss:$8 sps:$4 sm:$0xff]  }
 0xfc3   : > { %10040 = vmatmul.mubr.bf16.gmra.mrb[184].mxu1 %v9900_v41  ;;  %v18822_v41 = vld [vmem:[%s23563_s16 + $0x324] ss:$8 sps:$4 sm:$0xff]  }
 0xfc4   : > { %10165 = vmatpush1.bf16.msra.mxu1 %v18748_v17  ;;  %10192 = vmatprep.mubr.bf16.mxu1 %v19819_v56  ;;  %v18817_v17 = vld [vmem:[%s23563_s16 + $0x310] ss:$8 sps:$4 sm:$0xff]  }
 0xfc5   : > { %10166 = vmatprep.subr.bf16.mxu1 %v18753_v11  ;;  %v10387_v11 = vld [vmem:[#allocation6 + $0x23] sm:$0xff] }
 0xfc8   : > { %10167 = vmatpush1.bf16.msra.mxu1 %v18751_v33  ;;  %v18820_v33 = vld [vmem:[%s23563_s16 + $0x320] ss:$8 sps:$4 sm:$0xff]  }
 0xfc9   : > { %10168 = vmatprep.subr.bf16.mxu1 %v18756_v21  ;;  %v10389_v21 = vpack.c.bf16 %v10387_v11, %v22732_v57  ;;  %v18843_v57 = vld [vmem:[%s23563_s16 + $0x394] ss:$8 sps:$4 sm:$0xff]  }
 0xfcc   : > { %10169 = vmatpush1.bf16.msra.mxu1 %v18754_v53  ;;  %v18825_v53 = vld [vmem:[%s23563_s16 + $0x334] ss:$8 sps:$4 sm:$0xff]  }
 0xfcd   : > { %10170 = vmatprep.subr.bf16.mxu1 %v18759_v9  ;;  %v18823_v9 = vld [vmem:[%s23563_s16 + $0x330] ss:$8 sps:$4 sm:$0xff]  }
 0xfd0   : > { %10171 = vmatpush1.bf16.msra.mxu1 %v18757_v51  ;;  %v18828_v51 = vld [vmem:[%s23563_s16 + $0x344] ss:$8 sps:$4 sm:$0xff]  }
 0xfd1   : > { %10172 = vmatprep.subr.bf16.mxu1 %v18762_v24  ;;  %v18826_v24 = vld [vmem:[%s23563_s16 + $0x340] ss:$8 sps:$4 sm:$0xff]  }
 0xfd4   : > { %10173 = vmatpush1.bf16.msra.mxu1 %v18760_v60  ;;  %v18831_v60 = vld [vmem:[%s23563_s16 + $0x354] ss:$8 sps:$4 sm:$0xff]  }
 0xfd5   : > { %10174 = vmatprep.subr.bf16.mxu1 %v18765_v48  ;;  %v18829_v48 = vld [vmem:[%s23563_s16 + $0x350] ss:$8 sps:$4 sm:$0xff]  }
 0xfd8   : > { %10175 = vmatpush1.bf16.msra.mxu1 %v18763_v45  ;;  %v18834_v45 = vld [vmem:[%s23563_s16 + $0x364] ss:$8 sps:$4 sm:$0xff]  }
 0xfd9   : > { %10323 = vmatprep.subr.bf16.mxu1 %v18768_v1  ;;  %v18832_v1 = vld [vmem:[%s23563_s16 + $0x360] ss:$8 sps:$4 sm:$0xff]  }
 0xfdb   : > { %10193 = vmatmul.mubr.bf16.vlgmr.msra.gmra.mrb[180].mxu1 %v10062_v52  ;;  %v22881_v52 = vld [vmem:[#allocation6 + $0x14] sm:$0xff] }
 0xfdc   : > { %10324 = vmatpush1.bf16.msra.mxu1 %v18766_v31  ;;  %10202 = vmatprep.mubr.bf16.mxu1 %v19819_v56  ;;  %v18840_v31 = vld [vmem:[%s23563_s16 + $0x384] ss:$8 sps:$4 sm:$0xff]  }
 0xfdd   : > { %10325 = vmatprep.subr.bf16.mxu1 %v18771_v5  ;;  %v10547_v5 = vld [vmem:[#allocation6 + $0xc] sm:$0xff] }
 0xfe0   : > { %10326 = vmatpush1.bf16.msra.mxu1 %v18769_v29  ;;  %v18838_v29 = vld [vmem:[%s23563_s16 + $0x380] ss:$8 sps:$4 sm:$0xff]  }
 0xfe1   : > { %10327 = vmatprep.subr.bf16.mxu1 %v18774_v18  ;;  %v10551_v18 = vpack.c.bf16 %v22881_v52, %v10547_v5  ;;  %v18909_v5 = vld [vmem:[%s23563_s16 + $0x4f4] ss:$8 sps:$4 sm:$0xff]  }
 0xfe3   : > { %10203 = vmatmul.mubr.bf16.gmra.mrb[184].mxu1 %v10063_v32  ;;  %v22897_v32 = vld [vmem:[#allocation6 + $0x24] sm:$0xff] }
 0xfe4   : > { %10328 = vmatpush1.bf16.msra.mxu1 %v18772_v14  ;;  %10355 = vmatprep.mubr.bf16.mxu1 %v19819_v56  ;;  %v18846_v14 = vld [vmem:[%s23563_s16 + $0x3a4] ss:$8 sps:$4 sm:$0xff]  }
 0xfe5   : > { %10329 = vmatprep.subr.bf16.mxu1 %v18777_v39  ;;  %v22899_v39 = vld [vmem:[#allocation6 + $0x1c] sm:$0xff] }
 0xfe6   : > { %v10877_v11 = vpack.c.bf16 %v22899_v39, %v22881_v52  ;;  %v18904_v52 = vld [vmem:[%s23563_s16 + $0x4e0] ss:$8 sps:$4 sm:$0xff]  }
 0xfe8   : > { %10330 = vmatpush1.bf16.msra.mxu1 %v18775_v7  ;;  %v18844_v7 = vld [vmem:[%s23563_s16 + $0x3a0] ss:$8 sps:$4 sm:$0xff]  }
 0xfe9   : > { %10331 = vmatprep.subr.bf16.mxu1 %v18780_v25  ;;  %v10552_v25 = vpack.c.bf16 %v22897_v32, %v22899_v39  ;;  %v18918_v39 = vld [vmem:[%s23563_s16 + $0x524] ss:$8 sps:$4 sm:$0xff]  }
 0xfec   : > { %10332 = vmatpush1.bf16.msra.mxu1 %v18778_v19  ;;  %v18849_v19 = vld [vmem:[%s23563_s16 + $0x3b4] ss:$8 sps:$4 sm:$0xff]  }
 0xfed   : > { %10333 = vmatprep.subr.bf16.mxu1 %v18783_v22  ;;  %v18847_v22 = vld [vmem:[%s23563_s16 + $0x3b0] ss:$8 sps:$4 sm:$0xff]  }
 0xff0   : > { %10334 = vmatpush1.bf16.msra.mxu1 %v18781_v59  ;;  %v18852_v59 = vld [vmem:[%s23563_s16 + $0x3c4] ss:$8 sps:$4 sm:$0xff]  }
 0xff1   : > { %10335 = vmatprep.subr.bf16.mxu1 %v18786_v35  ;;  %v18850_v35 = vld [vmem:[%s23563_s16 + $0x3c0] ss:$8 sps:$4 sm:$0xff]  }
 0xff4   : > { %10336 = vmatpush1.bf16.msra.mxu1 %v18784_v4  ;;  %v18855_v4 = vld [vmem:[%s23563_s16 + $0x3d4] ss:$8 sps:$4 sm:$0xff]  }
 0xff5   : > { %10337 = vmatprep.subr.bf16.mxu1 %v18789_v23  ;;  %v18853_v23 = vld [vmem:[%s23563_s16 + $0x3d0] ss:$8 sps:$4 sm:$0xff]  }
 0xff8   : > { %10338 = vmatpush1.bf16.msra.mxu1 %v18787_v44  ;;  %v18858_v44 = vld [vmem:[%s23563_s16 + $0x3e4] ss:$8 sps:$4 sm:$0xff]  }
 0xff9   : > { %10486 = vmatprep.subr.bf16.mxu1 %v18792_v54  ;;  %v18856_v54 = vld [vmem:[%s23563_s16 + $0x3e0] ss:$8 sps:$4 sm:$0xff]  }
 0xffb   : > { %10356 = vmatmul.mubr.bf16.vlgmr.msra.gmra.mrb[180].mxu1 %v10225_v10  ;;  %v18859_v10 = vld [vmem:[%s23563_s16 + $0x3f0] ss:$8 sps:$4 sm:$0xff]  }
 0xffc   : > { %10487 = vmatpush1.bf16.msra.mxu1 %v18790_v36  ;;  %10365 = vmatprep.mubr.bf16.mxu1 %v19819_v56  ;;  %v18861_v36 = vld [vmem:[%s23563_s16 + $0x3f4] ss:$8 sps:$4 sm:$0xff]  }
 0xffd   : > { %10488 = vmatprep.subr.bf16.mxu1 %v18795_v63  ;;  %v18864_v63 = vld [vmem:[%s23563_s16 + $0x404] ss:$8 sps:$4 sm:$0xff]  }
0x1000   : > { %10489 = vmatpush1.bf16.msra.mxu1 %v18793_v6  ;;  %v22940_v6 = vld [vmem:[#allocation6 + $0x15] sm:$0xff] }
0x1001   : > { %10490 = vmatprep.subr.bf16.mxu1 %v18798_v62  ;;  %v10710_v62 = vld [vmem:[#allocation6 + $0xd] sm:$0xff] }
0x1003   : > { %10366 = vmatmul.mubr.bf16.gmra.mrb[184].mxu1 %v10226_v28  ;;  %v18867_v28 = vld [vmem:[%s23563_s16 + $0x414] ss:$8 sps:$4 sm:$0xff]  }
0x1004   : > { %10491 = vmatpush1.bf16.msra.mxu1 %v18796_v49  ;;  %10518 = vmatprep.mubr.bf16.mxu1 %v19819_v56  ;;  %v10714_v49 = vpack.c.bf16 %v22940_v6, %v10710_v62  ;;  %v23105_v62 = vld [vmem:[#allocation6 + $0x1e] sm:$0xff] }
0x1005   : > { %10492 = vmatprep.subr.bf16.mxu1 %v18801_v61  ;;  %v18865_v61 = vld [vmem:[%s23563_s16 + $0x410] ss:$8 sps:$4 sm:$0xff]  }
0x1008   : > { %10493 = vmatpush1.bf16.msra.mxu1 %v18799_v27  ;;  %v18870_v27 = vld [vmem:[%s23563_s16 + $0x424] ss:$8 sps:$4 sm:$0xff]  }
0x1009   : > { %10494 = vmatprep.subr.bf16.mxu1 %v18804_v37  ;;  %v22956_v37 = vld [vmem:[#allocation6 + $0x25] sm:$0xff] }
0x100c   : > { %10495 = vmatpush1.bf16.msra.mxu1 %v18802_v16  ;;  %v22958_v16 = vld [vmem:[#allocation6 + $0x1d] sm:$0xff] }
0x100d   : > { %10496 = vmatprep.subr.bf16.mxu1 %v18807_v13  ;;  %v18868_v13 = vld [vmem:[%s23563_s16 + $0x420] ss:$8 sps:$4 sm:$0xff]   ;;  %v10715_v46 = vpack.c.bf16 %v22956_v37, %v22958_v16 }
0x1010   : > { %10497 = vmatpush1.bf16.msra.mxu1 %v18805_v43  ;;  %v18871_v43 = vld [vmem:[%s23563_s16 + $0x430] ss:$8 sps:$4 sm:$0xff]  }
0x1011   : > { %10498 = vmatprep.subr.bf16.mxu1 %v18810_v40  ;;  %v18876_v40 = vld [vmem:[%s23563_s16 + $0x444] ss:$8 sps:$4 sm:$0xff]  }
0x1014   : > { %10499 = vmatpush1.bf16.msra.mxu1 %v18808_v38  ;;  %v18874_v38 = vld [vmem:[%s23563_s16 + $0x440] ss:$8 sps:$4 sm:$0xff]  }
0x1015   : > { %10500 = vmatprep.subr.bf16.mxu1 %v18813_v2  ;;  %v18879_v2 = vld [vmem:[%s23563_s16 + $0x454] ss:$8 sps:$4 sm:$0xff]  }
0x1018   : > { %10501 = vmatpush1.bf16.msra.mxu1 %v18811_v26  ;;  %v18877_v26 = vld [vmem:[%s23563_s16 + $0x450] ss:$8 sps:$4 sm:$0xff]  }
0x1019   : > { %10649 = vmatprep.subr.bf16.mxu1 %v18816_v58  ;;  %v18882_v58 = vld [vmem:[%s23563_s16 + $0x464] ss:$8 sps:$4 sm:$0xff]  }
0x101b   : > { %10519 = vmatmul.mubr.bf16.vlgmr.msra.gmra.mrb[180].mxu1 %v10388_v34  ;;  %v18885_v34 = vld [vmem:[%s23563_s16 + $0x474] ss:$8 sps:$4 sm:$0xff]  }
0x101c   : > { %10650 = vmatpush1.bf16.msra.mxu1 %v18814_v50  ;;  %10528 = vmatprep.mubr.bf16.mxu1 %v19819_v56  ;;  %v18880_v50 = vld [vmem:[%s23563_s16 + $0x460] ss:$8 sps:$4 sm:$0xff]  }
0x101d   : > { %10651 = vmatprep.subr.bf16.mxu1 %v18819_v55  ;;  %v18883_v55 = vld [vmem:[%s23563_s16 + $0x470] ss:$8 sps:$4 sm:$0xff]  }
0x1020   : > { %10652 = vmatpush1.bf16.msra.mxu1 %v18817_v17  ;;  %v18888_v17 = vld [vmem:[%s23563_s16 + $0x484] ss:$8 sps:$4 sm:$0xff]  }
0x1021   : > { %10653 = vmatprep.subr.bf16.mxu1 %v18822_v41  ;;  %v18886_v41 = vld [vmem:[%s23563_s16 + $0x480] ss:$8 sps:$4 sm:$0xff]  }
0x1023   : > { %10529 = vmatmul.mubr.bf16.gmra.mrb[184].mxu1 %v10389_v21  ;;  %v18889_v21 = vld [vmem:[%s23563_s16 + $0x490] ss:$8 sps:$4 sm:$0xff]  }
0x1024   : > { %10654 = vmatpush1.bf16.msra.mxu1 %v18820_v33  ;;  %10681 = vmatprep.mubr.bf16.mxu1 %v19819_v56  ;;  %v18891_v33 = vld [vmem:[%s23563_s16 + $0x494] ss:$8 sps:$4 sm:$0xff]  }
0x1025   : > { %10655 = vmatprep.subr.bf16.mxu1 %v18825_v53  ;;  %v18894_v53 = vld [vmem:[%s23563_s16 + $0x4a4] ss:$8 sps:$4 sm:$0xff]  }
0x1028   : > { %10656 = vmatpush1.bf16.msra.mxu1 %v18823_v9  ;;  %v10876_v9 = vld [vmem:[#allocation6 + $0x2c] sm:$0xff] }
0x1029   : > { %10657 = vmatprep.subr.bf16.mxu1 %v18828_v51  ;;  %v18892_v51 = vld [vmem:[%s23563_s16 + $0x4a0] ss:$8 sps:$4 sm:$0xff]  }
0x102c   : > { %10658 = vmatpush1.bf16.msra.mxu1 %v18826_v24  ;;  %v10878_v24 = vpack.c.bf16 %v10876_v9, %v22897_v32  ;;  %v18913_v32 = vld [vmem:[%s23563_s16 + $0x510] ss:$8 sps:$4 sm:$0xff]   ;;  %v18963_v9 = vld [vmem:[%s23563_s16 + $0x614] ss:$8 sps:$4 sm:$0xff]  }
0x102d   : > { %10659 = vmatprep.subr.bf16.mxu1 %v18831_v60  ;;  %v18897_v60 = vld [vmem:[%s23563_s16 + $0x4b4] ss:$8 sps:$4 sm:$0xff]  }
0x1030   : > { %10660 = vmatpush1.bf16.msra.mxu1 %v18829_v48  ;;  %v18895_v48 = vld [vmem:[%s23563_s16 + $0x4b0] ss:$8 sps:$4 sm:$0xff]  }
0x1031   : > { %10661 = vmatprep.subr.bf16.mxu1 %v18834_v45  ;;  %v18900_v45 = vld [vmem:[%s23563_s16 + $0x4c4] ss:$8 sps:$4 sm:$0xff]  }
0x1034   : > { %10662 = vmatpush1.bf16.msra.mxu1 %v18832_v1  ;;  %v18898_v1 = vld [vmem:[%s23563_s16 + $0x4c0] ss:$8 sps:$4 sm:$0xff]  }
0x1035   : > { %10663 = vmatprep.subr.bf16.mxu1 %v18837_v42  ;;  %v18903_v42 = vld [vmem:[%s23563_s16 + $0x4d4] ss:$8 sps:$4 sm:$0xff]  }
0x1038   : > { %10664 = vmatpush1.bf16.msra.mxu1 %v18835_v30  ;;  %v18901_v30 = vld [vmem:[%s23563_s16 + $0x4d0] ss:$8 sps:$4 sm:$0xff]  }
0x1039   : > { %10812 = vmatprep.subr.bf16.mxu1 %v18840_v31  ;;  %v18906_v31 = vld [vmem:[%s23563_s16 + $0x4e4] ss:$8 sps:$4 sm:$0xff]  }
0x103b   : > { %10682 = vmatmul.mubr.bf16.vlgmr.msra.gmra.mrb[180].mxu1 %v10551_v18  ;;  %v18912_v18 = vld [vmem:[%s23563_s16 + $0x504] ss:$8 sps:$4 sm:$0xff]  }
0x103c   : > { %10813 = vmatpush1.bf16.msra.mxu1 %v18838_v29  ;;  %10691 = vmatprep.mubr.bf16.mxu1 %v19819_v56  ;;  %v18907_v29 = vld [vmem:[%s23563_s16 + $0x4f0] ss:$8 sps:$4 sm:$0xff]  }
0x103d   : > { %10814 = vmatprep.subr.bf16.mxu1 %v18843_v57  ;;  %v18910_v57 = vld [vmem:[%s23563_s16 + $0x500] ss:$8 sps:$4 sm:$0xff]  }
0x1040   : > { %10815 = vmatpush1.bf16.msra.mxu1 %v18841_v3  ;;  %v11040_v3 = vpack.c.bf16 %v22958_v16, %v22940_v6  ;;  %v18936_v6 = vld [vmem:[%s23563_s16 + $0x584] ss:$8 sps:$4 sm:$0xff]  }
0x1041   : > { %10816 = vmatprep.subr.bf16.mxu1 %v18846_v14  ;;  %v18915_v14 = vld [vmem:[%s23563_s16 + $0x514] ss:$8 sps:$4 sm:$0xff]   ;;  %v23121_v16 = vld [vmem:[#allocation6 + $0x2e] sm:$0xff] }
0x1043   : > { %10692 = vmatmul.mubr.bf16.gmra.mrb[184].mxu1 %v10552_v25  ;;  %v18916_v25 = vld [vmem:[%s23563_s16 + $0x520] ss:$8 sps:$4 sm:$0xff]  }
0x1044   : > { %10817 = vmatpush1.bf16.msra.mxu1 %v18844_v7  ;;  %10844 = vmatprep.mubr.bf16.mxu1 %v19819_v56  ;;  %v11039_v7 = vld [vmem:[#allocation6 + $0x2d] sm:$0xff] }
0x1045   : > { %10818 = vmatprep.subr.bf16.mxu1 %v18849_v19  ;;  %v11041_v19 = vpack.c.bf16 %v11039_v7, %v22956_v37  ;;  %v18942_v37 = vld [vmem:[%s23563_s16 + $0x5a4] ss:$8 sps:$4 sm:$0xff]  }
0x1048   : > { %10819 = vmatpush1.bf16.msra.mxu1 %v18847_v22  ;;  %v18921_v22 = vld [vmem:[%s23563_s16 + $0x534] ss:$8 sps:$4 sm:$0xff]  }
0x1049   : > { %10820 = vmatprep.subr.bf16.mxu1 %v18852_v59  ;;  %v18919_v59 = vld [vmem:[%s23563_s16 + $0x530] ss:$8 sps:$4 sm:$0xff]  }
0x104c   : > { %10821 = vmatpush1.bf16.msra.mxu1 %v18850_v35  ;;  %v18924_v35 = vld [vmem:[%s23563_s16 + $0x544] ss:$8 sps:$4 sm:$0xff]  }
0x104d   : > { %10822 = vmatprep.subr.bf16.mxu1 %v18855_v4  ;;  %v18922_v4 = vld [vmem:[%s23563_s16 + $0x540] ss:$8 sps:$4 sm:$0xff]  }
0x1050   : > { %10823 = vmatpush1.bf16.msra.mxu1 %v18853_v23  ;;  %v18927_v23 = vld [vmem:[%s23563_s16 + $0x554] ss:$8 sps:$4 sm:$0xff]  }
0x1051   : > { %10824 = vmatprep.subr.bf16.mxu1 %v18858_v44  ;;  %v18925_v44 = vld [vmem:[%s23563_s16 + $0x550] ss:$8 sps:$4 sm:$0xff]  }
0x1054   : > { %10825 = vmatpush1.bf16.msra.mxu1 %v18856_v54  ;;  %v18930_v54 = vld [vmem:[%s23563_s16 + $0x564] ss:$8 sps:$4 sm:$0xff]  }
0x1055   : > { %10826 = vmatprep.subr.bf16.mxu1 %v18861_v36  ;;  %v18928_v36 = vld [vmem:[%s23563_s16 + $0x560] ss:$8 sps:$4 sm:$0xff]  }
0x1058   : > { %10827 = vmatpush1.bf16.msra.mxu1 %v18859_v10  ;;  %v18933_v10 = vld [vmem:[%s23563_s16 + $0x574] ss:$8 sps:$4 sm:$0xff]  }
0x1059   : > { %10975 = vmatprep.subr.bf16.mxu1 %v18864_v63  ;;  %v18931_v63 = vld [vmem:[%s23563_s16 + $0x570] ss:$8 sps:$4 sm:$0xff]  }
0x105b   : > { %10845 = vmatmul.mubr.bf16.vlgmr.msra.gmra.mrb[180].mxu1 %v10714_v49  ;;  %v18934_v49 = vld [vmem:[%s23563_s16 + $0x580] ss:$8 sps:$4 sm:$0xff]  }
0x105c   : > { %10976 = vmatpush1.bf16.msra.mxu1 %v18862_v12  ;;  %10854 = vmatprep.mubr.bf16.mxu1 %v19819_v56  ;;  %v11199_v12 = vld [vmem:[#allocation6 + $0x16] sm:$0xff] }
0x105d   : > { %10977 = vmatprep.subr.bf16.mxu1 %v18867_v28  ;;  %v11203_v28 = vpack.c.bf16 %v23105_v62, %v11199_v12  ;;  %v19005_v12 = vld [vmem:[%s23563_s16 + $0x6f4] ss:$8 sps:$4 sm:$0xff]  }
0x1060   : > { %10978 = vmatpush1.bf16.msra.mxu1 %v18865_v61  ;;  %v18939_v61 = vld [vmem:[%s23563_s16 + $0x594] ss:$8 sps:$4 sm:$0xff]  }
0x1061   : > { %10979 = vmatprep.subr.bf16.mxu1 %v18870_v27  ;;  %v18937_v27 = vld [vmem:[%s23563_s16 + $0x590] ss:$8 sps:$4 sm:$0xff]  }
0x1063   : > { %10855 = vmatmul.mubr.bf16.gmra.mrb[184].mxu1 %v10715_v46  ;;  %v18940_v46 = vld [vmem:[%s23563_s16 + $0x5a0] ss:$8 sps:$4 sm:$0xff]  }
0x1064   : > { %10980 = vmatpush1.bf16.msra.mxu1 %v18868_v13  ;;  %11007 = vmatprep.mubr.bf16.mxu1 %v19819_v56  ;;  %v23123_v13 = vld [vmem:[#allocation6 + $0x26] sm:$0xff] }
0x1065   : > { %10981 = vmatprep.subr.bf16.mxu1 %v18873_v20  ;;  %v11204_v20 = vpack.c.bf16 %v23121_v16, %v23123_v13  ;;  %v11529_v7 = vpack.c.bf16 %v23123_v13, %v23105_v62  ;;  %v19000_v62 = vld [vmem:[%s23563_s16 + $0x6e0] ss:$8 sps:$4 sm:$0xff]   ;;  %v19009_v13 = vld [vmem:[%s23563_s16 + $0x710] ss:$8 sps:$4 sm:$0xff]  }
0x1068   : > { %10982 = vmatpush1.bf16.msra.mxu1 %v18871_v43  ;;  %v18945_v43 = vld [vmem:[%s23563_s16 + $0x5b4] ss:$8 sps:$4 sm:$0xff]  }
0x1069   : > { %10983 = vmatprep.subr.bf16.mxu1 %v18876_v40  ;;  %v18943_v40 = vld [vmem:[%s23563_s16 + $0x5b0] ss:$8 sps:$4 sm:$0xff]  }
0x106c   : > { %10984 = vmatpush1.bf16.msra.mxu1 %v18874_v38  ;;  %v18948_v38 = vld [vmem:[%s23563_s16 + $0x5c4] ss:$8 sps:$4 sm:$0xff]  }
0x106d   : > { %10985 = vmatprep.subr.bf16.mxu1 %v18879_v2  ;;  %v18946_v2 = vld [vmem:[%s23563_s16 + $0x5c0] ss:$8 sps:$4 sm:$0xff]  }
0x1070   : > { %10986 = vmatpush1.bf16.msra.mxu1 %v18877_v26  ;;  %v18951_v26 = vld [vmem:[%s23563_s16 + $0x5d4] ss:$8 sps:$4 sm:$0xff]  }
0x1071   : > { %10987 = vmatprep.subr.bf16.mxu1 %v18882_v58  ;;  %v18949_v58 = vld [vmem:[%s23563_s16 + $0x5d0] ss:$8 sps:$4 sm:$0xff]  }
0x1074   : > { %10988 = vmatpush1.bf16.msra.mxu1 %v18880_v50  ;;  %v18954_v50 = vld [vmem:[%s23563_s16 + $0x5e4] ss:$8 sps:$4 sm:$0xff]  }
0x1075   : > { %10989 = vmatprep.subr.bf16.mxu1 %v18885_v34  ;;  %v18952_v34 = vld [vmem:[%s23563_s16 + $0x5e0] ss:$8 sps:$4 sm:$0xff]  }
0x1078   : > { %10990 = vmatpush1.bf16.msra.mxu1 %v18883_v55  ;;  %v18957_v55 = vld [vmem:[%s23563_s16 + $0x5f4] ss:$8 sps:$4 sm:$0xff]  }
0x1079   : > { %11138 = vmatprep.subr.bf16.mxu1 %v18888_v17  ;;  %v18955_v17 = vld [vmem:[%s23563_s16 + $0x5f0] ss:$8 sps:$4 sm:$0xff]  }
0x107b   : > { %11008 = vmatmul.mubr.bf16.vlgmr.msra.gmra.mrb[180].mxu1 %v10877_v11  ;;  %v23164_v11 = vld [vmem:[#allocation6 + $0x1f] sm:$0xff] }
0x107c   : > { %11139 = vmatpush1.bf16.msra.mxu1 %v18886_v41  ;;  %11017 = vmatprep.mubr.bf16.mxu1 %v19819_v56  ;;  %v18960_v41 = vld [vmem:[%s23563_s16 + $0x604] ss:$8 sps:$4 sm:$0xff]  }
0x107d   : > { %11140 = vmatprep.subr.bf16.mxu1 %v18891_v33  ;;  %v11362_v33 = vld [vmem:[#allocation6 + $0x17] sm:$0xff] }
0x1080   : > { %11141 = vmatpush1.bf16.msra.mxu1 %v18889_v21  ;;  %v18958_v21 = vld [vmem:[%s23563_s16 + $0x600] ss:$8 sps:$4 sm:$0xff]  }
0x1081   : > { %11142 = vmatprep.subr.bf16.mxu1 %v18894_v53  ;;  %v11366_v53 = vpack.c.bf16 %v23164_v11, %v11362_v33  ;;  %v19032_v33 = vld [vmem:[%s23563_s16 + $0x784] ss:$8 sps:$4 sm:$0xff]  }
0x1083   : > { %11018 = vmatmul.mubr.bf16.gmra.mrb[184].mxu1 %v10878_v24  ;;  %v18966_v24 = vld [vmem:[%s23563_s16 + $0x624] ss:$8 sps:$4 sm:$0xff]  }
0x1084   : > { %11143 = vmatpush1.bf16.msra.mxu1 %v18892_v51  ;;  %11170 = vmatprep.mubr.bf16.mxu1 %v19819_v56  ;;  %v18961_v51 = vld [vmem:[%s23563_s16 + $0x610] ss:$8 sps:$4 sm:$0xff]  }
0x1085   : > { %11144 = vmatprep.subr.bf16.mxu1 %v18897_v60  ;;  %v11364_v60 = vld [vmem:[#allocation6 + $0x27] sm:$0xff] }
0x1088   : > { %11145 = vmatpush1.bf16.msra.mxu1 %v18895_v48  ;;  %v23180_v48 = vld [vmem:[#allocation6 + $0x2f] sm:$0xff] }
0x1089   : > { %11146 = vmatprep.subr.bf16.mxu1 %v18900_v45  ;;  %v18964_v45 = vld [vmem:[%s23563_s16 + $0x620] ss:$8 sps:$4 sm:$0xff]  }
0x108c   : > { %11147 = vmatpush1.bf16.msra.mxu1 %v18898_v1  ;;  %v11367_v1 = vpack.c.bf16 %v23180_v48, %v11364_v60  ;;  %v19036_v60 = vld [vmem:[%s23563_s16 + $0x7a0] ss:$8 sps:$4 sm:$0xff]  }
0x108d   : > { %11148 = vmatprep.subr.bf16.mxu1 %v18903_v42  ;;  %v18969_v42 = vld [vmem:[%s23563_s16 + $0x634] ss:$8 sps:$4 sm:$0xff]  }
0x1090   : > { %11149 = vmatpush1.bf16.msra.mxu1 %v18901_v30  ;;  %v18967_v30 = vld [vmem:[%s23563_s16 + $0x630] ss:$8 sps:$4 sm:$0xff]  }
0x1091   : > { %11150 = vmatprep.subr.bf16.mxu1 %v18906_v31  ;;  %v18972_v31 = vld [vmem:[%s23563_s16 + $0x644] ss:$8 sps:$4 sm:$0xff]  }
0x1094   : > { %11151 = vmatpush1.bf16.msra.mxu1 %v18904_v52  ;;  %v18970_v52 = vld [vmem:[%s23563_s16 + $0x640] ss:$8 sps:$4 sm:$0xff]  }
0x1095   : > { %11152 = vmatprep.subr.bf16.mxu1 %v18909_v5  ;;  %v18975_v5 = vld [vmem:[%s23563_s16 + $0x654] ss:$8 sps:$4 sm:$0xff]  }
0x1098   : > { %11153 = vmatpush1.bf16.msra.mxu1 %v18907_v29  ;;  %v18973_v29 = vld [vmem:[%s23563_s16 + $0x650] ss:$8 sps:$4 sm:$0xff]  }
0x1099   : > { %11301 = vmatprep.subr.bf16.mxu1 %v18912_v18  ;;  %v18978_v18 = vld [vmem:[%s23563_s16 + $0x664] ss:$8 sps:$4 sm:$0xff]  }
0x109b   : > { %11171 = vmatmul.mubr.bf16.vlgmr.msra.gmra.mrb[180].mxu1 %v11040_v3  ;;  %v18981_v3 = vld [vmem:[%s23563_s16 + $0x674] ss:$8 sps:$4 sm:$0xff]  }
0x109c   : > { %11302 = vmatpush1.bf16.msra.mxu1 %v18910_v57  ;;  %11180 = vmatprep.mubr.bf16.mxu1 %v19819_v56  ;;  %v18976_v57 = vld [vmem:[%s23563_s16 + $0x660] ss:$8 sps:$4 sm:$0xff]  }
0x109d   : > { %11303 = vmatprep.subr.bf16.mxu1 %v18915_v14  ;;  %v18979_v14 = vld [vmem:[%s23563_s16 + $0x670] ss:$8 sps:$4 sm:$0xff]  }
0x10a0   : > { %11304 = vmatpush1.bf16.msra.mxu1 %v18913_v32  ;;  %v18984_v32 = vld [vmem:[%s23563_s16 + $0x684] ss:$8 sps:$4 sm:$0xff]  }
0x10a1   : > { %11305 = vmatprep.subr.bf16.mxu1 %v18918_v39  ;;  %v18982_v39 = vld [vmem:[%s23563_s16 + $0x680] ss:$8 sps:$4 sm:$0xff]  }
0x10a3   : > { %11181 = vmatmul.mubr.bf16.gmra.mrb[184].mxu1 %v11041_v19  ;;  %v18985_v19 = vld [vmem:[%s23563_s16 + $0x690] ss:$8 sps:$4 sm:$0xff]  }
0x10a4   : > { %11306 = vmatpush1.bf16.msra.mxu1 %v18916_v25  ;;  %11333 = vmatprep.mubr.bf16.mxu1 %v19819_v56  ;;  %v18987_v25 = vld [vmem:[%s23563_s16 + $0x694] ss:$8 sps:$4 sm:$0xff]  }
0x10a5   : > { %11307 = vmatprep.subr.bf16.mxu1 %v18921_v22  ;;  %v18990_v22 = vld [vmem:[%s23563_s16 + $0x6a4] ss:$8 sps:$4 sm:$0xff]  }
0x10a8   : > { %11308 = vmatpush1.bf16.msra.mxu1 %v18919_v59  ;;  %v11528_v59 = vld [vmem:[#allocation6 + $0x36] sm:$0xff] }
0x10a9   : > { %11309 = vmatprep.subr.bf16.mxu1 %v18924_v35  ;;  %v18988_v35 = vld [vmem:[%s23563_s16 + $0x6a0] ss:$8 sps:$4 sm:$0xff]  }
0x10ac   : > { %11310 = vmatpush1.bf16.msra.mxu1 %v18922_v4  ;;  %v11530_v4 = vpack.c.bf16 %v11528_v59, %v23121_v16  ;;  %v19011_v16 = vld [vmem:[%s23563_s16 + $0x714] ss:$8 sps:$4 sm:$0xff]  }
0x10ad   : > { %11311 = vmatprep.subr.bf16.mxu1 %v18927_v23  ;;  %v18993_v23 = vld [vmem:[%s23563_s16 + $0x6b4] ss:$8 sps:$4 sm:$0xff]  }
0x10b0   : > { %11312 = vmatpush1.bf16.msra.mxu1 %v18925_v44  ;;  %v18991_v44 = vld [vmem:[%s23563_s16 + $0x6b0] ss:$8 sps:$4 sm:$0xff]  }
0x10b1   : > { %11313 = vmatprep.subr.bf16.mxu1 %v18930_v54  ;;  %v18996_v54 = vld [vmem:[%s23563_s16 + $0x6c4] ss:$8 sps:$4 sm:$0xff]  }
0x10b4   : > { %11314 = vmatpush1.bf16.msra.mxu1 %v18928_v36  ;;  %v18994_v36 = vld [vmem:[%s23563_s16 + $0x6c0] ss:$8 sps:$4 sm:$0xff]  }
0x10b5   : > { %11315 = vmatprep.subr.bf16.mxu1 %v18933_v10  ;;  %v18999_v10 = vld [vmem:[%s23563_s16 + $0x6d4] ss:$8 sps:$4 sm:$0xff]  }
0x10b8   : > { %11316 = vmatpush1.bf16.msra.mxu1 %v18931_v63  ;;  %v18997_v63 = vld [vmem:[%s23563_s16 + $0x6d0] ss:$8 sps:$4 sm:$0xff]  }
0x10b9   : > { %11464 = vmatprep.subr.bf16.mxu1 %v18936_v6  ;;  %v19002_v6 = vld [vmem:[%s23563_s16 + $0x6e4] ss:$8 sps:$4 sm:$0xff]  }
0x10bb   : > { %11334 = vmatmul.mubr.bf16.vlgmr.msra.gmra.mrb[180].mxu1 %v11203_v28  ;;  %v19008_v28 = vld [vmem:[%s23563_s16 + $0x704] ss:$8 sps:$4 sm:$0xff]  }
0x10bc   : > { %11465 = vmatpush1.bf16.msra.mxu1 %v18934_v49  ;;  %11343 = vmatprep.mubr.bf16.mxu1 %v19819_v56  ;;  %v19003_v49 = vld [vmem:[%s23563_s16 + $0x6f0] ss:$8 sps:$4 sm:$0xff]  }
0x10bd   : > { %11466 = vmatprep.subr.bf16.mxu1 %v18939_v61  ;;  %v11689_v61 = vld [vmem:[#allocation6 + $0x27] sm:$0xff] }
0x10c0   : > { %11467 = vmatpush1.bf16.msra.mxu1 %v18937_v27  ;;  %v19006_v27 = vld [vmem:[%s23563_s16 + $0x700] ss:$8 sps:$4 sm:$0xff]  }
0x10c1   : > { %11468 = vmatprep.subr.bf16.mxu1 %v18942_v37  ;;  %v11692_v37 = vpack.c.bf16 %v11689_v61, %v23164_v11  ;;  %v19027_v11 = vld [vmem:[%s23563_s16 + $0x770] ss:$8 sps:$4 sm:$0xff]  }
0x10c3   : > { %11344 = vmatmul.mubr.bf16.gmra.mrb[184].mxu1 %v11204_v20  ;;  %v11691_v20 = vld [vmem:[#allocation6 + $0x37] sm:$0xff] }
0x10c4   : > { %11469 = vmatpush1.bf16.msra.mxu1 %v18940_v46  ;;  %11496 = vmatprep.mubr.bf16.mxu1 %v19819_v56  ;;  %v19014_v46 = vld [vmem:[%s23563_s16 + $0x724] ss:$8 sps:$4 sm:$0xff]  }
0x10c5   : > { %11470 = vmatprep.subr.bf16.mxu1 %v18945_v43  ;;  %v19012_v43 = vld [vmem:[%s23563_s16 + $0x720] ss:$8 sps:$4 sm:$0xff]  }
0x10c8   : > { %11471 = vmatpush1.bf16.msra.mxu1 %v18943_v40  ;;  %v11693_v40 = vpack.c.bf16 %v11691_v20, %v23180_v48  ;;  %v19039_v48 = vld [vmem:[%s23563_s16 + $0x7b0] ss:$8 sps:$4 sm:$0xff]  }
0x10c9   : > { %11472 = vmatprep.subr.bf16.mxu1 %v18948_v38  ;;  %v19017_v38 = vld [vmem:[%s23563_s16 + $0x734] ss:$8 sps:$4 sm:$0xff]  }
0x10cc   : > { %11473 = vmatpush1.bf16.msra.mxu1 %v18946_v2  ;;  %v19015_v2 = vld [vmem:[%s23563_s16 + $0x730] ss:$8 sps:$4 sm:$0xff]  }
0x10cd   : > { %11474 = vmatprep.subr.bf16.mxu1 %v18951_v26  ;;  %v19020_v26 = vld [vmem:[%s23563_s16 + $0x744] ss:$8 sps:$4 sm:$0xff]  }
0x10d0   : > { %11475 = vmatpush1.bf16.msra.mxu1 %v18949_v58  ;;  %v19018_v58 = vld [vmem:[%s23563_s16 + $0x740] ss:$8 sps:$4 sm:$0xff]  }
0x10d1   : > { %11476 = vmatprep.subr.bf16.mxu1 %v18954_v50  ;;  %v19023_v50 = vld [vmem:[%s23563_s16 + $0x754] ss:$8 sps:$4 sm:$0xff]  }
0x10d4   : > { %11477 = vmatpush1.bf16.msra.mxu1 %v18952_v34  ;;  %v19021_v34 = vld [vmem:[%s23563_s16 + $0x750] ss:$8 sps:$4 sm:$0xff]  }
0x10d5   : > { %11478 = vmatprep.subr.bf16.mxu1 %v18957_v55  ;;  %v19026_v55 = vld [vmem:[%s23563_s16 + $0x764] ss:$8 sps:$4 sm:$0xff]  }
0x10d8   : > { %11479 = vmatpush1.bf16.msra.mxu1 %v18955_v17  ;;  %v19024_v17 = vld [vmem:[%s23563_s16 + $0x760] ss:$8 sps:$4 sm:$0xff]  }
0x10d9   : > { %11627 = vmatprep.subr.bf16.mxu1 %v18960_v41  ;;  %v19029_v41 = vld [vmem:[%s23563_s16 + $0x774] ss:$8 sps:$4 sm:$0xff]  }
0x10db   : > { %11497 = vmatmul.mubr.bf16.vlgmr.msra.gmra.mrb[180].mxu1 %v11366_v53  ;;  %v19035_v53 = vld [vmem:[%s23563_s16 + $0x794] ss:$8 sps:$4 sm:$0xff]  }
0x10dc   : > { %11628 = vmatpush1.bf16.msra.mxu1 %v18958_v21  ;;  %11506 = vmatprep.mubr.bf16.mxu1 %v19819_v56  ;;  %v19030_v21 = vld [vmem:[%s23563_s16 + $0x780] ss:$8 sps:$4 sm:$0xff]  }
0x10dd   : > { %11629 = vmatprep.subr.bf16.mxu1 %v18963_v9  ;;  %v19033_v9 = vld [vmem:[%s23563_s16 + $0x790] ss:$8 sps:$4 sm:$0xff]  }
0x10e0   : > { %11630 = vmatpush1.bf16.msra.mxu1 %v18961_v51  ;;  %v19038_v51 = vld [vmem:[%s23563_s16 + $0x7a4] ss:$8 sps:$4 sm:$0xff]  }
0x10e1   : > { %11631 = vmatprep.subr.bf16.mxu1 %v18966_v24  ;;  %v11853_v24 = vld [vmem:[#allocation6 + $0x30] sm:$0xff] }
0x10e2   : > { %v11856_v47 = vpack.c.bf16 %v19466_v15, %v11853_v24  ;;  %v19063_v24 = vld [vmem:[#allocation16 + $0x130] ss:$8 sps:$4 sm:$0xff]   ;;  %v19066_v15 = vld [vmem:[#allocation16 + $0x140] ss:$8 sps:$4 sm:$0xff]  }
0x10e3   : > { %11507 = vmatmul.mubr.bf16.gmra.mrb[184].mxu1 %v11367_v1  ;;  %v19042_v1 = vld [vmem:[%s23563_s16 + $0x7c0] ss:$8 sps:$4 sm:$0xff]  }
0x10e4   : > { %11632 = vmatpush1.bf16.msra.mxu1 %v18964_v45  ;;  %11659 = vmatprep.mubr.bf16.mxu1 %v19819_v56  ;;  %v19044_v45 = vld [vmem:[%s23563_s16 + $0x7c4] ss:$8 sps:$4 sm:$0xff]  }
0x10e5   : > { %11633 = vmatprep.subr.bf16.mxu1 %v18969_v42  ;;  %v19047_v42 = vld [vmem:[%s23563_s16 + $0x7d4] ss:$8 sps:$4 sm:$0xff]  }
0x10e8   : > { %11634 = vmatpush1.bf16.msra.mxu1 %v18967_v30  ;;  %v19045_v30 = vld [vmem:[%s23563_s16 + $0x7d0] ss:$8 sps:$4 sm:$0xff]  }
0x10e9   : > { %11635 = vmatprep.subr.bf16.mxu1 %v18972_v31  ;;  %v19050_v31 = vld [vmem:[%s23563_s16 + $0x7e4] ss:$8 sps:$4 sm:$0xff]  }
0x10ec   : > { %11636 = vmatpush1.bf16.msra.mxu1 %v18970_v52  ;;  %v19048_v52 = vld [vmem:[%s23563_s16 + $0x7e0] ss:$8 sps:$4 sm:$0xff]  }
0x10ed   : > { %11637 = vmatprep.subr.bf16.mxu1 %v18975_v5  ;;  %v19053_v5 = vld [vmem:[%s23563_s16 + $0x7f4] ss:$8 sps:$4 sm:$0xff]  }
0x10f0   : > { %11638 = vmatpush1.bf16.msra.mxu1 %v18973_v29  ;;  %v19051_v29 = vld [vmem:[%s23563_s16 + $0x7f0] ss:$8 sps:$4 sm:$0xff]  }
0x10f1   : > { %11639 = vmatprep.subr.bf16.mxu1 %v18978_v18  ;;  %v12014_v18 = vld [vmem:[#allocation6 + $0x21] sm:$0xff] }
0x10f4   : > { %11640 = vmatpush1.bf16.msra.mxu1 %v18976_v57  ;;  %v12015_v57 = vld [vmem:[#allocation6 + $0x29] sm:$0xff] }
0x10f5   : > { %11641 = vmatprep.subr.bf16.mxu1 %v18981_v3  ;;  %v12018_v3 = vpack.c.bf16 %v12015_v57, %v12014_v18  ;;  %v19084_v18 = vld [vmem:[#allocation16 + $0x1a0] ss:$8 sps:$4 sm:$0xff]   ;;  %v19089_v57 = vld [vmem:[#allocation16 + $0x1b4] ss:$8 sps:$4 sm:$0xff]  }
0x10f8   : > { %11642 = vmatpush1.bf16.msra.mxu1 %v18979_v14  ;;  %v12016_v14 = vld [vmem:[#allocation6 + $0x31] sm:$0xff] }
0x10f9   : > { %11790 = vmatprep.subr.bf16.mxu1 %v18984_v32  ;;  %v12017_v32 = vld [vmem:[#allocation6 + $0x39] sm:$0xff] }
0x10fb   : > { %11660 = vmatmul.mubr.bf16.vlgmr.msra.gmra.mrb[180].mxu1 %v11529_v7  ;;  %v12179_v7 = vlaneseq }
0x10fc   : > { %11791 = vmatpush1.bf16.msra.mxu1 %v18982_v39  ;;  %11669 = vmatprep.mubr.bf16.mxu1 %v19819_v56  ;;  %v12019_v39 = vpack.c.bf16 %v12017_v32, %v12016_v14  ;;  %v19092_v14 = vld [vmem:[#allocation16 + $0x1c4] ss:$8 sps:$4 sm:$0xff]   ;;  %v19090_v32 = vld [vmem:[#allocation16 + $0x1c0] ss:$8 sps:$4 sm:$0xff]  }
0x10fd   : > { %11792 = vmatprep.subr.bf16.mxu1 %v18987_v25  ;;  %v23376_v25 = vshrl.u32 %v12179_v7, 7  ;;  %v19093_v7 = vld [vmem:[#allocation16 + $0x1d0] ss:$8 sps:$4 sm:$0xff]  }
0x10ff   : > { %v12185_v59 = vsub.s32 1, %v23376_v25 }
0x1100   : > { %11793 = vmatpush1.bf16.msra.mxu1 %v18985_v19  ;;  %v12181_v19 = vsub.s32 0, %v23376_v25  ;;  %v19456_v25 = vld [vmem:[#allocation19 + $0x10] sm:$0xff]  }
0x1101   : > { %11794 = vmatprep.subr.bf16.mxu1 %v18990_v22  ;;  %v12177_v22 = vld [vmem:[%s23564_s17] sm:$0x3] }
0x1103   : > { %11670 = vmatmul.mubr.bf16.gmra.mrb[184].mxu1 %v11530_v4 }
0x1104   : > { %11795 = vmatpush1.bf16.msra.mxu1 %v18988_v35  ;;  %11822 = vmatprep.mubr.bf16.mxu1 %v19819_v56  ;;  %v12182_v35 = vrot.slane %v12177_v22, %v12181_v19 }
0x1105   : > { %11796 = vmatprep.subr.bf16.mxu1 %v18993_v23 }
0x1108   : > { %11797 = vmatpush1.bf16.msra.mxu1 %v18991_v44 }
0x1109   : > { %11798 = vmatprep.subr.bf16.mxu1 %v18996_v54 }
0x110c   : > { %11799 = vmatpush1.bf16.msra.mxu1 %v18994_v36 }
0x110d   : > { %11800 = vmatprep.subr.bf16.mxu1 %v18999_v10 }
0x1110   : > { %11801 = vmatpush1.bf16.msra.mxu1 %v18997_v63 }
0x1111   : > { %11802 = vmatprep.subr.bf16.mxu1 %v19002_v6 }
0x1114   : > { %11803 = vmatpush1.bf16.msra.mxu1 %v19000_v62 }
0x1115   : > { %11804 = vmatprep.subr.bf16.mxu1 %v19005_v12 }
0x1118   : > { %11805 = vmatpush1.bf16.msra.mxu1 %v19003_v49 }
0x1119   : > { %11953 = vmatprep.subr.bf16.mxu1 %v19008_v28 }
0x111b   : > { %11823 = vmatmul.mubr.bf16.vlgmr.msra.gmra.mrb[180].mxu1 %v11692_v37 }
0x111c   : > { %11954 = vmatpush1.bf16.msra.mxu1 %v19006_v27  ;;  %11832 = vmatprep.mubr.bf16.mxu1 %v19819_v56 }
0x111d   : > { %11955 = vmatprep.subr.bf16.mxu1 %v19011_v16 }
0x1120   : > { %11956 = vmatpush1.bf16.msra.mxu1 %v19009_v13 }
0x1121   : > { %11957 = vmatprep.subr.bf16.mxu1 %v19014_v46 }
0x1123   : > { %11833 = vmatmul.mubr.bf16.gmra.mrb[184].mxu1 %v11693_v40 }
0x1124   : > { %11958 = vmatpush1.bf16.msra.mxu1 %v19012_v43  ;;  %11985 = vmatprep.mubr.bf16.mxu1 %v19819_v56 }
0x1125   : > { %11959 = vmatprep.subr.bf16.mxu1 %v19017_v38 }
0x1128   : > { %11960 = vmatpush1.bf16.msra.mxu1 %v19015_v2 }
0x1129   : > { %11961 = vmatprep.subr.bf16.mxu1 %v19020_v26 }
0x112c   : > { %11962 = vmatpush1.bf16.msra.mxu1 %v19018_v58 }
0x112d   : > { %11963 = vmatprep.subr.bf16.mxu1 %v19023_v50 }
0x1130   : > { %11964 = vmatpush1.bf16.msra.mxu1 %v19021_v34 }
0x1131   : > { %11965 = vmatprep.subr.bf16.mxu1 %v19026_v55 }
0x1134   : > { %11966 = vmatpush1.bf16.msra.mxu1 %v19024_v17  ;;  %v19056_v17 = vld [vmem:[#allocation16 + $0x104] ss:$8 sps:$4 sm:$0xff]  }
0x1135   : > { %11967 = vmatprep.subr.bf16.mxu1 %v19029_v41  ;;  %v12205_v41 = vld [vmem:[%s23565_s18] sm:$0xff] }
0x1138   : > { %11968 = vmatpush1.bf16.msra.mxu1 %v19027_v11  ;;  %v19054_v11 = vld [vmem:[#allocation16 + $0x100] ss:$8 sps:$4 sm:$0xff]  }
0x1139   : > { %12116 = vmatprep.subr.bf16.mxu1 %v19032_v33  ;;  %v19059_v33 = vld [vmem:[#allocation16 + $0x114] ss:$8 sps:$4 sm:$0xff]  }
0x113b   : > { %11986 = vmatmul.mubr.bf16.vlgmr.msra.gmra.mrb[180].mxu1 %v11855_v8  ;;  %v19041_v8 = vld [vmem:[%s23563_s16 + $0x7b4] ss:$8 sps:$4 sm:$0xff]  }
0x113c   : > { %12117 = vmatpush1.bf16.msra.mxu1 %v19030_v21  ;;  %11995 = vmatprep.mubr.bf16.mxu1 %v19819_v56  ;;  %v19057_v21 = vld [vmem:[#allocation16 + $0x110] ss:$8 sps:$4 sm:$0xff]  }
0x113d   : > { %12118 = vmatprep.subr.bf16.mxu1 %v19035_v53  ;;  %v19062_v53 = vld [vmem:[#allocation16 + $0x124] ss:$8 sps:$4 sm:$0xff]  }
0x1140   : > { %12119 = vmatpush1.bf16.msra.mxu1 %v19033_v9  ;;  %v19060_v9 = vld [vmem:[#allocation16 + $0x120] ss:$8 sps:$4 sm:$0xff]  }
0x1141   : > { %12120 = vmatprep.subr.bf16.mxu1 %v19038_v51  ;;  %v19065_v51 = vld [vmem:[#allocation16 + $0x134] ss:$8 sps:$4 sm:$0xff]  }
0x1143   : > { %11996 = vmatmul.mubr.bf16.gmra.mrb[184].mxu1 %v11856_v47  ;;  %v19071_v47 = vld [vmem:[#allocation16 + $0x154] ss:$8 sps:$4 sm:$0xff]  }
0x1144   : > { %12121 = vmatpush1.bf16.msra.mxu1 %v19036_v60  ;;  %12148 = vmatprep.mubr.bf16.mxu1 %v19819_v56  ;;  %v19068_v60 = vld [vmem:[#allocation16 + $0x144] ss:$8 sps:$4 sm:$0xff]  }
0x1145   : > { %12122 = vmatprep.subr.bf16.mxu1 %v19041_v8  ;;  %v19069_v8 = vld [vmem:[#allocation16 + $0x150] ss:$8 sps:$4 sm:$0xff]  }
0x1148   : > { %12123 = vmatpush1.bf16.msra.mxu1 %v19039_v48  ;;  %v19074_v48 = vld [vmem:[#allocation16 + $0x164] ss:$8 sps:$4 sm:$0xff]  }
0x1149   : > { %12124 = vmatprep.subr.bf16.mxu1 %v19044_v45  ;;  %v19072_v45 = vld [vmem:[#allocation16 + $0x160] ss:$8 sps:$4 sm:$0xff]  }
0x114c   : > { %12125 = vmatpush1.bf16.msra.mxu1 %v19042_v1  ;;  %v19077_v1 = vld [vmem:[#allocation16 + $0x174] ss:$8 sps:$4 sm:$0xff]  }
0x114d   : > { %12126 = vmatprep.subr.bf16.mxu1 %v19047_v42  ;;  %v19075_v42 = vld [vmem:[#allocation16 + $0x170] ss:$8 sps:$4 sm:$0xff]  }
0x1150   : > { %12127 = vmatpush1.bf16.msra.mxu1 %v19045_v30  ;;  %v19080_v30 = vld [vmem:[#allocation16 + $0x184] ss:$8 sps:$4 sm:$0xff]  }
0x1151   : > { %12128 = vmatprep.subr.bf16.mxu1 %v19050_v31  ;;  %v19078_v31 = vld [vmem:[#allocation16 + $0x180] ss:$8 sps:$4 sm:$0xff]  }
0x1154   : > { %12129 = vmatpush1.bf16.msra.mxu1 %v19048_v52  ;;  %v19083_v52 = vld [vmem:[#allocation16 + $0x194] ss:$8 sps:$4 sm:$0xff]  }
0x1155   : > { %12130 = vmatprep.subr.bf16.mxu1 %v19053_v5  ;;  %v19081_v5 = vld [vmem:[#allocation16 + $0x190] ss:$8 sps:$4 sm:$0xff]  }
0x1158   : > { %12131 = vmatpush1.bf16.msra.mxu1 %v19051_v29  ;;  %v19086_v29 = vld [vmem:[#allocation16 + $0x1a4] ss:$8 sps:$4 sm:$0xff]  }
0x115b   : > { %12149 = vmatmul.mubr.bf16.vlgmr.msra.gmra.mrb[180].mxu1 %v12018_v3  ;;  %v19087_v3 = vld [vmem:[#allocation16 + $0x1b0] ss:$8 sps:$4 sm:$0xff]  }
0x115c   : > { %12158 = vmatprep.mubr.bf16.mxu1 %v19819_v56  ;;  %v12186_v56 = vrot.slane %v12177_v22, %v12185_v59  ;;  %v19098_v22 = vld [vmem:[#allocation16 + $0x1e4] ss:$8 sps:$4 sm:$0xff]  }
0x1163   : > { %12159 = vmatmul.mubr.bf16.gmra.mrb[184].mxu1 %v12019_v39  ;;  %v19095_v39 = vld [vmem:[#allocation16 + $0x1d4] ss:$8 sps:$4 sm:$0xff]  }
0x122e   : > { %v12150_v4 = vpop.f32.mrb[180].mxu1 }
0x122f   : > { %v12189_v23 = vadd.f32 %v12182_v35, %v12150_v4  ;;  %v12152_v44 = vpop.f32.mrb[181].mxu1  ;;  %v19099_v4 = vld [vmem:[#allocation16 + $0x1f0] ss:$8 sps:$4 sm:$0xff]  }
0x1230   : > { %v12190_v54 = vadd.f32 %v12186_v56, %v12152_v44  ;;  %v12154_v36 = vpop.f32.mrb[182].mxu1 }
0x1231   : > { %v12191_v10 = vadd.f32 %v12182_v35, %v12154_v36  ;;  %v12156_v63 = vpop.f32.mrb[183].mxu1  ;;  %v12197_v62 = vmax.f32 %v12189_v23, 0.0  ;;  %v19104_v23 = vld [vmem:[#allocation16 + $0x4] ss:$8 sps:$4 sm:$0xff]  }
0x1232   : > { %v12192_v6 = vadd.f32 %v12186_v56, %v12156_v63  ;;  %v12198_v49 = vmax.f32 %v12190_v54, 0.0 }
0x1233   : > { %v12199_v12 = vmax.f32 %v12191_v10, 0.0 }
0x1234   : > { %v12200_v28 = vmax.f32 %v12192_v6, 0.0  ;;  %v19102_v6 = vld [vmem:[#allocation16] ss:$8 sps:$4 sm:$0xff]  }
0x1235   : > { %v17910_v61 = vpack.c.bf16 %v12199_v12, %v12197_v62  ;;  %v19107_v12 = vld [vmem:[#allocation16 + $0x14] ss:$8 sps:$4 sm:$0xff]  }
0x1236   : > { %v17908_v27 = vpack.c.bf16 %v12200_v28, %v12198_v49  ;;  %v12160_v37 = vpop.f32.mrb[184].mxu1  ;;  %v19105_v49 = vld [vmem:[#allocation16 + $0x10] ss:$8 sps:$4 sm:$0xff]   ;;  %v19110_v28 = vld [vmem:[#allocation16 + $0x24] ss:$8 sps:$4 sm:$0xff]  }
0x1237   : > { %v12193_v16 = vadd.f32 %v12182_v35, %v12160_v37  ;;  %v12162_v13 = vpop.f32.mrb[185].mxu1  ;;  %v19111_v37 = vld [vmem:[#allocation16 + $0x30] ss:$8 sps:$4 sm:$0xff]  }
0x1238   : > { %v12194_v46 = vadd.f32 %v12186_v56, %v12162_v13  ;;  %v12164_v20 = vpop.f32.mrb[186].mxu1  ;;  %17909 = vmatprep.subr.bf16.mxu0 %v17908_v27  ;;  %v19113_v27 = vld [vmem:[#allocation16 + $0x34] ss:$8 sps:$4 sm:$0xff]   ;;  %v19114_v13 = vld [vmem:[#allocation16 + $0x40] ss:$8 sps:$4 sm:$0xff]  }
0x1239   : > { %v12195_v43 = vadd.f32 %v12182_v35, %v12164_v20  ;;  %v12166_v40 = vpop.f32.mrb[187].mxu1  ;;  %17911 = vmatpush1.bf16.msra.mxu0 %v17910_v61  ;;  %v12201_v2 = vmax.f32 %v12193_v16, 0.0  ;;  %v19096_v35 = vld [vmem:[#allocation16 + $0x1e0] ss:$8 sps:$4 sm:$0xff]   ;;  %v19116_v16 = vld [vmem:[#allocation16 + $0x44] ss:$8 sps:$4 sm:$0xff]  }
0x123a   : > { %v12196_v38 = vadd.f32 %v12186_v56, %v12166_v40  ;;  %v12202_v58 = vmax.f32 %v12194_v46, 0.0  ;;  %v19101_v56 = vld [vmem:[#allocation16 + $0x1f4] ss:$8 sps:$4 sm:$0xff]   ;;  %v19108_v61 = vld [vmem:[#allocation16 + $0x20] ss:$8 sps:$4 sm:$0xff]  }
0x123b   : > { %v12203_v26 = vmax.f32 %v12195_v43, 0.0  ;;  %v19119_v46 = vld [vmem:[#allocation16 + $0x54] ss:$8 sps:$4 sm:$0xff]   ;;  %v19117_v20 = vld [vmem:[#allocation16 + $0x50] ss:$8 sps:$4 sm:$0xff]  }
0x123c   : > { %v12204_v50 = vmax.f32 %v12196_v38, 0.0  ;;  %v19122_v43 = vld [vmem:[#allocation16 + $0x64] ss:$8 sps:$4 sm:$0xff]   ;;  %v19120_v40 = vld [vmem:[#allocation16 + $0x60] ss:$8 sps:$4 sm:$0xff]  }
0x123d   : > { %v17914_v34 = vpack.c.bf16 %v12203_v26, %v12201_v2  ;;  %v19125_v38 = vld [vmem:[#allocation16 + $0x74] ss:$8 sps:$4 sm:$0xff]   ;;  %v19123_v2 = vld [vmem:[#allocation16 + $0x70] ss:$8 sps:$4 sm:$0xff]   ;;  %v19128_v26 = vld [vmem:[#allocation16 + $0x84] ss:$8 sps:$4 sm:$0xff]  }
0x123e   : > { %v17912_v55 = vpack.c.bf16 %v12204_v50, %v12202_v58  ;;  %v19126_v58 = vld [vmem:[#allocation16 + $0x80] ss:$8 sps:$4 sm:$0xff]   ;;  %v19131_v50 = vld [vmem:[#allocation16 + $0x94] ss:$8 sps:$4 sm:$0xff]  }
0x1240   : > { %17913 = vmatprep.subr.bf16.mxu0 %v17912_v55  ;;  %v19134_v55 = vld [vmem:[#allocation16 + $0xa4] ss:$8 sps:$4 sm:$0xff]  }
0x1241   : > { %17915 = vmatpush1.bf16.msra.mxu0 %v17914_v34  ;;  %v19129_v34 = vld [vmem:[#allocation16 + $0x90] ss:$8 sps:$4 sm:$0xff]  }
0x1242   : > { %12514 = vmatprep.subr.bf16.mxu0 %v19056_v17  ;;  %v19132_v17 = vld [vmem:[#allocation16 + $0xa0] ss:$8 sps:$4 sm:$0xff]  }
0x1244   : > { %15477 = vmatmul.mubr.msk.f32.vlgmr.msra.gmra.mrb[30].mxu0 %vm972_vm1, %v12205_v41  ;;  %v19137_v41 = vld [vmem:[#allocation16 + $0xb4] ss:$8 sps:$4 sm:$0xff]  }
0x1245   : > { %12515 = vmatpush1.bf16.msra.mxu0 %v19054_v11  ;;  %v19135_v11 = vld [vmem:[#allocation16 + $0xb0] ss:$8 sps:$4 sm:$0xff]  }
0x1246   : > { %12516 = vmatprep.subr.bf16.mxu0 %v19059_v33  ;;  %v19140_v33 = vld [vmem:[#allocation16 + $0xc4] ss:$8 sps:$4 sm:$0xff]  }
0x1249   : > { %12517 = vmatpush1.bf16.msra.mxu0 %v19057_v21  ;;  %v19138_v21 = vld [vmem:[#allocation16 + $0xc0] ss:$8 sps:$4 sm:$0xff]  }
0x124a   : > { %12518 = vmatprep.subr.bf16.mxu0 %v19062_v53  ;;  %v19143_v53 = vld [vmem:[#allocation16 + $0xd4] ss:$8 sps:$4 sm:$0xff]  }
0x124d   : > { %12519 = vmatpush1.bf16.msra.mxu0 %v19060_v9  ;;  %v19141_v9 = vld [vmem:[#allocation16 + $0xd0] ss:$8 sps:$4 sm:$0xff]  }
0x124e   : > { %12520 = vmatprep.subr.bf16.mxu0 %v19065_v51  ;;  %v19146_v51 = vld [vmem:[#allocation16 + $0xe4] ss:$8 sps:$4 sm:$0xff]  }
0x1251   : > { %12521 = vmatpush1.bf16.msra.mxu0 %v19063_v24  ;;  %v19144_v24 = vld [vmem:[#allocation16 + $0xe0] ss:$8 sps:$4 sm:$0xff]  }
0x1252   : > { %12522 = vmatprep.subr.bf16.mxu0 %v19068_v60  ;;  %v19149_v60 = vld [vmem:[#allocation16 + $0xf4] ss:$8 sps:$4 sm:$0xff]  }
0x1255   : > { %12523 = vmatpush1.bf16.msra.mxu0 %v19066_v15  ;;  %v19147_v15 = vld [vmem:[#allocation16 + $0xf0] ss:$8 sps:$4 sm:$0xff]  }
0x1256   : > { %12524 = vmatprep.subr.bf16.mxu0 %v19071_v47  ;;  %v19152_v47 = vld [vmem:[#allocation16 + $0x204] ss:$8 sps:$4 sm:$0xff]  }
0x1259   : > { %12525 = vmatpush1.bf16.msra.mxu0 %v19069_v8  ;;  %v19150_v8 = vld [vmem:[#allocation16 + $0x200] ss:$8 sps:$4 sm:$0xff]  }
0x125a   : > { %12526 = vmatprep.subr.bf16.mxu0 %v19074_v48  ;;  %v19155_v48 = vld [vmem:[#allocation16 + $0x214] ss:$8 sps:$4 sm:$0xff]  }
0x125d   : > { %12527 = vmatpush1.bf16.msra.mxu0 %v19072_v45 }
0x125e   : > { %12528 = vmatprep.subr.bf16.mxu0 %v19077_v1  ;;  %v19153_v1 = vld [vmem:[#allocation16 + $0x210] ss:$8 sps:$4 sm:$0xff]  }
0x1261   : > { %12529 = vmatpush1.bf16.msra.mxu0 %v19075_v42  ;;  %v19158_v42 = vld [vmem:[#allocation16 + $0x224] ss:$8 sps:$4 sm:$0xff]  }
0x1262   : > { %12530 = vmatprep.subr.bf16.mxu0 %v19080_v30  ;;  %v19156_v30 = vld [vmem:[#allocation16 + $0x220] ss:$8 sps:$4 sm:$0xff]  }
0x1265   : > { %12531 = vmatpush1.bf16.msra.mxu0 %v19078_v31  ;;  %v19161_v31 = vld [vmem:[#allocation16 + $0x234] ss:$8 sps:$4 sm:$0xff]  }
0x1266   : > { %12532 = vmatprep.subr.bf16.mxu0 %v19083_v52  ;;  %v19159_v52 = vld [vmem:[#allocation16 + $0x230] ss:$8 sps:$4 sm:$0xff]  }
0x1269   : > { %12533 = vmatpush1.bf16.msra.mxu0 %v19081_v5  ;;  %v19164_v5 = vld [vmem:[#allocation16 + $0x244] ss:$8 sps:$4 sm:$0xff]  }
0x126a   : > { %12534 = vmatprep.subr.bf16.mxu0 %v19086_v29  ;;  %v19162_v29 = vld [vmem:[#allocation16 + $0x240] ss:$8 sps:$4 sm:$0xff]  }
0x126d   : > { %12535 = vmatpush1.bf16.msra.mxu0 %v19084_v18  ;;  %v19167_v18 = vld [vmem:[#allocation16 + $0x254] ss:$8 sps:$4 sm:$0xff]  }
0x126e   : > { %12536 = vmatprep.subr.bf16.mxu0 %v19089_v57  ;;  %v19165_v57 = vld [vmem:[#allocation16 + $0x250] ss:$8 sps:$4 sm:$0xff]  }
0x1271   : > { %12537 = vmatpush1.bf16.msra.mxu0 %v19087_v3  ;;  %v19170_v3 = vld [vmem:[#allocation16 + $0x264] ss:$8 sps:$4 sm:$0xff]  }
0x1272   : > { %12538 = vmatprep.subr.bf16.mxu0 %v19092_v14  ;;  %v19168_v14 = vld [vmem:[#allocation16 + $0x260] ss:$8 sps:$4 sm:$0xff]  }
0x1275   : > { %12539 = vmatpush1.bf16.msra.mxu0 %v19090_v32  ;;  %v19173_v32 = vld [vmem:[#allocation16 + $0x274] ss:$8 sps:$4 sm:$0xff]  }
0x1276   : > { %12540 = vmatprep.subr.bf16.mxu0 %v19095_v39  ;;  %v19171_v39 = vld [vmem:[#allocation16 + $0x270] ss:$8 sps:$4 sm:$0xff]  }
0x1279   : > { %12541 = vmatpush1.bf16.msra.mxu0 %v19093_v7  ;;  %v19176_v7 = vld [vmem:[#allocation16 + $0x284] ss:$8 sps:$4 sm:$0xff]  }
0x127a   : > { %12542 = vmatprep.subr.bf16.mxu0 %v19098_v22  ;;  %v19174_v22 = vld [vmem:[#allocation16 + $0x280] ss:$8 sps:$4 sm:$0xff]  }
0x127d   : > { %12543 = vmatpush1.bf16.msra.mxu0 %v19096_v35  ;;  %v19179_v35 = vld [vmem:[#allocation16 + $0x294] ss:$8 sps:$4 sm:$0xff]  }
0x127e   : > { %12544 = vmatprep.subr.bf16.mxu0 %v19101_v56  ;;  %v19177_v56 = vld [vmem:[#allocation16 + $0x290] ss:$8 sps:$4 sm:$0xff]  }
0x1281   : > { %12545 = vmatpush1.bf16.msra.mxu0 %v19099_v4  ;;  %v19182_v4 = vld [vmem:[#allocation16 + $0x2a4] ss:$8 sps:$4 sm:$0xff]  }
0x1282   : > { %12715 = vmatprep.subr.bf16.mxu0 %v19104_v23  ;;  %v19180_v23 = vld [vmem:[#allocation16 + $0x2a0] ss:$8 sps:$4 sm:$0xff]  }
0x1317   : > { %v12275_v44 = vpop.f32.mrb[30].mxu0 }
0x1318   : > { %v23391_v54 = vpack.c.bf16 %v12275_v44, %v12275_v44  ;;  %v12277_v36 = vpop.f32.mrb[31].mxu0  ;;  %v19185_v44 = vld [vmem:[#allocation16 + $0x2b4] ss:$8 sps:$4 sm:$0xff]  }
0x1319   : > { %v23393_v10 = vpack.c.bf16 %v12277_v36, %v12277_v36  ;;  %v19183_v36 = vld [vmem:[#allocation16 + $0x2b0] ss:$8 sps:$4 sm:$0xff]  }
0x131a   : > { %v23399_v62 = vshrl.u32 %v23391_v54, 16 }
0x131b   : > { %v23396_v63 = vshrl.u32 %v23393_v10, 16  ;;  %v12791_v45 = vrot.slane %v23393_v10, 1 }
0x131d   : > { %12546 = vmatprep.mubr.bf16.mxu0 %v23396_v63 }
0x131e   : > { %12547 = vmatmul.mubr.bf16.vlgmr.msra.gmra.mrb[32].mxu0 %v23399_v62 }
0x131f   : > { %12716 = vmatpush1.bf16.msra.mxu0 %v19102_v6  ;;  %12747 = vmatprep.mubr.bf16.mxu0 %v23393_v10  ;;  %v19188_v6 = vld [vmem:[#allocation16 + $0x2c4] ss:$8 sps:$4 sm:$0xff]  }
0x1320   : > { %12717 = vmatprep.subr.bf16.mxu0 %v19107_v12  ;;  %v19186_v12 = vld [vmem:[#allocation16 + $0x2c0] ss:$8 sps:$4 sm:$0xff]  }
0x1323   : > { %12718 = vmatpush1.bf16.msra.mxu0 %v19105_v49  ;;  %v19191_v49 = vld [vmem:[#allocation16 + $0x2d4] ss:$8 sps:$4 sm:$0xff]  }
0x1324   : > { %12719 = vmatprep.subr.bf16.mxu0 %v19110_v28  ;;  %v19189_v28 = vld [vmem:[#allocation16 + $0x2d0] ss:$8 sps:$4 sm:$0xff]  }
0x1327   : > { %12720 = vmatpush1.bf16.msra.mxu0 %v19108_v61  ;;  %v19194_v61 = vld [vmem:[#allocation16 + $0x2e4] ss:$8 sps:$4 sm:$0xff]  }
0x1328   : > { %12721 = vmatprep.subr.bf16.mxu0 %v19113_v27  ;;  %v19192_v27 = vld [vmem:[#allocation16 + $0x2e0] ss:$8 sps:$4 sm:$0xff]  }
0x132b   : > { %12722 = vmatpush1.bf16.msra.mxu0 %v19111_v37  ;;  %v19197_v37 = vld [vmem:[#allocation16 + $0x2f4] ss:$8 sps:$4 sm:$0xff]  }
0x132c   : > { %12723 = vmatprep.subr.bf16.mxu0 %v19116_v16  ;;  %v19195_v16 = vld [vmem:[#allocation16 + $0x2f0] ss:$8 sps:$4 sm:$0xff]  }
0x132f   : > { %12724 = vmatpush1.bf16.msra.mxu0 %v19114_v13  ;;  %v19200_v13 = vld [vmem:[#allocation16 + $0x304] ss:$8 sps:$4 sm:$0xff]  }
0x1330   : > { %12725 = vmatprep.subr.bf16.mxu0 %v19119_v46  ;;  %v19198_v46 = vld [vmem:[#allocation16 + $0x300] ss:$8 sps:$4 sm:$0xff]  }
0x1333   : > { %12726 = vmatpush1.bf16.msra.mxu0 %v19117_v20  ;;  %v12790_v20 = vrot.slane %v23391_v54, 1 }
0x1334   : > { %12727 = vmatprep.subr.bf16.mxu0 %v19122_v43  ;;  %v19203_v43 = vld [vmem:[#allocation16 + $0x314] ss:$8 sps:$4 sm:$0xff]  }
0x1337   : > { %12728 = vmatpush1.bf16.msra.mxu0 %v19120_v40  ;;  %v13030_v40 = vrot.slane %v23396_v63, 1 }
0x1338   : > { %12729 = vmatprep.subr.bf16.mxu0 %v19125_v38  ;;  %v19201_v38 = vld [vmem:[#allocation16 + $0x310] ss:$8 sps:$4 sm:$0xff]  }
0x133b   : > { %12730 = vmatpush1.bf16.msra.mxu0 %v19123_v2  ;;  %v19206_v2 = vld [vmem:[#allocation16 + $0x324] ss:$8 sps:$4 sm:$0xff]  }
0x133c   : > { %12731 = vmatprep.subr.bf16.mxu0 %v19128_v26  ;;  %v19204_v26 = vld [vmem:[#allocation16 + $0x320] ss:$8 sps:$4 sm:$0xff]  }
0x133f   : > { %12732 = vmatpush1.bf16.msra.mxu0 %v19126_v58  ;;  %v19209_v58 = vld [vmem:[#allocation16 + $0x334] ss:$8 sps:$4 sm:$0xff]  }
0x1340   : > { %12733 = vmatprep.subr.bf16.mxu0 %v19131_v50  ;;  %v19207_v50 = vld [vmem:[#allocation16 + $0x330] ss:$8 sps:$4 sm:$0xff]  }
0x1343   : > { %12734 = vmatpush1.bf16.msra.mxu0 %v19129_v34  ;;  %v19212_v34 = vld [vmem:[#allocation16 + $0x344] ss:$8 sps:$4 sm:$0xff]  }
0x1344   : > { %12735 = vmatprep.subr.bf16.mxu0 %v19134_v55  ;;  %v19210_v55 = vld [vmem:[#allocation16 + $0x340] ss:$8 sps:$4 sm:$0xff]  }
0x1347   : > { %12736 = vmatpush1.bf16.msra.mxu0 %v19132_v17  ;;  %v19215_v17 = vld [vmem:[#allocation16 + $0x354] ss:$8 sps:$4 sm:$0xff]  }
0x1348   : > { %12737 = vmatprep.subr.bf16.mxu0 %v19137_v41  ;;  %v19213_v41 = vld [vmem:[#allocation16 + $0x350] ss:$8 sps:$4 sm:$0xff]  }
0x134b   : > { %12738 = vmatpush1.bf16.msra.mxu0 %v19135_v11  ;;  %v19218_v11 = vld [vmem:[#allocation16 + $0x364] ss:$8 sps:$4 sm:$0xff]  }
0x134c   : > { %12739 = vmatprep.subr.bf16.mxu0 %v19140_v33  ;;  %v19216_v33 = vld [vmem:[#allocation16 + $0x360] ss:$8 sps:$4 sm:$0xff]  }
0x134f   : > { %12740 = vmatpush1.bf16.msra.mxu0 %v19138_v21  ;;  %v19221_v21 = vld [vmem:[#allocation16 + $0x374] ss:$8 sps:$4 sm:$0xff]  }
0x1350   : > { %12741 = vmatprep.subr.bf16.mxu0 %v19143_v53  ;;  %v19219_v53 = vld [vmem:[#allocation16 + $0x370] ss:$8 sps:$4 sm:$0xff]  }
0x1353   : > { %12742 = vmatpush1.bf16.msra.mxu0 %v19141_v9  ;;  %v19224_v9 = vld [vmem:[#allocation16 + $0x384] ss:$8 sps:$4 sm:$0xff]  }
0x1354   : > { %12743 = vmatprep.subr.bf16.mxu0 %v19146_v51  ;;  %v19222_v51 = vld [vmem:[#allocation16 + $0x380] ss:$8 sps:$4 sm:$0xff]  }
0x1357   : > { %12744 = vmatpush1.bf16.msra.mxu0 %v19144_v24  ;;  %v19227_v24 = vld [vmem:[#allocation16 + $0x394] ss:$8 sps:$4 sm:$0xff]  }
0x1358   : > { %12745 = vmatprep.subr.bf16.mxu0 %v19149_v60  ;;  %v19225_v60 = vld [vmem:[#allocation16 + $0x390] ss:$8 sps:$4 sm:$0xff]  }
0x135b   : > { %12746 = vmatpush1.bf16.msra.mxu0 %v19147_v15  ;;  %v19230_v15 = vld [vmem:[#allocation16 + $0x3a4] ss:$8 sps:$4 sm:$0xff]  }
0x135c   : > { %12954 = vmatprep.subr.bf16.mxu0 %v19152_v47  ;;  %v19228_v47 = vld [vmem:[#allocation16 + $0x3a0] ss:$8 sps:$4 sm:$0xff]  }
0x135e   : > { %12748 = vmatmul.mubr.bf16.vlgmr.msra.gmra.mrb[36].mxu0 %v23391_v54 }
0x135f   : > { %12955 = vmatpush1.bf16.msra.mxu0 %v19150_v8  ;;  %12986 = vmatprep.mubr.bf16.mxu0 %v12791_v45  ;;  %v19233_v8 = vld [vmem:[#allocation16 + $0x3b4] ss:$8 sps:$4 sm:$0xff]   ;;  %v19236_v45 = vld [vmem:[#allocation16 + $0x3c4] ss:$8 sps:$4 sm:$0xff]  }
0x1360   : > { %12956 = vmatprep.subr.bf16.mxu0 %v19155_v48  ;;  %v19231_v48 = vld [vmem:[#allocation16 + $0x3b0] ss:$8 sps:$4 sm:$0xff]  }
0x1363   : > { %12957 = vmatpush1.bf16.msra.mxu0 %v19153_v1  ;;  %v19234_v1 = vld [vmem:[#allocation16 + $0x3c0] ss:$8 sps:$4 sm:$0xff]  }
0x1364   : > { %12958 = vmatprep.subr.bf16.mxu0 %v19158_v42  ;;  %v19239_v42 = vld [vmem:[#allocation16 + $0x3d4] ss:$8 sps:$4 sm:$0xff]  }
0x1367   : > { %12959 = vmatpush1.bf16.msra.mxu0 %v19156_v30  ;;  %v19237_v30 = vld [vmem:[#allocation16 + $0x3d0] ss:$8 sps:$4 sm:$0xff]  }
0x1368   : > { %12960 = vmatprep.subr.bf16.mxu0 %v19161_v31  ;;  %v19242_v31 = vld [vmem:[#allocation16 + $0x3e4] ss:$8 sps:$4 sm:$0xff]  }
0x136b   : > { %12961 = vmatpush1.bf16.msra.mxu0 %v19159_v52  ;;  %v19240_v52 = vld [vmem:[#allocation16 + $0x3e0] ss:$8 sps:$4 sm:$0xff]  }
0x136c   : > { %12962 = vmatprep.subr.bf16.mxu0 %v19164_v5  ;;  %v19245_v5 = vld [vmem:[#allocation16 + $0x3f4] ss:$8 sps:$4 sm:$0xff]  }
0x136f   : > { %12963 = vmatpush1.bf16.msra.mxu0 %v19162_v29  ;;  %v19243_v29 = vld [vmem:[#allocation16 + $0x3f0] ss:$8 sps:$4 sm:$0xff]  }
0x1370   : > { %12964 = vmatprep.subr.bf16.mxu0 %v19167_v18  ;;  %v19248_v18 = vld [vmem:[#allocation16 + $0x404] ss:$8 sps:$4 sm:$0xff]  }
0x1373   : > { %12965 = vmatpush1.bf16.msra.mxu0 %v19165_v57  ;;  %v19246_v57 = vld [vmem:[#allocation16 + $0x400] ss:$8 sps:$4 sm:$0xff]  }
0x1374   : > { %12966 = vmatprep.subr.bf16.mxu0 %v19170_v3  ;;  %v13029_v3 = vrot.slane %v23399_v62, 1 }
0x1377   : > { %12967 = vmatpush1.bf16.msra.mxu0 %v19168_v14  ;;  %v19251_v14 = vld [vmem:[#allocation16 + $0x414] ss:$8 sps:$4 sm:$0xff]  }
0x1378   : > { %12968 = vmatprep.subr.bf16.mxu0 %v19173_v32  ;;  %v13269_v32 = vrot.slane %v23393_v10, 2 }
0x137b   : > { %12969 = vmatpush1.bf16.msra.mxu0 %v19171_v39  ;;  %v19249_v39 = vld [vmem:[#allocation16 + $0x410] ss:$8 sps:$4 sm:$0xff]  }
0x137c   : > { %12970 = vmatprep.subr.bf16.mxu0 %v19176_v7  ;;  %v19254_v7 = vld [vmem:[#allocation16 + $0x424] ss:$8 sps:$4 sm:$0xff]  }
0x137f   : > { %12971 = vmatpush1.bf16.msra.mxu0 %v19174_v22  ;;  %v19252_v22 = vld [vmem:[#allocation16 + $0x420] ss:$8 sps:$4 sm:$0xff]  }
0x1380   : > { %12972 = vmatprep.subr.bf16.mxu0 %v19179_v35  ;;  %v19257_v35 = vld [vmem:[#allocation16 + $0x434] ss:$8 sps:$4 sm:$0xff]  }
0x1383   : > { %12973 = vmatpush1.bf16.msra.mxu0 %v19177_v56  ;;  %v19255_v56 = vld [vmem:[#allocation16 + $0x430] ss:$8 sps:$4 sm:$0xff]  }
0x1384   : > { %12974 = vmatprep.subr.bf16.mxu0 %v19182_v4  ;;  %v19260_v4 = vld [vmem:[#allocation16 + $0x444] ss:$8 sps:$4 sm:$0xff]  }
0x1387   : > { %12975 = vmatpush1.bf16.msra.mxu0 %v19180_v23  ;;  %v19258_v23 = vld [vmem:[#allocation16 + $0x440] ss:$8 sps:$4 sm:$0xff]  }
0x1388   : > { %12976 = vmatprep.subr.bf16.mxu0 %v19185_v44  ;;  %v19263_v44 = vld [vmem:[#allocation16 + $0x454] ss:$8 sps:$4 sm:$0xff]  }
0x138b   : > { %12977 = vmatpush1.bf16.msra.mxu0 %v19183_v36  ;;  %v19261_v36 = vld [vmem:[#allocation16 + $0x450] ss:$8 sps:$4 sm:$0xff]  }
0x138c   : > { %12978 = vmatprep.subr.bf16.mxu0 %v19188_v6  ;;  %v19266_v6 = vld [vmem:[#allocation16 + $0x464] ss:$8 sps:$4 sm:$0xff]  }
0x138f   : > { %12979 = vmatpush1.bf16.msra.mxu0 %v19186_v12 }
0x1390   : > { %12980 = vmatprep.subr.bf16.mxu0 %v19191_v49 }
0x1393   : > { %12981 = vmatpush1.bf16.msra.mxu0 %v19189_v28  ;;  %v19264_v28 = vld [vmem:[#allocation16 + $0x460] ss:$8 sps:$4 sm:$0xff]  }
0x1394   : > { %12982 = vmatprep.subr.bf16.mxu0 %v19194_v61 }
0x1397   : > { %12983 = vmatpush1.bf16.msra.mxu0 %v19192_v27  ;;  %v19269_v27 = vld [vmem:[#allocation16 + $0x474] ss:$8 sps:$4 sm:$0xff]  }
0x1398   : > { %12984 = vmatprep.subr.bf16.mxu0 %v19197_v37 }
0x139b   : > { %12985 = vmatpush1.bf16.msra.mxu0 %v19195_v16  ;;  %v19267_v16 = vld [vmem:[#allocation16 + $0x470] ss:$8 sps:$4 sm:$0xff]  }
0x139c   : > { %13193 = vmatprep.subr.bf16.mxu0 %v19200_v13  ;;  %v19272_v13 = vld [vmem:[#allocation16 + $0x484] ss:$8 sps:$4 sm:$0xff]  }
0x139e   : > { %12987 = vmatmul.mubr.bf16.vlgmr.msra.gmra.mrb[40].mxu0 %v12790_v20  ;;  %v19275_v20 = vld [vmem:[#allocation16 + $0x494] ss:$8 sps:$4 sm:$0xff]  }
0x139f   : > { %13194 = vmatpush1.bf16.msra.mxu0 %v19198_v46  ;;  %13225 = vmatprep.mubr.bf16.mxu0 %v13030_v40  ;;  %v19270_v46 = vld [vmem:[#allocation16 + $0x480] ss:$8 sps:$4 sm:$0xff]   ;;  %v19278_v40 = vld [vmem:[#allocation16 + $0x4a4] ss:$8 sps:$4 sm:$0xff]  }
0x13a0   : > { %13195 = vmatprep.subr.bf16.mxu0 %v19203_v43  ;;  %v19273_v43 = vld [vmem:[#allocation16 + $0x490] ss:$8 sps:$4 sm:$0xff]  }
0x13a3   : > { %13196 = vmatpush1.bf16.msra.mxu0 %v19201_v38  ;;  %v19276_v38 = vld [vmem:[#allocation16 + $0x4a0] ss:$8 sps:$4 sm:$0xff]  }
0x13a4   : > { %13197 = vmatprep.subr.bf16.mxu0 %v19206_v2  ;;  %v19281_v2 = vld [vmem:[#allocation16 + $0x4b4] ss:$8 sps:$4 sm:$0xff]  }
0x13a7   : > { %13198 = vmatpush1.bf16.msra.mxu0 %v19204_v26  ;;  %v19279_v26 = vld [vmem:[#allocation16 + $0x4b0] ss:$8 sps:$4 sm:$0xff]  }
0x13a8   : > { %13199 = vmatprep.subr.bf16.mxu0 %v19209_v58  ;;  %v19284_v58 = vld [vmem:[#allocation16 + $0x4c4] ss:$8 sps:$4 sm:$0xff]  }
0x13ab   : > { %13200 = vmatpush1.bf16.msra.mxu0 %v19207_v50  ;;  %v19282_v50 = vld [vmem:[#allocation16 + $0x4c0] ss:$8 sps:$4 sm:$0xff]  }
0x13ac   : > { %13201 = vmatprep.subr.bf16.mxu0 %v19212_v34  ;;  %v19287_v34 = vld [vmem:[#allocation16 + $0x4d4] ss:$8 sps:$4 sm:$0xff]  }
0x13af   : > { %13202 = vmatpush1.bf16.msra.mxu0 %v19210_v55  ;;  %v19285_v55 = vld [vmem:[#allocation16 + $0x4d0] ss:$8 sps:$4 sm:$0xff]  }
0x13b0   : > { %13203 = vmatprep.subr.bf16.mxu0 %v19215_v17  ;;  %v19290_v17 = vld [vmem:[#allocation16 + $0x4e4] ss:$8 sps:$4 sm:$0xff]  }
0x13b3   : > { %13204 = vmatpush1.bf16.msra.mxu0 %v19213_v41  ;;  %v19288_v41 = vld [vmem:[#allocation16 + $0x4e0] ss:$8 sps:$4 sm:$0xff]  }
0x13b4   : > { %13205 = vmatprep.subr.bf16.mxu0 %v19218_v11  ;;  %v19293_v11 = vld [vmem:[#allocation16 + $0x4f4] ss:$8 sps:$4 sm:$0xff]  }
0x13b7   : > { %13206 = vmatpush1.bf16.msra.mxu0 %v19216_v33  ;;  %v19291_v33 = vld [vmem:[#allocation16 + $0x4f0] ss:$8 sps:$4 sm:$0xff]  }
0x13b8   : > { %13207 = vmatprep.subr.bf16.mxu0 %v19221_v21  ;;  %v19296_v21 = vld [vmem:[#allocation16 + $0x504] ss:$8 sps:$4 sm:$0xff]  }
0x13bb   : > { %13208 = vmatpush1.bf16.msra.mxu0 %v19219_v53  ;;  %v19294_v53 = vld [vmem:[#allocation16 + $0x500] ss:$8 sps:$4 sm:$0xff]  }
0x13bc   : > { %13209 = vmatprep.subr.bf16.mxu0 %v19224_v9  ;;  %v13268_v9 = vrot.slane %v23391_v54, 2 }
0x13bf   : > { %13210 = vmatpush1.bf16.msra.mxu0 %v19222_v51  ;;  %v19299_v51 = vld [vmem:[#allocation16 + $0x514] ss:$8 sps:$4 sm:$0xff]  }
0x13c0   : > { %13211 = vmatprep.subr.bf16.mxu0 %v19227_v24  ;;  %v13508_v24 = vrot.slane %v23396_v63, 2 }
0x13c3   : > { %13212 = vmatpush1.bf16.msra.mxu0 %v19225_v60  ;;  %v19297_v60 = vld [vmem:[#allocation16 + $0x510] ss:$8 sps:$4 sm:$0xff]  }
0x13c4   : > { %13213 = vmatprep.subr.bf16.mxu0 %v19230_v15  ;;  %v19302_v15 = vld [vmem:[#allocation16 + $0x524] ss:$8 sps:$4 sm:$0xff]  }
0x13c7   : > { %13214 = vmatpush1.bf16.msra.mxu0 %v19228_v47  ;;  %v19300_v47 = vld [vmem:[#allocation16 + $0x520] ss:$8 sps:$4 sm:$0xff]  }
0x13c8   : > { %13215 = vmatprep.subr.bf16.mxu0 %v19233_v8  ;;  %v19305_v8 = vld [vmem:[#allocation16 + $0x534] ss:$8 sps:$4 sm:$0xff]  }
0x13cb   : > { %13216 = vmatpush1.bf16.msra.mxu0 %v19231_v48  ;;  %v19303_v48 = vld [vmem:[#allocation16 + $0x530] ss:$8 sps:$4 sm:$0xff]  }
0x13cc   : > { %13217 = vmatprep.subr.bf16.mxu0 %v19236_v45  ;;  %v19308_v45 = vld [vmem:[#allocation16 + $0x544] ss:$8 sps:$4 sm:$0xff]  }
0x13cf   : > { %13218 = vmatpush1.bf16.msra.mxu0 %v19234_v1  ;;  %v19306_v1 = vld [vmem:[#allocation16 + $0x540] ss:$8 sps:$4 sm:$0xff]  }
0x13d0   : > { %13219 = vmatprep.subr.bf16.mxu0 %v19239_v42  ;;  %v19311_v42 = vld [vmem:[#allocation16 + $0x554] ss:$8 sps:$4 sm:$0xff]  }
0x13d3   : > { %13220 = vmatpush1.bf16.msra.mxu0 %v19237_v30  ;;  %v19309_v30 = vld [vmem:[#allocation16 + $0x550] ss:$8 sps:$4 sm:$0xff]  }
0x13d4   : > { %13221 = vmatprep.subr.bf16.mxu0 %v19242_v31  ;;  %v19314_v31 = vld [vmem:[#allocation16 + $0x564] ss:$8 sps:$4 sm:$0xff]  }
0x13d7   : > { %13222 = vmatpush1.bf16.msra.mxu0 %v19240_v52 }
0x13d8   : > { %13223 = vmatprep.subr.bf16.mxu0 %v19245_v5 }
0x13db   : > { %13224 = vmatpush1.bf16.msra.mxu0 %v19243_v29 }
0x13dc   : > { %13432 = vmatprep.subr.bf16.mxu0 %v19248_v18 }
0x13de   : > { %13226 = vmatmul.mubr.bf16.vlgmr.msra.gmra.mrb[44].mxu0 %v13029_v3  ;;  %v19312_v3 = vld [vmem:[#allocation16 + $0x560] ss:$8 sps:$4 sm:$0xff]  }
0x13df   : > { %13433 = vmatpush1.bf16.msra.mxu0 %v19246_v57  ;;  %13464 = vmatprep.mubr.bf16.mxu0 %v13269_v32  ;;  %v19317_v32 = vld [vmem:[#allocation16 + $0x574] ss:$8 sps:$4 sm:$0xff]  }
0x13e0   : > { %13434 = vmatprep.subr.bf16.mxu0 %v19251_v14 }
0x13e3   : > { %13435 = vmatpush1.bf16.msra.mxu0 %v19249_v39  ;;  %v19315_v39 = vld [vmem:[#allocation16 + $0x570] ss:$8 sps:$4 sm:$0xff]  }
0x13e4   : > { %13436 = vmatprep.subr.bf16.mxu0 %v19254_v7  ;;  %v19320_v7 = vld [vmem:[#allocation16 + $0x584] ss:$8 sps:$4 sm:$0xff]  }
0x13e7   : > { %13437 = vmatpush1.bf16.msra.mxu0 %v19252_v22  ;;  %v19318_v22 = vld [vmem:[#allocation16 + $0x580] ss:$8 sps:$4 sm:$0xff]  }
0x13e8   : > { %13438 = vmatprep.subr.bf16.mxu0 %v19257_v35  ;;  %v19323_v35 = vld [vmem:[#allocation16 + $0x594] ss:$8 sps:$4 sm:$0xff]  }
0x13eb   : > { %13439 = vmatpush1.bf16.msra.mxu0 %v19255_v56  ;;  %v19321_v56 = vld [vmem:[#allocation16 + $0x590] ss:$8 sps:$4 sm:$0xff]  }
0x13ec   : > { %13440 = vmatprep.subr.bf16.mxu0 %v19260_v4  ;;  %v19326_v4 = vld [vmem:[#allocation16 + $0x5a4] ss:$8 sps:$4 sm:$0xff]  }
0x13ef   : > { %13441 = vmatpush1.bf16.msra.mxu0 %v19258_v23  ;;  %v19324_v23 = vld [vmem:[#allocation16 + $0x5a0] ss:$8 sps:$4 sm:$0xff]  }
0x13f0   : > { %13442 = vmatprep.subr.bf16.mxu0 %v19263_v44  ;;  %v19329_v44 = vld [vmem:[#allocation16 + $0x5b4] ss:$8 sps:$4 sm:$0xff]  }
0x13f1   : > { %v23410_v12 = vpop.f32.mrb[32].mxu0 }
0x13f2   : > { %v23412_v49 = vpop.f32.mrb[33].mxu0 }
0x13f3   : > { %13443 = vmatpush1.bf16.msra.mxu0 %v19261_v36  ;;  %v12552_v61 = vpop.f32.mrb[34].mxu0  ;;  %v19327_v36 = vld [vmem:[#allocation16 + $0x5b0] ss:$8 sps:$4 sm:$0xff]  }
0x13f4   : > { %13444 = vmatprep.subr.bf16.mxu0 %v19266_v6  ;;  %v12553_v37 = vpop.f32.mrb[35].mxu0  ;;  %v19332_v6 = vld [vmem:[#allocation16 + $0x5c4] ss:$8 sps:$4 sm:$0xff]  }
0x13f5   : > { %v19338_v61 = vld [vmem:[#allocation16 + $0x5e4] ss:$8 sps:$4 sm:$0xff]   ;;  %v19341_v37 = vld [vmem:[#allocation16 + $0x5f4] ss:$8 sps:$4 sm:$0xff]  }
0x13f7   : > { %13445 = vmatpush1.bf16.msra.mxu0 %v19264_v28  ;;  %v19333_v28 = vld [vmem:[#allocation16 + $0x5d0] ss:$8 sps:$4 sm:$0xff]  }
0x13f8   : > { %13446 = vmatprep.subr.bf16.mxu0 %v19269_v27  ;;  %v19336_v27 = vld [vmem:[#allocation16 + $0x5e0] ss:$8 sps:$4 sm:$0xff]  }
0x13fb   : > { %13447 = vmatpush1.bf16.msra.mxu0 %v19267_v16  ;;  %v19339_v16 = vld [vmem:[#allocation16 + $0x5f0] ss:$8 sps:$4 sm:$0xff]  }
0x13fc   : > { %13448 = vmatprep.subr.bf16.mxu0 %v19272_v13  ;;  %v19344_v13 = vld [vmem:[#allocation16 + $0x604] ss:$8 sps:$4 sm:$0xff]  }
0x13ff   : > { %13449 = vmatpush1.bf16.msra.mxu0 %v19270_v46  ;;  %v19342_v46 = vld [vmem:[#allocation16 + $0x600] ss:$8 sps:$4 sm:$0xff]  }
0x1400   : > { %13450 = vmatprep.subr.bf16.mxu0 %v19275_v20  ;;  %v13507_v20 = vrot.slane %v23399_v62, 2 }
0x1403   : > { %13451 = vmatpush1.bf16.msra.mxu0 %v19273_v43  ;;  %v19347_v43 = vld [vmem:[#allocation16 + $0x614] ss:$8 sps:$4 sm:$0xff]  }
0x1404   : > { %13452 = vmatprep.subr.bf16.mxu0 %v19278_v40  ;;  %v13747_v40 = vrot.slane %v23393_v10, 3  ;;  %v19357_v10 = vld [vmem:[#allocation16 + $0x650] ss:$8 sps:$4 sm:$0xff]  }
0x1407   : > { %13453 = vmatpush1.bf16.msra.mxu0 %v19276_v38  ;;  %v19345_v38 = vld [vmem:[#allocation16 + $0x610] ss:$8 sps:$4 sm:$0xff]  }
0x1408   : > { %13454 = vmatprep.subr.bf16.mxu0 %v19281_v2  ;;  %v19350_v2 = vld [vmem:[#allocation16 + $0x624] ss:$8 sps:$4 sm:$0xff]  }
0x140b   : > { %13455 = vmatpush1.bf16.msra.mxu0 %v19279_v26  ;;  %v19348_v26 = vld [vmem:[#allocation16 + $0x620] ss:$8 sps:$4 sm:$0xff]  }
0x140c   : > { %13456 = vmatprep.subr.bf16.mxu0 %v19284_v58  ;;  %v19353_v58 = vld [vmem:[#allocation16 + $0x634] ss:$8 sps:$4 sm:$0xff]  }
0x140f   : > { %13457 = vmatpush1.bf16.msra.mxu0 %v19282_v50  ;;  %v19351_v50 = vld [vmem:[#allocation16 + $0x630] ss:$8 sps:$4 sm:$0xff]  }
0x1410   : > { %13458 = vmatprep.subr.bf16.mxu0 %v19287_v34  ;;  %v19356_v34 = vld [vmem:[#allocation16 + $0x644] ss:$8 sps:$4 sm:$0xff]  }
0x1413   : > { %13459 = vmatpush1.bf16.msra.mxu0 %v19285_v55  ;;  %v19354_v55 = vld [vmem:[#allocation16 + $0x640] ss:$8 sps:$4 sm:$0xff]  }
0x1414   : > { %13460 = vmatprep.subr.bf16.mxu0 %v19290_v17  ;;  %v19359_v17 = vld [vmem:[#allocation16 + $0x654] ss:$8 sps:$4 sm:$0xff]  }
0x1417   : > { %13461 = vmatpush1.bf16.msra.mxu0 %v19288_v41  ;;  %v19362_v41 = vld [vmem:[#allocation16 + $0x664] ss:$8 sps:$4 sm:$0xff]  }
0x1418   : > { %13462 = vmatprep.subr.bf16.mxu0 %v19293_v11 }
0x141b   : > { %13463 = vmatpush1.bf16.msra.mxu0 %v19291_v33 }
0x141c   : > { %13671 = vmatprep.subr.bf16.mxu0 %v19296_v21 }
0x141e   : > { %13465 = vmatmul.mubr.bf16.vlgmr.msra.gmra.mrb[48].mxu0 %v13268_v9 }
0x141f   : > { %13672 = vmatpush1.bf16.msra.mxu0 %v19294_v53  ;;  %13703 = vmatprep.mubr.bf16.mxu0 %v13508_v24 }
0x1420   : > { %13673 = vmatprep.subr.bf16.mxu0 %v19299_v51  ;;  %v19360_v51 = vld [vmem:[#allocation16 + $0x660] ss:$8 sps:$4 sm:$0xff]  }
0x1423   : > { %13674 = vmatpush1.bf16.msra.mxu0 %v19297_v60  ;;  %v19365_v60 = vld [vmem:[#allocation16 + $0x674] ss:$8 sps:$4 sm:$0xff]  }
0x1424   : > { %13675 = vmatprep.subr.bf16.mxu0 %v19302_v15  ;;  %v19363_v15 = vld [vmem:[#allocation16 + $0x670] ss:$8 sps:$4 sm:$0xff]  }
0x1427   : > { %13676 = vmatpush1.bf16.msra.mxu0 %v19300_v47  ;;  %v19368_v47 = vld [vmem:[#allocation16 + $0x684] ss:$8 sps:$4 sm:$0xff]  }
0x1428   : > { %13677 = vmatprep.subr.bf16.mxu0 %v19305_v8  ;;  %v19366_v8 = vld [vmem:[#allocation16 + $0x680] ss:$8 sps:$4 sm:$0xff]  }
0x142b   : > { %13678 = vmatpush1.bf16.msra.mxu0 %v19303_v48  ;;  %v19371_v48 = vld [vmem:[#allocation16 + $0x694] ss:$8 sps:$4 sm:$0xff]  }
0x142c   : > { %13679 = vmatprep.subr.bf16.mxu0 %v19308_v45  ;;  %v19369_v45 = vld [vmem:[#allocation16 + $0x690] ss:$8 sps:$4 sm:$0xff]  }
0x142f   : > { %13680 = vmatpush1.bf16.msra.mxu0 %v19306_v1  ;;  %v19374_v1 = vld [vmem:[#allocation16 + $0x6a4] ss:$8 sps:$4 sm:$0xff]  }
0x1430   : > { %13681 = vmatprep.subr.bf16.mxu0 %v19311_v42  ;;  %v19372_v42 = vld [vmem:[#allocation16 + $0x6a0] ss:$8 sps:$4 sm:$0xff]  }
0x1431   : > { %v12749_v52 = vpop.f32.mrb[36].mxu0 }
0x1432   : > { %v23417_v5 = vadd.f32 %v12749_v52, %v23410_v12  ;;  %v12751_v29 = vpop.f32.mrb[37].mxu0  ;;  %v19330_v12 = vld [vmem:[#allocation16 + $0x5c0] ss:$8 sps:$4 sm:$0xff]   ;;  %v19380_v52 = vld [vmem:[#allocation16 + $0x6c4] ss:$8 sps:$4 sm:$0xff]  }
0x1433   : > { %v23420_v18 = vadd.f32 %v12751_v29, %v23412_v49  ;;  %v12753_v57 = vpop.f32.mrb[38].mxu0  ;;  %13682 = vmatpush1.bf16.msra.mxu0 %v19309_v30  ;;  %v19335_v49 = vld [vmem:[#allocation16 + $0x5d4] ss:$8 sps:$4 sm:$0xff]  }
0x1434   : > { %v12754_v14 = vpop.f32.mrb[39].mxu0  ;;  %13683 = vmatprep.subr.bf16.mxu0 %v19314_v31  ;;  %v19377_v30 = vld [vmem:[#allocation16 + $0x6b4] ss:$8 sps:$4 sm:$0xff]   ;;  %v19375_v31 = vld [vmem:[#allocation16 + $0x6b0] ss:$8 sps:$4 sm:$0xff]  }
0x1435   : > { %v19383_v29 = vld [vmem:[#allocation16 + $0x6d4] ss:$8 sps:$4 sm:$0xff]   ;;  %v19386_v57 = vld [vmem:[#allocation16 + $0x6e4] ss:$8 sps:$4 sm:$0xff]  }
0x1436   : > { %v19389_v14 = vld [vmem:[#allocation16 + $0x6f4] ss:$8 sps:$4 sm:$0xff]  }
0x1437   : > { %13684 = vmatpush1.bf16.msra.mxu0 %v19312_v3  ;;  %v19384_v3 = vld [vmem:[#allocation16 + $0x6e0] ss:$8 sps:$4 sm:$0xff]  }
0x1438   : > { %13685 = vmatprep.subr.bf16.mxu0 %v19317_v32  ;;  %v19387_v32 = vld [vmem:[#allocation16 + $0x6f0] ss:$8 sps:$4 sm:$0xff]  }
0x143b   : > { %13686 = vmatpush1.bf16.msra.mxu0 %v19315_v39  ;;  %v19392_v39 = vld [vmem:[#allocation16 + $0x704] ss:$8 sps:$4 sm:$0xff]  }
0x143c   : > { %13687 = vmatprep.subr.bf16.mxu0 %v19320_v7  ;;  %v19390_v7 = vld [vmem:[#allocation16 + $0x700] ss:$8 sps:$4 sm:$0xff]  }
0x143f   : > { %13688 = vmatpush1.bf16.msra.mxu0 %v19318_v22  ;;  %v13746_v22 = vrot.slane %v23391_v54, 3  ;;  %v19402_v54 = vld [vmem:[#allocation16 + $0x740] ss:$8 sps:$4 sm:$0xff]  }
0x1440   : > { %13689 = vmatprep.subr.bf16.mxu0 %v19323_v35  ;;  %v19395_v35 = vld [vmem:[#allocation16 + $0x714] ss:$8 sps:$4 sm:$0xff]  }
0x1443   : > { %13690 = vmatpush1.bf16.msra.mxu0 %v19321_v56  ;;  %v13986_v56 = vrot.slane %v23396_v63, 3  ;;  %v19405_v63 = vld [vmem:[#allocation16 + $0x750] ss:$8 sps:$4 sm:$0xff]  }
0x1444   : > { %13691 = vmatprep.subr.bf16.mxu0 %v19326_v4  ;;  %v19393_v4 = vld [vmem:[#allocation16 + $0x710] ss:$8 sps:$4 sm:$0xff]  }
0x1447   : > { %13692 = vmatpush1.bf16.msra.mxu0 %v19324_v23  ;;  %v19398_v23 = vld [vmem:[#allocation16 + $0x724] ss:$8 sps:$4 sm:$0xff]  }
0x1448   : > { %13693 = vmatprep.subr.bf16.mxu0 %v19329_v44  ;;  %v19396_v44 = vld [vmem:[#allocation16 + $0x720] ss:$8 sps:$4 sm:$0xff]  }
0x144b   : > { %13694 = vmatpush1.bf16.msra.mxu0 %v19327_v36  ;;  %v19401_v36 = vld [vmem:[#allocation16 + $0x734] ss:$8 sps:$4 sm:$0xff]  }
0x144c   : > { %13695 = vmatprep.subr.bf16.mxu0 %v19332_v6  ;;  %v19399_v6 = vld [vmem:[#allocation16 + $0x730] ss:$8 sps:$4 sm:$0xff]  }
0x144f   : > { %13696 = vmatpush1.bf16.msra.mxu0 %v19330_v12  ;;  %v19404_v12 = vld [vmem:[#allocation16 + $0x744] ss:$8 sps:$4 sm:$0xff]  }
0x1450   : > { %13697 = vmatprep.subr.bf16.mxu0 %v19335_v49  ;;  %v19407_v49 = vld [vmem:[#allocation16 + $0x754] ss:$8 sps:$4 sm:$0xff]  }
0x1453   : > { %13698 = vmatpush1.bf16.msra.mxu0 %v19333_v28  ;;  %v19410_v28 = vld [vmem:[#allocation16 + $0x764] ss:$8 sps:$4 sm:$0xff]  }
0x1454   : > { %13699 = vmatprep.subr.bf16.mxu0 %v19338_v61 }
0x1457   : > { %13700 = vmatpush1.bf16.msra.mxu0 %v19336_v27 }
0x1458   : > { %13701 = vmatprep.subr.bf16.mxu0 %v19341_v37 }
0x145b   : > { %13702 = vmatpush1.bf16.msra.mxu0 %v19339_v16 }
0x145c   : > { %13910 = vmatprep.subr.bf16.mxu0 %v19344_v13 }
0x145e   : > { %13704 = vmatmul.mubr.bf16.vlgmr.msra.gmra.mrb[52].mxu0 %v13507_v20 }
0x145f   : > { %13911 = vmatpush1.bf16.msra.mxu0 %v19342_v46  ;;  %13942 = vmatprep.mubr.bf16.mxu0 %v13747_v40  ;;  %v19408_v46 = vld [vmem:[#allocation16 + $0x760] ss:$8 sps:$4 sm:$0xff]   ;;  %v19411_v40 = vld [vmem:[#allocation16 + $0x770] ss:$8 sps:$4 sm:$0xff]  }
0x1460   : > { %13912 = vmatprep.subr.bf16.mxu0 %v19347_v43  ;;  %v19413_v43 = vld [vmem:[#allocation16 + $0x774] ss:$8 sps:$4 sm:$0xff]  }
0x1463   : > { %13913 = vmatpush1.bf16.msra.mxu0 %v19345_v38  ;;  %v19416_v38 = vld [vmem:[#allocation16 + $0x784] ss:$8 sps:$4 sm:$0xff]  }
0x1464   : > { %13914 = vmatprep.subr.bf16.mxu0 %v19350_v2  ;;  %v19414_v2 = vld [vmem:[#allocation16 + $0x780] ss:$8 sps:$4 sm:$0xff]  }
0x1467   : > { %13915 = vmatpush1.bf16.msra.mxu0 %v19348_v26  ;;  %v19419_v26 = vld [vmem:[#allocation16 + $0x794] ss:$8 sps:$4 sm:$0xff]  }
0x1468   : > { %13916 = vmatprep.subr.bf16.mxu0 %v19353_v58  ;;  %v19417_v58 = vld [vmem:[#allocation16 + $0x790] ss:$8 sps:$4 sm:$0xff]  }
0x146b   : > { %13917 = vmatpush1.bf16.msra.mxu0 %v19351_v50  ;;  %v19422_v50 = vld [vmem:[#allocation16 + $0x7a4] ss:$8 sps:$4 sm:$0xff]  }
0x146c   : > { %13918 = vmatprep.subr.bf16.mxu0 %v19356_v34  ;;  %v19420_v34 = vld [vmem:[#allocation16 + $0x7a0] ss:$8 sps:$4 sm:$0xff]  }
0x146f   : > { %13919 = vmatpush1.bf16.msra.mxu0 %v19354_v55  ;;  %v19425_v55 = vld [vmem:[#allocation16 + $0x7b4] ss:$8 sps:$4 sm:$0xff]  }
0x1470   : > { %13920 = vmatprep.subr.bf16.mxu0 %v19359_v17  ;;  %v19423_v17 = vld [vmem:[#allocation16 + $0x7b0] ss:$8 sps:$4 sm:$0xff]  }
0x1471   : > { %v12988_v11 = vpop.f32.mrb[40].mxu0 }
0x1472   : > { %v23425_v33 = vadd.f32 %v12988_v11, %v23417_v5  ;;  %v12990_v21 = vpop.f32.mrb[41].mxu0  ;;  %v19378_v5 = vld [vmem:[#allocation16 + $0x6c0] ss:$8 sps:$4 sm:$0xff]   ;;  %v19431_v11 = vld [vmem:[#allocation16 + $0x7d4] ss:$8 sps:$4 sm:$0xff]  }
0x1473   : > { %v23428_v53 = vadd.f32 %v12990_v21, %v23420_v18  ;;  %v12992_v9 = vpop.f32.mrb[42].mxu0  ;;  %13921 = vmatpush1.bf16.msra.mxu0 %v19357_v10  ;;  %v19381_v18 = vld [vmem:[#allocation16 + $0x6d0] ss:$8 sps:$4 sm:$0xff]   ;;  %v19428_v10 = vld [vmem:[#allocation16 + $0x7c4] ss:$8 sps:$4 sm:$0xff]  }
0x1474   : > { %v12993_v24 = vpop.f32.mrb[43].mxu0  ;;  %13922 = vmatprep.subr.bf16.mxu0 %v19362_v41  ;;  %v19426_v41 = vld [vmem:[#allocation16 + $0x7c0] ss:$8 sps:$4 sm:$0xff]   ;;  %v19434_v21 = vld [vmem:[#allocation16 + $0x7e4] ss:$8 sps:$4 sm:$0xff]  }
0x1475   : > { %v19437_v9 = vld [vmem:[#allocation16 + $0x7f4] ss:$8 sps:$4 sm:$0xff]   ;;  %v13985_v24 = vrot.slane %v23399_v62, 3 }
0x1476   : > { %v19441_v62 = vld [vmem:[%s23659_s20 + $0x8] sm:$0xff]  }
0x1477   : > { %13923 = vmatpush1.bf16.msra.mxu0 %v19360_v51  ;;  %v19435_v51 = vld [vmem:[#allocation16 + $0x7f0] ss:$8 sps:$4 sm:$0xff]  }
0x1478   : > { %13924 = vmatprep.subr.bf16.mxu0 %v19365_v60 }
0x147b   : > { %13925 = vmatpush1.bf16.msra.mxu0 %v19363_v15 }
0x147c   : > { %13926 = vmatprep.subr.bf16.mxu0 %v19368_v47 }
0x147f   : > { %13927 = vmatpush1.bf16.msra.mxu0 %v19366_v8 }
0x1480   : > { %13928 = vmatprep.subr.bf16.mxu0 %v19371_v48 }
0x1483   : > { %13929 = vmatpush1.bf16.msra.mxu0 %v19369_v45 }
0x1484   : > { %13930 = vmatprep.subr.bf16.mxu0 %v19374_v1  ;;  %v19438_v1 = vld [vmem:[%s23658_s30 + $0x40] sm:$0xff]   ;;  %s14513_s30 = sshll.u32 %s879_s28, 4  ;;  %s23507_s30 = int_to_ptr.vmem [resolvable:$true] %s14513_s30 }
0x1485   : > { %16330 = vmatprep.subr.bf16.mxu1 %v19438_v1  ;;  %s19719_s3 = scalar_lea.vmem %s23507_s30, 16 }
0x1486   : > { %p19720_p8 = scmp.ne.s32.totalorder %s23507_s30, %s19719_s3 }
0x1487   : > { %13931 = vmatpush1.bf16.msra.mxu0 %v19372_v42  ;;  %v19439_v42 = vld [vmem:[%s23659_s20] sm:$0xff]  }
0x1488   : > { %13932 = vmatprep.subr.bf16.mxu0 %v19377_v30  ;;  %v19440_v30 = vld [vmem:[%s23659_s20 + $0x48] sm:$0xff]   ;;  %16331 = vmatpush3.bf16.msra.mxu1 %v19439_v42  ;;  %p19721_p5 = pnand %p19720_p8, %p23664_p11 }
0x1489   : > { %16332 = vmatprep.subr.bf16.mxu1 %v19440_v30 }
0x148a   : > { %p19722_p6 = pneg %p19721_p5 }
0x148b   : > { %13933 = vmatpush1.bf16.msra.mxu0 %v19375_v31  ;;  %v19442_v31 = vld [vmem:[%s23659_s20 + $0x50] sm:$0xff]  }
0x148c   : > { %13934 = vmatprep.subr.bf16.mxu0 %v19380_v52  ;;  %16333 = vmatpush3.bf16.msra.mxu1 %v19441_v62  ;;  %v19443_v52 = vld [vmem:[%s23659_s20 + $0x10] sm:$0xff]  }
0x148d   : > { %16334 = vmatprep.subr.bf16.mxu1 %v19442_v31 }
0x148f   : > { %13935 = vmatpush1.bf16.msra.mxu0 %v19378_v5  ;;  %v19444_v5 = vld [vmem:[%s23659_s20 + $0x58] sm:$0xff]  }
0x1490   : > { %13936 = vmatprep.subr.bf16.mxu0 %v19383_v29  ;;  %16335 = vmatpush3.bf16.msra.mxu1 %v19443_v52  ;;  %v19445_v29 = vld [vmem:[%s23659_s20 + $0x18] sm:$0xff]  }
0x1491   : > { %16336 = vmatprep.subr.bf16.mxu1 %v19444_v5 }
0x1493   : > { %13937 = vmatpush1.bf16.msra.mxu0 %v19381_v18  ;;  %v19446_v18 = vld [vmem:[%s23659_s20 + $0x60] sm:$0xff]  }
0x1494   : > { %13938 = vmatprep.subr.bf16.mxu0 %v19386_v57  ;;  %16337 = vmatpush3.bf16.msra.mxu1 %v19445_v29  ;;  %v19447_v57 = vld [vmem:[%s23659_s20 + $0x20] sm:$0xff]  }
0x1495   : > { %16338 = vmatprep.subr.bf16.mxu1 %v19446_v18 }
0x1497   : > { %13939 = vmatpush1.bf16.msra.mxu0 %v19384_v3  ;;  %v19448_v3 = vld [vmem:[%s23659_s20 + $0x68] sm:$0xff]  }
0x1498   : > { %13940 = vmatprep.subr.bf16.mxu0 %v19389_v14  ;;  %16339 = vmatpush3.bf16.msra.mxu1 %v19447_v57  ;;  %v19449_v14 = vld [vmem:[%s23659_s20 + $0x28] sm:$0xff]  }
0x1499   : > { %16340 = vmatprep.subr.bf16.mxu1 %v19448_v3 }
0x149b   : > { %13941 = vmatpush1.bf16.msra.mxu0 %v19387_v32 }
0x149c   : > { %14149 = vmatprep.subr.bf16.mxu0 %v19392_v39  ;;  %16341 = vmatpush3.bf16.msra.mxu1 %v19449_v14 }
0x149e   : > { %13943 = vmatmul.mubr.bf16.vlgmr.msra.gmra.mrb[56].mxu0 %v13746_v22  ;;  %v19450_v22 = vld [vmem:[%s23659_s20 + $0x70] sm:$0xff]  }
0x149f   : > { %14150 = vmatpush1.bf16.msra.mxu0 %v19390_v7  ;;  %14181 = vmatprep.mubr.bf16.mxu0 %v13986_v56 }
0x14a0   : > { %14151 = vmatprep.subr.bf16.mxu0 %v19395_v35  ;;  %16342 = vmatprep.subr.bf16.mxu1 %v19450_v22 }
0x14a3   : > { %14152 = vmatpush1.bf16.msra.mxu0 %v19393_v4  ;;  %v19451_v4 = vld [vmem:[%s23659_s20 + $0x30] sm:$0xff]  }
0x14a4   : > { %14153 = vmatprep.subr.bf16.mxu0 %v19398_v23  ;;  %16343 = vmatpush3.bf16.msra.mxu1 %v19451_v4 }
0x14a7   : > { %14154 = vmatpush1.bf16.msra.mxu0 %v19396_v44  ;;  %v19452_v44 = vld [vmem:[%s23659_s20 + $0x78] sm:$0xff]  }
0x14a8   : > { %14155 = vmatprep.subr.bf16.mxu0 %v19401_v36  ;;  %v19453_v36 = vld [vmem:[%s23659_s20 + $0x38] sm:$0xff]   ;;  %16344 = vmatprep.subr.bf16.mxu1 %v19452_v44 }
0x14a9   : > { %16345 = vmatpush3.bf16.msra.mxu1 %v19453_v36 }
0x14aa   : > { %17788 = vmatprep.subr.bf16.mxu1 %v19816_v0 }
0x14ab   : > { %14156 = vmatpush1.bf16.msra.mxu0 %v19399_v6 }
0x14ac   : > { %14157 = vmatprep.subr.bf16.mxu0 %v19404_v12 }
0x14af   : > { %14158 = vmatpush1.bf16.msra.mxu0 %v19402_v54 }
0x14b0   : > { %14159 = vmatprep.subr.bf16.mxu0 %v19407_v49 }
0x14b1   : > { %v13227_v61 = vpop.f32.mrb[44].mxu0 }
0x14b2   : > { %v13234_v27 = vadd.f32 %v13227_v61, %v23425_v33  ;;  %v13229_v37 = vpop.f32.mrb[45].mxu0  ;;  %v19429_v33 = vld [vmem:[#allocation16 + $0x7d0] ss:$8 sps:$4 sm:$0xff]   ;;  %v14192_v61 = vld [vmem:[%s23660_s5] sm:$0x3]  ;;  %s19723_s5 = sshll.u32 %s19820_s7, 4  ;;  %s19724_s5 = int_to_ptr.vmem [resolvable:$false] %s19723_s5 }
0x14b3   : > { %v13235_v16 = vadd.f32 %v13229_v37, %v23428_v53  ;;  %v13231_v13 = vpop.f32.mrb[46].mxu0  ;;  %14160 = vmatpush1.bf16.msra.mxu0 %v19405_v63  ;;  %v19432_v53 = vld [vmem:[#allocation16 + $0x7e0] ss:$8 sps:$4 sm:$0xff]   ;;  %s19725_s2 = scalar_lea.vmem %s19724_s5, 32  ;;  %p19726_p0 = scmp.lt.s32.totalorder %s23507_s30, %s19724_s5 }
0x14b4   : > { %v13232_v20 = vpop.f32.mrb[47].mxu0  ;;  %14161 = vmatprep.subr.bf16.mxu0 %v19410_v28  ;;  %p19727_p9 = scmp.lt.s32.totalorder %s19725_s2, %s19719_s3 }
0x14b6   : > { %p19728_p10 = por %p19727_p9, %p19726_p0 }
0x14b7   : > { %14162 = vmatpush1.bf16.msra.mxu0 %v19408_v46 }
0x14b8   : > { %14163 = vmatprep.subr.bf16.mxu0 %v19413_v43  ;;  %p19729_p13 = pnand %p19728_p10, %p19722_p6 }
0x14bb   : > { %14164 = vmatpush1.bf16.msra.mxu0 %v19411_v40 }
0x14bc   : > { %14165 = vmatprep.subr.bf16.mxu0 %v19416_v38 }
0x14bf   : > { %14166 = vmatpush1.bf16.msra.mxu0 %v19414_v2 }
0x14c0   : > { %14167 = vmatprep.subr.bf16.mxu0 %v19419_v26 }
0x14c3   : > { %14168 = vmatpush1.bf16.msra.mxu0 %v19417_v58 }
0x14c4   : > { %14169 = vmatprep.subr.bf16.mxu0 %v19422_v50 }
0x14c7   : > { %14170 = vmatpush1.bf16.msra.mxu0 %v19420_v34  ;;  %v19454_v34 = vld [vmem:[#allocation19] sm:$0xff]  }
0x14c8   : > { %14171 = vmatprep.subr.bf16.mxu0 %v19425_v55 }
0x14cb   : > { %14172 = vmatpush1.bf16.msra.mxu0 %v19423_v17  ;;  %v19458_v17 = vld [vmem:[#allocation19 + $0x20] sm:$0xff]  }
0x14cc   : > { %14173 = vmatprep.subr.bf16.mxu0 %v19428_v10  ;;  %v19459_v10 = vld [vmem:[#allocation19 + $0x28] sm:$0xff]  }
0x14cf   : > { %14174 = vmatpush1.bf16.msra.mxu0 %v19426_v41  ;;  %v19460_v41 = vld [vmem:[#allocation19 + $0x30] sm:$0xff]  }
0x14d0   : > { %14175 = vmatprep.subr.bf16.mxu0 %v19431_v11  ;;  %v19461_v11 = vld [vmem:[#allocation19 + $0x38] sm:$0xff]  }
0x14d3   : > { %14176 = vmatpush1.bf16.msra.mxu0 %v19429_v33 }
0x14d4   : > { %14177 = vmatprep.subr.bf16.mxu0 %v19434_v21  ;;  %v14242_v21 = vld [vmem:[#allocation18] sm:$0x1] }
0x14d7   : > { %14178 = vmatpush1.bf16.msra.mxu0 %v19432_v53 }
0x14d8   : > { %14179 = vmatprep.subr.bf16.mxu0 %v19437_v9 }
0x14db   : > { %14180 = vmatpush1.bf16.msra.mxu0 %v19435_v51 }
0x14de   : > { %14182 = vmatmul.mubr.bf16.vlgmr.msra.gmra.mrb[60].mxu0 %v13985_v24 }
0x14f1   : > { %v13466_v60 = vpop.f32.mrb[48].mxu0 }
0x14f2   : > { %v13473_v15 = vadd.f32 %v13466_v60, %v13234_v27  ;;  %v13468_v47 = vpop.f32.mrb[49].mxu0  ;;  %v14197_v27 = vrot.slane %v14192_v61, %v12181_v19  ;;  %v19455_v19 = vld [vmem:[#allocation19 + $0x8] sm:$0xff]  }
0x14f3   : > { %v13474_v8 = vadd.f32 %v13468_v47, %v13235_v16  ;;  %v13470_v48 = vpop.f32.mrb[50].mxu0  ;;  %v14201_v16 = vrot.slane %v14192_v61, %v12185_v59  ;;  %v19457_v59 = vld [vmem:[#allocation19 + $0x18] sm:$0xff]  }
0x14f4   : > { %v13471_v45 = vpop.f32.mrb[51].mxu0 }
0x1531   : > { %v13705_v32 = vpop.f32.mrb[52].mxu0 }
0x1532   : > { %v13712_v39 = vadd.f32 %v13705_v32, %v13473_v15  ;;  %v13707_v7 = vpop.f32.mrb[53].mxu0 }
0x1533   : > { %v13713_v35 = vadd.f32 %v13707_v7, %v13474_v8  ;;  %v13709_v56 = vpop.f32.mrb[54].mxu0  ;;  %v14397_v8 = vld [vmem:[#allocation21] sm:$0x1] }
0x1534   : > { %v13710_v23 = vpop.f32.mrb[55].mxu0 }
0x1571   : > { %v13944_v6 = vpop.f32.mrb[56].mxu0 }
0x1572   : > { %v13951_v12 = vadd.f32 %v13944_v6, %v13712_v39  ;;  %v13946_v54 = vpop.f32.mrb[57].mxu0 }
0x1573   : > { %v13952_v49 = vadd.f32 %v13946_v54, %v13713_v35  ;;  %v13948_v63 = vpop.f32.mrb[58].mxu0 }
0x1574   : > { %v13949_v28 = vpop.f32.mrb[59].mxu0 }
0x15b1   : > { %v14183_v37 = vpop.f32.mrb[60].mxu0 }
0x15b2   : > { %v14190_v13 = vadd.f32 %v14183_v37, %v13951_v12  ;;  %v14185_v46 = vpop.f32.mrb[61].mxu0 }
0x15b3   : > { %v14191_v20 = vadd.f32 %v14185_v46, %v13952_v49  ;;  %v14187_v43 = vpop.f32.mrb[62].mxu0 }
0x15b4   : > { %v14204_v40 = vadd.f32 %v14197_v27, %v14190_v13  ;;  %v14188_v38 = vpop.f32.mrb[63].mxu0 }
0x15b5   : > { %v14205_v2 = vadd.f32 %v14201_v16, %v14191_v20 }
0x15b6   : > { %v14206_v26 = vmax.f32 %v14204_v40, 0.0 }
0x15b7   : > { %v14207_v58 = vmax.f32 %v14205_v2, 0.0 }
0x15b8   : > { %v14208_v55 = vpack.c.bf16 %v14206_v26, %v14206_v26 }
0x15b9   : > { %v14209_v50 = vpack.c.bf16 %v14207_v58, %v14207_v58 }
0x15bb   : > { %14371 = vmatprep.mubr.bf16.mxu1 %v14209_v50 }
0x15bc   : > { %14372 = vmatmul.mubr.bf16.vlgmr.msra.gmra.mrb[188].mxu1 %v14208_v55 }
0x15bd   : > { %17789 = vmatpush3.bf16.msra.mxu1 %v19454_v34  ;;  %17804 = vmatprep.mubr.msk.bf16.mxu1 %vm19817_vm0, %v19816_v0 }
0x15be   : > { %17790 = vmatprep.subr.bf16.mxu1 %v19816_v0 }
0x15c1   : > { %17791 = vmatpush3.bf16.msra.mxu1 %v19455_v19 }
0x15c2   : > { %17792 = vmatprep.subr.bf16.mxu1 %v19816_v0 }
0x15c5   : > { %17793 = vmatpush3.bf16.msra.mxu1 %v19456_v25 }
0x15c6   : > { %17794 = vmatprep.subr.bf16.mxu1 %v19816_v0 }
0x15c9   : > { %17795 = vmatpush3.bf16.msra.mxu1 %v19457_v59 }
0x15ca   : > { %17796 = vmatprep.subr.bf16.mxu1 %v19816_v0 }
0x15cd   : > { %17797 = vmatpush3.bf16.msra.mxu1 %v19458_v17 }
0x15ce   : > { %17798 = vmatprep.subr.bf16.mxu1 %v19816_v0 }
0x15d1   : > { %17799 = vmatpush3.bf16.msra.mxu1 %v19459_v10 }
0x15d2   : > { %17800 = vmatprep.subr.bf16.mxu1 %v19816_v0 }
0x15d5   : > { %17801 = vmatpush3.bf16.msra.mxu1 %v19460_v41 }
0x15d6   : > { %17802 = vmatprep.subr.bf16.mxu1 %v19816_v0 }
0x15d9   : > { %17803 = vmatpush3.bf16.msra.mxu1 %v19461_v11 }
0x168f   : > { %v16346_v33 = vpop.f32.mrb[188].mxu1 }
0x1690   : > { %v16347_v53 = vpop.f32.mrb[189].mxu1 }
0x1691   : > { %v16348_v9 = vadd.f32 %v16347_v53, %v16346_v33  ;;  %v16349_v51 = vpop.f32.mrb[190].mxu1 }
0x1692   : > { %v16350_v24 = vpop.f32.mrb[191].mxu1 }
0x1693   : > { %v14374_v60 = vadd.f32 %v16348_v9, %v14242_v21 }
0x1695   : > { %v14379_v15 = vmax.f32 %v14374_v60, 0.0 }
0x1697   : > { %v14380_v47 = vpack.c.bf16 %v14379_v15, %v14379_v15 }
0x1699   : > { %17805 = vmatmul.mubr.bf16.vlgmr.msra.gmra.mrb[192].mxu1 %v14380_v47 }
0x176c   : > { %v14480_v48 = vpop.f32.mrb[192].mxu1 }
0x176d   : > { %v14481_v45 = vadd.f32 %v14480_v48, %v14397_v8  ;;  %v17806_v1 = vpop.f32.mrb[193].mxu1 }
0x176e   : > { %v14483_v0 = vpop.f32.mrb[194].mxu1 }
0x176f   : > { %v17807_v42 = vpop.f32.mrb[195].mxu1  ;;  %v14487_v30 = vsel %vm14486_vm5, %v14481_v45, -inf }
0x1770   : > { %14488 = vmax.xlane.f32.xlu0 %v14487_v30 }
0x17fd   : > { %v14489_v62 = vpop.xlane.xlu0 %14488 }
0x17fe   : > { %v14490_v31 = vsub.f32 %v14481_v45, %v14489_v62 }
0x1800   : > { %v14491_v52 = vmul.f32 1.442695, %v14490_v31 }
0x1802   : > { %19462 = vpow2.f32 %v14491_v52 }
0x180c   : > { %v19463_v5 = vpop.eup %19462 }
0x180d   : > { %v14493_v29 = vsel %vm14486_vm5, %v19463_v5, 0.0 }
0x180e   : > { %14494 = vadd.xlane.f32.xlu0 %v14493_v29 }
0x189b   : > { %v14495_v18 = vpop.xlane.xlu0 %14494 }
0x189c   : > { %19464 = vlog2.f32 %v14495_v18 }
0x18a6   : > { %v19465_v57 = vpop.eup %19464 }
0x18a7   : > { %v14497_v3 = vmul.f32 0.6931472, %v19465_v57 }
0x18a9   : > { %v14498_v14 = vsub.f32 %v14490_v31, %v14497_v3 }
0x18ab   : > { %14499 = vst [vmem:[%s879_s28] sm:$0x1] %v14498_v14 }
0x18ac   : > { %19732 = shalt.err (!%p19729_p13)
}
0x18ad   : > { %s19733_s29 = scalar_lea.hbm %s23505_s27, 16  ;;  %s19737_s6 = scalar_lea.hbm %s23663_s8, 32 }
0x18ae   : > { %p19734_p12 = scmp.ne.s32.totalorder %s23505_s27, %s19733_s29  ;;  %p19738_p3 = scmp.lt.u32.totalorder %s23505_s27, %s23663_s8 }
0x18af   : > { %p19739_p4 = scmp.lt.u32.totalorder %s19737_s6, %s19733_s29  ;;  %p19741_p8 = scmp.lt.u32.totalorder %s19733_s29, %s23505_s27 }
0x18b0   : > { %p19735_p1 = pnand %p19734_p12, %p23664_p11 }
0x18b1   : > { %p19740_p7 = por %p19739_p4, %p19738_p3 }
0x18b2   : > { %p19736_p2 = pneg %p19735_p1 }
0x18b3   : > { %p19742_p5 = por %p19741_p8, %p19740_p7 }
0x18b5   : > { %p19743_p6 = pnand %p19742_p5, %p19736_p2 }
0x18b7   : > { %19746 = shalt.err (!%p19743_p6)
}
0x18b8   : > { %18313 = dma.vmem_to_hbm [thread:$0]  (%p23664_p11), %s23507_s30, 16, %s23505_s27, %s14501_s9  }
0x18b9 PF: > { %s23665_s3 = sld [smem:[#allocation32_spill]]  ;;  %s23666_s5 = sld [smem:[#allocation29_spill]] }
0x18ba   : > { %s23667_s2 = sld [smem:[#allocation36_spill]] }
0x18bf   : > { %p18365_p0 = scmp.ge.s32.totalorder %s23665_s3, 2  ;;  %s14525_s1 = sand.u32 1, %s23666_s5  }
0x18c0   : > { %p23668_p9 = scmp.ne.s32.totalorder %s23667_s2, 0  ;;  %s14526_s28 = scalar_lea.sflag [#allocation9], %s14525_s1 }
0x18c2   : > { %p18344_p10 = pnand %p18365_p0, %p23668_p9 }
0x18c4   : > { %19784 = dma.done.wait (!%p18344_p10), %s14526_s28, 16  }
0x18c5   : > { %19786 = vsyncadd (!%p18344_p10), %s14526_s28, 4294967280  ;;  %s23669_s30 = sld [smem:[#allocation33_spill]]  ;;  %s23670_s29 = sld [smem:[#allocation30_spill]] }
0x18c6   : > { %s23671_s2 = sld [smem:[#allocation31_spill]]  ;;  %s23672_s6 = sld [smem:[#allocation34_spill]] }
0x18cb   : > { %p40_p13 = scmp.ge.s32.totalorder %s23669_s30, 4  }
0x18cd   :  { %42 = sbr.rel (!%p40_p13) target bundleno = 24 (0x18), region = 192 }
0x18d4   :  { %14530 = vsyncpa [#allocation8], 1 }
0x18d5   :  { %14532 = vsyncpa [#allocation8 + $0x1], 1 }
0x18d6   :  { %14533 = vsyncpa [#allocation11], 1 }
0x18d7   :  { %14534 = vsyncpa [#allocation14], 1 }
0x18d8   :  { %14535 = vsyncpa [#allocation17], 1 }
0x18d9   :  { %14536 = vsyncpa [#allocation20], 1 }
0x18da   :  { %14537 = vsyncpa [#allocation9], 1 }
0x18db   :  { %14539 = vsyncpa [#allocation9 + $0x1], 1 }

</bundles_post_ra>
